<compile_context>
chip_gen: v6e
topology: v6e:2x2x1
jax: 0.10.0
libtpu: 0.0.40
codegen_flags: <defaults>
</compile_context>

<pallas_src>
import jax
import jax.numpy as jnp
from jax.experimental import pallas as pl
from jax.experimental.pallas import tpu as pltpu


def _round_up(x, m):
    return (x + m - 1) // m * m


STACK = 4                       # Agent.stack_size()
OBS = 275                       # Agent.observation_size()
LIDAR = 270
L1 = (LIDAR - 7) // 3 + 1       # 88  (Conv1d k=7, s=3)
L2 = (L1 - 5) // 2 + 1          # 42  (Conv1d k=5, s=2)
C1, C2 = 16, 32
H1F = L1 * C1                   # 1408 (time-major conv1 activation, already 11*128)
H2F = L2 * C2                   # 1344 (time-major conv2 activation)
H2P = _round_up(H2F, 128)       # 1408: conv2 activation padded lane-dense
NSTREAM = 32 + 16 + 32          # 80
NSP = 128                       # merged-streams width padded to one lane tile
OUTP = 128                      # output head padded to one lane tile
RAW = STACK * OBS               # 1100


# ---------------------------------------------------------------- fused kernel ----

def _fused_kernel(x_ref, m1_ref, b1_ref, m2_ref, b2_ref, wl_ref, bl_ref,
                  ws_ref, bs_ref, wo1a_ref, wo1s_ref, bo1_ref, wo2_ref, bo2_ref,
                  out_ref):
    relu = lambda v: jnp.maximum(v, 0.0)
    bf16 = jnp.bfloat16

    def mm(a, w_ref):
        return jnp.dot(a, w_ref[...], preferred_element_type=jnp.float32)

    x = x_ref[...].astype(bf16)                                   # (TB, 1100) raw obs
    h1 = relu(mm(x, m1_ref) + b1_ref[...])                        # conv1   -> (TB, 1408)
    h2 = relu(mm(h1.astype(bf16), m2_ref) + b2_ref[...])          # conv2   -> (TB, 1408 padded)
    out1 = relu(mm(h2.astype(bf16), wl_ref) + bl_ref[...])        # lidar FC-> (TB, 256)
    s = relu(mm(x, ws_ref) + bs_ref[...])                         # streams -> (TB, 128 padded)
    hid = relu(mm(out1.astype(bf16), wo1a_ref)
               + mm(s.astype(bf16), wo1s_ref) + bo1_ref[...])     # (TB, 384)
    out_ref[...] = mm(hid.astype(bf16), wo2_ref) + bo2_ref[...]   # (TB, 128) lane-dense


def jestel_forward_pallas(raw, kp, *, out_n, block_rows=256):
    """raw: (B, 1100) float32 or bfloat16. Returns (B, out_n) float32."""
    B = raw.shape[0]
    out_pad = kp["wo2"].shape[1]          # 128 (lane-dense padded head)
    assert out_n <= out_pad

    # Batch tile: multiple of 16 (bf16 sublane packing), <= block_rows, and capped at
    # ceil(B/2) so large batches always get >=2 grid steps (v7x two-TC sharding).
    tb = max(16, min(block_rows, _round_up(pl.cdiv(B, 2), 16)))
    grid = (pl.cdiv(B, tb),)              # ragged last block, no jnp.pad HBM copy

    weights = (kp["m1"], kp["b1"], kp["m2"], kp["b2"], kp["wl"], kp["bl"],
               kp["ws"], kp["bs"], kp["wo1a"], kp["wo1s"], kp["bo1"],
               kp["wo2"], kp["bo2"])
    # Constant index_map -> weights DMA'd once; single-buffer them to halve their VMEM.
    w_specs = [pl.BlockSpec(w.shape, lambda i: (0, 0), pipeline_mode=pl.Buffered(1))
               for w in weights]

    # Right-sized VMEM budget: single-buffered weights + double-buffered x/out tiles +
    # f32/bf16 activation scratch, with ~25% headroom. Clamp to [24, 40] MiB (above the
    # 16 MiB v5e scoped default, well under v7x's 64 MiB physical).
    weight_bytes = sum(int(w.size) * w.dtype.itemsize for w in weights)
    act_cols = RAW + H1F + H2P + 256 + NSP + 384 + out_pad
    vmem = int(1.25 * (weight_bytes
                       + 2 * tb * RAW * raw.dtype.itemsize
                       + 2 * tb * out_pad * 4
                       + 6 * tb * act_cols))
    vmem = min(max(vmem, 24 << 20), 40 << 20)

    out = pl.pallas_call(
        _fused_kernel,
        out_shape=jax.ShapeDtypeStruct((B, out_pad), jnp.float32),
        grid=grid,
        in_specs=[pl.BlockSpec((tb, RAW), lambda i: (i, 0))] + w_specs,
        out_specs=pl.BlockSpec((tb, out_pad), lambda i: (i, 0)),
        compiler_params=pltpu.CompilerParams(
            dimension_semantics=("parallel",),
            vmem_limit_bytes=vmem),
    )(raw, *weights)
    return out[:, :out_n]


# ------------------------------------------------------------ parameter setup ----

def init_params(key, output_size):
    """Deterministic synthetic init, PyTorch-convention shapes (out, in[, k])."""
    ks = jax.random.split(key, 16)
    w = lambda k, shape, s=0.05: s * jax.random.normal(k, shape, jnp.float32)
    return dict(
        conv1_w=w(ks[0], (C1, STACK, 7)), conv1_b=w(ks[1], (C1,), 0.01),
        conv2_w=w(ks[2], (C2, C1, 5)),    conv2_b=w(ks[3], (C2,), 0.01),
        lin_w=w(ks[4], (256, H2F)),       lin_b=w(ks[5], (256,), 0.01),
        dir_w=w(ks[6], (32, STACK * 2)),  dir_b=w(ks[7], (32,), 0.01),
        dist_w=w(ks[8], (16, STACK * 1)), dist_b=w(ks[9], (16,), 0.01),
        vel_w=w(ks[10], (32, STACK * 2)), vel_b=w(ks[11], (32,), 0.01),
        o1_w=w(ks[12], (384, 336)),       o1_b=w(ks[13], (384,), 0.01),
        o2_w=w(ks[14], (output_size, 384)), o2_b=w(ks[15], (output_size,), 0.01),
    )


def kernel_params(p, weight_dtype=jnp.bfloat16):
    """Fold convs / flatten / stream-split into dense, lane-dense matmul weights (host, once)."""
    f32 = jnp.float32

    # conv1 as a dense (1100, 1408) matmul on the RAW observation:
    #   h1[:, t*16+co] = sum_{c,k} conv1_w[co,c,k] * raw[:, c*275 + 3t + k]
    c = jnp.arange(STACK).reshape(STACK, 1, 1, 1)
    t = jnp.arange(L1).reshape(1, L1, 1, 1)
    k = jnp.arange(7).reshape(1, 1, 7, 1)
    co = jnp.arange(C1).reshape(1, 1, 1, C1)
    shp = (STACK, L1, 7, C1)
    rows = jnp.broadcast_to(c * OBS + 3 * t + k, shp).ravel()
    cols = jnp.broadcast_to(t * C1 + co, shp).ravel()
    vals = jnp.broadcast_to(p["conv1_w"][co, c, k], shp).ravel()
    m1 = jnp.zeros((RAW, H1F), f32).at[rows, cols].add(vals)
    b1 = jnp.tile(p["conv1_b"], L1).reshape(1, H1F)

    # conv2 as a dense (1408, 1344) matmul on the time-major conv1 activation,
    # zero-padded to 1408 output columns for lane-dense h2:
    #   h2[:, u*32+co2] = sum_{ci,k} conv2_w[co2,ci,k] * h1[:, (2u+k)*16 + ci]
    u = jnp.arange(L2).reshape(L2, 1, 1, 1)
    k2 = jnp.arange(5).reshape(1, 5, 1, 1)
    ci = jnp.arange(C1).reshape(1, 1, C1, 1)
    co2 = jnp.arange(C2).reshape(1, 1, 1, C2)
    shp2 = (L2, 5, C1, C2)
    rows2 = jnp.broadcast_to((2 * u + k2) * C1 + ci, shp2).ravel()
    cols2 = jnp.broadcast_to(u * C2 + co2, shp2).ravel()
    vals2 = jnp.broadcast_to(p["conv2_w"][co2, ci, k2], shp2).ravel()
    m2 = jnp.zeros((H1F, H2F), f32).at[rows2, cols2].add(vals2)
    m2 = jnp.pad(m2, ((0, 0), (0, H2P - H2F)))
    b2 = jnp.pad(jnp.tile(p["conv2_b"], L2), (0, H2P - H2F)).reshape(1, H2P)

    # lidar Linear: fold PyTorch channel-major Flatten (index co2*42+u) into the weight so
    # the kernel consumes the time-major layout (index u*32+co2); pad rows to H2P (zeros).
    wl = p["lin_w"].T.reshape(C2, L2, 256).transpose(1, 0, 2).reshape(H2F, 256)
    wl = jnp.pad(wl, ((0, H2P - H2F), (0, 0)))
    bl = p["lin_b"].reshape(1, 256)

    # direction/distance/velocity streams merged into ONE (1100, 128) matmul reading the
    # relevant raw-observation columns directly; columns 80..127 are zero padding.
    ws = jnp.zeros((RAW, NSP), f32)
    dir_wT, dist_wT, vel_wT = p["dir_w"].T, p["dist_w"].T, p["vel_w"].T
    for si in range(STACK):
        base = si * OBS
        ws = ws.at[base + 270, 0:32].set(dir_wT[2 * si])
        ws = ws.at[base + 271, 0:32].set(dir_wT[2 * si + 1])
        ws = ws.at[base + 272, 32:48].set(dist_wT[si])
        ws = ws.at[base + 273, 48:80].set(vel_wT[2 * si])
        ws = ws.at[base + 274, 48:80].set(vel_wT[2 * si + 1])
    bs = jnp.pad(jnp.concatenate([p["dir_b"], p["dist_b"], p["vel_b"]]),
                 (0, NSP - NSTREAM)).reshape(1, NSP)

    wo1 = p["o1_w"].T                                       # (336, 384)
    wo1a = wo1[:256]                                         # lidar part
    wo1s = jnp.pad(wo1[256:336], ((0, NSP - NSTREAM), (0, 0)))   # padded streams part
    bo1 = p["o1_b"].reshape(1, -1)

    # output head padded to 128 lane-dense columns (extra columns are zero weight/bias).
    out_n = p["o2_w"].shape[0]
    wo2 = jnp.pad(p["o2_w"].T, ((0, 0), (0, OUTP - out_n)))
    bo2 = jnp.pad(p["o2_b"], (0, OUTP - out_n)).reshape(1, OUTP)

    kp = dict(m1=m1, b1=b1, m2=m2, b2=b2, wl=wl, bl=bl, ws=ws, bs=bs,
              wo1a=wo1a, wo1s=wo1s, bo1=bo1, wo2=wo2, bo2=bo2)
    # Matmul weights in weight_dtype (bf16 default: halved HBM->VMEM traffic, native MXU
    # input); biases stay f32.  weight_dtype=f32 is used once to validate the folds exactly.
    for name in ("m1", "m2", "wl", "ws", "wo1a", "wo1s", "wo2"):
        kp[name] = kp[name].astype(weight_dtype)
    return kp


# --------------------------------------------------------- pure-JAX references ----

def reference_forward(raw, p):
    """Mirrors PyTorch JestelNetwork.forward exactly (NCW convs, PyTorch flatten)."""
    B = raw.shape[0]
    obs = raw.reshape(B, STACK, OBS)
    o_l = obs[:, :, :LIDAR]
    o_g = obs[:, :, 270:272].reshape(B, STACK * 2)
    o_d = obs[:, :, 272].reshape(B, STACK)
    o_v = obs[:, :, 273:275].reshape(B, STACK * 2)
    dn = ("NCH", "OIH", "NCH")
    h = jax.lax.conv_general_dilated(o_l, p["conv1_w"], (3,), "VALID", dimension_numbers=dn)
    h = jax.nn.relu(h + p["conv1_b"][None, :, None])
    h = jax.lax.conv_general_dilated(h, p["conv2_w"], (2,), "VALID", dimension_numbers=dn)
    h = jax.nn.relu(h + p["conv2_b"][None, :, None])
    h = h.reshape(B, -1)
    out1 = jax.nn.relu(h @ p["lin_w"].T + p["lin_b"])
    out2 = jax.nn.relu(o_g @ p["dir_w"].T + p["dir_b"])
    out3 = jax.nn.relu(o_d @ p["dist_w"].T + p["dist_b"])
    out4 = jax.nn.relu(o_v @ p["vel_w"].T + p["vel_b"])
    comb = jnp.concatenate([out1, out2, out3, out4], axis=1)
    hid = jax.nn.relu(comb @ p["o1_w"].T + p["o1_b"])
    return hid @ p["o2_w"].T + p["o2_b"]


def folded_forward_jax(raw, kp):
    """Same math as the kernel, pure JAX; with f32 weights it validates the folds exactly."""
    relu = jax.nn.relu
    x = raw.astype(kp["m1"].dtype)
    h1 = relu(x @ kp["m1"] + kp["b1"])
    h2 = relu(h1 @ kp["m2"] + kp["b2"])
    out1 = relu(h2 @ kp["wl"] + kp["bl"])
    s = relu(x @ kp["ws"] + kp["bs"])
    hid = relu(out1 @ kp["wo1a"] + s @ kp["wo1s"] + kp["bo1"])
    return hid @ kp["wo2"] + kp["bo2"]


# -------------------------------------------------------------------- main ----

if __name__ == "__main__":
    key = jax.random.PRNGKey(0)
    k_params, k_x = jax.random.split(key)

    output_size = 2                     # Agent.action_size() (actor_mean head)
    params = init_params(k_params, output_size)

    B = 2
    x = jax.random.normal(k_x, (B, STACK * OBS), jnp.float32)   # (2, 1100)

    # 1) Validate the structural folds exactly (f32 weights, pure JAX, tight tolerance).
    kp_f32 = kernel_params(params, weight_dtype=jnp.float32)
    fold_out = folded_forward_jax(x, kp_f32)[:, :output_size]
    ref = reference_forward(x, params)
    fold_err = float(jnp.max(jnp.abs(fold_out - ref)))
    assert fold_err < 1e-4, f"fold mismatch vs reference, max abs err = {fold_err}"

    # 2) Fused Pallas kernel with bf16 weights; caller feeds the observation in bf16
    #    (identical numerics to the previous f32-in / in-kernel-cast path).
    kp = kernel_params(params)
    x_bf16 = x.astype(jnp.bfloat16)

    fwd = jax.jit(jestel_forward_pallas, static_argnames=("out_n", "block_rows"))
    out = jax.block_until_ready(fwd(x_bf16, kp, out_n=output_size))
    assert out.shape == (B, output_size), out.shape

    err = float(jnp.max(jnp.abs(out - ref)))
    # bf16 weights/activations with f32 accumulation: error is ~1e-3 on this net.
    assert err < 5e-2, f"Pallas output mismatch vs reference, max abs err = {err}"

    print("KERNEL_OK")
</pallas_src>

<mosaic_0001>
module attributes {stable_mosaic.version = 11 : i64} {
  func.func @_fused_kernel(%arg0: i32, %arg1: memref<16x1100xbf16, #tpu.memory_space<vmem>>, %arg2: memref<1100x1408xbf16, #tpu.memory_space<vmem>>, %arg3: memref<1x1408xf32, #tpu.memory_space<vmem>>, %arg4: memref<1408x1408xbf16, #tpu.memory_space<vmem>>, %arg5: memref<1x1408xf32, #tpu.memory_space<vmem>>, %arg6: memref<1408x256xbf16, #tpu.memory_space<vmem>>, %arg7: memref<1x256xf32, #tpu.memory_space<vmem>>, %arg8: memref<1100x128xbf16, #tpu.memory_space<vmem>>, %arg9: memref<1x128xf32, #tpu.memory_space<vmem>>, %arg10: memref<256x384xbf16, #tpu.memory_space<vmem>>, %arg11: memref<128x384xbf16, #tpu.memory_space<vmem>>, %arg12: memref<1x384xf32, #tpu.memory_space<vmem>>, %arg13: memref<384x128xbf16, #tpu.memory_space<vmem>>, %arg14: memref<1x128xf32, #tpu.memory_space<vmem>>, %arg15: memref<16x128xf32, #tpu.memory_space<vmem>>) attributes {dimension_semantics = [#tpu.dimension_semantics<parallel>], iteration_bounds = array<i64: 1>, scalar_prefetch = 0 : i64, scratch_operands = 0 : i64, tpu.core_type = #tpu.core_type<tc>, window_params = [{transform_indices = @transform_0, window_bounds = array<i64: 16, 1100>}, {pipeline_mode = #tpu.pipeline_mode<synchronous>, transform_indices = @transform_1, window_bounds = array<i64: 1100, 1408>}, {pipeline_mode = #tpu.pipeline_mode<synchronous>, transform_indices = @transform_2, window_bounds = array<i64: 1, 1408>}, {pipeline_mode = #tpu.pipeline_mode<synchronous>, transform_indices = @transform_3, window_bounds = array<i64: 1408, 1408>}, {pipeline_mode = #tpu.pipeline_mode<synchronous>, transform_indices = @transform_4, window_bounds = array<i64: 1, 1408>}, {pipeline_mode = #tpu.pipeline_mode<synchronous>, transform_indices = @transform_5, window_bounds = array<i64: 1408, 256>}, {pipeline_mode = #tpu.pipeline_mode<synchronous>, transform_indices = @transform_6, window_bounds = array<i64: 1, 256>}, {pipeline_mode = #tpu.pipeline_mode<synchronous>, transform_indices = @transform_7, window_bounds = array<i64: 1100, 128>}, {pipeline_mode = #tpu.pipeline_mode<synchronous>, transform_indices = @transform_8, window_bounds = array<i64: 1, 128>}, {pipeline_mode = #tpu.pipeline_mode<synchronous>, transform_indices = @transform_9, window_bounds = array<i64: 256, 384>}, {pipeline_mode = #tpu.pipeline_mode<synchronous>, transform_indices = @transform_10, window_bounds = array<i64: 128, 384>}, {pipeline_mode = #tpu.pipeline_mode<synchronous>, transform_indices = @transform_11, window_bounds = array<i64: 1, 384>}, {pipeline_mode = #tpu.pipeline_mode<synchronous>, transform_indices = @transform_12, window_bounds = array<i64: 384, 128>}, {pipeline_mode = #tpu.pipeline_mode<synchronous>, transform_indices = @transform_13, window_bounds = array<i64: 1, 128>}, {transform_indices = @transform_14, window_bounds = array<i64: 16, 128>}]} {
    %c0 = arith.constant 0 : index
    %c0_0 = arith.constant 0 : index
    %0 = vector.load %arg1[%c0, %c0_0] : memref<16x1100xbf16, #tpu.memory_space<vmem>>, vector<16x1100xbf16>
    %c0_1 = arith.constant 0 : index
    %c0_2 = arith.constant 0 : index
    %1 = vector.load %arg2[%c0_1, %c0_2] : memref<1100x1408xbf16, #tpu.memory_space<vmem>>, vector<1100x1408xbf16>
    %cst = arith.constant dense<0.000000e+00> : vector<16x1408xf32>
    %2 = tpu.matmul %0, %1, %cst {dimension_numbers = #tpu.dot_dimension_numbers<[1], [0], [0], [1], [0, 0, 1, 1], [], []>} : vector<16x1100xbf16>, vector<1100x1408xbf16>, vector<16x1408xf32> -> vector<16x1408xf32>
    %c0_3 = arith.constant 0 : index
    %c0_4 = arith.constant 0 : index
    %3 = vector.load %arg3[%c0_3, %c0_4] : memref<1x1408xf32, #tpu.memory_space<vmem>>, vector<1x1408xf32>
    %4 = vector.broadcast %3 : vector<1x1408xf32> to vector<16x1408xf32>
    %5 = arith.addf %2, %4 : vector<16x1408xf32>
    %cst_5 = arith.constant 0.000000e+00 : f32
    %6 = vector.broadcast %cst_5 : f32 to vector<16x1408xf32>
    %7 = arith.maximumf %5, %6 : vector<16x1408xf32>
    %8 = arith.truncf %7 : vector<16x1408xf32> to vector<16x1408xbf16>
    %c0_6 = arith.constant 0 : index
    %c0_7 = arith.constant 0 : index
    %9 = vector.load %arg4[%c0_6, %c0_7] : memref<1408x1408xbf16, #tpu.memory_space<vmem>>, vector<1408x1408xbf16>
    %cst_8 = arith.constant dense<0.000000e+00> : vector<16x1408xf32>
    %10 = tpu.matmul %8, %9, %cst_8 {dimension_numbers = #tpu.dot_dimension_numbers<[1], [0], [0], [1], [0, 0, 1, 1], [], []>} : vector<16x1408xbf16>, vector<1408x1408xbf16>, vector<16x1408xf32> -> vector<16x1408xf32>
    %c0_9 = arith.constant 0 : index
    %c0_10 = arith.constant 0 : index
    %11 = vector.load %arg5[%c0_9, %c0_10] : memref<1x1408xf32, #tpu.memory_space<vmem>>, vector<1x1408xf32>
    %12 = vector.broadcast %11 : vector<1x1408xf32> to vector<16x1408xf32>
    %13 = arith.addf %10, %12 : vector<16x1408xf32>
    %cst_11 = arith.constant 0.000000e+00 : f32
    %14 = vector.broadcast %cst_11 : f32 to vector<16x1408xf32>
    %15 = arith.maximumf %13, %14 : vector<16x1408xf32>
    %16 = arith.truncf %15 : vector<16x1408xf32> to vector<16x1408xbf16>
    %c0_12 = arith.constant 0 : index
    %c0_13 = arith.constant 0 : index
    %17 = vector.load %arg6[%c0_12, %c0_13] : memref<1408x256xbf16, #tpu.memory_space<vmem>>, vector<1408x256xbf16>
    %cst_14 = arith.constant dense<0.000000e+00> : vector<16x256xf32>
    %18 = tpu.matmul %16, %17, %cst_14 {dimension_numbers = #tpu.dot_dimension_numbers<[1], [0], [0], [1], [0, 0, 1, 1], [], []>} : vector<16x1408xbf16>, vector<1408x256xbf16>, vector<16x256xf32> -> vector<16x256xf32>
    %c0_15 = arith.constant 0 : index
    %c0_16 = arith.constant 0 : index
    %19 = vector.load %arg7[%c0_15, %c0_16] : memref<1x256xf32, #tpu.memory_space<vmem>>, vector<1x256xf32>
    %20 = vector.broadcast %19 : vector<1x256xf32> to vector<16x256xf32>
    %21 = arith.addf %18, %20 : vector<16x256xf32>
    %cst_17 = arith.constant 0.000000e+00 : f32
    %22 = vector.broadcast %cst_17 : f32 to vector<16x256xf32>
    %23 = arith.maximumf %21, %22 : vector<16x256xf32>
    %c0_18 = arith.constant 0 : index
    %c0_19 = arith.constant 0 : index
    %24 = vector.load %arg8[%c0_18, %c0_19] : memref<1100x128xbf16, #tpu.memory_space<vmem>>, vector<1100x128xbf16>
    %cst_20 = arith.constant dense<0.000000e+00> : vector<16x128xf32>
    %25 = tpu.matmul %0, %24, %cst_20 {dimension_numbers = #tpu.dot_dimension_numbers<[1], [0], [0], [1], [0, 0, 1, 1], [], []>} : vector<16x1100xbf16>, vector<1100x128xbf16>, vector<16x128xf32> -> vector<16x128xf32>
    %c0_21 = arith.constant 0 : index
    %c0_22 = arith.constant 0 : index
    %26 = vector.load %arg9[%c0_21, %c0_22] : memref<1x128xf32, #tpu.memory_space<vmem>>, vector<1x128xf32>
    %27 = vector.broadcast %26 : vector<1x128xf32> to vector<16x128xf32>
    %28 = arith.addf %25, %27 : vector<16x128xf32>
    %cst_23 = arith.constant 0.000000e+00 : f32
    %29 = vector.broadcast %cst_23 : f32 to vector<16x128xf32>
    %30 = arith.maximumf %28, %29 : vector<16x128xf32>
    %31 = arith.truncf %23 : vector<16x256xf32> to vector<16x256xbf16>
    %c0_24 = arith.constant 0 : index
    %c0_25 = arith.constant 0 : index
    %32 = vector.load %arg10[%c0_24, %c0_25] : memref<256x384xbf16, #tpu.memory_space<vmem>>, vector<256x384xbf16>
    %cst_26 = arith.constant dense<0.000000e+00> : vector<16x384xf32>
    %33 = tpu.matmul %31, %32, %cst_26 {dimension_numbers = #tpu.dot_dimension_numbers<[1], [0], [0], [1], [0, 0, 1, 1], [], []>} : vector<16x256xbf16>, vector<256x384xbf16>, vector<16x384xf32> -> vector<16x384xf32>
    %34 = arith.truncf %30 : vector<16x128xf32> to vector<16x128xbf16>
    %c0_27 = arith.constant 0 : index
    %c0_28 = arith.constant 0 : index
    %35 = vector.load %arg11[%c0_27, %c0_28] : memref<128x384xbf16, #tpu.memory_space<vmem>>, vector<128x384xbf16>
    %cst_29 = arith.constant dense<0.000000e+00> : vector<16x384xf32>
    %36 = tpu.matmul %34, %35, %cst_29 {dimension_numbers = #tpu.dot_dimension_numbers<[1], [0], [0], [1], [0, 0, 1, 1], [], []>} : vector<16x128xbf16>, vector<128x384xbf16>, vector<16x384xf32> -> vector<16x384xf32>
    %37 = arith.addf %33, %36 : vector<16x384xf32>
    %c0_30 = arith.constant 0 : index
    %c0_31 = arith.constant 0 : index
    %38 = vector.load %arg12[%c0_30, %c0_31] : memref<1x384xf32, #tpu.memory_space<vmem>>, vector<1x384xf32>
    %39 = vector.broadcast %38 : vector<1x384xf32> to vector<16x384xf32>
    %40 = arith.addf %37, %39 : vector<16x384xf32>
    %cst_32 = arith.constant 0.000000e+00 : f32
    %41 = vector.broadcast %cst_32 : f32 to vector<16x384xf32>
    %42 = arith.maximumf %40, %41 : vector<16x384xf32>
    %43 = arith.truncf %42 : vector<16x384xf32> to vector<16x384xbf16>
    %c0_33 = arith.constant 0 : index
    %c0_34 = arith.constant 0 : index
    %44 = vector.load %arg13[%c0_33, %c0_34] : memref<384x128xbf16, #tpu.memory_space<vmem>>, vector<384x128xbf16>
    %cst_35 = arith.constant dense<0.000000e+00> : vector<16x128xf32>
    %45 = tpu.matmul %43, %44, %cst_35 {dimension_numbers = #tpu.dot_dimension_numbers<[1], [0], [0], [1], [0, 0, 1, 1], [], []>} : vector<16x384xbf16>, vector<384x128xbf16>, vector<16x128xf32> -> vector<16x128xf32>
    %c0_36 = arith.constant 0 : index
    %c0_37 = arith.constant 0 : index
    %46 = vector.load %arg14[%c0_36, %c0_37] : memref<1x128xf32, #tpu.memory_space<vmem>>, vector<1x128xf32>
    %47 = vector.broadcast %46 : vector<1x128xf32> to vector<16x128xf32>
    %48 = arith.addf %45, %47 : vector<16x128xf32>
    %c0_38 = arith.constant 0 : index
    %c0_39 = arith.constant 0 : index
    %49 = vector.load %arg15[%c0_38, %c0_39] : memref<16x128xf32, #tpu.memory_space<vmem>>, vector<16x128xf32>
    tpu.vector_store %arg15[%c0_38, %c0_39], %48 {strides = array<i32>} : memref<16x128xf32, #tpu.memory_space<vmem>>, vector<16x128xf32>,
    return
  }
  func.func @transform_0(%arg0: i32) -> (i32, i32) {
    %c0_i32 = arith.constant 0 : i32
    %c0_i32_0 = arith.constant 0 : i32
    return %arg0, %c0_i32 : i32, i32
  }
  func.func @transform_1(%arg0: i32) -> (i32, i32) {
    %c0_i32 = arith.constant 0 : i32
    %c0_i32_0 = arith.constant 0 : i32
    %c0_i32_1 = arith.constant 0 : i32
    return %c0_i32, %c0_i32_0 : i32, i32
  }
  func.func @transform_2(%arg0: i32) -> (i32, i32) {
    %c0_i32 = arith.constant 0 : i32
    %c0_i32_0 = arith.constant 0 : i32
    %c0_i32_1 = arith.constant 0 : i32
    return %c0_i32, %c0_i32_0 : i32, i32
  }
  func.func @transform_3(%arg0: i32) -> (i32, i32) {
    %c0_i32 = arith.constant 0 : i32
    %c0_i32_0 = arith.constant 0 : i32
    %c0_i32_1 = arith.constant 0 : i32
    return %c0_i32, %c0_i32_0 : i32, i32
  }
  func.func @transform_4(%arg0: i32) -> (i32, i32) {
    %c0_i32 = arith.constant 0 : i32
    %c0_i32_0 = arith.constant 0 : i32
    %c0_i32_1 = arith.constant 0 : i32
    return %c0_i32, %c0_i32_0 : i32, i32
  }
  func.func @transform_5(%arg0: i32) -> (i32, i32) {
    %c0_i32 = arith.constant 0 : i32
    %c0_i32_0 = arith.constant 0 : i32
    %c0_i32_1 = arith.constant 0 : i32
    return %c0_i32, %c0_i32_0 : i32, i32
  }
  func.func @transform_6(%arg0: i32) -> (i32, i32) {
    %c0_i32 = arith.constant 0 : i32
    %c0_i32_0 = arith.constant 0 : i32
    %c0_i32_1 = arith.constant 0 : i32
    return %c0_i32, %c0_i32_0 : i32, i32
  }
  func.func @transform_7(%arg0: i32) -> (i32, i32) {
    %c0_i32 = arith.constant 0 : i32
    %c0_i32_0 = arith.constant 0 : i32
    %c0_i32_1 = arith.constant 0 : i32
    return %c0_i32, %c0_i32_0 : i32, i32
  }
  func.func @transform_8(%arg0: i32) -> (i32, i32) {
    %c0_i32 = arith.constant 0 : i32
    %c0_i32_0 = arith.constant 0 : i32
    %c0_i32_1 = arith.constant 0 : i32
    return %c0_i32, %c0_i32_0 : i32, i32
  }
  func.func @transform_9(%arg0: i32) -> (i32, i32) {
    %c0_i32 = arith.constant 0 : i32
    %c0_i32_0 = arith.constant 0 : i32
    %c0_i32_1 = arith.constant 0 : i32
    return %c0_i32, %c0_i32_0 : i32, i32
  }
  func.func @transform_10(%arg0: i32) -> (i32, i32) {
    %c0_i32 = arith.constant 0 : i32
    %c0_i32_0 = arith.constant 0 : i32
    %c0_i32_1 = arith.constant 0 : i32
    return %c0_i32, %c0_i32_0 : i32, i32
  }
  func.func @transform_11(%arg0: i32) -> (i32, i32) {
    %c0_i32 = arith.constant 0 : i32
    %c0_i32_0 = arith.constant 0 : i32
    %c0_i32_1 = arith.constant 0 : i32
    return %c0_i32, %c0_i32_0 : i32, i32
  }
  func.func @transform_12(%arg0: i32) -> (i32, i32) {
    %c0_i32 = arith.constant 0 : i32
    %c0_i32_0 = arith.constant 0 : i32
    %c0_i32_1 = arith.constant 0 : i32
    return %c0_i32, %c0_i32_0 : i32, i32
  }
  func.func @transform_13(%arg0: i32) -> (i32, i32) {
    %c0_i32 = arith.constant 0 : i32
    %c0_i32_0 = arith.constant 0 : i32
    %c0_i32_1 = arith.constant 0 : i32
    return %c0_i32, %c0_i32_0 : i32, i32
  }
  func.func @transform_14(%arg0: i32) -> (i32, i32) {
    %c0_i32 = arith.constant 0 : i32
    %c0_i32_0 = arith.constant 0 : i32
    return %arg0, %c0_i32 : i32, i32
  }
}

</mosaic_0001>

<bundles_post_ra>
// kernel: jestel_forward_pallas.1
= control target key start
LH: loop header
LB: loop body
LE: loop exit
PB: predicated region body
PF: predicated region fallthrough
CT: control target
= control target key end

     0   :  { %19 = vsyncpa [#allocation3], 0  ;;  %s24092_s0 = inlined_call_operand.hbm [shape: bf16[2,1100], index: 0, kind: input, shape index: {}]   ;;  %s24093_s1 = inlined_call_operand.hbm [shape: bf16[1100,1408], index: 1, kind: input, shape index: {}]   ;;  %s24094_s2 = inlined_call_operand.hbm [shape: f32[1,1408], index: 2, kind: input, shape index: {}]   ;;  %s24095_s3 = inlined_call_operand.hbm [shape: bf16[1408,1408], index: 3, kind: input, shape index: {}]   ;;  %s24096_s4 = inlined_call_operand.hbm [shape: f32[1,1408], index: 4, kind: input, shape index: {}]   ;;  %s24097_s5 = inlined_call_operand.hbm [shape: bf16[1408,256], index: 5, kind: input, shape index: {}]   ;;  %s24098_s6 = inlined_call_operand.hbm [shape: f32[1,256], index: 6, kind: input, shape index: {}]   ;;  %s24099_s7 = inlined_call_operand.hbm [shape: bf16[1100,128], index: 7, kind: input, shape index: {}]   ;;  %s24100_s8 = inlined_call_operand.hbm [shape: f32[1,128], index: 8, kind: input, shape index: {}]   ;;  %s24101_s9 = inlined_call_operand.hbm [shape: bf16[256,384], index: 9, kind: input, shape index: {}]   ;;  %s24102_s10 = inlined_call_operand.hbm [shape: bf16[128,384], index: 10, kind: input, shape index: {}]   ;;  %s24103_s11 = inlined_call_operand.hbm [shape: f32[1,384], index: 11, kind: input, shape index: {}]   ;;  %s24104_s12 = inlined_call_operand.hbm [shape: bf16[384,128], index: 12, kind: input, shape index: {}]   ;;  %s24105_s13 = inlined_call_operand.hbm [shape: f32[1,128], index: 13, kind: input, shape index: {}]   ;;  %s24106_s14 = inlined_call_operand.hbm [shape: f32[2,128], index: 14, kind: output, shape index: {}]  }
   0x1   :  { %20 = vsyncpa [#allocation6], 0 }
   0x2   :  { %21 = vsyncpa [#allocation9], 0 }
   0x3   :  { %22 = vsyncpa [#allocation12], 0 }
   0x4   :  { %23 = vsyncpa [#allocation15], 0 }
   0x5   :  { %24 = vsyncpa [#allocation18], 0 }
   0x6   :  { %25 = vsyncpa [#allocation21], 0 }
   0x7   :  { %26 = vsyncpa [#allocation24], 0 }
   0x8   :  { %27 = vsyncpa [#allocation4], 0 }
   0x9   :  { %32 = vsyncadd [#allocation3], 1008  ;;  %s23119_s29 = smov [#allocation5]  }
   0xa   :  { %s45_s30 = sshll.u32 %s23119_s29, 4  ;;  %s46_s30 = int_to_ptr.vmem [resolvable:$true] %s45_s30 }
   0xb   :  { %s22809_s15 = scalar_lea.vmem %s46_s30, 97152  ;;  %p22814_p1 = scmp.lt.s32.totalorder %s46_s30, %s46_s30 }
   0xc   :  { %p22810_p0 = scmp.ne.s32.totalorder %s46_s30, %s22809_s15  ;;  %p22815_p2 = scmp.lt.s32.totalorder %s22809_s15, %s22809_s15 }
   0xe   :  { %p22816_p3 = por %p22815_p2, %p22814_p1 }
  0x10   :  { %p22817_p4 = pnand %p22816_p3, %p22810_p0 }
  0x12   :  { %22820 = shalt.err (!%p22817_p4)
}
  0x13   :  { %s23120_s16 = smov 704   ;;  %s23121_s17 = smov 44  }
  0x14   :  { %51 = dma.hbm_to_vmem [thread:$0]  %s24093_s1, 97152, %s46_s30, [#allocation6], %s23120_s16, %s23120_s16, %s23121_s17  }
  0x15   :  { %s23122_s20 = smov [#allocation8]   ;;  %s23123_s22 = smov [#allocation11]  }
  0x16   :  { %s67_s21 = sshll.u32 %s23122_s20, 4  ;;  %s89_s23 = sshll.u32 %s23123_s22, 4  ;;  %s68_s21 = int_to_ptr.vmem [resolvable:$true] %s67_s21  ;;  %s90_s23 = int_to_ptr.vmem [resolvable:$true] %s89_s23 }
  0x17   :  { %s22829_s24 = scalar_lea.vmem %s68_s21, 123904  ;;  %p22834_p6 = scmp.lt.s32.totalorder %s68_s21, %s68_s21 }
  0x18   :  { %p22830_p5 = scmp.ne.s32.totalorder %s68_s21, %s22829_s24  ;;  %p22835_p7 = scmp.lt.s32.totalorder %s22829_s24, %s22829_s24 }
  0x1a   :  { %p22836_p8 = por %p22835_p7, %p22834_p6 }
  0x1c   :  { %p22837_p9 = pnand %p22836_p8, %p22830_p5 }
  0x1e   :  { %22840 = shalt.err (!%p22837_p9)
}
  0x1f   :  { %73 = dma.hbm_to_vmem [thread:$0]  %s24095_s3, 123904, %s68_s21, [#allocation9], %s23120_s16, %s23120_s16, %s23121_s17  }
  0x20   :  { %s22849_s27 = scalar_lea.vmem %s90_s23, 22528  ;;  %p22854_p11 = scmp.lt.s32.totalorder %s90_s23, %s90_s23 }
  0x21   :  { %p22850_p10 = scmp.ne.s32.totalorder %s90_s23, %s22849_s27  ;;  %p22855_p12 = scmp.lt.s32.totalorder %s22849_s27, %s22849_s27 }
  0x23   :  { %p22856_p13 = por %p22855_p12, %p22854_p11 }
  0x25   :  { %p22857_p0 = pnand %p22856_p13, %p22850_p10 }
  0x27   :  { %22860 = shalt.err (!%p22857_p0)
}
  0x28   :  { %s23124_s1 = smov 128   ;;  %s23125_s28 = smov 8  }
  0x29   :  { %95 = dma.hbm_to_vmem [thread:$0]  %s24097_s5, 22528, %s90_s23, [#allocation12], %s23124_s1, %s23124_s1, %s23125_s28  }
  0x2a   :  { %s23126_s15 = smov [#allocation14]  }
  0x2b   :  { %s111_s18 = sshll.u32 %s23126_s15, 4  ;;  %s112_s18 = int_to_ptr.vmem [resolvable:$true] %s111_s18 }
  0x2c   :  { %s22869_s19 = scalar_lea.vmem %s112_s18, 8832  ;;  %p22874_p2 = scmp.lt.s32.totalorder %s112_s18, %s112_s18 }
  0x2d   :  { %p22870_p1 = scmp.ne.s32.totalorder %s112_s18, %s22869_s19  ;;  %p22875_p3 = scmp.lt.s32.totalorder %s22869_s19, %s22869_s19 }
  0x2f   :  { %p22876_p4 = por %p22875_p3, %p22874_p2 }
  0x31   :  { %p22877_p5 = pnand %p22876_p4, %p22870_p1 }
  0x33   :  { %22880 = shalt.err (!%p22877_p5)
}
  0x34   :  { %s23127_s3 = smov 64   ;;  %s23128_s16 = smov 4  }
  0x35   :  { %117 = dma.hbm_to_vmem [thread:$0]  %s24099_s7, 8832, %s112_s18, [#allocation15], %s23127_s3, %s23127_s3, %s23128_s16  }
  0x36   :  { %s23129_s5 = smov [#allocation17]  }
  0x37   :  { %s133_s21 = sshll.u32 %s23129_s5, 4  ;;  %s134_s21 = int_to_ptr.vmem [resolvable:$true] %s133_s21 }
  0x38   :  { %s22889_s22 = scalar_lea.vmem %s134_s21, 6144  ;;  %p22894_p7 = scmp.lt.s32.totalorder %s134_s21, %s134_s21 }
  0x39   :  { %p22890_p6 = scmp.ne.s32.totalorder %s134_s21, %s22889_s22  ;;  %p22895_p8 = scmp.lt.s32.totalorder %s22889_s22, %s22889_s22 }
  0x3b   :  { %p22896_p9 = por %p22895_p8, %p22894_p7 }
  0x3d   :  { %p22897_p10 = pnand %p22896_p9, %p22890_p6 }
  0x3f   :  { %22900 = shalt.err (!%p22897_p10)
}
  0x40   :  { %s23130_s23 = smov 192   ;;  %s23131_s24 = smov 12  }
  0x41   :  { %139 = dma.hbm_to_vmem [thread:$0]  %s24101_s9, 6144, %s134_s21, [#allocation18], %s23130_s23, %s23130_s23, %s23131_s24  }
  0x42   :  { %s23132_s7 = smov [#allocation20]   ;;  %s23133_s1 = smov [#allocation2]  }
  0x43   :  { %s158_s27 = sshll.u32 %s23132_s7, 4  ;;  %s33_s28 = sshll.u32 %s23133_s1, 4  ;;  %s159_s27 = int_to_ptr.vmem [resolvable:$true] %s158_s27  ;;  %s34_s28 = int_to_ptr.vmem [resolvable:$true] %s33_s28 }
  0x44   :  { %s22909_s29 = scalar_lea.vmem %s159_s27, 48  ;;  %s22913_s30 = scalar_lea.vmem %s159_s27, 64 }
  0x45   :  { %p22910_p11 = scmp.ne.s32.totalorder %s159_s27, %s22909_s29  ;;  %p22914_p12 = scmp.lt.s32.totalorder %s159_s27, %s159_s27 }
  0x46   :  { %p22915_p13 = scmp.lt.s32.totalorder %s22913_s30, %s22909_s29 }
  0x48   :  { %p22916_p0 = por %p22915_p13, %p22914_p12 }
  0x4a   :  { %p22917_p1 = pnand %p22916_p0, %p22910_p11 }
  0x4c   :  { %22920 = shalt.err (!%p22917_p1)
}
  0x4d   :  { %161 = dma.hbm_to_vmem [thread:$0]  %s24103_s11, 48, %s159_s27, [#allocation21]  }
  0x4e   :  { %s22929_s19 = scalar_lea.vmem %s34_s28, 144  ;;  %s22933_s9 = scalar_lea.vmem %s34_s28, 1152 }
  0x4f   :  { %p22930_p2 = scmp.ne.s32.totalorder %s34_s28, %s22929_s19  ;;  %p22934_p3 = scmp.lt.s32.totalorder %s34_s28, %s34_s28 }
  0x50   :  { %p22935_p4 = scmp.lt.s32.totalorder %s22933_s9, %s22929_s19 }
  0x52   :  { %p22936_p5 = por %p22935_p4, %p22934_p3 }
  0x54   :  { %p22937_p6 = pnand %p22936_p5, %p22930_p2 }
  0x56   :  { %22940 = shalt.err (!%p22937_p6)
}
  0x57   :  { %s23134_s17 = smov 144   ;;  %s23135_s20 = smov 9  }
  0x58   :  { %39 = dma.hbm_to_vmem [thread:$0]  %s24092_s0, 144, %s34_s28, [#allocation3], %s23134_s17, %s23134_s17, %s23135_s20  }
  0x59   :  { %s23136_s22 = smov [#allocation7]   ;;  %s23137_s26 = smov [#allocation10]  }
  0x5a   :  { %s58_s25 = sshll.u32 %s23136_s22, 4  ;;  %s80_s11 = sshll.u32 %s23137_s26, 4  ;;  %s59_s25 = int_to_ptr.vmem [resolvable:$true] %s58_s25  ;;  %s81_s11 = int_to_ptr.vmem [resolvable:$true] %s80_s11 }
  0x5b   :  { %s22949_s7 = scalar_lea.vmem %s59_s25, 176  ;;  %s22953_s27 = scalar_lea.vmem %s59_s25, 192 }
  0x5c   :  { %p22950_p7 = scmp.ne.s32.totalorder %s59_s25, %s22949_s7  ;;  %p22954_p8 = scmp.lt.s32.totalorder %s59_s25, %s59_s25 }
  0x5d   :  { %p22955_p9 = scmp.lt.s32.totalorder %s22953_s27, %s22949_s7 }
  0x5f   :  { %p22956_p10 = por %p22955_p9, %p22954_p8 }
  0x61   :  { %p22957_p11 = pnand %p22956_p10, %p22950_p7 }
  0x63   :  { %22960 = shalt.err (!%p22957_p11)
}
  0x64   :  { %61 = dma.hbm_to_vmem [thread:$0]  %s24094_s2, 176, %s59_s25, [#allocation6]  }
  0x65   :  { %s22969_s30 = scalar_lea.vmem %s81_s11, 176  ;;  %s22973_s0 = scalar_lea.vmem %s81_s11, 192 }
  0x66   :  { %p22970_p12 = scmp.ne.s32.totalorder %s81_s11, %s22969_s30  ;;  %p22974_p13 = scmp.lt.s32.totalorder %s81_s11, %s81_s11 }
  0x67   :  { %p22975_p0 = scmp.lt.s32.totalorder %s22973_s0, %s22969_s30 }
  0x69   :  { %p22976_p1 = por %p22975_p0, %p22974_p13 }
  0x6b   :  { %p22977_p2 = pnand %p22976_p1, %p22970_p12 }
  0x6d   :  { %22980 = shalt.err (!%p22977_p2)
}
  0x6e   :  { %83 = dma.hbm_to_vmem [thread:$0]  %s24096_s4, 176, %s81_s11, [#allocation9]  }
  0x6f   :  { %s23138_s18 = smov [#allocation13]   ;;  %s23139_s9 = smov [#allocation16]  }
  0x70   :  { %s102_s19 = sshll.u32 %s23138_s18, 4  ;;  %s124_s17 = sshll.u32 %s23139_s9, 4  ;;  %s103_s19 = int_to_ptr.vmem [resolvable:$true] %s102_s19  ;;  %s125_s17 = int_to_ptr.vmem [resolvable:$true] %s124_s17 }
  0x71   :  { %s22989_s20 = scalar_lea.vmem %s103_s19, 32  ;;  %p22994_p4 = scmp.lt.s32.totalorder %s103_s19, %s103_s19 }
  0x72   :  { %p22990_p3 = scmp.ne.s32.totalorder %s103_s19, %s22989_s20  ;;  %p22995_p5 = scmp.lt.s32.totalorder %s22989_s20, %s22989_s20 }
  0x74   :  { %p22996_p6 = por %p22995_p5, %p22994_p4 }
  0x76   :  { %p22997_p7 = pnand %p22996_p6, %p22990_p3 }
  0x78   :  { %23000 = shalt.err (!%p22997_p7)
}
  0x79   :  { %105 = dma.hbm_to_vmem [thread:$0]  %s24098_s6, 32, %s103_s19, [#allocation12]  }
  0x7a   :  { %s23009_s21 = scalar_lea.vmem %s125_s17, 16  ;;  %s23013_s4 = scalar_lea.vmem %s125_s17, 32 }
  0x7b   :  { %p23010_p8 = scmp.ne.s32.totalorder %s125_s17, %s23009_s21  ;;  %p23014_p9 = scmp.lt.s32.totalorder %s125_s17, %s125_s17 }
  0x7c   :  { %p23015_p10 = scmp.lt.s32.totalorder %s23013_s4, %s23009_s21 }
  0x7e   :  { %p23016_p11 = por %p23015_p10, %p23014_p9 }
  0x80   :  { %p23017_p12 = pnand %p23016_p11, %p23010_p8 }
  0x82   :  { %23020 = shalt.err (!%p23017_p12)
}
  0x83   :  { %127 = dma.hbm_to_vmem [thread:$0]  %s24100_s8, 16, %s125_s17, [#allocation15]  }
  0x84   :  { %s23140_s26 = smov [#allocation19]   ;;  %s23141_s7 = smov [#allocation22]  }
  0x85   :  { %s145_s11 = sshll.u32 %s23140_s26, 4  ;;  %s167_s27 = sshll.u32 %s23141_s7, 4  ;;  %s146_s11 = int_to_ptr.vmem [resolvable:$true] %s145_s11  ;;  %s168_s27 = int_to_ptr.vmem [resolvable:$true] %s167_s27 }
  0x86   :  { %s23029_s1 = scalar_lea.vmem %s146_s11, 3072  ;;  %p23034_p0 = scmp.lt.s32.totalorder %s146_s11, %s146_s11 }
  0x87   :  { %p23030_p13 = scmp.ne.s32.totalorder %s146_s11, %s23029_s1  ;;  %p23035_p1 = scmp.lt.s32.totalorder %s23029_s1, %s23029_s1 }
  0x89   :  { %p23036_p2 = por %p23035_p1, %p23034_p0 }
  0x8b   :  { %p23037_p3 = pnand %p23036_p2, %p23030_p13 }
  0x8d   :  { %23040 = shalt.err (!%p23037_p3)
}
  0x8e   :  { %151 = dma.hbm_to_vmem [thread:$0]  %s24102_s10, 3072, %s146_s11, [#allocation18], %s23130_s23, %s23130_s23, %s23131_s24  }
  0x8f   :  { %s23049_s8 = scalar_lea.vmem %s168_s27, 3072  ;;  %p23054_p5 = scmp.lt.s32.totalorder %s168_s27, %s168_s27 }
  0x90   :  { %p23050_p4 = scmp.ne.s32.totalorder %s168_s27, %s23049_s8  ;;  %p23055_p6 = scmp.lt.s32.totalorder %s23049_s8, %s23049_s8 }
  0x92   :  { %p23056_p7 = por %p23055_p6, %p23054_p5 }
  0x94   :  { %p23057_p8 = pnand %p23056_p7, %p23050_p4 }
  0x96   :  { %23060 = shalt.err (!%p23057_p8)
}
  0x97   :  { %173 = dma.hbm_to_vmem [thread:$0]  %s24104_s12, 3072, %s168_s27, [#allocation21], %s23127_s3, %s23127_s3, %s23128_s16  }
  0x98   :  { %s23142_s28 = smov [#allocation23]  }
  0x99   :  { %s180_s15 = sshll.u32 %s23142_s28, 4  ;;  %s181_s15 = int_to_ptr.vmem [resolvable:$true] %s180_s15 }
  0x9a   :  { %s23069_s18 = scalar_lea.vmem %s181_s15, 16  ;;  %s23073_s10 = scalar_lea.vmem %s181_s15, 32 }
  0x9b   :  { %p23070_p9 = scmp.ne.s32.totalorder %s181_s15, %s23069_s18  ;;  %p23074_p10 = scmp.lt.s32.totalorder %s181_s15, %s181_s15 }
  0x9c   :  { %p23075_p11 = scmp.lt.s32.totalorder %s23073_s10, %s23069_s18 }
  0x9e   :  { %p23076_p12 = por %p23075_p11, %p23074_p10 }
  0xa0   :  { %p23077_p13 = pnand %p23076_p12, %p23070_p9 }
  0xa2   :  { %23080 = shalt.err (!%p23077_p13)
}
  0xa3   :  { %183 = dma.hbm_to_vmem [thread:$0]  %s24105_s13, 16, %s181_s15, [#allocation24]  }
  0xa4   :  { %23101 = dma.done.wait [#allocation3], 1152  }
  0xa5   :  { %23102 = vsyncadd [#allocation3], 4294966144 }
  0xa6   :  { %23103 = dma.done.wait [#allocation6], 97328  }
  0xa7   :  { %23104 = vsyncadd [#allocation6], 4294869968 }
  0xa8   :  { %23105 = dma.done.wait [#allocation9], 124080  }
  0xa9   :  { %23106 = vsyncadd [#allocation9], 4294843216 }
  0xaa   :  { %23107 = dma.done.wait [#allocation12], 22560  }
  0xab   :  { %23108 = vsyncadd [#allocation12], 4294944736 }
  0xac   :  { %23109 = dma.done.wait [#allocation15], 8848  }
  0xad   :  { %23110 = vsyncadd [#allocation15], 4294958448 }
  0xae   :  { %23111 = dma.done.wait [#allocation18], 9216  }
  0xaf   :  { %23112 = vsyncadd [#allocation18], 4294958080 }
  0xb0   :  { %23113 = dma.done.wait [#allocation21], 3120  }
  0xb1   :  { %23114 = vsyncadd [#allocation21], 4294964176 }
  0xb2   :  { %23115 = dma.done.wait [#allocation24], 16  }
  0xb3   :  { %23116 = vsyncadd [#allocation24], 4294967280  ;;  %v19813_v0 = vld [vmem:[#allocation5 + $0x26c] ss:$44 sps:$4 sm:$0xff]   ;;  %v19817_v2 = vld [vmem:[#allocation5 + $0x268] ss:$44 sps:$4 sm:$0xff]   ;;  %v1075_v39 = vlaneseq }
  0xb4   :  { %v19815_v1 = vld [vmem:[#allocation5 + $0x7ec] ss:$44 sps:$4 sm:$0xff]   ;;  %5230 = vmatprep.subr.bf16.mxu0 %v19813_v0  ;;  %v19818_v3 = vld [vmem:[#allocation5 + $0x7e8] ss:$44 sps:$4 sm:$0xff]   ;;  %v19823_v6 = vld [vmem:[#allocation5 + $0x210] ss:$44 sps:$4 sm:$0xff]  }
  0xb5   :  { %5273 = vmatprep.subr.bf16.mxu1 %v19815_v1  ;;  %v19819_v4 = vld [vmem:[#allocation5 + $0x214] ss:$44 sps:$4 sm:$0xff]   ;;  %5231 = vmatpush1.bf16.msra.mxu0 %v19817_v2  ;;  %v19824_v7 = vld [vmem:[#allocation5 + $0x790] ss:$44 sps:$4 sm:$0xff]   ;;  %v19829_v10 = vld [vmem:[#allocation5 + $0x1b8] ss:$44 sps:$4 sm:$0xff]  }
  0xb6   :  { %5274 = vmatpush1.bf16.msra.mxu1 %v19818_v3  ;;  %v19821_v5 = vld [vmem:[#allocation5 + $0x794] ss:$44 sps:$4 sm:$0xff]   ;;  %5232 = vmatprep.subr.bf16.mxu0 %v19819_v4  ;;  %v19825_v8 = vld [vmem:[#allocation5 + $0x1bc] ss:$44 sps:$4 sm:$0xff]   ;;  %v19830_v11 = vld [vmem:[#allocation5 + $0x738] ss:$44 sps:$4 sm:$0xff]  }
  0xb7   :  { %5275 = vmatprep.subr.bf16.mxu1 %v19821_v5  ;;  %v19827_v9 = vld [vmem:[#allocation5 + $0x73c] ss:$44 sps:$4 sm:$0xff]   ;;  %v19831_v12 = vld [vmem:[#allocation5 + $0x164] ss:$44 sps:$4 sm:$0xff]   ;;  %v19835_v14 = vld [vmem:[#allocation5 + $0x160] ss:$44 sps:$4 sm:$0xff]  }
  0xb8   :  { %v19833_v13 = vld [vmem:[#allocation5 + $0x6e4] ss:$44 sps:$4 sm:$0xff]   ;;  %v19836_v15 = vld [vmem:[#allocation5 + $0x6e0] ss:$44 sps:$4 sm:$0xff]   ;;  %v19841_v18 = vld [vmem:[#allocation5 + $0x108] ss:$44 sps:$4 sm:$0xff]  }
  0xb9   :  { %5233 = vmatpush1.bf16.msra.mxu0 %v19823_v6  ;;  %v19837_v16 = vld [vmem:[#allocation5 + $0x10c] ss:$44 sps:$4 sm:$0xff]   ;;  %v19842_v19 = vld [vmem:[#allocation5 + $0x688] ss:$44 sps:$4 sm:$0xff]   ;;  %v19847_v22 = vld [vmem:[#allocation5 + $0xb0] ss:$44 sps:$4 sm:$0xff]  }
  0xba   :  { %5276 = vmatpush1.bf16.msra.mxu1 %v19824_v7  ;;  %5234 = vmatprep.subr.bf16.mxu0 %v19825_v8  ;;  %v19839_v17 = vld [vmem:[#allocation5 + $0x68c] ss:$44 sps:$4 sm:$0xff]   ;;  %v19843_v20 = vld [vmem:[#allocation5 + $0xb4] ss:$44 sps:$4 sm:$0xff]   ;;  %v19848_v23 = vld [vmem:[#allocation5 + $0x630] ss:$44 sps:$4 sm:$0xff]  }
  0xbb   :  { %5277 = vmatprep.subr.bf16.mxu1 %v19827_v9  ;;  %v19845_v21 = vld [vmem:[#allocation5 + $0x634] ss:$44 sps:$4 sm:$0xff]   ;;  %v19849_v24 = vld [vmem:[#allocation5 + $0x5c] ss:$44 sps:$4 sm:$0xff]   ;;  %v19853_v26 = vld [vmem:[#allocation5 + $0x58] ss:$44 sps:$4 sm:$0xff]  }
  0xbc   :  { %v19851_v25 = vld [vmem:[#allocation5 + $0x5dc] ss:$44 sps:$4 sm:$0xff]   ;;  %v19854_v27 = vld [vmem:[#allocation5 + $0x5d8] ss:$44 sps:$4 sm:$0xff]   ;;  %v19859_v30 = vld [vmem:[#allocation5] ss:$44 sps:$4 sm:$0xff]  }
  0xbd   :  { %5235 = vmatpush1.bf16.msra.mxu0 %v19829_v10  ;;  %v19855_v28 = vld [vmem:[#allocation5 + $0x4] ss:$44 sps:$4 sm:$0xff]   ;;  %v19860_v31 = vld [vmem:[#allocation5 + $0x580] ss:$44 sps:$4 sm:$0xff]   ;;  %v19865_v34 = vld [vmem:[#allocation5 + $0x528] ss:$44 sps:$4 sm:$0xff]  }
  0xbe   :  { %5278 = vmatpush1.bf16.msra.mxu1 %v19830_v11  ;;  %5236 = vmatprep.subr.bf16.mxu0 %v19831_v12  ;;  %v19857_v29 = vld [vmem:[#allocation5 + $0x584] ss:$44 sps:$4 sm:$0xff]   ;;  %v19861_v32 = vld [vmem:[#allocation5 + $0x52c] ss:$44 sps:$4 sm:$0xff]   ;;  %v19866_v35 = vld [vmem:[#allocation5 + $0xaa8] ss:$44 sps:$4 sm:$0xff]  }
  0xbf   :  { %5279 = vmatprep.subr.bf16.mxu1 %v19833_v13  ;;  %v19863_v33 = vld [vmem:[#allocation5 + $0xaac] ss:$44 sps:$4 sm:$0xff]   ;;  %v19867_v36 = vld [vmem:[#allocation5 + $0x4d4] ss:$44 sps:$4 sm:$0xff]   ;;  %v19871_v38 = vld [vmem:[#allocation5 + $0x4d0] ss:$44 sps:$4 sm:$0xff]  }
  0xc0   :  { %v19869_v37 = vld [vmem:[#allocation5 + $0xa54] ss:$44 sps:$4 sm:$0xff]   ;;  %v23143_v40 = vmov 1966171168   ;;  %v19872_v42 = vld [vmem:[#allocation5 + $0xa50] ss:$44 sps:$4 sm:$0xff]  }
  0xc1   :  { %5237 = vmatpush1.bf16.msra.mxu0 %v19835_v14  ;;  %v1155_v41 = vunpack.c.l.s4 %v23143_v40  ;;  %v19873_v43 = vld [vmem:[#allocation5 + $0x47c] ss:$44 sps:$4 sm:$0xff]   ;;  %v19877_v45 = vld [vmem:[#allocation5 + $0x478] ss:$44 sps:$4 sm:$0xff]   ;;  %v23279_v47 = vshrl.u32 %v1075_v39, 7  ;;  %vm5196_vm0 = vcmask 1045504  }
  0xc2   :  { %5280 = vmatpush1.bf16.msra.mxu1 %v19836_v15  ;;  %5238 = vmatprep.subr.bf16.mxu0 %v19837_v16  ;;  %v19875_v44 = vld [vmem:[#allocation5 + $0x9fc] ss:$44 sps:$4 sm:$0xff]   ;;  %v19878_v46 = vld [vmem:[#allocation5 + $0x9f8] ss:$44 sps:$4 sm:$0xff]   ;;  %v19883_v51 = vld [vmem:[#allocation5 + $0x420] ss:$44 sps:$4 sm:$0xff]  }
  0xc3   :  { %5281 = vmatprep.subr.bf16.mxu1 %v19839_v17  ;;  %v1156_v48 = vunpack.c.0.s8 %v1155_v41  ;;  %v19879_v49 = vld [vmem:[#allocation5 + $0x424] ss:$44 sps:$4 sm:$0xff]   ;;  %v19884_v52 = vld [vmem:[#allocation5 + $0x9a0] ss:$44 sps:$4 sm:$0xff]   ;;  %v19889_v60 = vld [vmem:[#allocation5 + $0x3c8] ss:$44 sps:$4 sm:$0xff]  }
  0xc4   :  { %v19881_v50 = vld [vmem:[#allocation5 + $0x9a4] ss:$44 sps:$4 sm:$0xff]   ;;  %v19885_v53 = vld [vmem:[#allocation5 + $0x3cc] ss:$44 sps:$4 sm:$0xff]   ;;  %v19890_v61 = vld [vmem:[#allocation5 + $0x948] ss:$44 sps:$4 sm:$0xff]  }
  0xc5   :  { %5239 = vmatpush1.bf16.msra.mxu0 %v19841_v18  ;;  %v19887_v54 = vld [vmem:[#allocation5 + $0x94c] ss:$44 sps:$4 sm:$0xff]   ;;  %v23282_v55 = vsub.s32 %v1156_v48, %v23279_v47  ;;  %v19913_v58 = vld [vmem:[#allocation2 + $0x24] ss:$9 sps:$4 sm:$0xff]   ;;  %v19891_v0 = vld [vmem:[#allocation5 + $0x374] ss:$44 sps:$4 sm:$0xff]  }
  0xc6   :  { %5282 = vmatpush1.bf16.msra.mxu1 %v19842_v19  ;;  %5240 = vmatprep.subr.bf16.mxu0 %v19843_v20  ;;  %v19909_v56 = vld [vmem:[#allocation2] ss:$9 sps:$4 sm:$0xff]   ;;  %v19911_v57 = vld [vmem:[#allocation2 + $0x12] ss:$9 sps:$4 sm:$0xff]   ;;  %vm5192_vm1 = vcmask 621568   ;;  %vm23146_vm2 = vmmov 0  }
  0xc7   :  { %5283 = vmatprep.subr.bf16.mxu1 %v19845_v21  ;;  %v19915_v59 = vld [vmem:[#allocation2 + $0x36] ss:$9 sps:$4 sm:$0xff]   ;;  %v1160_v62 = vrot.slane %v19909_v56, %v23282_v55  ;;  %v1174_v63 = vrot.slane %v19911_v57, %v23282_v55  ;;  %v1188_v1 = vrot.slane %v19913_v58, %v23282_v55  ;;  %v19897_v9 = vld [vmem:[#allocation5 + $0x31c] ss:$44 sps:$4 sm:$0xff]  }
  0xc8   :  { %v1202_v2 = vrot.slane %v19915_v59, %v23282_v55  ;;  %v19893_v3 = vld [vmem:[#allocation5 + $0x8f4] ss:$44 sps:$4 sm:$0xff]   ;;  %v19895_v6 = vld [vmem:[#allocation5 + $0x370] ss:$44 sps:$4 sm:$0xff]   ;;  %v19901_v14 = vld [vmem:[#allocation5 + $0x318] ss:$44 sps:$4 sm:$0xff]  }
  0xc9   :  { %5241 = vmatpush1.bf16.msra.mxu0 %v19847_v22  ;;  %v1211_v4 = vcombine.high %v1160_v62, %v1174_v63  ;;  %v19896_v7 = vld [vmem:[#allocation5 + $0x8f0] ss:$44 sps:$4 sm:$0xff]   ;;  %v19902_v15 = vld [vmem:[#allocation5 + $0x898] ss:$44 sps:$4 sm:$0xff]   ;;  %v1210_v16 = vcombine.low %v1160_v62, %v1174_v63  ;;  %v19907_v20 = vld [vmem:[#allocation5 + $0x2c0] ss:$44 sps:$4 sm:$0xff]  }
  0xca   :  { %5284 = vmatpush1.bf16.msra.mxu1 %v19848_v23  ;;  %5242 = vmatprep.subr.bf16.mxu0 %v19849_v24  ;;  %v1215_v5 = vcombine.high %v1188_v1, %v1202_v2  ;;  %v19899_v11 = vld [vmem:[#allocation5 + $0x89c] ss:$44 sps:$4 sm:$0xff]   ;;  %v1214_v17 = vcombine.low %v1188_v1, %v1202_v2  ;;  %v19903_v18 = vld [vmem:[#allocation5 + $0x2c4] ss:$44 sps:$4 sm:$0xff]   ;;  %v19908_v21 = vld [vmem:[#allocation5 + $0x840] ss:$44 sps:$4 sm:$0xff]  }
  0xcb   :  { %5285 = vmatprep.subr.bf16.mxu1 %v19851_v25  ;;  %v1238_v8 = vrot.slane %v1211_v4, %v23282_v55  ;;  %v19905_v19 = vld [vmem:[#allocation5 + $0x844] ss:$44 sps:$4 sm:$0xff]   ;;  %v1224_v22 = vrot.slane %v1210_v16, %v23282_v55  ;;  %v19919_v24 = vld [vmem:[#allocation5 + $0xd6c] ss:$44 sps:$4 sm:$0xff]   ;;  %v19952_v48 = vld [vmem:[#allocation5 + $0x1134] ss:$44 sps:$4 sm:$0xff]  }
  0xcc   :  { %v1266_v10 = vrot.slane %v1215_v5, %v23282_v55  ;;  %v1252_v23 = vrot.slane %v1214_v17, %v23282_v55  ;;  %v19922_v25 = vld [vmem:[#allocation5 + $0x12ec] ss:$44 sps:$4 sm:$0xff]   ;;  %v19940_v39 = vld [vmem:[#allocation5 + $0x11e4] ss:$44 sps:$4 sm:$0xff]  }
  0xcd   :  { %5243 = vmatpush1.bf16.msra.mxu0 %v19853_v26  ;;  %v19935_v40 = vld [vmem:[#allocation5 + $0xc60] ss:$44 sps:$4 sm:$0xff]   ;;  %v19961_v56 = vld [vmem:[#allocation5 + $0xb04] ss:$44 sps:$4 sm:$0xff]  }
  0xce   :  { %5286 = vmatpush1.bf16.msra.mxu1 %v19854_v27  ;;  %5244 = vmatprep.subr.bf16.mxu0 %v19855_v28  ;;  %v23290_v12 = vcombine.low %v1238_v8, %v1266_v10  ;;  %v23292_v13 = vcombine.high %v1238_v8, %v1266_v10  ;;  %v23298_v26 = vcombine.low %v1224_v22, %v1252_v23  ;;  %v19917_v27 = vld [vmem:[#allocation5 + $0xd68] ss:$44 sps:$4 sm:$0xff]   ;;  %v19938_v41 = vld [vmem:[#allocation5 + $0x11e0] ss:$44 sps:$4 sm:$0xff]   ;;  %v19964_v57 = vld [vmem:[#allocation5 + $0x1084] ss:$44 sps:$4 sm:$0xff]  }
  0xcf   :  { %5287 = vmatprep.subr.bf16.mxu1 %v19857_v29  ;;  %v19920_v28 = vld [vmem:[#allocation5 + $0x12e8] ss:$44 sps:$4 sm:$0xff]   ;;  %v23300_v29 = vcombine.high %v1224_v22, %v1252_v23  ;;  %v19959_v62 = vld [vmem:[#allocation5 + $0xb00] ss:$44 sps:$4 sm:$0xff]   ;;  %v19977_v22 = vld [vmem:[#allocation5 + $0xf78] ss:$44 sps:$4 sm:$0xff]  }
  0xd0   :  { %24134 = vst [vmem:[#allocation35_spill] sm:$0xff] %v23290_v12  ;;  %24135 = vst [vmem:[#allocation36_spill] sm:$0xff] %v23292_v13  ;;  %5262 = vmatprep.mubr.bf16.mxu0 %v23290_v12  ;;  %5305 = vmatprep.mubr.bf16.mxu1 %v23292_v13  ;;  %v20013_v58 = vld [vmem:[#allocation2 + $0x4] ss:$9 sps:$4 sm:$0xff]   ;;  %v20014_v59 = vld [vmem:[#allocation2 + $0x16] ss:$9 sps:$4 sm:$0xff]  }
  0xd1   :  { %5245 = vmatpush1.bf16.msra.mxu0 %v19859_v30  ;;  %24136 = vst [vmem:[#allocation37_spill] sm:$0xff] %v23298_v26  ;;  %24137 = vst [vmem:[#allocation38_spill] sm:$0xff] %v23300_v29  ;;  %v19925_v30 = vld [vmem:[#allocation5 + $0xd14] ss:$44 sps:$4 sm:$0xff]   ;;  %v23305_v63 = vrot.slane %v20013_v58, %v23282_v55  ;;  %v19967_v2 = vld [vmem:[#allocation5 + $0x102c] ss:$44 sps:$4 sm:$0xff]  }
  0xd2   :  { %5288 = vmatpush1.bf16.msra.mxu1 %v19860_v31  ;;  %5246 = vmatprep.subr.bf16.mxu0 %v19861_v32  ;;  %v19928_v31 = vld [vmem:[#allocation5 + $0x1294] ss:$44 sps:$4 sm:$0xff]   ;;  %v19923_v32 = vld [vmem:[#allocation5 + $0xd10] ss:$44 sps:$4 sm:$0xff]   ;;  %v19970_v5 = vld [vmem:[#allocation5 + $0x15ac] ss:$44 sps:$4 sm:$0xff]  }
  0xd3   :  { %5289 = vmatprep.subr.bf16.mxu1 %v19863_v33  ;;  %v19926_v33 = vld [vmem:[#allocation5 + $0x1290] ss:$44 sps:$4 sm:$0xff]   ;;  %v19962_v1 = vld [vmem:[#allocation5 + $0x1080] ss:$44 sps:$4 sm:$0xff]   ;;  %v19965_v8 = vld [vmem:[#allocation5 + $0x1028] ss:$44 sps:$4 sm:$0xff]  }
  0xd4   :  { %v19980_v23 = vld [vmem:[#allocation5 + $0x14f8] ss:$44 sps:$4 sm:$0xff]  }
  0xd5   :  { %5247 = vmatpush2.bf16.msra.mxu0 %v19865_v34  ;;  %v19931_v34 = vld [vmem:[#allocation5 + $0xcbc] ss:$44 sps:$4 sm:$0xff]  }
  0xd6   :  { %5290 = vmatpush2.bf16.msra.mxu1 %v19866_v35  ;;  %5248 = vmatprep.subr.bf16.mxu0 %v19867_v36  ;;  %v19934_v35 = vld [vmem:[#allocation5 + $0x123c] ss:$44 sps:$4 sm:$0xff]   ;;  %v19929_v36 = vld [vmem:[#allocation5 + $0xcb8] ss:$44 sps:$4 sm:$0xff]  }
  0xd7   :  { %5291 = vmatprep.subr.bf16.mxu1 %v19869_v37  ;;  %v19932_v37 = vld [vmem:[#allocation5 + $0x1238] ss:$44 sps:$4 sm:$0xff]  }
  0xd9   :  { %5249 = vmatpush2.bf16.msra.mxu0 %v19871_v38  ;;  %v19937_v38 = vld [vmem:[#allocation5 + $0xc64] ss:$44 sps:$4 sm:$0xff]  }
  0xda   :  { %5292 = vmatpush2.bf16.msra.mxu1 %v19872_v42  ;;  %5250 = vmatprep.subr.bf16.mxu0 %v19873_v43  ;;  %v19943_v42 = vld [vmem:[#allocation5 + $0xc0c] ss:$44 sps:$4 sm:$0xff]  }
  0xdb   :  { %5293 = vmatprep.subr.bf16.mxu1 %v19875_v44  ;;  %v19946_v43 = vld [vmem:[#allocation5 + $0x118c] ss:$44 sps:$4 sm:$0xff]   ;;  %v19941_v44 = vld [vmem:[#allocation5 + $0xc08] ss:$44 sps:$4 sm:$0xff]  }
  0xdd   :  { %5251 = vmatpush2.bf16.msra.mxu0 %v19877_v45  ;;  %v19944_v45 = vld [vmem:[#allocation5 + $0x1188] ss:$44 sps:$4 sm:$0xff]  }
  0xde   :  { %5294 = vmatpush2.bf16.msra.mxu1 %v19878_v46  ;;  %5252 = vmatprep.subr.bf16.mxu0 %v19879_v49  ;;  %v19949_v46 = vld [vmem:[#allocation5 + $0xbb4] ss:$44 sps:$4 sm:$0xff]   ;;  %v19947_v49 = vld [vmem:[#allocation5 + $0xbb0] ss:$44 sps:$4 sm:$0xff]  }
  0xdf   :  { %5295 = vmatprep.subr.bf16.mxu1 %v19881_v50  ;;  %v19950_v50 = vld [vmem:[#allocation5 + $0x1130] ss:$44 sps:$4 sm:$0xff]  }
  0xe1   :  { %5253 = vmatpush2.bf16.msra.mxu0 %v19883_v51  ;;  %v19955_v51 = vld [vmem:[#allocation5 + $0xb5c] ss:$44 sps:$4 sm:$0xff]  }
  0xe2   :  { %5296 = vmatpush2.bf16.msra.mxu1 %v19884_v52  ;;  %5254 = vmatprep.subr.bf16.mxu0 %v19885_v53  ;;  %v19958_v52 = vld [vmem:[#allocation5 + $0x10dc] ss:$44 sps:$4 sm:$0xff]   ;;  %v19953_v53 = vld [vmem:[#allocation5 + $0xb58] ss:$44 sps:$4 sm:$0xff]  }
  0xe3   :  { %5297 = vmatprep.subr.bf16.mxu1 %v19887_v54  ;;  %v19956_v54 = vld [vmem:[#allocation5 + $0x10d8] ss:$44 sps:$4 sm:$0xff]  }
  0xe5   :  { %5255 = vmatpush2.bf16.msra.mxu0 %v19889_v60  ;;  %v20015_v60 = vld [vmem:[#allocation2 + $0x28] ss:$9 sps:$4 sm:$0xff]  }
  0xe6   :  { %5298 = vmatpush2.bf16.msra.mxu1 %v19890_v61  ;;  %5256 = vmatprep.subr.bf16.mxu0 %v19891_v0  ;;  %v20016_v61 = vld [vmem:[#allocation2 + $0x3a] ss:$9 sps:$4 sm:$0xff]   ;;  %v23308_v0 = vrot.slane %v20014_v59, %v23282_v55 }
  0xe7   :  { %5299 = vmatprep.subr.bf16.mxu1 %v19893_v3  ;;  %v23311_v3 = vrot.slane %v20015_v60, %v23282_v55  ;;  %v23314_v4 = vrot.slane %v20016_v61, %v23282_v55  ;;  %v20025_v59 = vld [vmem:[#allocation5 + $0x170c] ss:$44 sps:$4 sm:$0xff]   ;;  %v20028_v60 = vld [vmem:[#allocation5 + $0x21c] ss:$44 sps:$4 sm:$0xff]  }
  0xe8   :  { %v20047_v61 = vld [vmem:[#allocation2 + $0x8] ss:$9 sps:$4 sm:$0x11]  }
  0xe9   :  { %5257 = vmatpush2.bf16.msra.mxu0 %v19895_v6  ;;  %v1213_v6 = vcombine.high %v23305_v63, %v23308_v0 }
  0xea   :  { %5300 = vmatpush2.bf16.msra.mxu1 %v19896_v7  ;;  %5258 = vmatprep.subr.bf16.mxu0 %v19897_v9  ;;  %v1217_v7 = vcombine.high %v23311_v3, %v23314_v4  ;;  %v19968_v9 = vld [vmem:[#allocation5 + $0x15a8] ss:$44 sps:$4 sm:$0xff]  }
  0xeb   :  { %5301 = vmatprep.subr.bf16.mxu1 %v19899_v11  ;;  %v1245_v10 = vrot.slane %v1213_v6, %v23282_v55  ;;  %v19973_v11 = vld [vmem:[#allocation5 + $0xfd4] ss:$44 sps:$4 sm:$0xff]   ;;  %v1292_v6 = vrot.slane %v20047_v61, %v23282_v55 }
  0xec   :  { %v20090_v61 = vld [vmem:[#allocation5 + $0x5e0] ss:$44 sps:$4 sm:$0xff]  }
  0xed   :  { %5259 = vmatpush2.bf16.msra.mxu0 %v19901_v14  ;;  %v1273_v14 = vrot.slane %v1217_v7, %v23282_v55 }
  0xee   :  { %5302 = vmatpush2.bf16.msra.mxu1 %v19902_v15  ;;  %5260 = vmatprep.subr.bf16.mxu0 %v19903_v18  ;;  %v19976_v15 = vld [vmem:[#allocation5 + $0x1554] ss:$44 sps:$4 sm:$0xff]   ;;  %v19971_v18 = vld [vmem:[#allocation5 + $0xfd0] ss:$44 sps:$4 sm:$0xff]  }
  0xef   :  { %5303 = vmatprep.subr.bf16.mxu1 %v19905_v19  ;;  %v23322_v16 = vcombine.low %v1245_v10, %v1273_v14  ;;  %v23324_v17 = vcombine.high %v1245_v10, %v1273_v14  ;;  %v19974_v19 = vld [vmem:[#allocation5 + $0x1550] ss:$44 sps:$4 sm:$0xff]  }
  0xf0   :  { %v20029_v10 = vld [vmem:[#allocation5 + $0x16b0] ss:$44 sps:$4 sm:$0xff]  }
  0xf1   :  { %5261 = vmatpush2.bf16.msra.mxu0 %v19907_v20  ;;  %24138 = vst [vmem:[#allocation39_spill] sm:$0xff] %v23322_v16  ;;  %24139 = vst [vmem:[#allocation40_spill] sm:$0xff] %v23324_v17  ;;  %v19979_v20 = vld [vmem:[#allocation5 + $0xf7c] ss:$44 sps:$4 sm:$0xff]  }
  0xf2   :  { %5304 = vmatpush2.bf16.msra.mxu1 %v19908_v21  ;;  %5316 = vmatprep.subr.bf16.mxu0 %v19919_v24  ;;  %v19982_v21 = vld [vmem:[#allocation5 + $0x14fc] ss:$44 sps:$4 sm:$0xff]   ;;  %v19985_v24 = vld [vmem:[#allocation5 + $0xf24] ss:$44 sps:$4 sm:$0xff]  }
  0xf3   :  { %5359 = vmatprep.subr.bf16.mxu1 %v19922_v25  ;;  %v19988_v25 = vld [vmem:[#allocation5 + $0x14a4] ss:$44 sps:$4 sm:$0xff]   ;;  %v20037_v14 = vld [vmem:[#allocation5 + $0x165c] ss:$44 sps:$4 sm:$0xff]  }
  0xf4   :  { %5263 = vmatmul.mubr.bf16.vlgmr.msra.gmra.mxu0 %v23298_v26 }
  0xf5   :  { %5306 = vmatmul.mubr.bf16.vlgmr.msra.gmra.mxu1 %v23300_v29  ;;  %5317 = vmatpush1.bf16.msra.mxu0 %v19917_v27  ;;  %v19983_v27 = vld [vmem:[#allocation5 + $0xf20] ss:$44 sps:$4 sm:$0xff]  }
  0xf6   :  { %5360 = vmatpush1.bf16.msra.mxu1 %v19920_v28  ;;  %5318 = vmatprep.subr.bf16.mxu0 %v19925_v30  ;;  %v19986_v28 = vld [vmem:[#allocation5 + $0x14a0] ss:$44 sps:$4 sm:$0xff]  }
  0xf7   :  { %5361 = vmatprep.subr.bf16.mxu1 %v19928_v31  ;;  %5348 = vmatprep.mubr.bf16.mxu0 %v23322_v16  ;;  %v19991_v30 = vld [vmem:[#allocation5 + $0xecc] ss:$44 sps:$4 sm:$0xff]  }
  0xf8   :  { %5391 = vmatprep.mubr.bf16.mxu1 %v23324_v17  ;;  %v19994_v31 = vld [vmem:[#allocation5 + $0x144c] ss:$44 sps:$4 sm:$0xff]  }
  0xf9   :  { %5319 = vmatpush1.bf16.msra.mxu0 %v19923_v32  ;;  %v19989_v32 = vld [vmem:[#allocation5 + $0xec8] ss:$44 sps:$4 sm:$0xff]  }
  0xfa   :  { %5362 = vmatpush1.bf16.msra.mxu1 %v19926_v33  ;;  %5320 = vmatprep.subr.bf16.mxu0 %v19931_v34  ;;  %v19992_v33 = vld [vmem:[#allocation5 + $0x1448] ss:$44 sps:$4 sm:$0xff]  }
  0xfb   :  { %5363 = vmatprep.subr.bf16.mxu1 %v19934_v35  ;;  %v19997_v34 = vld [vmem:[#allocation5 + $0xe74] ss:$44 sps:$4 sm:$0xff]  }
  0xfc   :  { %v20000_v35 = vld [vmem:[#allocation5 + $0x13f4] ss:$44 sps:$4 sm:$0xff]  }
  0xfd   :  { %5321 = vmatpush1.bf16.msra.mxu0 %v19929_v36  ;;  %v19995_v36 = vld [vmem:[#allocation5 + $0xe70] ss:$44 sps:$4 sm:$0xff]  }
  0xfe   :  { %5364 = vmatpush1.bf16.msra.mxu1 %v19932_v37  ;;  %5322 = vmatprep.subr.bf16.mxu0 %v19937_v38  ;;  %v19998_v37 = vld [vmem:[#allocation5 + $0x13f0] ss:$44 sps:$4 sm:$0xff]  }
  0xff   :  { %5365 = vmatprep.subr.bf16.mxu1 %v19940_v39  ;;  %v20003_v38 = vld [vmem:[#allocation5 + $0xe1c] ss:$44 sps:$4 sm:$0xff]  }
 0x100   :  { %v20006_v39 = vld [vmem:[#allocation5 + $0x139c] ss:$44 sps:$4 sm:$0xff]  }
 0x101   :  { %5323 = vmatpush1.bf16.msra.mxu0 %v19935_v40  ;;  %v1212_v40 = vcombine.low %v23305_v63, %v23308_v0  ;;  %v20049_v63 = vld [vmem:[#allocation2 + $0x2c] ss:$9 sps:$4 sm:$0x11]   ;;  %v20050_v0 = vld [vmem:[#allocation2 + $0x3e] ss:$9 sps:$4 sm:$0x11]  }
 0x102   :  { %5366 = vmatpush1.bf16.msra.mxu1 %v19938_v41  ;;  %5324 = vmatprep.subr.bf16.mxu0 %v19943_v42  ;;  %v1216_v41 = vcombine.low %v23311_v3, %v23314_v4  ;;  %v20001_v42 = vld [vmem:[#allocation5 + $0xe18] ss:$44 sps:$4 sm:$0xff]   ;;  %v20031_v3 = vld [vmem:[#allocation5 + $0x16b4] ss:$44 sps:$4 sm:$0xff]  }
 0x103   :  { %5367 = vmatprep.subr.bf16.mxu1 %v19946_v43  ;;  %v20004_v43 = vld [vmem:[#allocation5 + $0x1398] ss:$44 sps:$4 sm:$0xff]  }
 0x104   :  { %v20034_v4 = vld [vmem:[#allocation5 + $0x1c4] ss:$44 sps:$4 sm:$0xff]  }
 0x105   :  { %5325 = vmatpush1.bf16.msra.mxu0 %v19941_v44  ;;  %v20009_v44 = vld [vmem:[#allocation5 + $0xdc4] ss:$44 sps:$4 sm:$0xff]  }
 0x106   :  { %5368 = vmatpush1.bf16.msra.mxu1 %v19944_v45  ;;  %5326 = vmatprep.subr.bf16.mxu0 %v19949_v46  ;;  %v20012_v45 = vld [vmem:[#allocation5 + $0x1344] ss:$44 sps:$4 sm:$0xff]   ;;  %v20007_v46 = vld [vmem:[#allocation5 + $0xdc0] ss:$44 sps:$4 sm:$0xff]  }
 0x107   :  { %5369 = vmatprep.subr.bf16.mxu1 %v19952_v48  ;;  %v1231_v48 = vrot.slane %v1212_v40, %v23282_v55  ;;  %v20063_v40 = vld [vmem:[#allocation5 + $0x8] ss:$44 sps:$4 sm:$0xff]  }
 0x109   :  { %5327 = vmatpush1.bf16.msra.mxu0 %v19947_v49  ;;  %v1259_v49 = vrot.slane %v1216_v41, %v23282_v55  ;;  %v20066_v41 = vld [vmem:[#allocation5 + $0x740] ss:$44 sps:$4 sm:$0xff]  }
 0x10a   :  { %5370 = vmatpush1.bf16.msra.mxu1 %v19950_v50  ;;  %5328 = vmatprep.subr.bf16.mxu0 %v19955_v51  ;;  %v20010_v50 = vld [vmem:[#allocation5 + $0x1340] ss:$44 sps:$4 sm:$0xff]  }
 0x10b   :  { %5371 = vmatprep.subr.bf16.mxu1 %v19958_v52  ;;  %v20022_v51 = vld [vmem:[#allocation5 + $0x1760] ss:$44 sps:$4 sm:$0x3f]   ;;  %v20017_v52 = vld [vmem:[#allocation5 + $0x1764] ss:$44 sps:$4 sm:$0x3f]  }
 0x10c   :  { %v5198_v58 = vsel %vm5196_vm0, %v20022_v51, 0  ;;  %v20083_v51 = vld [vmem:[#allocation5 + $0x484] ss:$44 sps:$4 sm:$0xff]  }
 0x10d   :  { %5329 = vmatpush1.bf16.msra.mxu0 %v19953_v53  ;;  %v20021_v53 = vld [vmem:[#allocation5 + $0x274] ss:$44 sps:$4 sm:$0xff]  }
 0x10e   :  { %5372 = vmatpush1.bf16.msra.mxu1 %v19956_v54  ;;  %5330 = vmatprep.subr.bf16.mxu0 %v19961_v56  ;;  %v23334_v54 = vcombine.low %v1231_v48, %v1259_v49  ;;  %v23336_v56 = vcombine.high %v1231_v48, %v1259_v49  ;;  %v20080_v48 = vld [vmem:[#allocation5 + $0x694] ss:$44 sps:$4 sm:$0xff]   ;;  %v20075_v49 = vld [vmem:[#allocation5 + $0x4d8] ss:$44 sps:$4 sm:$0xff]  }
 0x10f   :  { %5373 = vmatprep.subr.bf16.mxu1 %v19964_v57  ;;  %v20019_v57 = vld [vmem:[#allocation5 + $0x270] ss:$44 sps:$4 sm:$0xff]  }
 0x110   :  { %24140 = vst [vmem:[#allocation41_spill] sm:$0xff] %v23334_v54  ;;  %24141 = vst [vmem:[#allocation42_spill] sm:$0xff] %v23336_v56 }
 0x111   :  { %5331 = vmatpush1.bf16.msra.mxu0 %v19959_v62  ;;  %v20048_v62 = vld [vmem:[#allocation2 + $0x1a] ss:$9 sps:$4 sm:$0x11]  }
 0x112   :  { %5374 = vmatpush1.bf16.msra.mxu1 %v19962_v1  ;;  %5332 = vmatprep.subr.bf16.mxu0 %v19967_v2  ;;  %v20023_v1 = vld [vmem:[#allocation5 + $0x1708] ss:$44 sps:$4 sm:$0xff]   ;;  %v20026_v2 = vld [vmem:[#allocation5 + $0x218] ss:$44 sps:$4 sm:$0xff]   ;;  %v1299_v7 = vrot.slane %v20048_v62, %v23282_v55 }
 0x113   :  { %5375 = vmatprep.subr.bf16.mxu1 %v19970_v5  ;;  %v24109_v5 = vmov 0   ;;  %v20095_v62 = vld [vmem:[#allocation5 + $0x3d4] ss:$44 sps:$4 sm:$0xff]  }
 0x115   :  { %5333 = vmatpush2.bf16.msra.mxu0 %v19965_v8  ;;  %v1306_v8 = vrot.slane %v20049_v63, %v23282_v55  ;;  %v20098_v63 = vld [vmem:[#allocation5 + $0x58c] ss:$44 sps:$4 sm:$0xff]  }
 0x116   :  { %5376 = vmatpush2.bf16.msra.mxu1 %v19968_v9  ;;  %5334 = vmatprep.subr.bf16.mxu0 %v19973_v11  ;;  %v1313_v9 = vrot.slane %v20050_v0, %v23282_v55  ;;  %v20032_v11 = vld [vmem:[#allocation5 + $0x1c0] ss:$44 sps:$4 sm:$0xff]   ;;  %v20093_v0 = vld [vmem:[#allocation5 + $0x3d0] ss:$44 sps:$4 sm:$0xff]  }
 0x117   :  { %5377 = vmatprep.subr.bf16.mxu1 %v19976_v15  ;;  %v20040_v15 = vld [vmem:[#allocation5 + $0x16c] ss:$44 sps:$4 sm:$0xff]  }
 0x119   :  { %5335 = vmatpush2.bf16.msra.mxu0 %v19971_v18  ;;  %v1314_v18 = vcombine.low %v1292_v6, %v1299_v7  ;;  %v20102_v6 = vld [vmem:[#allocation5 + $0xab0] ss:$44 sps:$4 sm:$0xff]  }
 0x11a   :  { %5378 = vmatpush2.bf16.msra.mxu1 %v19974_v19  ;;  %5336 = vmatprep.subr.bf16.mxu0 %v19979_v20  ;;  %v1315_v19 = vcombine.low %v1306_v8, %v1313_v9  ;;  %v20035_v20 = vld [vmem:[#allocation5 + $0x1658] ss:$44 sps:$4 sm:$0xff]   ;;  %v20110_v8 = vld [vmem:[#allocation5 + $0xa5c] ss:$44 sps:$4 sm:$0xff]   ;;  %v20105_v9 = vld [vmem:[#allocation5 + $0x320] ss:$44 sps:$4 sm:$0xff]  }
 0x11b   :  { %5379 = vmatprep.subr.bf16.mxu1 %v19982_v21  ;;  %v20038_v21 = vld [vmem:[#allocation5 + $0x168] ss:$44 sps:$4 sm:$0xff]   ;;  %v20107_v7 = vld [vmem:[#allocation5 + $0x324] ss:$44 sps:$4 sm:$0xff]  }
 0x11d   :  { %5337 = vmatpush2.bf16.msra.mxu0 %v19977_v22  ;;  %v20043_v22 = vld [vmem:[#allocation5 + $0x1604] ss:$44 sps:$4 sm:$0xff]  }
 0x11e   :  { %5380 = vmatpush2.bf16.msra.mxu1 %v19980_v23  ;;  %5338 = vmatprep.subr.bf16.mxu0 %v19985_v24  ;;  %v20046_v23 = vld [vmem:[#allocation5 + $0x114] ss:$44 sps:$4 sm:$0xff]   ;;  %v1322_v24 = vrot.slane %v1314_v18, %v23282_v55 }
 0x11f   :  { %5381 = vmatprep.subr.bf16.mxu1 %v19988_v25  ;;  %v1329_v25 = vrot.slane %v1315_v19, %v23282_v55  ;;  %v20057_v55 = vld [vmem:[#allocation5 + $0x60] ss:$44 sps:$4 sm:$0xff]  }
 0x120   :  { %v20114_v18 = vld [vmem:[#allocation5 + $0xa00] ss:$44 sps:$4 sm:$0xff]  }
 0x121   :  { %5339 = vmatpush2.bf16.msra.mxu0 %v19983_v27  ;;  %v20041_v27 = vld [vmem:[#allocation5 + $0x1600] ss:$44 sps:$4 sm:$0xff]  }
 0x122   :  { %5382 = vmatpush2.bf16.msra.mxu1 %v19986_v28  ;;  %5340 = vmatprep.subr.bf16.mxu0 %v19991_v30  ;;  %v20044_v28 = vld [vmem:[#allocation5 + $0x110] ss:$44 sps:$4 sm:$0xff]   ;;  %v20119_v19 = vld [vmem:[#allocation5 + $0x9ac] ss:$44 sps:$4 sm:$0xff]  }
 0x123   :  { %5383 = vmatprep.subr.bf16.mxu1 %v19994_v31  ;;  %v20053_v30 = vld [vmem:[#allocation5 + $0xbc] ss:$44 sps:$4 sm:$0xff]   ;;  %v20056_v31 = vld [vmem:[#allocation5 + $0x7f4] ss:$44 sps:$4 sm:$0xff]  }
 0x125   :  { %5341 = vmatpush2.bf16.msra.mxu0 %v19989_v32  ;;  %v23350_v32 = vcombine.low %v1322_v24, %v1329_v25  ;;  %v20128_v24 = vld [vmem:[#allocation5 + $0xd1c] ss:$44 sps:$4 sm:$0xff]  }
 0x126   :  { %5384 = vmatpush2.bf16.msra.mxu1 %v19992_v33  ;;  %5342 = vmatprep.subr.bf16.mxu0 %v19997_v34  ;;  %v20051_v33 = vld [vmem:[#allocation5 + $0xb8] ss:$44 sps:$4 sm:$0xff]   ;;  %v20054_v34 = vld [vmem:[#allocation5 + $0x7f0] ss:$44 sps:$4 sm:$0xff]  }
 0x127   :  { %5385 = vmatprep.subr.bf16.mxu1 %v20000_v35  ;;  %24142 = vst [vmem:[#allocation43_spill] sm:$0xff] %v23350_v32  ;;  %v20059_v35 = vld [vmem:[#allocation5 + $0x64] ss:$44 sps:$4 sm:$0xff]  }
 0x128   :  { %v20123_v25 = vld [vmem:[#allocation5 + $0x950] ss:$44 sps:$4 sm:$0xff]  }
 0x129   :  { %5343 = vmatpush2.bf16.msra.mxu0 %v19995_v36  ;;  %v20062_v36 = vld [vmem:[#allocation5 + $0x79c] ss:$44 sps:$4 sm:$0xff]  }
 0x12a   :  { %5386 = vmatpush2.bf16.msra.mxu1 %v19998_v37  ;;  %5344 = vmatprep.subr.bf16.mxu0 %v20003_v38  ;;  %v20060_v37 = vld [vmem:[#allocation5 + $0x798] ss:$44 sps:$4 sm:$0xff]  }
 0x12b   :  { %5387 = vmatprep.subr.bf16.mxu1 %v20006_v39  ;;  %v20065_v38 = vld [vmem:[#allocation5 + $0xc] ss:$44 sps:$4 sm:$0xff]   ;;  %v20068_v39 = vld [vmem:[#allocation5 + $0x744] ss:$44 sps:$4 sm:$0xff]  }
 0x12d   :  { %5345 = vmatpush2.bf16.msra.mxu0 %v20001_v42  ;;  %v20071_v42 = vld [vmem:[#allocation5 + $0x534] ss:$44 sps:$4 sm:$0xff]  }
 0x12e   :  { %5388 = vmatpush2.bf16.msra.mxu1 %v20004_v43  ;;  %5346 = vmatprep.subr.bf16.mxu0 %v20009_v44  ;;  %v20074_v43 = vld [vmem:[#allocation5 + $0x6ec] ss:$44 sps:$4 sm:$0xff]   ;;  %v20069_v44 = vld [vmem:[#allocation5 + $0x530] ss:$44 sps:$4 sm:$0xff]  }
 0x12f   :  { %5389 = vmatprep.subr.bf16.mxu1 %v20012_v45  ;;  %v20072_v45 = vld [vmem:[#allocation5 + $0x6e8] ss:$44 sps:$4 sm:$0xff]  }
 0x131   :  { %5347 = vmatpush2.bf16.msra.mxu0 %v20007_v46  ;;  %v20077_v46 = vld [vmem:[#allocation5 + $0x4dc] ss:$44 sps:$4 sm:$0xff]  }
 0x132   :  { %5390 = vmatpush2.bf16.msra.mxu1 %v20010_v50  ;;  %18002 = vmatprep.subr.msk.bf16.mxu0 %vm5196_vm0, %v20017_v52  ;;  %v20078_v50 = vld [vmem:[#allocation5 + $0x690] ss:$44 sps:$4 sm:$0xff]  }
 0x133   :  { %5445 = vmatprep.subr.bf16.mxu1 %v20021_v53  ;;  %v20086_v52 = vld [vmem:[#allocation5 + $0x63c] ss:$44 sps:$4 sm:$0xff]   ;;  %v20081_v53 = vld [vmem:[#allocation5 + $0x480] ss:$44 sps:$4 sm:$0xff]  }
 0x134   :  { %5349 = vmatmul.mubr.bf16.vlgmr.msra.gmra.mxu0 %v23334_v54 }
 0x135   :  { %5392 = vmatmul.mubr.bf16.vlgmr.msra.gmra.mxu1 %v23336_v56  ;;  %5409 = vmatpush1.bf16.msra.mxu0 %v5198_v58  ;;  %v20089_v58 = vld [vmem:[#allocation5 + $0x42c] ss:$44 sps:$4 sm:$0xff]  }
 0x136   :  { %5446 = vmatpush1.bf16.msra.mxu1 %v20019_v57  ;;  %5410 = vmatprep.subr.bf16.mxu0 %v20025_v59  ;;  %v20084_v57 = vld [vmem:[#allocation5 + $0x638] ss:$44 sps:$4 sm:$0xff]  }
 0x137   :  { %5447 = vmatprep.subr.bf16.mxu1 %v20028_v60  ;;  %5434 = vmatprep.mubr.bf16.mxu0 %v24109_v5  ;;  %v20092_v59 = vld [vmem:[#allocation5 + $0x5e4] ss:$44 sps:$4 sm:$0xff]   ;;  %v20087_v60 = vld [vmem:[#allocation5 + $0x428] ss:$44 sps:$4 sm:$0xff]  }
 0x138   :  { %5477 = vmatprep.mubr.bf16.mxu1 %v23290_v12 }
 0x139   :  { %5411 = vmatpush1.bf16.msra.mxu0 %v20023_v1  ;;  %v20096_v1 = vld [vmem:[#allocation5 + $0x588] ss:$44 sps:$4 sm:$0xff]  }
 0x13a   :  { %5448 = vmatpush1.bf16.msra.mxu1 %v20026_v2  ;;  %5412 = vmatprep.subr.bf16.mxu0 %v20031_v3  ;;  %v20101_v2 = vld [vmem:[#allocation5 + $0x37c] ss:$44 sps:$4 sm:$0xff]   ;;  %v20104_v3 = vld [vmem:[#allocation5 + $0xab4] ss:$44 sps:$4 sm:$0xff]  }
 0x13b   :  { %5449 = vmatprep.subr.bf16.mxu1 %v20034_v4  ;;  %v20099_v4 = vld [vmem:[#allocation5 + $0x378] ss:$44 sps:$4 sm:$0xff]  }
 0x13d   :  { %5413 = vmatpush1.bf16.msra.mxu0 %v20029_v10  ;;  %v20108_v10 = vld [vmem:[#allocation5 + $0xa58] ss:$44 sps:$4 sm:$0xff]  }
 0x13e   :  { %5450 = vmatpush1.bf16.msra.mxu1 %v20032_v11  ;;  %5414 = vmatprep.subr.bf16.mxu0 %v20037_v14  ;;  %v20113_v11 = vld [vmem:[#allocation5 + $0x2cc] ss:$44 sps:$4 sm:$0xff]   ;;  %v20116_v14 = vld [vmem:[#allocation5 + $0xa04] ss:$44 sps:$4 sm:$0xff]  }
 0x13f   :  { %5451 = vmatprep.subr.bf16.mxu1 %v20040_v15  ;;  %v20111_v15 = vld [vmem:[#allocation5 + $0x2c8] ss:$44 sps:$4 sm:$0xff]  }
 0x141   :  { %5415 = vmatpush1.bf16.msra.mxu0 %v20035_v20  ;;  %v20122_v20 = vld [vmem:[#allocation5 + $0xd74] ss:$44 sps:$4 sm:$0xff]  }
 0x142   :  { %5452 = vmatpush1.bf16.msra.mxu1 %v20038_v21  ;;  %5416 = vmatprep.subr.bf16.mxu0 %v20043_v22  ;;  %v20117_v21 = vld [vmem:[#allocation5 + $0x9a8] ss:$44 sps:$4 sm:$0xff]   ;;  %v20120_v22 = vld [vmem:[#allocation5 + $0xd70] ss:$44 sps:$4 sm:$0xff]  }
 0x143   :  { %5453 = vmatprep.subr.bf16.mxu1 %v20046_v23  ;;  %v20125_v23 = vld [vmem:[#allocation5 + $0x954] ss:$44 sps:$4 sm:$0xff]  }
 0x145   :  { %5417 = vmatpush1.bf16.msra.mxu0 %v20041_v27  ;;  %v20126_v27 = vld [vmem:[#allocation5 + $0xd18] ss:$44 sps:$4 sm:$0xff]  }
 0x146   :  { %5454 = vmatpush1.bf16.msra.mxu1 %v20044_v28  ;;  %5488 = vmatprep.subr.bf16.mxu0 %v20056_v31  ;;  %v20131_v28 = vld [vmem:[#allocation5 + $0x8fc] ss:$44 sps:$4 sm:$0xff]   ;;  %v20129_v31 = vld [vmem:[#allocation5 + $0x8f8] ss:$44 sps:$4 sm:$0xff]  }
 0x147   :  { %5455 = vmatprep.subr.bf16.mxu1 %v20053_v30  ;;  %v20134_v30 = vld [vmem:[#allocation5 + $0xcc4] ss:$44 sps:$4 sm:$0xff]  }
 0x148   :  { %18003 = vmatmul.mubr.msk.bf16.vlgmr.msra.gmra.mxu0 %vm5192_vm1, %v23350_v32 }
 0x149   :  { %5489 = vmatpush1.bf16.msra.mxu0 %v20054_v34  ;;  %5520 = vmatprep.mubr.bf16.mxu0 %v23292_v13  ;;  %v20137_v34 = vld [vmem:[#allocation5 + $0x8a4] ss:$44 sps:$4 sm:$0xff]  }
 0x14a   :  { %5456 = vmatpush1.bf16.msra.mxu1 %v20051_v33  ;;  %5490 = vmatprep.subr.bf16.mxu0 %v20062_v36  ;;  %v20132_v33 = vld [vmem:[#allocation5 + $0xcc0] ss:$44 sps:$4 sm:$0xff]  }
 0x14b   :  { %5457 = vmatprep.subr.bf16.mxu1 %v20059_v35  ;;  %v20140_v35 = vld [vmem:[#allocation5 + $0xc6c] ss:$44 sps:$4 sm:$0xff]  }
 0x14c   :  { %v20135_v36 = vld [vmem:[#allocation5 + $0x8a0] ss:$44 sps:$4 sm:$0xff]  }
 0x14d   :  { %5491 = vmatpush1.bf16.msra.mxu0 %v20060_v37  ;;  %v20143_v37 = vld [vmem:[#allocation5 + $0x84c] ss:$44 sps:$4 sm:$0xff]  }
 0x14e   :  { %5458 = vmatpush1.bf16.msra.mxu1 %v20057_v55  ;;  %5492 = vmatprep.subr.bf16.mxu0 %v20068_v39  ;;  %v20138_v55 = vld [vmem:[#allocation5 + $0xc68] ss:$44 sps:$4 sm:$0xff]  }
 0x14f   :  { %5459 = vmatprep.subr.bf16.mxu1 %v20065_v38  ;;  %v20146_v38 = vld [vmem:[#allocation5 + $0xc14] ss:$44 sps:$4 sm:$0xff]  }
 0x150   :  { %v20141_v39 = vld [vmem:[#allocation5 + $0x848] ss:$44 sps:$4 sm:$0xff]  }
 0x151   :  { %5493 = vmatpush1.bf16.msra.mxu0 %v20066_v41  ;;  %v20149_v41 = vld [vmem:[#allocation5 + $0xbbc] ss:$44 sps:$4 sm:$0xff]  }
 0x152   :  { %5460 = vmatpush1.bf16.msra.mxu1 %v20063_v40  ;;  %5494 = vmatprep.subr.bf16.mxu0 %v20074_v43  ;;  %v20144_v40 = vld [vmem:[#allocation5 + $0xc10] ss:$44 sps:$4 sm:$0xff]   ;;  %v20147_v43 = vld [vmem:[#allocation5 + $0xbb8] ss:$44 sps:$4 sm:$0xff]  }
 0x153   :  { %5461 = vmatprep.subr.bf16.mxu1 %v20071_v42  ;;  %v20152_v42 = vld [vmem:[#allocation5 + $0x12f4] ss:$44 sps:$4 sm:$0xff]  }
 0x155   :  { %5495 = vmatpush1.bf16.msra.mxu0 %v20072_v45  ;;  %v20155_v45 = vld [vmem:[#allocation5 + $0xb64] ss:$44 sps:$4 sm:$0xff]  }
 0x156   :  { %5462 = vmatpush2.bf16.msra.mxu1 %v20069_v44  ;;  %5496 = vmatprep.subr.bf16.mxu0 %v20080_v48  ;;  %v20150_v44 = vld [vmem:[#allocation5 + $0x12f0] ss:$44 sps:$4 sm:$0xff]   ;;  %v20153_v48 = vld [vmem:[#allocation5 + $0xb60] ss:$44 sps:$4 sm:$0xff]  }
 0x157   :  { %5463 = vmatprep.subr.bf16.mxu1 %v20077_v46  ;;  %v20158_v46 = vld [vmem:[#allocation5 + $0x129c] ss:$44 sps:$4 sm:$0xff]  }
 0x159   :  { %5497 = vmatpush1.bf16.msra.mxu0 %v20078_v50  ;;  %v20161_v50 = vld [vmem:[#allocation5 + $0xb0c] ss:$44 sps:$4 sm:$0xff]  }
 0x15a   :  { %5464 = vmatpush2.bf16.msra.mxu1 %v20075_v49  ;;  %5498 = vmatprep.subr.bf16.mxu0 %v20086_v52  ;;  %v20156_v49 = vld [vmem:[#allocation5 + $0x1298] ss:$44 sps:$4 sm:$0xff]   ;;  %v20159_v52 = vld [vmem:[#allocation5 + $0xb08] ss:$44 sps:$4 sm:$0xff]  }
 0x15b   :  { %5465 = vmatprep.subr.bf16.mxu1 %v20083_v51  ;;  %v20164_v51 = vld [vmem:[#allocation5 + $0x1244] ss:$44 sps:$4 sm:$0xff]  }
 0x15d   :  { %5499 = vmatpush1.bf16.msra.mxu0 %v20084_v57  ;;  %v20167_v57 = vld [vmem:[#allocation5 + $0x1034] ss:$44 sps:$4 sm:$0xff]  }
 0x15e   :  { %5466 = vmatpush2.bf16.msra.mxu1 %v20081_v53  ;;  %5500 = vmatprep.subr.bf16.mxu0 %v20092_v59  ;;  %v20162_v53 = vld [vmem:[#allocation5 + $0x1240] ss:$44 sps:$4 sm:$0xff]   ;;  %v20165_v59 = vld [vmem:[#allocation5 + $0x1030] ss:$44 sps:$4 sm:$0xff]  }
 0x15f   :  { %5467 = vmatprep.subr.bf16.mxu1 %v20089_v58  ;;  %v20170_v58 = vld [vmem:[#allocation5 + $0x11ec] ss:$44 sps:$4 sm:$0xff]  }
 0x161   :  { %5501 = vmatpush1.bf16.msra.mxu0 %v20090_v61  ;;  %v20173_v61 = vld [vmem:[#allocation5 + $0xfdc] ss:$44 sps:$4 sm:$0xff]  }
 0x162   :  { %5468 = vmatpush2.bf16.msra.mxu1 %v20087_v60  ;;  %5502 = vmatprep.subr.bf16.mxu0 %v20098_v63  ;;  %v20168_v60 = vld [vmem:[#allocation5 + $0x11e8] ss:$44 sps:$4 sm:$0xff]   ;;  %v20171_v63 = vld [vmem:[#allocation5 + $0xfd8] ss:$44 sps:$4 sm:$0xff]  }
 0x163   :  { %5469 = vmatprep.subr.bf16.mxu1 %v20095_v62  ;;  %v20176_v62 = vld [vmem:[#allocation5 + $0x1194] ss:$44 sps:$4 sm:$0xff]  }
 0x165   :  { %5503 = vmatpush1.bf16.msra.mxu0 %v20096_v1  ;;  %v20179_v1 = vld [vmem:[#allocation5 + $0xf84] ss:$44 sps:$4 sm:$0xff]  }
 0x166   :  { %5470 = vmatpush2.bf16.msra.mxu1 %v20093_v0  ;;  %5504 = vmatprep.subr.bf16.mxu0 %v20104_v3  ;;  %v20174_v0 = vld [vmem:[#allocation5 + $0x1190] ss:$44 sps:$4 sm:$0xff]   ;;  %v20177_v3 = vld [vmem:[#allocation5 + $0xf80] ss:$44 sps:$4 sm:$0xff]  }
 0x167   :  { %5471 = vmatprep.subr.bf16.mxu1 %v20101_v2  ;;  %v20182_v2 = vld [vmem:[#allocation5 + $0x113c] ss:$44 sps:$4 sm:$0xff]  }
 0x169   :  { %5505 = vmatpush2.bf16.msra.mxu0 %v20102_v6  ;;  %v20185_v6 = vld [vmem:[#allocation5 + $0xf2c] ss:$44 sps:$4 sm:$0xff]  }
 0x16a   :  { %5472 = vmatpush2.bf16.msra.mxu1 %v20099_v4  ;;  %5506 = vmatprep.subr.bf16.mxu0 %v20110_v8  ;;  %v20180_v4 = vld [vmem:[#allocation5 + $0x1138] ss:$44 sps:$4 sm:$0xff]   ;;  %v20183_v8 = vld [vmem:[#allocation5 + $0xf28] ss:$44 sps:$4 sm:$0xff]  }
 0x16b   :  { %5473 = vmatprep.subr.bf16.mxu1 %v20107_v7  ;;  %v20188_v7 = vld [vmem:[#allocation5 + $0x10e4] ss:$44 sps:$4 sm:$0xff]  }
 0x16d   :  { %5507 = vmatpush2.bf16.msra.mxu0 %v20108_v10  ;;  %v20191_v10 = vld [vmem:[#allocation5 + $0xed4] ss:$44 sps:$4 sm:$0xff]  }
 0x16e   :  { %5474 = vmatpush2.bf16.msra.mxu1 %v20105_v9  ;;  %5508 = vmatprep.subr.bf16.mxu0 %v20116_v14  ;;  %v20186_v9 = vld [vmem:[#allocation5 + $0x10e0] ss:$44 sps:$4 sm:$0xff]   ;;  %v20189_v14 = vld [vmem:[#allocation5 + $0xed0] ss:$44 sps:$4 sm:$0xff]  }
 0x16f   :  { %5475 = vmatprep.subr.bf16.mxu1 %v20113_v11  ;;  %v20194_v11 = vld [vmem:[#allocation5 + $0x108c] ss:$44 sps:$4 sm:$0xff]  }
 0x171   :  { %5509 = vmatpush2.bf16.msra.mxu0 %v20114_v18  ;;  %v20197_v18 = vld [vmem:[#allocation5 + $0xe7c] ss:$44 sps:$4 sm:$0xff]  }
 0x172   :  { %5476 = vmatpush2.bf16.msra.mxu1 %v20111_v15  ;;  %5510 = vmatprep.subr.bf16.mxu0 %v20119_v19  ;;  %v20192_v15 = vld [vmem:[#allocation5 + $0x1088] ss:$44 sps:$4 sm:$0xff]  }
 0x173   :  { %5531 = vmatprep.subr.bf16.mxu1 %v20122_v20  ;;  %v20200_v19 = vld [vmem:[#allocation5 + $0x15b4] ss:$44 sps:$4 sm:$0xff]   ;;  %v20195_v20 = vld [vmem:[#allocation5 + $0xe78] ss:$44 sps:$4 sm:$0xff]  }
 0x175   :  { %5478 = vmatmul.mubr.bf16.vlgmr.msra.gmra.mxu1 %v23298_v26  ;;  %5511 = vmatpush2.bf16.msra.mxu0 %v20117_v21  ;;  %v20198_v21 = vld [vmem:[#allocation5 + $0x15b0] ss:$44 sps:$4 sm:$0xff]  }
 0x176   :  { %5532 = vmatpush1.bf16.msra.mxu1 %v20120_v22  ;;  %5512 = vmatprep.subr.bf16.mxu0 %v20125_v23  ;;  %v20203_v22 = vld [vmem:[#allocation5 + $0xe24] ss:$44 sps:$4 sm:$0xff]   ;;  %v20206_v23 = vld [vmem:[#allocation5 + $0x155c] ss:$44 sps:$4 sm:$0xff]  }
 0x177   :  { %5533 = vmatprep.subr.bf16.mxu1 %v20128_v24  ;;  %5563 = vmatprep.mubr.bf16.mxu1 %v23322_v16  ;;  %v20201_v24 = vld [vmem:[#allocation5 + $0xe20] ss:$44 sps:$4 sm:$0xff]  }
 0x179   :  { %5513 = vmatpush2.bf16.msra.mxu0 %v20123_v25  ;;  %v20204_v25 = vld [vmem:[#allocation5 + $0x1558] ss:$44 sps:$4 sm:$0xff]  }
 0x17a   :  { %5534 = vmatpush1.bf16.msra.mxu1 %v20126_v27  ;;  %5514 = vmatprep.subr.bf16.mxu0 %v20131_v28  ;;  %v20209_v27 = vld [vmem:[#allocation5 + $0xdcc] ss:$44 sps:$4 sm:$0xff]   ;;  %v20212_v28 = vld [vmem:[#allocation5 + $0x1504] ss:$44 sps:$4 sm:$0xff]  }
 0x17b   :  { %5535 = vmatprep.subr.bf16.mxu1 %v20134_v30  ;;  %v20207_v30 = vld [vmem:[#allocation5 + $0xdc8] ss:$44 sps:$4 sm:$0xff]  }
 0x17d   :  { %5515 = vmatpush2.bf16.msra.mxu0 %v20129_v31  ;;  %v20210_v31 = vld [vmem:[#allocation5 + $0x1500] ss:$44 sps:$4 sm:$0xff]  }
 0x17e   :  { %5536 = vmatpush1.bf16.msra.mxu1 %v20132_v33  ;;  %5516 = vmatprep.subr.bf16.mxu0 %v20137_v34  ;;  %v1071_v33 = vld [vmem:[#allocation7] sm:$0xff] }
 0x17f   :  { %5537 = vmatprep.subr.bf16.mxu1 %v20140_v35  ;;  %v20215_v34 = vld [vmem:[#allocation5 + $0x14ac] ss:$44 sps:$4 sm:$0xff]   ;;  %v23360_v35 = vsub.s32 0, %v23279_v47 }
 0x181   :  { %5517 = vmatpush2.bf16.msra.mxu0 %v20135_v36  ;;  %24143 = vst [vmem:[#allocation44_spill] sm:$0xff] %v23360_v35  ;;  %v20216_v36 = vld [vmem:[#allocation5 + $0x176c] ss:$44 sps:$4 sm:$0x3f]  }
 0x182   :  { %5538 = vmatpush1.bf16.msra.mxu1 %v20138_v55  ;;  %5518 = vmatprep.subr.bf16.mxu0 %v20143_v37  ;;  %v20218_v55 = vld [vmem:[#allocation5 + $0x1768] ss:$44 sps:$4 sm:$0x3f]  }
 0x183   :  { %5539 = vmatprep.subr.bf16.mxu1 %v20146_v38  ;;  %v20213_v37 = vld [vmem:[#allocation5 + $0x14a8] ss:$44 sps:$4 sm:$0xff]   ;;  %v1078_v38 = vrot.slane %v1071_v33, %v23360_v35  ;;  %v20270_v33 = vld [vmem:[#allocation5 + $0x698] ss:$44 sps:$4 sm:$0xff]  }
 0x185   :  { %5519 = vmatpush2.bf16.msra.mxu0 %v20141_v39  ;;  %v20221_v39 = vld [vmem:[#allocation5 + $0x1454] ss:$44 sps:$4 sm:$0xff]  }
 0x186   :  { %5540 = vmatpush1.bf16.msra.mxu1 %v20144_v40  ;;  %5574 = vmatprep.subr.bf16.mxu0 %v20152_v42  ;;  %v5204_v40 = vsel %vm5196_vm0, %v20218_v55, 0  ;;  %v20273_v55 = vld [vmem:[#allocation5 + $0xc0] ss:$44 sps:$4 sm:$0xff]  }
 0x187   :  { %5541 = vmatprep.subr.bf16.mxu1 %v20149_v41  ;;  %v20224_v41 = vld [vmem:[#allocation5 + $0x1714] ss:$44 sps:$4 sm:$0xff]  }
 0x188   :  { %5521 = vmatmul.mubr.bf16.vlgmr.msra.gmra.mxu0 %v23300_v29 }
 0x189   :  { %5575 = vmatpush1.bf16.msra.mxu0 %v20150_v44  ;;  %5606 = vmatprep.mubr.bf16.mxu0 %v23324_v17  ;;  %v20219_v44 = vld [vmem:[#allocation5 + $0x1450] ss:$44 sps:$4 sm:$0xff]  }
 0x18a   :  { %5542 = vmatpush1.bf16.msra.mxu1 %v20147_v43  ;;  %5576 = vmatprep.subr.bf16.mxu0 %v20158_v46 }
 0x18b   :  { %5543 = vmatprep.subr.bf16.mxu1 %v20155_v45  ;;  %v20222_v45 = vld [vmem:[#allocation5 + $0x1710] ss:$44 sps:$4 sm:$0xff]  }
 0x18d   :  { %5577 = vmatpush1.bf16.msra.mxu0 %v20156_v49 }
 0x18e   :  { %5544 = vmatpush1.bf16.msra.mxu1 %v20153_v48  ;;  %5578 = vmatprep.subr.bf16.mxu0 %v20164_v51  ;;  %v20227_v48 = vld [vmem:[#allocation5 + $0x13fc] ss:$44 sps:$4 sm:$0xff]  }
 0x18f   :  { %5545 = vmatprep.subr.bf16.mxu1 %v20161_v50  ;;  %v20230_v51 = vld [vmem:[#allocation5 + $0x16bc] ss:$44 sps:$4 sm:$0xff]  }
 0x191   :  { %5579 = vmatpush1.bf16.msra.mxu0 %v20162_v53 }
 0x192   :  { %5546 = vmatpush1.bf16.msra.mxu1 %v20159_v52  ;;  %5580 = vmatprep.subr.bf16.mxu0 %v20170_v58  ;;  %v20225_v58 = vld [vmem:[#allocation5 + $0x13f8] ss:$44 sps:$4 sm:$0xff]  }
 0x193   :  { %5547 = vmatprep.subr.bf16.mxu1 %v20167_v57 }
 0x195   :  { %5581 = vmatpush1.bf16.msra.mxu0 %v20168_v60 }
 0x196   :  { %5548 = vmatpush2.bf16.msra.mxu1 %v20165_v59  ;;  %5582 = vmatprep.subr.bf16.mxu0 %v20176_v62  ;;  %v20228_v59 = vld [vmem:[#allocation5 + $0x16b8] ss:$44 sps:$4 sm:$0xff]  }
 0x197   :  { %5549 = vmatprep.subr.bf16.mxu1 %v20173_v61  ;;  %v20233_v61 = vld [vmem:[#allocation5 + $0x13a4] ss:$44 sps:$4 sm:$0xff]  }
 0x198   :  { %v20236_v62 = vld [vmem:[#allocation5 + $0x1664] ss:$44 sps:$4 sm:$0xff]  }
 0x199   :  { %5583 = vmatpush1.bf16.msra.mxu0 %v20174_v0  ;;  %v20231_v0 = vld [vmem:[#allocation5 + $0x13a0] ss:$44 sps:$4 sm:$0xff]  }
 0x19a   :  { %5550 = vmatpush2.bf16.msra.mxu1 %v20171_v63  ;;  %5584 = vmatprep.subr.bf16.mxu0 %v20182_v2  ;;  %v20239_v2 = vld [vmem:[#allocation5 + $0x134c] ss:$44 sps:$4 sm:$0xff]  }
 0x19b   :  { %5551 = vmatprep.subr.bf16.mxu1 %v20179_v1  ;;  %v20234_v1 = vld [vmem:[#allocation5 + $0x1660] ss:$44 sps:$4 sm:$0xff]  }
 0x19d   :  { %5585 = vmatpush1.bf16.msra.mxu0 %v20180_v4  ;;  %v20237_v4 = vld [vmem:[#allocation5 + $0x1348] ss:$44 sps:$4 sm:$0xff]  }
 0x19e   :  { %5552 = vmatpush2.bf16.msra.mxu1 %v20177_v3  ;;  %5586 = vmatprep.subr.bf16.mxu0 %v20188_v7  ;;  %v20242_v3 = vld [vmem:[#allocation5 + $0x160c] ss:$44 sps:$4 sm:$0xff]   ;;  %v20245_v7 = vld [vmem:[#allocation5 + $0x27c] ss:$44 sps:$4 sm:$0xff]  }
 0x19f   :  { %5553 = vmatprep.subr.bf16.mxu1 %v20185_v6  ;;  %v20240_v6 = vld [vmem:[#allocation5 + $0x1608] ss:$44 sps:$4 sm:$0xff]  }
 0x1a1   :  { %5587 = vmatpush1.bf16.msra.mxu0 %v20186_v9  ;;  %v20243_v9 = vld [vmem:[#allocation5 + $0x278] ss:$44 sps:$4 sm:$0xff]  }
 0x1a2   :  { %5554 = vmatpush2.bf16.msra.mxu1 %v20183_v8  ;;  %5588 = vmatprep.subr.bf16.mxu0 %v20194_v11  ;;  %v20248_v8 = vld [vmem:[#allocation5 + $0x7fc] ss:$44 sps:$4 sm:$0xff]   ;;  %v20251_v11 = vld [vmem:[#allocation5 + $0x224] ss:$44 sps:$4 sm:$0xff]  }
 0x1a3   :  { %5555 = vmatprep.subr.bf16.mxu1 %v20191_v10  ;;  %v20246_v10 = vld [vmem:[#allocation5 + $0x7f8] ss:$44 sps:$4 sm:$0xff]  }
 0x1a5   :  { %5589 = vmatpush1.bf16.msra.mxu0 %v20192_v15  ;;  %v20249_v15 = vld [vmem:[#allocation5 + $0x220] ss:$44 sps:$4 sm:$0xff]  }
 0x1a6   :  { %5556 = vmatpush2.bf16.msra.mxu1 %v20189_v14  ;;  %5590 = vmatprep.subr.bf16.mxu0 %v20200_v19  ;;  %v20254_v14 = vld [vmem:[#allocation5 + $0x7a4] ss:$44 sps:$4 sm:$0xff]   ;;  %v20257_v19 = vld [vmem:[#allocation5 + $0x1cc] ss:$44 sps:$4 sm:$0xff]  }
 0x1a7   :  { %5557 = vmatprep.subr.bf16.mxu1 %v20197_v18  ;;  %v20252_v18 = vld [vmem:[#allocation5 + $0x7a0] ss:$44 sps:$4 sm:$0xff]  }
 0x1a9   :  { %5591 = vmatpush2.bf16.msra.mxu0 %v20198_v21  ;;  %v20255_v21 = vld [vmem:[#allocation5 + $0x1c8] ss:$44 sps:$4 sm:$0xff]  }
 0x1aa   :  { %5558 = vmatpush2.bf16.msra.mxu1 %v20195_v20  ;;  %5592 = vmatprep.subr.bf16.mxu0 %v20206_v23  ;;  %v20260_v20 = vld [vmem:[#allocation5 + $0x74c] ss:$44 sps:$4 sm:$0xff]   ;;  %v20263_v23 = vld [vmem:[#allocation5 + $0x174] ss:$44 sps:$4 sm:$0xff]  }
 0x1ab   :  { %5559 = vmatprep.subr.bf16.mxu1 %v20203_v22  ;;  %v20258_v22 = vld [vmem:[#allocation5 + $0x748] ss:$44 sps:$4 sm:$0xff]  }
 0x1ad   :  { %5593 = vmatpush2.bf16.msra.mxu0 %v20204_v25  ;;  %v20261_v25 = vld [vmem:[#allocation5 + $0x170] ss:$44 sps:$4 sm:$0xff]  }
 0x1ae   :  { %5560 = vmatpush2.bf16.msra.mxu1 %v20201_v24  ;;  %5594 = vmatprep.subr.bf16.mxu0 %v20212_v28  ;;  %v20266_v24 = vld [vmem:[#allocation5 + $0x6f4] ss:$44 sps:$4 sm:$0xff]   ;;  %v20269_v28 = vld [vmem:[#allocation5 + $0x11c] ss:$44 sps:$4 sm:$0xff]  }
 0x1af   :  { %5561 = vmatprep.subr.bf16.mxu1 %v20209_v27  ;;  %v20264_v27 = vld [vmem:[#allocation5 + $0x6f0] ss:$44 sps:$4 sm:$0xff]  }
 0x1b1   :  { %5595 = vmatpush2.bf16.msra.mxu0 %v20210_v31  ;;  %v20267_v31 = vld [vmem:[#allocation5 + $0x118] ss:$44 sps:$4 sm:$0xff]  }
 0x1b2   :  { %5562 = vmatpush2.bf16.msra.mxu1 %v20207_v30  ;;  %5596 = vmatprep.subr.bf16.mxu0 %v20215_v34  ;;  %v20272_v30 = vld [vmem:[#allocation5 + $0x69c] ss:$44 sps:$4 sm:$0xff]   ;;  %v20275_v34 = vld [vmem:[#allocation5 + $0xc4] ss:$44 sps:$4 sm:$0xff]  }
 0x1b3   :  { %18004 = vmatprep.subr.msk.bf16.mxu1 %vm5196_vm0, %v20216_v36  ;;  %v20278_v36 = vld [vmem:[#allocation5 + $0x644] ss:$44 sps:$4 sm:$0xff]  }
 0x1b4   :  { %v5264_v42 = vpop.f32.mrf.mxu0 }
 0x1b5   :  { %5564 = vmatmul.mubr.bf16.vlgmr.msra.gmra.mxu1 %v23334_v54  ;;  %v5307_v43 = vpop.f32.mrf.mxu1  ;;  %v5265_v46 = vadd.f32 %v5264_v42, %v1078_v38  ;;  %5597 = vmatpush2.bf16.msra.mxu0 %v20213_v37  ;;  %v20276_v37 = vld [vmem:[#allocation5 + $0x640] ss:$44 sps:$4 sm:$0xff]  }
 0x1b6   :  { %5624 = vmatpush1.bf16.msra.mxu1 %v5204_v40  ;;  %v23366_v49 = vpop.f32.mrf.mxu0  ;;  %5598 = vmatprep.subr.bf16.mxu0 %v20221_v39  ;;  %v20284_v39 = vld [vmem:[#allocation5 + $0x5ec] ss:$44 sps:$4 sm:$0xff]   ;;  %v20279_v40 = vld [vmem:[#allocation5 + $0x68] ss:$44 sps:$4 sm:$0xff]  }
 0x1b7   :  { %v23368_v50 = vpop.f32.mrf.mxu1  ;;  %5625 = vmatprep.subr.bf16.mxu1 %v20224_v41  ;;  %v23370_v52 = vadd.f32 %v5307_v43, %v5265_v46  ;;  %5649 = vmatprep.mubr.bf16.mxu1 %v24109_v5  ;;  %v20282_v41 = vld [vmem:[#allocation5 + $0x5e8] ss:$44 sps:$4 sm:$0xff]  }
 0x1b8   :  { %v5268_v53 = vpop.f32.mrf.mxu0  ;;  %v20287_v42 = vld [vmem:[#allocation5 + $0x14] ss:$44 sps:$4 sm:$0xff]   ;;  %v20293_v46 = vld [vmem:[#allocation5 + $0x53c] ss:$44 sps:$4 sm:$0xff]  }
 0x1b9   :  { %v5311_v57 = vpop.f32.mrf.mxu1  ;;  %v5269_v60 = vadd.f32 %v5268_v53, %v1078_v38  ;;  %5599 = vmatpush2.bf16.msra.mxu0 %v20219_v44  ;;  %v20281_v38 = vld [vmem:[#allocation5 + $0x6c] ss:$44 sps:$4 sm:$0xff]   ;;  %v20290_v43 = vld [vmem:[#allocation5 + $0x594] ss:$44 sps:$4 sm:$0xff]   ;;  %v20285_v44 = vld [vmem:[#allocation5 + $0x10] ss:$44 sps:$4 sm:$0xff]  }
 0x1ba   :  { %5626 = vmatpush1.bf16.msra.mxu1 %v20222_v45  ;;  %5600 = vmatprep.subr.bf16.mxu0 %v20227_v48  ;;  %v20288_v45 = vld [vmem:[#allocation5 + $0x590] ss:$44 sps:$4 sm:$0xff]   ;;  %v20294_v53 = vld [vmem:[#allocation5 + $0xab8] ss:$44 sps:$4 sm:$0xff]  }
 0x1bb   :  { %5627 = vmatprep.subr.bf16.mxu1 %v20230_v51  ;;  %v23373_v63 = vadd.f32 %v5311_v57, %v5269_v60  ;;  %v20296_v48 = vld [vmem:[#allocation5 + $0xabc] ss:$44 sps:$4 sm:$0xff]   ;;  %v20291_v51 = vld [vmem:[#allocation5 + $0x538] ss:$44 sps:$4 sm:$0xff]   ;;  %v20300_v60 = vld [vmem:[#allocation5 + $0xa60] ss:$44 sps:$4 sm:$0xff]  }
 0x1bc   :  { %v20299_v57 = vld [vmem:[#allocation5 + $0x4e4] ss:$44 sps:$4 sm:$0xff]  }
 0x1bd   :  { %5601 = vmatpush2.bf16.msra.mxu0 %v20225_v58  ;;  %v20302_v58 = vld [vmem:[#allocation5 + $0xa64] ss:$44 sps:$4 sm:$0xff]  }
 0x1be   :  { %5628 = vmatpush1.bf16.msra.mxu1 %v20228_v59  ;;  %5602 = vmatprep.subr.bf16.mxu0 %v20233_v61  ;;  %v20297_v59 = vld [vmem:[#allocation5 + $0x4e0] ss:$44 sps:$4 sm:$0xff]  }
 0x1bf   :  { %5629 = vmatprep.subr.bf16.mxu1 %v20236_v62  ;;  %v20305_v61 = vld [vmem:[#allocation5 + $0x48c] ss:$44 sps:$4 sm:$0xff]  }
 0x1c0   :  { %v20308_v62 = vld [vmem:[#allocation5 + $0xa0c] ss:$44 sps:$4 sm:$0xff]  }
 0x1c1   :  { %5603 = vmatpush2.bf16.msra.mxu0 %v20231_v0  ;;  %v20303_v0 = vld [vmem:[#allocation5 + $0x488] ss:$44 sps:$4 sm:$0xff]  }
 0x1c2   :  { %5630 = vmatpush1.bf16.msra.mxu1 %v20234_v1  ;;  %5604 = vmatprep.subr.bf16.mxu0 %v20239_v2  ;;  %v20306_v1 = vld [vmem:[#allocation5 + $0xa08] ss:$44 sps:$4 sm:$0xff]  }
 0x1c3   :  { %5631 = vmatprep.subr.bf16.mxu1 %v20242_v3  ;;  %v20311_v2 = vld [vmem:[#allocation5 + $0x434] ss:$44 sps:$4 sm:$0xff]  }
 0x1c4   :  { %v20314_v3 = vld [vmem:[#allocation5 + $0x9b4] ss:$44 sps:$4 sm:$0xff]  }
 0x1c5   :  { %5605 = vmatpush2.bf16.msra.mxu0 %v20237_v4  ;;  %v20309_v4 = vld [vmem:[#allocation5 + $0x430] ss:$44 sps:$4 sm:$0xff]  }
 0x1c6   :  { %5632 = vmatpush1.bf16.msra.mxu1 %v20240_v6  ;;  %5660 = vmatprep.subr.bf16.mxu0 %v20245_v7  ;;  %v20312_v6 = vld [vmem:[#allocation5 + $0x9b0] ss:$44 sps:$4 sm:$0xff]   ;;  %v23380_v7 = vpop.f32.mrf.mxu0 }
 0x1c7   :  { %5703 = vmatprep.subr.bf16.mxu1 %v20248_v8  ;;  %v23382_v8 = vpop.f32.mrf.mxu1 }
 0x1c8   :  { %5607 = vmatmul.mubr.bf16.vlgmr.msra.gmra.mxu0 %v23336_v56 }
 0x1c9   :  { %18005 = vmatmul.mubr.msk.bf16.vlgmr.msra.gmra.mxu1 %vm5192_vm1, %v23350_v32  ;;  %5661 = vmatpush1.bf16.msra.mxu0 %v20243_v9  ;;  %v20317_v9 = vld [vmem:[#allocation5 + $0x3dc] ss:$44 sps:$4 sm:$0xff]  }
 0x1ca   :  { %5704 = vmatpush1.bf16.msra.mxu1 %v20246_v10  ;;  %5662 = vmatprep.subr.bf16.mxu0 %v20251_v11  ;;  %v20320_v10 = vld [vmem:[#allocation5 + $0x95c] ss:$44 sps:$4 sm:$0xff]   ;;  %v20315_v11 = vld [vmem:[#allocation5 + $0x3d8] ss:$44 sps:$4 sm:$0xff]  }
 0x1cb   :  { %5705 = vmatprep.subr.bf16.mxu1 %v20254_v14  ;;  %5692 = vmatprep.mubr.bf16.mxu0 %v23290_v12  ;;  %v20318_v14 = vld [vmem:[#allocation5 + $0x958] ss:$44 sps:$4 sm:$0xff]  }
 0x1cc   :  { %5735 = vmatprep.mubr.bf16.mxu1 %v23292_v13 }
 0x1cd   :  { %5663 = vmatpush1.bf16.msra.mxu0 %v20249_v15 }
 0x1ce   :  { %5706 = vmatpush1.bf16.msra.mxu1 %v20252_v18  ;;  %5664 = vmatprep.subr.bf16.mxu0 %v20257_v19 }
 0x1cf   :  { %5707 = vmatprep.subr.bf16.mxu1 %v20260_v20 }
 0x1d1   :  { %5665 = vmatpush1.bf16.msra.mxu0 %v20255_v21 }
 0x1d2   :  { %5708 = vmatpush1.bf16.msra.mxu1 %v20258_v22  ;;  %5666 = vmatprep.subr.bf16.mxu0 %v20263_v23  ;;  %v20323_v22 = vld [vmem:[#allocation5 + $0x384] ss:$44 sps:$4 sm:$0xff]  }
 0x1d3   :  { %5709 = vmatprep.subr.bf16.mxu1 %v20266_v24  ;;  %v20326_v23 = vld [vmem:[#allocation5 + $0x904] ss:$44 sps:$4 sm:$0xff]  }
 0x1d5   :  { %5667 = vmatpush1.bf16.msra.mxu0 %v20261_v25  ;;  %v20321_v25 = vld [vmem:[#allocation5 + $0x380] ss:$44 sps:$4 sm:$0xff]  }
 0x1d6   :  { %5710 = vmatpush1.bf16.msra.mxu1 %v20264_v27  ;;  %5668 = vmatprep.subr.bf16.mxu0 %v20269_v28  ;;  %v20324_v27 = vld [vmem:[#allocation5 + $0x900] ss:$44 sps:$4 sm:$0xff]  }
 0x1d7   :  { %5711 = vmatprep.subr.bf16.mxu1 %v20272_v30 }
 0x1d9   :  { %5669 = vmatpush1.bf16.msra.mxu0 %v20267_v31 }
 0x1da   :  { %5712 = vmatpush1.bf16.msra.mxu1 %v20270_v33  ;;  %5670 = vmatprep.subr.bf16.mxu0 %v20275_v34  ;;  %v20332_v33 = vld [vmem:[#allocation5 + $0x8ac] ss:$44 sps:$4 sm:$0xff]  }
 0x1db   :  { %5713 = vmatprep.subr.bf16.mxu1 %v20278_v36  ;;  %v20327_v36 = vld [vmem:[#allocation5 + $0x328] ss:$44 sps:$4 sm:$0xff]  }
 0x1dd   :  { %5671 = vmatpush1.bf16.msra.mxu0 %v20273_v55  ;;  %v20330_v55 = vld [vmem:[#allocation5 + $0x8a8] ss:$44 sps:$4 sm:$0xff]  }
 0x1de   :  { %5714 = vmatpush1.bf16.msra.mxu1 %v20276_v37  ;;  %5672 = vmatprep.subr.bf16.mxu0 %v20281_v38  ;;  %v20335_v37 = vld [vmem:[#allocation5 + $0x2d4] ss:$44 sps:$4 sm:$0xff]  }
 0x1df   :  { %5715 = vmatprep.subr.bf16.mxu1 %v20284_v39  ;;  %v20338_v38 = vld [vmem:[#allocation5 + $0x854] ss:$44 sps:$4 sm:$0xff]   ;;  %v20333_v39 = vld [vmem:[#allocation5 + $0x2d0] ss:$44 sps:$4 sm:$0xff]  }
 0x1e1   :  { %5673 = vmatpush1.bf16.msra.mxu0 %v20279_v40  ;;  %v20336_v40 = vld [vmem:[#allocation5 + $0x850] ss:$44 sps:$4 sm:$0xff]  }
 0x1e2   :  { %5716 = vmatpush1.bf16.msra.mxu1 %v20282_v41  ;;  %5674 = vmatprep.subr.bf16.mxu0 %v20287_v42  ;;  %v20344_v41 = vld [vmem:[#allocation5 + $0x12fc] ss:$44 sps:$4 sm:$0xff]   ;;  %v20339_v42 = vld [vmem:[#allocation5 + $0xd78] ss:$44 sps:$4 sm:$0xff]  }
 0x1e3   :  { %5717 = vmatprep.subr.bf16.mxu1 %v20290_v43  ;;  %v20342_v43 = vld [vmem:[#allocation5 + $0x12f8] ss:$44 sps:$4 sm:$0xff]  }
 0x1e5   :  { %5675 = vmatpush1.bf16.msra.mxu0 %v20285_v44 }
 0x1e6   :  { %5718 = vmatpush1.bf16.msra.mxu1 %v20288_v45  ;;  %5676 = vmatprep.subr.bf16.mxu0 %v20293_v46  ;;  %v20347_v45 = vld [vmem:[#allocation5 + $0xd24] ss:$44 sps:$4 sm:$0xff]  }
 0x1e7   :  { %5719 = vmatprep.subr.bf16.mxu1 %v20296_v48  ;;  %v20350_v46 = vld [vmem:[#allocation5 + $0x12a4] ss:$44 sps:$4 sm:$0xff]   ;;  %v20345_v48 = vld [vmem:[#allocation5 + $0xd20] ss:$44 sps:$4 sm:$0xff]  }
 0x1e9   :  { %5677 = vmatpush2.bf16.msra.mxu0 %v20291_v51  ;;  %v20348_v51 = vld [vmem:[#allocation5 + $0x12a0] ss:$44 sps:$4 sm:$0xff]  }
 0x1ea   :  { %5720 = vmatpush2.bf16.msra.mxu1 %v20294_v53  ;;  %5678 = vmatprep.subr.bf16.mxu0 %v20299_v57 }
 0x1eb   :  { %5721 = vmatprep.subr.bf16.mxu1 %v20302_v58 }
 0x1ed   :  { %5679 = vmatpush2.bf16.msra.mxu0 %v20297_v59  ;;  %v20353_v59 = vld [vmem:[#allocation5 + $0xccc] ss:$44 sps:$4 sm:$0xff]  }
 0x1ee   :  { %5722 = vmatpush2.bf16.msra.mxu1 %v20300_v60  ;;  %5680 = vmatprep.subr.bf16.mxu0 %v20305_v61  ;;  %v20356_v60 = vld [vmem:[#allocation5 + $0x124c] ss:$44 sps:$4 sm:$0xff]   ;;  %v20351_v61 = vld [vmem:[#allocation5 + $0xcc8] ss:$44 sps:$4 sm:$0xff]  }
 0x1ef   :  { %5723 = vmatprep.subr.bf16.mxu1 %v20308_v62  ;;  %v20354_v62 = vld [vmem:[#allocation5 + $0x1248] ss:$44 sps:$4 sm:$0xff]  }
 0x1f1   :  { %5681 = vmatpush2.bf16.msra.mxu0 %v20303_v0 }
 0x1f2   :  { %5724 = vmatpush2.bf16.msra.mxu1 %v20306_v1  ;;  %5682 = vmatprep.subr.bf16.mxu0 %v20311_v2  ;;  %v20359_v2 = vld [vmem:[#allocation5 + $0xc74] ss:$44 sps:$4 sm:$0xff]  }
 0x1f3   :  { %5725 = vmatprep.subr.bf16.mxu1 %v20314_v3  ;;  %v20362_v3 = vld [vmem:[#allocation5 + $0x11f4] ss:$44 sps:$4 sm:$0xff]  }
 0x1f4   :  { %v5350_v15 = vpop.f32.mrf.mxu0 }
 0x1f5   :  { %v5393_v18 = vpop.f32.mrf.mxu1  ;;  %v5351_v19 = vadd.f32 %v5350_v15, %v23370_v52  ;;  %5683 = vmatpush2.bf16.msra.mxu0 %v20309_v4  ;;  %v20329_v52 = vld [vmem:[#allocation5 + $0x32c] ss:$44 sps:$4 sm:$0xff]   ;;  %v20368_v15 = vld [vmem:[#allocation5 + $0x119c] ss:$44 sps:$4 sm:$0xff]  }
 0x1f6   :  { %5726 = vmatpush2.bf16.msra.mxu1 %v20312_v6  ;;  %v23385_v20 = vpop.f32.mrf.mxu0  ;;  %5684 = vmatprep.subr.bf16.mxu0 %v20317_v9  ;;  %v20357_v9 = vld [vmem:[#allocation5 + $0xc70] ss:$44 sps:$4 sm:$0xff]  }
 0x1f7   :  { %v23387_v21 = vpop.f32.mrf.mxu1  ;;  %5727 = vmatprep.subr.bf16.mxu1 %v20320_v10  ;;  %v5394_v24 = vadd.f32 %v5393_v18, %v5351_v19  ;;  %v20360_v10 = vld [vmem:[#allocation5 + $0x11f0] ss:$44 sps:$4 sm:$0xff]   ;;  %v20363_v18 = vld [vmem:[#allocation5 + $0xc18] ss:$44 sps:$4 sm:$0xff]  }
 0x1f8   :  { %v5354_v28 = vpop.f32.mrf.mxu0  ;;  %v20366_v19 = vld [vmem:[#allocation5 + $0x1198] ss:$44 sps:$4 sm:$0xff]  }
 0x1f9   :  { %v5397_v30 = vpop.f32.mrf.mxu1  ;;  %v5355_v31 = vadd.f32 %v5354_v28, %v23373_v63  ;;  %5685 = vmatpush2.bf16.msra.mxu0 %v20315_v11  ;;  %v20341_v63 = vld [vmem:[#allocation5 + $0xd7c] ss:$44 sps:$4 sm:$0xff]   ;;  %v20380_v28 = vld [vmem:[#allocation5 + $0x10ec] ss:$44 sps:$4 sm:$0xff]  }
 0x1fa   :  { %5728 = vmatpush2.bf16.msra.mxu1 %v20318_v14  ;;  %5686 = vmatprep.subr.bf16.mxu0 %v20323_v22  ;;  %v23390_v44 = vpop.f32.mrf.mxu0  ;;  %v20365_v14 = vld [vmem:[#allocation5 + $0xc1c] ss:$44 sps:$4 sm:$0xff]   ;;  %v20371_v22 = vld [vmem:[#allocation5 + $0xbc4] ss:$44 sps:$4 sm:$0xff]  }
 0x1fb   :  { %5729 = vmatprep.subr.bf16.mxu1 %v20326_v23  ;;  %v5398_v34 = vadd.f32 %v5397_v30, %v5355_v31  ;;  %v20374_v23 = vld [vmem:[#allocation5 + $0x1144] ss:$44 sps:$4 sm:$0xff]   ;;  %v20375_v30 = vld [vmem:[#allocation5 + $0xb68] ss:$44 sps:$4 sm:$0xff]  }
 0x1fc   :  { %v20378_v31 = vld [vmem:[#allocation5 + $0x10e8] ss:$44 sps:$4 sm:$0xff]  }
 0x1fd   :  { %5687 = vmatpush2.bf16.msra.mxu0 %v20321_v25  ;;  %v20372_v25 = vld [vmem:[#allocation5 + $0x1140] ss:$44 sps:$4 sm:$0xff]  }
 0x1fe   :  { %5730 = vmatpush2.bf16.msra.mxu1 %v20324_v27  ;;  %5688 = vmatprep.subr.bf16.mxu0 %v20329_v52  ;;  %v20377_v27 = vld [vmem:[#allocation5 + $0xb6c] ss:$44 sps:$4 sm:$0xff]   ;;  %v20383_v52 = vld [vmem:[#allocation5 + $0xb14] ss:$44 sps:$4 sm:$0xff]  }
 0x1ff   :  { %5731 = vmatprep.subr.bf16.mxu1 %v20332_v33  ;;  %v20386_v33 = vld [vmem:[#allocation5 + $0x1094] ss:$44 sps:$4 sm:$0xff]  }
 0x201   :  { %5689 = vmatpush2.bf16.msra.mxu0 %v20327_v36  ;;  %v20384_v36 = vld [vmem:[#allocation5 + $0x1090] ss:$44 sps:$4 sm:$0xff]  }
 0x202   :  { %5732 = vmatpush2.bf16.msra.mxu1 %v20330_v55  ;;  %5690 = vmatprep.subr.bf16.mxu0 %v20335_v37  ;;  %v20389_v55 = vld [vmem:[#allocation5 + $0x103c] ss:$44 sps:$4 sm:$0xff]  }
 0x203   :  { %5733 = vmatprep.subr.bf16.mxu1 %v20338_v38  ;;  %v20392_v37 = vld [vmem:[#allocation5 + $0x15bc] ss:$44 sps:$4 sm:$0xff]   ;;  %v20387_v38 = vld [vmem:[#allocation5 + $0x1038] ss:$44 sps:$4 sm:$0xff]  }
 0x205   :  { %5691 = vmatpush2.bf16.msra.mxu0 %v20333_v39  ;;  %v20390_v39 = vld [vmem:[#allocation5 + $0x15b8] ss:$44 sps:$4 sm:$0xff]  }
 0x206   :  { %5734 = vmatpush2.bf16.msra.mxu1 %v20336_v40  ;;  %5746 = vmatprep.subr.bf16.mxu0 %v20341_v63  ;;  %v20395_v40 = vld [vmem:[#allocation5 + $0xfe4] ss:$44 sps:$4 sm:$0xff]  }
 0x207   :  { %5789 = vmatprep.subr.bf16.mxu1 %v20344_v41  ;;  %v20398_v63 = vld [vmem:[#allocation5 + $0x1564] ss:$44 sps:$4 sm:$0xff]   ;;  %v20393_v41 = vld [vmem:[#allocation5 + $0xfe0] ss:$44 sps:$4 sm:$0xff]  }
 0x208   :  { %v5436_v53 = vpop.f32.mrf.mxu0  ;;  %5693 = vmatmul.mubr.bf16.vlgmr.msra.gmra.mxu0 %v23298_v26 }
 0x209   :  { %5736 = vmatmul.mubr.bf16.vlgmr.msra.gmra.mxu1 %v23300_v29  ;;  %v5437_v57 = vadd.f32 %v5436_v53, %v5394_v24  ;;  %5747 = vmatpush1.bf16.msra.mxu0 %v20339_v42  ;;  %v20369_v24 = vld [vmem:[#allocation5 + $0xbc0] ss:$44 sps:$4 sm:$0xff]  }
 0x20a   :  { %5790 = vmatpush1.bf16.msra.mxu1 %v20342_v43  ;;  %v23394_v58 = vpop.f32.mrf.mxu0  ;;  %5748 = vmatprep.subr.bf16.mxu0 %v20347_v45  ;;  %v20396_v42 = vld [vmem:[#allocation5 + $0x1560] ss:$44 sps:$4 sm:$0xff]  }
 0x20b   :  { %5791 = vmatprep.subr.bf16.mxu1 %v20350_v46  ;;  %5778 = vmatprep.mubr.bf16.mxu0 %v23322_v16  ;;  %v6510_v4 = vmax.f32 %v5437_v57, 0.0  ;;  %v20401_v43 = vld [vmem:[#allocation5 + $0xf8c] ss:$44 sps:$4 sm:$0xff]   ;;  %v20399_v46 = vld [vmem:[#allocation5 + $0xf88] ss:$44 sps:$4 sm:$0xff]  }
 0x20c   :  { %5821 = vmatprep.mubr.bf16.mxu1 %v23324_v17  ;;  %v5440_v0 = vpop.f32.mrf.mxu0  ;;  %v20404_v45 = vld [vmem:[#allocation5 + $0x150c] ss:$44 sps:$4 sm:$0xff]   ;;  %v20410_v53 = vld [vmem:[#allocation5 + $0x14b4] ss:$44 sps:$4 sm:$0xff]   ;;  %v20405_v57 = vld [vmem:[#allocation5 + $0xf30] ss:$44 sps:$4 sm:$0xff]  }
 0x20d   :  { %v5441_v1 = vadd.f32 %v5440_v0, %v5398_v34  ;;  %5749 = vmatpush1.bf16.msra.mxu0 %v20345_v48  ;;  %v20381_v34 = vld [vmem:[#allocation5 + $0xb10] ss:$44 sps:$4 sm:$0xff]   ;;  %v20402_v48 = vld [vmem:[#allocation5 + $0x1508] ss:$44 sps:$4 sm:$0xff]   ;;  %v20414_v0 = vld [vmem:[#allocation5 + $0x1458] ss:$44 sps:$4 sm:$0xff]  }
 0x20e   :  { %5792 = vmatpush1.bf16.msra.mxu1 %v20348_v51  ;;  %5750 = vmatprep.subr.bf16.mxu0 %v20353_v59  ;;  %v20407_v51 = vld [vmem:[#allocation5 + $0xf34] ss:$44 sps:$4 sm:$0xff]   ;;  %v20408_v59 = vld [vmem:[#allocation5 + $0x14b0] ss:$44 sps:$4 sm:$0xff]  }
 0x20f   :  { %5793 = vmatprep.subr.bf16.mxu1 %v20356_v60  ;;  %v6521_v6 = vmax.f32 %v5441_v1, 0.0  ;;  %v20413_v60 = vld [vmem:[#allocation5 + $0xedc] ss:$44 sps:$4 sm:$0xff]   ;;  %v20419_v1 = vld [vmem:[#allocation5 + $0xe84] ss:$44 sps:$4 sm:$0xff]  }
 0x211   :  { %v23398_v11 = vpack.c.bf16 %v6521_v6, %v6510_v4  ;;  %5751 = vmatpush1.bf16.msra.mxu0 %v20351_v61  ;;  %v20416_v61 = vld [vmem:[#allocation5 + $0x145c] ss:$44 sps:$4 sm:$0xff]   ;;  %v20420_v4 = vld [vmem:[#allocation5 + $0x1400] ss:$44 sps:$4 sm:$0xff]  }
 0x212   :  { %5794 = vmatpush1.bf16.msra.mxu1 %v20354_v62  ;;  %5752 = vmatprep.subr.bf16.mxu0 %v20359_v2  ;;  %v20411_v62 = vld [vmem:[#allocation5 + $0xed8] ss:$44 sps:$4 sm:$0xff]  }
 0x213   :  { %24144 = vst [vmem:[#allocation45_spill] sm:$0xff] %v23398_v11  ;;  %5795 = vmatprep.subr.bf16.mxu1 %v20362_v3  ;;  %v20422_v2 = vld [vmem:[#allocation5 + $0x1404] ss:$44 sps:$4 sm:$0xff]   ;;  %v20417_v3 = vld [vmem:[#allocation5 + $0xe80] ss:$44 sps:$4 sm:$0xff]  }
 0x214   :  { %v20425_v6 = vld [vmem:[#allocation5 + $0xe2c] ss:$44 sps:$4 sm:$0xff]  }
 0x215   :  { %5753 = vmatpush1.bf16.msra.mxu0 %v20357_v9  ;;  %v20428_v9 = vld [vmem:[#allocation5 + $0x13ac] ss:$44 sps:$4 sm:$0xff]  }
 0x216   :  { %5796 = vmatpush1.bf16.msra.mxu1 %v20360_v10  ;;  %5754 = vmatprep.subr.bf16.mxu0 %v20365_v14  ;;  %v20423_v10 = vld [vmem:[#allocation5 + $0xe28] ss:$44 sps:$4 sm:$0xff]  }
 0x217   :  { %5797 = vmatprep.subr.bf16.mxu1 %v20368_v15  ;;  %v20426_v14 = vld [vmem:[#allocation5 + $0x13a8] ss:$44 sps:$4 sm:$0xff]  }
 0x218   :  { %v20431_v15 = vld [vmem:[#allocation5 + $0xdd4] ss:$44 sps:$4 sm:$0xff]  }
 0x219   :  { %5755 = vmatpush1.bf16.msra.mxu0 %v20363_v18  ;;  %v20434_v18 = vld [vmem:[#allocation5 + $0x1354] ss:$44 sps:$4 sm:$0xff]  }
 0x21a   :  { %5798 = vmatpush1.bf16.msra.mxu1 %v20366_v19  ;;  %5756 = vmatprep.subr.bf16.mxu0 %v20371_v22  ;;  %v23401_v19 = vsub.s32 2, %v23279_v47  ;;  %v20429_v22 = vld [vmem:[#allocation5 + $0xdd0] ss:$44 sps:$4 sm:$0xff]  }
 0x21b   :  { %5799 = vmatprep.subr.bf16.mxu1 %v20374_v23  ;;  %v23403_v23 = vpop.f32.mrf.mxu1 }
 0x21c   :  { %24145 = vst [vmem:[#allocation46_spill] sm:$0xff] %v23401_v19 }
 0x21d   :  { %5757 = vmatpush1.bf16.msra.mxu0 %v20369_v24  ;;  %v20432_v24 = vld [vmem:[#allocation5 + $0x1350] ss:$44 sps:$4 sm:$0xff]  }
 0x21e   :  { %5800 = vmatpush1.bf16.msra.mxu1 %v20372_v25  ;;  %5758 = vmatprep.subr.bf16.mxu0 %v20377_v27  ;;  %v20435_v25 = vld [vmem:[#allocation5 + $0x1774] ss:$44 sps:$4 sm:$0x3f]  }
 0x21f   :  { %5801 = vmatprep.subr.bf16.mxu1 %v20380_v28  ;;  %v20439_v28 = vld [vmem:[#allocation5 + $0x284] ss:$44 sps:$4 sm:$0xff]  }
 0x221   :  { %5759 = vmatpush1.bf16.msra.mxu0 %v20375_v30  ;;  %v20440_v30 = vld [vmem:[#allocation5 + $0x1770] ss:$44 sps:$4 sm:$0x3f]  }
 0x222   :  { %5802 = vmatpush1.bf16.msra.mxu1 %v20378_v31  ;;  %5760 = vmatprep.subr.bf16.mxu0 %v20383_v52  ;;  %v22794_v31 = vld [vmem:[#allocation7] sm:$0xff] }
 0x223   :  { %5803 = vmatprep.subr.bf16.mxu1 %v20386_v33  ;;  %v1086_v52 = vrot.slane %v22794_v31, %v23401_v19  ;;  %v20437_v33 = vld [vmem:[#allocation5 + $0x280] ss:$44 sps:$4 sm:$0xff]   ;;  %v20480_v31 = vld [vmem:[#allocation5 + $0x750] ss:$44 sps:$4 sm:$0xff]   ;;  %v24148_v19 = vmov 0  }
 0x225   :  { %5761 = vmatpush1.bf16.msra.mxu0 %v20381_v34  ;;  %v23406_v34 = vpop.f32.mrf.mxu0 }
 0x226   :  { %5804 = vmatpush1.bf16.msra.mxu1 %v20384_v36  ;;  %5762 = vmatprep.subr.bf16.mxu0 %v20389_v55  ;;  %v5210_v55 = vsel %vm5196_vm0, %v20440_v30, 0  ;;  %v20477_v30 = vld [vmem:[#allocation5 + $0x18] ss:$44 sps:$4 sm:$0xff]  }
 0x227   :  { %5805 = vmatprep.subr.bf16.mxu1 %v20392_v37  ;;  %v20443_v37 = vld [vmem:[#allocation5 + $0x171c] ss:$44 sps:$4 sm:$0xff]  }
 0x229   :  { %5763 = vmatpush2.bf16.msra.mxu0 %v20387_v38  ;;  %v20446_v38 = vld [vmem:[#allocation5 + $0x22c] ss:$44 sps:$4 sm:$0xff]  }
 0x22a   :  { %5806 = vmatpush2.bf16.msra.mxu1 %v20390_v39  ;;  %5764 = vmatprep.subr.bf16.mxu0 %v20395_v40  ;;  %v20441_v40 = vld [vmem:[#allocation5 + $0x1718] ss:$44 sps:$4 sm:$0xff]  }
 0x22b   :  { %5807 = vmatprep.subr.bf16.mxu1 %v20398_v63  ;;  %v20444_v63 = vld [vmem:[#allocation5 + $0x228] ss:$44 sps:$4 sm:$0xff]  }
 0x22d   :  { %5765 = vmatpush2.bf16.msra.mxu0 %v20393_v41 }
 0x22e   :  { %5808 = vmatpush2.bf16.msra.mxu1 %v20396_v42  ;;  %5766 = vmatprep.subr.bf16.mxu0 %v20401_v43 }
 0x22f   :  { %5809 = vmatprep.subr.bf16.mxu1 %v20404_v45 }
 0x231   :  { %5767 = vmatpush2.bf16.msra.mxu0 %v20399_v46  ;;  %v20449_v46 = vld [vmem:[#allocation5 + $0x16c4] ss:$44 sps:$4 sm:$0xff]  }
 0x232   :  { %5810 = vmatpush2.bf16.msra.mxu1 %v20402_v48  ;;  %5768 = vmatprep.subr.bf16.mxu0 %v20407_v51  ;;  %v20452_v48 = vld [vmem:[#allocation5 + $0x1d4] ss:$44 sps:$4 sm:$0xff]  }
 0x233   :  { %5811 = vmatprep.subr.bf16.mxu1 %v20410_v53  ;;  %v20447_v53 = vld [vmem:[#allocation5 + $0x16c0] ss:$44 sps:$4 sm:$0xff]  }
 0x235   :  { %5769 = vmatpush2.bf16.msra.mxu0 %v20405_v57  ;;  %v5479_v27 = vpop.f32.mrf.mxu1  ;;  %v20450_v57 = vld [vmem:[#allocation5 + $0x1d0] ss:$44 sps:$4 sm:$0xff]  }
 0x236   :  { %5812 = vmatpush2.bf16.msra.mxu1 %v20408_v59  ;;  %5770 = vmatprep.subr.bf16.mxu0 %v20413_v60  ;;  %v5480_v39 = vadd.f32 %v5479_v27, %v1086_v52  ;;  %v20479_v27 = vld [vmem:[#allocation5 + $0x1c] ss:$44 sps:$4 sm:$0xff]  }
 0x237   :  { %5813 = vmatprep.subr.bf16.mxu1 %v20416_v61  ;;  %v23408_v36 = vpop.f32.mrf.mxu1  ;;  %v20455_v61 = vld [vmem:[#allocation5 + $0x166c] ss:$44 sps:$4 sm:$0xff]  }
 0x239   :  { %5771 = vmatpush2.bf16.msra.mxu0 %v20411_v62  ;;  %v5483_v43 = vpop.f32.mrf.mxu1  ;;  %v20458_v62 = vld [vmem:[#allocation5 + $0x17c] ss:$44 sps:$4 sm:$0xff]  }
 0x23a   :  { %5814 = vmatpush2.bf16.msra.mxu1 %v20414_v0  ;;  %5772 = vmatprep.subr.bf16.mxu0 %v20419_v1  ;;  %v5484_v51 = vadd.f32 %v5483_v43, %v1086_v52  ;;  %v20453_v0 = vld [vmem:[#allocation5 + $0x1668] ss:$44 sps:$4 sm:$0xff]   ;;  %v20456_v1 = vld [vmem:[#allocation5 + $0x178] ss:$44 sps:$4 sm:$0xff]  }
 0x23b   :  { %5815 = vmatprep.subr.bf16.mxu1 %v20422_v2  ;;  %v20461_v2 = vld [vmem:[#allocation5 + $0x1614] ss:$44 sps:$4 sm:$0xff]   ;;  %v20485_v52 = vld [vmem:[#allocation5 + $0x544] ss:$44 sps:$4 sm:$0xff]   ;;  %v20500_v43 = vld [vmem:[#allocation5 + $0x64c] ss:$44 sps:$4 sm:$0xff]  }
 0x23d   :  { %5773 = vmatpush2.bf16.msra.mxu0 %v20417_v3  ;;  %v20464_v3 = vld [vmem:[#allocation5 + $0x124] ss:$44 sps:$4 sm:$0xff]  }
 0x23e   :  { %5816 = vmatpush2.bf16.msra.mxu1 %v20420_v4  ;;  %5774 = vmatprep.subr.bf16.mxu0 %v20425_v6  ;;  %v20459_v4 = vld [vmem:[#allocation5 + $0x1610] ss:$44 sps:$4 sm:$0xff]   ;;  %v20462_v6 = vld [vmem:[#allocation5 + $0x120] ss:$44 sps:$4 sm:$0xff]  }
 0x23f   :  { %5817 = vmatprep.subr.bf16.mxu1 %v20428_v9  ;;  %v20467_v9 = vld [vmem:[#allocation5 + $0xcc] ss:$44 sps:$4 sm:$0xff]  }
 0x241   :  { %5775 = vmatpush2.bf16.msra.mxu0 %v20423_v10  ;;  %v20470_v10 = vld [vmem:[#allocation5 + $0x804] ss:$44 sps:$4 sm:$0xff]  }
 0x242   :  { %5818 = vmatpush2.bf16.msra.mxu1 %v20426_v14  ;;  %5776 = vmatprep.subr.bf16.mxu0 %v20431_v15  ;;  %v20465_v14 = vld [vmem:[#allocation5 + $0xc8] ss:$44 sps:$4 sm:$0xff]   ;;  %v20468_v15 = vld [vmem:[#allocation5 + $0x800] ss:$44 sps:$4 sm:$0xff]  }
 0x243   :  { %5819 = vmatprep.subr.bf16.mxu1 %v20434_v18  ;;  %v20473_v18 = vld [vmem:[#allocation5 + $0x74] ss:$44 sps:$4 sm:$0xff]  }
 0x245   :  { %5777 = vmatpush2.bf16.msra.mxu0 %v20429_v22  ;;  %v20476_v22 = vld [vmem:[#allocation5 + $0x7ac] ss:$44 sps:$4 sm:$0xff]  }
 0x246   :  { %5820 = vmatpush2.bf16.msra.mxu1 %v20432_v24  ;;  %18006 = vmatprep.subr.msk.bf16.mxu0 %vm5196_vm0, %v20435_v25  ;;  %v20471_v24 = vld [vmem:[#allocation5 + $0x70] ss:$44 sps:$4 sm:$0xff]   ;;  %v20474_v25 = vld [vmem:[#allocation5 + $0x7a8] ss:$44 sps:$4 sm:$0xff]  }
 0x247   :  { %5875 = vmatprep.subr.bf16.mxu1 %v20439_v28  ;;  %v20482_v28 = vld [vmem:[#allocation5 + $0x754] ss:$44 sps:$4 sm:$0xff]  }
 0x248   :  { %v5522_v41 = vpop.f32.mrf.mxu0  ;;  %5779 = vmatmul.mubr.bf16.vlgmr.msra.gmra.mxu0 %v23334_v54 }
 0x249   :  { %5822 = vmatmul.mubr.bf16.vlgmr.msra.gmra.mxu1 %v23336_v56  ;;  %v23414_v42 = vadd.f32 %v5522_v41, %v5480_v39  ;;  %5839 = vmatpush1.bf16.msra.mxu0 %v5210_v55  ;;  %v20483_v55 = vld [vmem:[#allocation5 + $0x540] ss:$44 sps:$4 sm:$0xff]   ;;  %v20494_v39 = vld [vmem:[#allocation5 + $0x6a4] ss:$44 sps:$4 sm:$0xff]  }
 0x24a   :  { %5876 = vmatpush1.bf16.msra.mxu1 %v20437_v33  ;;  %v23416_v45 = vpop.f32.mrf.mxu0  ;;  %5840 = vmatprep.subr.bf16.mxu0 %v20443_v37  ;;  %v20488_v33 = vld [vmem:[#allocation5 + $0x6fc] ss:$44 sps:$4 sm:$0xff]   ;;  %v20486_v37 = vld [vmem:[#allocation5 + $0x6f8] ss:$44 sps:$4 sm:$0xff]   ;;  %v20497_v41 = vld [vmem:[#allocation5 + $0x494] ss:$44 sps:$4 sm:$0xff]  }
 0x24b   :  { %5877 = vmatprep.subr.bf16.mxu1 %v20446_v38  ;;  %5864 = vmatprep.mubr.bf16.mxu0 %v24109_v5  ;;  %v20491_v38 = vld [vmem:[#allocation5 + $0x4ec] ss:$44 sps:$4 sm:$0xff]  }
 0x24c   :  { %5907 = vmatprep.mubr.bf16.mxu1 %v23290_v12  ;;  %v5526_v59 = vpop.f32.mrf.mxu0 }
 0x24d   :  { %v23420_v60 = vadd.f32 %v5526_v59, %v5484_v51  ;;  %5841 = vmatpush1.bf16.msra.mxu0 %v20441_v40  ;;  %v20489_v40 = vld [vmem:[#allocation5 + $0x4e8] ss:$44 sps:$4 sm:$0xff]   ;;  %v20504_v59 = vld [vmem:[#allocation5 + $0x5f0] ss:$44 sps:$4 sm:$0xff]  }
 0x24e   :  { %5878 = vmatpush1.bf16.msra.mxu1 %v20444_v63  ;;  %5842 = vmatprep.subr.bf16.mxu0 %v20449_v46  ;;  %v20492_v63 = vld [vmem:[#allocation5 + $0x6a0] ss:$44 sps:$4 sm:$0xff]   ;;  %v20495_v46 = vld [vmem:[#allocation5 + $0x490] ss:$44 sps:$4 sm:$0xff]  }
 0x24f   :  { %5879 = vmatprep.subr.bf16.mxu1 %v20452_v48  ;;  %v20498_v48 = vld [vmem:[#allocation5 + $0x648] ss:$44 sps:$4 sm:$0xff]  }
 0x250   :  { %v20503_v51 = vld [vmem:[#allocation5 + $0x43c] ss:$44 sps:$4 sm:$0xff]  }
 0x251   :  { %5843 = vmatpush1.bf16.msra.mxu0 %v20447_v53  ;;  %v20506_v53 = vld [vmem:[#allocation5 + $0x5f4] ss:$44 sps:$4 sm:$0xff]  }
 0x252   :  { %5880 = vmatpush1.bf16.msra.mxu1 %v20450_v57  ;;  %5844 = vmatprep.subr.bf16.mxu0 %v20455_v61  ;;  %v20501_v57 = vld [vmem:[#allocation5 + $0x438] ss:$44 sps:$4 sm:$0xff]   ;;  %v23425_v61 = vpop.f32.mrf.mxu1 }
 0x253   :  { %5881 = vmatprep.subr.bf16.mxu1 %v20458_v62  ;;  %v20509_v62 = vld [vmem:[#allocation5 + $0x3e4] ss:$44 sps:$4 sm:$0xff]  }
 0x255   :  { %5845 = vmatpush1.bf16.msra.mxu0 %v20453_v0  ;;  %v20512_v0 = vld [vmem:[#allocation5 + $0x59c] ss:$44 sps:$4 sm:$0xff]  }
 0x256   :  { %5882 = vmatpush1.bf16.msra.mxu1 %v20456_v1  ;;  %5846 = vmatprep.subr.bf16.mxu0 %v20461_v2 }
 0x257   :  { %5883 = vmatprep.subr.bf16.mxu1 %v20464_v3  ;;  %v20507_v3 = vld [vmem:[#allocation5 + $0x3e0] ss:$44 sps:$4 sm:$0xff]  }
 0x259   :  { %5847 = vmatpush1.bf16.msra.mxu0 %v20459_v4  ;;  %v20510_v4 = vld [vmem:[#allocation5 + $0x598] ss:$44 sps:$4 sm:$0xff]  }
 0x25a   :  { %5884 = vmatpush1.bf16.msra.mxu1 %v20462_v6  ;;  %5918 = vmatprep.subr.bf16.mxu0 %v20470_v10  ;;  %v20518_v10 = vld [vmem:[#allocation5 + $0xac4] ss:$44 sps:$4 sm:$0xff]  }
 0x25b   :  { %5885 = vmatprep.subr.bf16.mxu1 %v20467_v9  ;;  %v20515_v9 = vld [vmem:[#allocation5 + $0x38c] ss:$44 sps:$4 sm:$0xff]  }
 0x25c   :  { %18007 = vmatmul.mubr.msk.bf16.vlgmr.msra.gmra.mxu0 %vm5192_vm1, %v23350_v32 }
 0x25d   :  { %5919 = vmatpush1.bf16.msra.mxu0 %v20468_v15  ;;  %5950 = vmatprep.mubr.bf16.mxu0 %v23292_v13 }
 0x25e   :  { %5886 = vmatpush1.bf16.msra.mxu1 %v20465_v14  ;;  %5920 = vmatprep.subr.bf16.mxu0 %v20476_v22  ;;  %v20516_v22 = vld [vmem:[#allocation5 + $0xac0] ss:$44 sps:$4 sm:$0xff]  }
 0x25f   :  { %5887 = vmatprep.subr.bf16.mxu1 %v20473_v18  ;;  %v20513_v18 = vld [vmem:[#allocation5 + $0x388] ss:$44 sps:$4 sm:$0xff]  }
 0x261   :  { %5921 = vmatpush1.bf16.msra.mxu0 %v20474_v25  ;;  %v20519_v25 = vld [vmem:[#allocation5 + $0x330] ss:$44 sps:$4 sm:$0xff]  }
 0x262   :  { %5888 = vmatpush1.bf16.msra.mxu1 %v20471_v24  ;;  %5922 = vmatprep.subr.bf16.mxu0 %v20482_v28  ;;  %v20524_v24 = vld [vmem:[#allocation5 + $0xa6c] ss:$44 sps:$4 sm:$0xff]   ;;  %v20527_v28 = vld [vmem:[#allocation5 + $0x2dc] ss:$44 sps:$4 sm:$0xff]  }
 0x263   :  { %5889 = vmatprep.subr.bf16.mxu1 %v20479_v27  ;;  %v20522_v27 = vld [vmem:[#allocation5 + $0xa68] ss:$44 sps:$4 sm:$0xff]  }
 0x265   :  { %5923 = vmatpush1.bf16.msra.mxu0 %v20480_v31  ;;  %v20525_v31 = vld [vmem:[#allocation5 + $0x2d8] ss:$44 sps:$4 sm:$0xff]  }
 0x266   :  { %5890 = vmatpush1.bf16.msra.mxu1 %v20477_v30  ;;  %5924 = vmatprep.subr.bf16.mxu0 %v20488_v33  ;;  %v20530_v30 = vld [vmem:[#allocation5 + $0xa14] ss:$44 sps:$4 sm:$0xff]   ;;  %v20536_v33 = vld [vmem:[#allocation5 + $0xd84] ss:$44 sps:$4 sm:$0xff]  }
 0x267   :  { %5891 = vmatprep.subr.bf16.mxu1 %v20485_v52  ;;  %v20533_v52 = vld [vmem:[#allocation5 + $0x9bc] ss:$44 sps:$4 sm:$0xff]  }
 0x269   :  { %5925 = vmatpush1.bf16.msra.mxu0 %v20486_v37  ;;  %v20534_v37 = vld [vmem:[#allocation5 + $0xd80] ss:$44 sps:$4 sm:$0xff]  }
 0x26a   :  { %5892 = vmatpush2.bf16.msra.mxu1 %v20483_v55  ;;  %5926 = vmatprep.subr.bf16.mxu0 %v20494_v39  ;;  %v20531_v55 = vld [vmem:[#allocation5 + $0x9b8] ss:$44 sps:$4 sm:$0xff]  }
 0x26b   :  { %5893 = vmatprep.subr.bf16.mxu1 %v20491_v38  ;;  %v23431_v38 = vpop.f32.mrf.mxu0 }
 0x26d   :  { %5927 = vmatpush1.bf16.msra.mxu0 %v20492_v63  ;;  %v20542_v63 = vld [vmem:[#allocation5 + $0xd2c] ss:$44 sps:$4 sm:$0xff]  }
 0x26e   :  { %5894 = vmatpush2.bf16.msra.mxu1 %v20489_v40  ;;  %5928 = vmatprep.subr.bf16.mxu0 %v20500_v43  ;;  %v20539_v40 = vld [vmem:[#allocation5 + $0x964] ss:$44 sps:$4 sm:$0xff]   ;;  %v20540_v43 = vld [vmem:[#allocation5 + $0xd28] ss:$44 sps:$4 sm:$0xff]  }
 0x26f   :  { %5895 = vmatprep.subr.bf16.mxu1 %v20497_v41  ;;  %v20537_v41 = vld [vmem:[#allocation5 + $0x960] ss:$44 sps:$4 sm:$0xff]  }
 0x271   :  { %5929 = vmatpush1.bf16.msra.mxu0 %v20498_v48 }
 0x272   :  { %5896 = vmatpush2.bf16.msra.mxu1 %v20495_v46  ;;  %5930 = vmatprep.subr.bf16.mxu0 %v20506_v53 }
 0x273   :  { %5897 = vmatprep.subr.bf16.mxu1 %v20503_v51 }
 0x275   :  { %v5565_v1 = vpop.f32.mrf.mxu1  ;;  %5931 = vmatpush1.bf16.msra.mxu0 %v20504_v59  ;;  %v20545_v59 = vld [vmem:[#allocation5 + $0x90c] ss:$44 sps:$4 sm:$0xff]  }
 0x276   :  { %v5566_v2 = vadd.f32 %v5565_v1, %v23414_v42  ;;  %5898 = vmatpush2.bf16.msra.mxu1 %v20501_v57  ;;  %5932 = vmatprep.subr.bf16.mxu0 %v20512_v0  ;;  %v20521_v42 = vld [vmem:[#allocation5 + $0x334] ss:$44 sps:$4 sm:$0xff]  }
 0x277   :  { %v23428_v6 = vpop.f32.mrf.mxu1  ;;  %5899 = vmatprep.subr.bf16.mxu1 %v20509_v62  ;;  %v20548_v62 = vld [vmem:[#allocation5 + $0xcd4] ss:$44 sps:$4 sm:$0xff]  }
 0x278   :  { %v20543_v1 = vld [vmem:[#allocation5 + $0x908] ss:$44 sps:$4 sm:$0xff]  }
 0x279   :  { %v5569_v14 = vpop.f32.mrf.mxu1  ;;  %5933 = vmatpush1.bf16.msra.mxu0 %v20510_v4 }
 0x27a   :  { %v5570_v15 = vadd.f32 %v5569_v14, %v23420_v60  ;;  %5900 = vmatpush2.bf16.msra.mxu1 %v20507_v3  ;;  %5934 = vmatprep.subr.bf16.mxu0 %v20518_v10  ;;  %v20528_v60 = vld [vmem:[#allocation5 + $0xa10] ss:$44 sps:$4 sm:$0xff]  }
 0x27b   :  { %5901 = vmatprep.subr.bf16.mxu1 %v20515_v9  ;;  %v23433_v39 = vpop.f32.mrf.mxu1  ;;  %v20546_v3 = vld [vmem:[#allocation5 + $0xcd0] ss:$44 sps:$4 sm:$0xff]  }
 0x27c   :  { %v20554_v14 = vld [vmem:[#allocation5 + $0xc7c] ss:$44 sps:$4 sm:$0xff]  }
 0x27d   :  { %5935 = vmatpush2.bf16.msra.mxu0 %v20516_v22  ;;  %v20549_v22 = vld [vmem:[#allocation5 + $0x8b0] ss:$44 sps:$4 sm:$0xff]  }
 0x27e   :  { %5902 = vmatpush2.bf16.msra.mxu1 %v20513_v18  ;;  %5936 = vmatprep.subr.bf16.mxu0 %v20524_v24 }
 0x27f   :  { %5903 = vmatprep.subr.bf16.mxu1 %v20521_v42 }
 0x281   :  { %5937 = vmatpush2.bf16.msra.mxu0 %v20522_v27  ;;  %v20557_v27 = vld [vmem:[#allocation5 + $0x85c] ss:$44 sps:$4 sm:$0xff]  }
 0x282   :  { %5904 = vmatpush2.bf16.msra.mxu1 %v20519_v25  ;;  %5938 = vmatprep.subr.bf16.mxu0 %v20530_v30  ;;  %v20552_v25 = vld [vmem:[#allocation5 + $0xc78] ss:$44 sps:$4 sm:$0xff]  }
 0x283   :  { %5905 = vmatprep.subr.bf16.mxu1 %v20527_v28  ;;  %v20560_v28 = vld [vmem:[#allocation5 + $0xc24] ss:$44 sps:$4 sm:$0xff]  }
 0x285   :  { %5939 = vmatpush2.bf16.msra.mxu0 %v20528_v60  ;;  %v20563_v60 = vld [vmem:[#allocation5 + $0xbcc] ss:$44 sps:$4 sm:$0xff]  }
 0x286   :  { %5906 = vmatpush2.bf16.msra.mxu1 %v20525_v31  ;;  %5940 = vmatprep.subr.bf16.mxu0 %v20533_v52  ;;  %v20558_v31 = vld [vmem:[#allocation5 + $0xc20] ss:$44 sps:$4 sm:$0xff]   ;;  %v20566_v52 = vld [vmem:[#allocation5 + $0x1304] ss:$44 sps:$4 sm:$0xff]  }
 0x287   :  { %5961 = vmatprep.subr.bf16.mxu1 %v20536_v33  ;;  %v20561_v33 = vld [vmem:[#allocation5 + $0xbc8] ss:$44 sps:$4 sm:$0xff]  }
 0x288   :  { %v5608_v46 = vpop.f32.mrf.mxu0 }
 0x289   :  { %v5651_v48 = vpop.f32.mrf.mxu1  ;;  %5908 = vmatmul.mubr.bf16.vlgmr.msra.gmra.mxu1 %v23298_v26  ;;  %v5609_v51 = vadd.f32 %v5608_v46, %v5566_v2  ;;  %5941 = vmatpush2.bf16.msra.mxu0 %v20531_v55  ;;  %v20551_v2 = vld [vmem:[#allocation5 + $0x8b4] ss:$44 sps:$4 sm:$0xff]  }
 0x28a   :  { %5962 = vmatpush1.bf16.msra.mxu1 %v20534_v37  ;;  %v23436_v53 = vpop.f32.mrf.mxu0  ;;  %5942 = vmatprep.subr.bf16.mxu0 %v20539_v40  ;;  %v20564_v55 = vld [vmem:[#allocation5 + $0x1300] ss:$44 sps:$4 sm:$0xff]  }
 0x28b   :  { %v23438_v57 = vpop.f32.mrf.mxu1  ;;  %5963 = vmatprep.subr.bf16.mxu1 %v20542_v63  ;;  %v5652_v0 = vadd.f32 %v5651_v48, %v5609_v51  ;;  %5993 = vmatprep.mubr.bf16.mxu1 %v23322_v16  ;;  %v20569_v37 = vld [vmem:[#allocation5 + $0xb74] ss:$44 sps:$4 sm:$0xff]   ;;  %v20572_v40 = vld [vmem:[#allocation5 + $0x12ac] ss:$44 sps:$4 sm:$0xff]   ;;  %v20567_v63 = vld [vmem:[#allocation5 + $0xb70] ss:$44 sps:$4 sm:$0xff]  }
 0x28c   :  { %v5612_v4 = vpop.f32.mrf.mxu0  ;;  %v20578_v46 = vld [vmem:[#allocation5 + $0x1254] ss:$44 sps:$4 sm:$0xff]   ;;  %v20573_v48 = vld [vmem:[#allocation5 + $0xb18] ss:$44 sps:$4 sm:$0xff]   ;;  %v20576_v51 = vld [vmem:[#allocation5 + $0x1250] ss:$44 sps:$4 sm:$0xff]  }
 0x28d   :  { %v5655_v9 = vpop.f32.mrf.mxu1  ;;  %v5613_v10 = vadd.f32 %v5612_v4, %v5570_v15  ;;  %5943 = vmatpush2.bf16.msra.mxu0 %v20537_v41  ;;  %v6512_v42 = vmax.f32 %v5652_v0, 0.0  ;;  %v20555_v15 = vld [vmem:[#allocation5 + $0x858] ss:$44 sps:$4 sm:$0xff]   ;;  %v20570_v41 = vld [vmem:[#allocation5 + $0x12a8] ss:$44 sps:$4 sm:$0xff]  }
 0x28e   :  { %5964 = vmatpush1.bf16.msra.mxu1 %v20540_v43  ;;  %5944 = vmatprep.subr.bf16.mxu0 %v20545_v59  ;;  %v20575_v43 = vld [vmem:[#allocation5 + $0xb1c] ss:$44 sps:$4 sm:$0xff]   ;;  %v20581_v59 = vld [vmem:[#allocation5 + $0x1044] ss:$44 sps:$4 sm:$0xff]   ;;  %v20579_v0 = vld [vmem:[#allocation5 + $0x1040] ss:$44 sps:$4 sm:$0xff]  }
 0x28f   :  { %5965 = vmatprep.subr.bf16.mxu1 %v20548_v62  ;;  %v5656_v18 = vadd.f32 %v5655_v9, %v5613_v10  ;;  %v20584_v62 = vld [vmem:[#allocation5 + $0x11fc] ss:$44 sps:$4 sm:$0xff]   ;;  %v20590_v4 = vld [vmem:[#allocation5 + $0x11a4] ss:$44 sps:$4 sm:$0xff]   ;;  %v20588_v10 = vld [vmem:[#allocation5 + $0x11a0] ss:$44 sps:$4 sm:$0xff]  }
 0x290   :  { %v20585_v9 = vld [vmem:[#allocation5 + $0xfe8] ss:$44 sps:$4 sm:$0xff]  }
 0x291   :  { %v6523_v24 = vmax.f32 %v5656_v18, 0.0  ;;  %5945 = vmatpush2.bf16.msra.mxu0 %v20543_v1  ;;  %v20582_v1 = vld [vmem:[#allocation5 + $0x11f8] ss:$44 sps:$4 sm:$0xff]   ;;  %v20591_v18 = vld [vmem:[#allocation5 + $0xf90] ss:$44 sps:$4 sm:$0xff]  }
 0x292   :  { %5966 = vmatpush1.bf16.msra.mxu1 %v20546_v3  ;;  %5946 = vmatprep.subr.bf16.mxu0 %v20551_v2  ;;  %v20587_v3 = vld [vmem:[#allocation5 + $0xfec] ss:$44 sps:$4 sm:$0xff]   ;;  %v20593_v2 = vld [vmem:[#allocation5 + $0xf94] ss:$44 sps:$4 sm:$0xff]  }
 0x293   :  { %5967 = vmatprep.subr.bf16.mxu1 %v20554_v14  ;;  %v23441_v30 = vpack.c.bf16 %v6523_v24, %v6512_v42  ;;  %v20596_v14 = vld [vmem:[#allocation5 + $0x114c] ss:$44 sps:$4 sm:$0xff]   ;;  %v20599_v42 = vld [vmem:[#allocation5 + $0xf3c] ss:$44 sps:$4 sm:$0xff]   ;;  %v20602_v24 = vld [vmem:[#allocation5 + $0x10f4] ss:$44 sps:$4 sm:$0xff]  }
 0x295   :  { %24146 = vst [vmem:[#allocation47_spill] sm:$0xff] %v23441_v30  ;;  %5947 = vmatpush2.bf16.msra.mxu0 %v20549_v22  ;;  %v20594_v22 = vld [vmem:[#allocation5 + $0x1148] ss:$44 sps:$4 sm:$0xff]  }
 0x296   :  { %5968 = vmatpush1.bf16.msra.mxu1 %v20552_v25  ;;  %5948 = vmatprep.subr.bf16.mxu0 %v20557_v27  ;;  %v20597_v25 = vld [vmem:[#allocation5 + $0xf38] ss:$44 sps:$4 sm:$0xff]   ;;  %v20600_v27 = vld [vmem:[#allocation5 + $0x10f0] ss:$44 sps:$4 sm:$0xff]   ;;  %v20867_v30 = vld [vmem:[#allocation5 + $0x448] ss:$44 sps:$4 sm:$0xff]  }
 0x297   :  { %5969 = vmatprep.subr.bf16.mxu1 %v20560_v28  ;;  %v20605_v28 = vld [vmem:[#allocation5 + $0xee4] ss:$44 sps:$4 sm:$0xff]  }
 0x299   :  { %5949 = vmatpush2.bf16.msra.mxu0 %v20555_v15  ;;  %v20608_v15 = vld [vmem:[#allocation5 + $0x109c] ss:$44 sps:$4 sm:$0xff]  }
 0x29a   :  { %5970 = vmatpush1.bf16.msra.mxu1 %v20558_v31  ;;  %6004 = vmatprep.subr.bf16.mxu0 %v20566_v52  ;;  %v20603_v31 = vld [vmem:[#allocation5 + $0xee0] ss:$44 sps:$4 sm:$0xff]  }
 0x29b   :  { %5971 = vmatprep.subr.bf16.mxu1 %v20563_v60  ;;  %v20606_v60 = vld [vmem:[#allocation5 + $0x1098] ss:$44 sps:$4 sm:$0xff]  }
 0x29c   :  { %5951 = vmatmul.mubr.bf16.vlgmr.msra.gmra.mxu0 %v23300_v29  ;;  %v20611_v52 = vld [vmem:[#allocation5 + $0xe8c] ss:$44 sps:$4 sm:$0xff]  }
 0x29d   :  { %6005 = vmatpush1.bf16.msra.mxu0 %v20564_v55  ;;  %6036 = vmatprep.mubr.bf16.mxu0 %v23324_v17  ;;  %v20609_v55 = vld [vmem:[#allocation5 + $0xe88] ss:$44 sps:$4 sm:$0xff]  }
 0x29e   :  { %5972 = vmatpush1.bf16.msra.mxu1 %v20561_v33  ;;  %6006 = vmatprep.subr.bf16.mxu0 %v20572_v40  ;;  %v20614_v33 = vld [vmem:[#allocation5 + $0x15c4] ss:$44 sps:$4 sm:$0xff]   ;;  %v20617_v40 = vld [vmem:[#allocation5 + $0xe34] ss:$44 sps:$4 sm:$0xff]  }
 0x29f   :  { %5973 = vmatprep.subr.bf16.mxu1 %v20569_v37  ;;  %v20612_v37 = vld [vmem:[#allocation5 + $0x15c0] ss:$44 sps:$4 sm:$0xff]  }
 0x2a1   :  { %6007 = vmatpush1.bf16.msra.mxu0 %v20570_v41  ;;  %v20615_v41 = vld [vmem:[#allocation5 + $0xe30] ss:$44 sps:$4 sm:$0xff]  }
 0x2a2   :  { %5974 = vmatpush1.bf16.msra.mxu1 %v20567_v63  ;;  %6008 = vmatprep.subr.bf16.mxu0 %v20578_v46  ;;  %v20620_v63 = vld [vmem:[#allocation5 + $0x156c] ss:$44 sps:$4 sm:$0xff]   ;;  %v20623_v46 = vld [vmem:[#allocation5 + $0xddc] ss:$44 sps:$4 sm:$0xff]  }
 0x2a3   :  { %5975 = vmatprep.subr.bf16.mxu1 %v20575_v43  ;;  %v20618_v43 = vld [vmem:[#allocation5 + $0x1568] ss:$44 sps:$4 sm:$0xff]  }
 0x2a5   :  { %6009 = vmatpush1.bf16.msra.mxu0 %v20576_v51  ;;  %v20621_v51 = vld [vmem:[#allocation5 + $0xdd8] ss:$44 sps:$4 sm:$0xff]  }
 0x2a6   :  { %5976 = vmatpush1.bf16.msra.mxu1 %v20573_v48  ;;  %6010 = vmatprep.subr.bf16.mxu0 %v20584_v62  ;;  %v20626_v48 = vld [vmem:[#allocation5 + $0x1514] ss:$44 sps:$4 sm:$0xff]   ;;  %v24107_v62 = vsub.s32 4, %v23279_v47 }
 0x2a7   :  { %5977 = vmatprep.subr.bf16.mxu1 %v20581_v59  ;;  %v20624_v59 = vld [vmem:[#allocation5 + $0x1510] ss:$44 sps:$4 sm:$0xff]  }
 0x2a9   :  { %6011 = vmatpush1.bf16.msra.mxu0 %v20582_v1  ;;  %v20629_v1 = vld [vmem:[#allocation5 + $0x14bc] ss:$44 sps:$4 sm:$0xff]  }
 0x2aa   :  { %5978 = vmatpush2.bf16.msra.mxu1 %v20579_v0  ;;  %6012 = vmatprep.subr.bf16.mxu0 %v20590_v4  ;;  %v20630_v0 = vld [vmem:[#allocation5 + $0x177c] ss:$44 sps:$4 sm:$0x3f]  }
 0x2ab   :  { %5979 = vmatprep.subr.bf16.mxu1 %v20587_v3  ;;  %v20632_v3 = vld [vmem:[#allocation5 + $0x1778] ss:$44 sps:$4 sm:$0x3f]  }
 0x2ac   :  { %v22795_v4 = vld [vmem:[#allocation7] sm:$0xff] }
 0x2ad   :  { %6013 = vmatpush1.bf16.msra.mxu0 %v20588_v10  ;;  %v20627_v10 = vld [vmem:[#allocation5 + $0x14b8] ss:$44 sps:$4 sm:$0xff]  }
 0x2ae   :  { %5980 = vmatpush2.bf16.msra.mxu1 %v20585_v9  ;;  %6014 = vmatprep.subr.bf16.mxu0 %v20596_v14  ;;  %v1094_v9 = vrot.slane %v22795_v4, %v24107_v62  ;;  %v23450_v14 = vpop.f32.mrf.mxu1  ;;  %v20651_v4 = vld [vmem:[#allocation5 + $0x1358] ss:$44 sps:$4 sm:$0xff]   ;;  %v20780_v62 = vld [vmem:[#allocation5 + $0x11a8] ss:$44 sps:$4 sm:$0xff]  }
 0x2af   :  { %5981 = vmatprep.subr.bf16.mxu1 %v20593_v2  ;;  %v23448_v2 = vpop.f32.mrf.mxu0 }
 0x2b1   :  { %6015 = vmatpush1.bf16.msra.mxu0 %v20594_v22  ;;  %v20635_v22 = vld [vmem:[#allocation5 + $0x1464] ss:$44 sps:$4 sm:$0xff]  }
 0x2b2   :  { %5982 = vmatpush2.bf16.msra.mxu1 %v20591_v18  ;;  %6016 = vmatprep.subr.bf16.mxu0 %v20602_v24  ;;  %v5216_v18 = vsel %vm5196_vm0, %v20632_v3, 0  ;;  %v20633_v24 = vld [vmem:[#allocation5 + $0x1460] ss:$44 sps:$4 sm:$0xff]   ;;  %v20656_v3 = vld [vmem:[#allocation5 + $0x161c] ss:$44 sps:$4 sm:$0xff]  }
 0x2b3   :  { %5983 = vmatprep.subr.bf16.mxu1 %v20599_v42  ;;  %v20638_v42 = vld [vmem:[#allocation5 + $0x1724] ss:$44 sps:$4 sm:$0xff]  }
 0x2b5   :  { %6017 = vmatpush1.bf16.msra.mxu0 %v20600_v27 }
 0x2b6   :  { %5984 = vmatpush2.bf16.msra.mxu1 %v20597_v25  ;;  %6018 = vmatprep.subr.bf16.mxu0 %v20608_v15  ;;  %v20636_v25 = vld [vmem:[#allocation5 + $0x1720] ss:$44 sps:$4 sm:$0xff]  }
 0x2b7   :  { %5985 = vmatprep.subr.bf16.mxu1 %v20605_v28 }
 0x2b9   :  { %6019 = vmatpush1.bf16.msra.mxu0 %v20606_v60 }
 0x2ba   :  { %5986 = vmatpush2.bf16.msra.mxu1 %v20603_v31  ;;  %6020 = vmatprep.subr.bf16.mxu0 %v20614_v33  ;;  %v20644_v33 = vld [vmem:[#allocation5 + $0x16cc] ss:$44 sps:$4 sm:$0xff]  }
 0x2bb   :  { %5987 = vmatprep.subr.bf16.mxu1 %v20611_v52  ;;  %v20641_v52 = vld [vmem:[#allocation5 + $0x140c] ss:$44 sps:$4 sm:$0xff]  }
 0x2bd   :  { %6021 = vmatpush2.bf16.msra.mxu0 %v20612_v37  ;;  %v20639_v37 = vld [vmem:[#allocation5 + $0x1408] ss:$44 sps:$4 sm:$0xff]  }
 0x2be   :  { %5988 = vmatpush2.bf16.msra.mxu1 %v20609_v55  ;;  %6022 = vmatprep.subr.bf16.mxu0 %v20620_v63 }
 0x2bf   :  { %5989 = vmatprep.subr.bf16.mxu1 %v20617_v40  ;;  %v20642_v40 = vld [vmem:[#allocation5 + $0x16c8] ss:$44 sps:$4 sm:$0xff]  }
 0x2c1   :  { %6023 = vmatpush2.bf16.msra.mxu0 %v20618_v43 }
 0x2c2   :  { %5990 = vmatpush2.bf16.msra.mxu1 %v20615_v41  ;;  %6024 = vmatprep.subr.bf16.mxu0 %v20626_v48  ;;  %v20650_v48 = vld [vmem:[#allocation5 + $0x1674] ss:$44 sps:$4 sm:$0xff]  }
 0x2c3   :  { %5991 = vmatprep.subr.bf16.mxu1 %v20623_v46  ;;  %v20647_v46 = vld [vmem:[#allocation5 + $0x13b4] ss:$44 sps:$4 sm:$0xff]  }
 0x2c5   :  { %6025 = vmatpush2.bf16.msra.mxu0 %v20624_v59  ;;  %v20645_v59 = vld [vmem:[#allocation5 + $0x13b0] ss:$44 sps:$4 sm:$0xff]  }
 0x2c6   :  { %5992 = vmatpush2.bf16.msra.mxu1 %v20621_v51  ;;  %6026 = vmatprep.subr.bf16.mxu0 %v20629_v1  ;;  %v20653_v1 = vld [vmem:[#allocation5 + $0x135c] ss:$44 sps:$4 sm:$0xff]  }
 0x2c7   :  { %18008 = vmatprep.subr.msk.bf16.mxu1 %vm5196_vm0, %v20630_v0  ;;  %v20648_v0 = vld [vmem:[#allocation5 + $0x1670] ss:$44 sps:$4 sm:$0xff]  }
 0x2c8   :  { %v5694_v27 = vpop.f32.mrf.mxu0 }
 0x2c9   :  { %5994 = vmatmul.mubr.bf16.vlgmr.msra.gmra.mxu1 %v23334_v54  ;;  %v5737_v28 = vpop.f32.mrf.mxu1  ;;  %v5695_v15 = vadd.f32 %v5694_v27, %v1094_v9  ;;  %6027 = vmatpush2.bf16.msra.mxu0 %v20627_v10  ;;  %v20659_v10 = vld [vmem:[#allocation5 + $0x28c] ss:$44 sps:$4 sm:$0xff]   ;;  %v20663_v27 = vld [vmem:[#allocation5 + $0x230] ss:$44 sps:$4 sm:$0xff]  }
 0x2ca   :  { %6054 = vmatpush1.bf16.msra.mxu1 %v5216_v18  ;;  %v23455_v31 = vpop.f32.mrf.mxu0  ;;  %6028 = vmatprep.subr.bf16.mxu0 %v20635_v22  ;;  %v20662_v18 = vld [vmem:[#allocation5 + $0x80c] ss:$44 sps:$4 sm:$0xff]   ;;  %v20657_v22 = vld [vmem:[#allocation5 + $0x288] ss:$44 sps:$4 sm:$0xff]  }
 0x2cb   :  { %v23457_v60 = vpop.f32.mrf.mxu1  ;;  %6055 = vmatprep.subr.bf16.mxu1 %v20638_v42  ;;  %v23459_v55 = vadd.f32 %v5737_v28, %v5695_v15  ;;  %6079 = vmatprep.mubr.bf16.mxu1 %v24109_v5  ;;  %v20660_v42 = vld [vmem:[#allocation5 + $0x808] ss:$44 sps:$4 sm:$0xff]   ;;  %v20666_v28 = vld [vmem:[#allocation5 + $0x7b0] ss:$44 sps:$4 sm:$0xff]  }
 0x2cc   :  { %v5698_v63 = vpop.f32.mrf.mxu0  ;;  %v20671_v15 = vld [vmem:[#allocation5 + $0x1dc] ss:$44 sps:$4 sm:$0xff]  }
 0x2cd   :  { %v5741_v41 = vpop.f32.mrf.mxu1  ;;  %v5699_v43 = vadd.f32 %v5698_v63, %v1094_v9  ;;  %6029 = vmatpush2.bf16.msra.mxu0 %v20633_v24  ;;  %v20654_v9 = vld [vmem:[#allocation5 + $0x1618] ss:$44 sps:$4 sm:$0xff]   ;;  %v20665_v24 = vld [vmem:[#allocation5 + $0x234] ss:$44 sps:$4 sm:$0xff]  }
 0x2ce   :  { %6056 = vmatpush1.bf16.msra.mxu1 %v20636_v25  ;;  %6030 = vmatprep.subr.bf16.mxu0 %v20641_v52  ;;  %v20668_v25 = vld [vmem:[#allocation5 + $0x7b4] ss:$44 sps:$4 sm:$0xff]   ;;  %v20674_v52 = vld [vmem:[#allocation5 + $0x75c] ss:$44 sps:$4 sm:$0xff]   ;;  %v20680_v63 = vld [vmem:[#allocation5 + $0x704] ss:$44 sps:$4 sm:$0xff]  }
 0x2cf   :  { %6057 = vmatprep.subr.bf16.mxu1 %v20644_v33  ;;  %v23462_v51 = vadd.f32 %v5741_v41, %v5699_v43  ;;  %v20669_v33 = vld [vmem:[#allocation5 + $0x1d8] ss:$44 sps:$4 sm:$0xff]   ;;  %v20675_v41 = vld [vmem:[#allocation5 + $0x180] ss:$44 sps:$4 sm:$0xff]  }
 0x2d0   :  { %v20678_v43 = vld [vmem:[#allocation5 + $0x700] ss:$44 sps:$4 sm:$0xff]  }
 0x2d1   :  { %6031 = vmatpush2.bf16.msra.mxu0 %v20639_v37  ;;  %v20672_v37 = vld [vmem:[#allocation5 + $0x758] ss:$44 sps:$4 sm:$0xff]  }
 0x2d2   :  { %6058 = vmatpush1.bf16.msra.mxu1 %v20642_v40  ;;  %6032 = vmatprep.subr.bf16.mxu0 %v20647_v46  ;;  %v20677_v40 = vld [vmem:[#allocation5 + $0x184] ss:$44 sps:$4 sm:$0xff]   ;;  %v20683_v46 = vld [vmem:[#allocation5 + $0x12c] ss:$44 sps:$4 sm:$0xff]  }
 0x2d3   :  { %6059 = vmatprep.subr.bf16.mxu1 %v20650_v48  ;;  %v20686_v48 = vld [vmem:[#allocation5 + $0x6ac] ss:$44 sps:$4 sm:$0xff]  }
 0x2d5   :  { %6033 = vmatpush2.bf16.msra.mxu0 %v20645_v59  ;;  %v20681_v59 = vld [vmem:[#allocation5 + $0x128] ss:$44 sps:$4 sm:$0xff]  }
 0x2d6   :  { %6060 = vmatpush1.bf16.msra.mxu1 %v20648_v0  ;;  %6034 = vmatprep.subr.bf16.mxu0 %v20653_v1  ;;  %v20684_v0 = vld [vmem:[#allocation5 + $0x6a8] ss:$44 sps:$4 sm:$0xff]  }
 0x2d7   :  { %6061 = vmatprep.subr.bf16.mxu1 %v20656_v3  ;;  %v20689_v1 = vld [vmem:[#allocation5 + $0xd4] ss:$44 sps:$4 sm:$0xff]  }
 0x2d8   :  { %v20692_v3 = vld [vmem:[#allocation5 + $0x654] ss:$44 sps:$4 sm:$0xff]  }
 0x2d9   :  { %6035 = vmatpush2.bf16.msra.mxu0 %v20651_v4  ;;  %v20687_v4 = vld [vmem:[#allocation5 + $0xd0] ss:$44 sps:$4 sm:$0xff]  }
 0x2da   :  { %6062 = vmatpush1.bf16.msra.mxu1 %v20654_v9  ;;  %6090 = vmatprep.subr.bf16.mxu0 %v20659_v10  ;;  %v20690_v9 = vld [vmem:[#allocation5 + $0x650] ss:$44 sps:$4 sm:$0xff]  }
 0x2db   :  { %6133 = vmatprep.subr.bf16.mxu1 %v20662_v18  ;;  %v20695_v10 = vld [vmem:[#allocation5 + $0x7c] ss:$44 sps:$4 sm:$0xff]  }
 0x2dc   :  { %6037 = vmatmul.mubr.bf16.vlgmr.msra.gmra.mxu0 %v23336_v56  ;;  %v20698_v18 = vld [vmem:[#allocation5 + $0x5fc] ss:$44 sps:$4 sm:$0xff]  }
 0x2dd   :  { %18009 = vmatmul.mubr.msk.bf16.vlgmr.msra.gmra.mxu1 %vm5192_vm1, %v23350_v32  ;;  %6091 = vmatpush1.bf16.msra.mxu0 %v20657_v22  ;;  %v20693_v22 = vld [vmem:[#allocation5 + $0x78] ss:$44 sps:$4 sm:$0xff]  }
 0x2de   :  { %6134 = vmatpush1.bf16.msra.mxu1 %v20660_v42  ;;  %6092 = vmatprep.subr.bf16.mxu0 %v20665_v24  ;;  %v20696_v42 = vld [vmem:[#allocation5 + $0x5f8] ss:$44 sps:$4 sm:$0xff]  }
 0x2df   :  { %6135 = vmatprep.subr.bf16.mxu1 %v20668_v25  ;;  %6122 = vmatprep.mubr.bf16.mxu0 %v23290_v12  ;;  %v20701_v24 = vld [vmem:[#allocation5 + $0x24] ss:$44 sps:$4 sm:$0xff]  }
 0x2e0   :  { %6165 = vmatprep.mubr.bf16.mxu1 %v23292_v13  ;;  %v20704_v25 = vld [vmem:[#allocation5 + $0x5a4] ss:$44 sps:$4 sm:$0xff]  }
 0x2e1   :  { %6093 = vmatpush1.bf16.msra.mxu0 %v20663_v27  ;;  %v20699_v27 = vld [vmem:[#allocation5 + $0x20] ss:$44 sps:$4 sm:$0xff]  }
 0x2e2   :  { %6136 = vmatpush1.bf16.msra.mxu1 %v20666_v28  ;;  %6094 = vmatprep.subr.bf16.mxu0 %v20671_v15  ;;  %v20702_v28 = vld [vmem:[#allocation5 + $0x5a0] ss:$44 sps:$4 sm:$0xff]  }
 0x2e3   :  { %6137 = vmatprep.subr.bf16.mxu1 %v20674_v52  ;;  %v20707_v15 = vld [vmem:[#allocation5 + $0x54c] ss:$44 sps:$4 sm:$0xff]  }
 0x2e4   :  { %v20710_v52 = vld [vmem:[#allocation5 + $0xacc] ss:$44 sps:$4 sm:$0xff]  }
 0x2e5   :  { %6095 = vmatpush1.bf16.msra.mxu0 %v20669_v33  ;;  %v20705_v33 = vld [vmem:[#allocation5 + $0x548] ss:$44 sps:$4 sm:$0xff]  }
 0x2e6   :  { %6138 = vmatpush1.bf16.msra.mxu1 %v20672_v37  ;;  %6096 = vmatprep.subr.bf16.mxu0 %v20677_v40  ;;  %v20708_v37 = vld [vmem:[#allocation5 + $0xac8] ss:$44 sps:$4 sm:$0xff]  }
 0x2e7   :  { %6139 = vmatprep.subr.bf16.mxu1 %v20680_v63  ;;  %v20713_v40 = vld [vmem:[#allocation5 + $0x4f4] ss:$44 sps:$4 sm:$0xff]  }
 0x2e8   :  { %v20716_v63 = vld [vmem:[#allocation5 + $0xa74] ss:$44 sps:$4 sm:$0xff]  }
 0x2e9   :  { %6097 = vmatpush1.bf16.msra.mxu0 %v20675_v41  ;;  %v20711_v41 = vld [vmem:[#allocation5 + $0x4f0] ss:$44 sps:$4 sm:$0xff]  }
 0x2ea   :  { %6140 = vmatpush1.bf16.msra.mxu1 %v20678_v43  ;;  %6098 = vmatprep.subr.bf16.mxu0 %v20683_v46  ;;  %v20714_v43 = vld [vmem:[#allocation5 + $0xa70] ss:$44 sps:$4 sm:$0xff]  }
 0x2eb   :  { %6141 = vmatprep.subr.bf16.mxu1 %v20686_v48  ;;  %v20719_v46 = vld [vmem:[#allocation5 + $0x49c] ss:$44 sps:$4 sm:$0xff]  }
 0x2ec   :  { %v20722_v48 = vld [vmem:[#allocation5 + $0xa1c] ss:$44 sps:$4 sm:$0xff]  }
 0x2ed   :  { %6099 = vmatpush1.bf16.msra.mxu0 %v20681_v59  ;;  %v20717_v59 = vld [vmem:[#allocation5 + $0x498] ss:$44 sps:$4 sm:$0xff]  }
 0x2ee   :  { %6142 = vmatpush1.bf16.msra.mxu1 %v20684_v0  ;;  %6100 = vmatprep.subr.bf16.mxu0 %v20689_v1  ;;  %v20720_v0 = vld [vmem:[#allocation5 + $0xa18] ss:$44 sps:$4 sm:$0xff]  }
 0x2ef   :  { %6143 = vmatprep.subr.bf16.mxu1 %v20692_v3  ;;  %v20725_v1 = vld [vmem:[#allocation5 + $0x444] ss:$44 sps:$4 sm:$0xff]  }
 0x2f0   :  { %v20728_v3 = vld [vmem:[#allocation5 + $0x9c4] ss:$44 sps:$4 sm:$0xff]  }
 0x2f1   :  { %6101 = vmatpush1.bf16.msra.mxu0 %v20687_v4  ;;  %v20723_v4 = vld [vmem:[#allocation5 + $0x440] ss:$44 sps:$4 sm:$0xff]  }
 0x2f2   :  { %6144 = vmatpush1.bf16.msra.mxu1 %v20690_v9  ;;  %6102 = vmatprep.subr.bf16.mxu0 %v20695_v10  ;;  %v20726_v9 = vld [vmem:[#allocation5 + $0x9c0] ss:$44 sps:$4 sm:$0xff]   ;;  %v23469_v10 = vpop.f32.mrf.mxu0 }
 0x2f3   :  { %6145 = vmatprep.subr.bf16.mxu1 %v20698_v18  ;;  %v23471_v18 = vpop.f32.mrf.mxu1 }
 0x2f5   :  { %6103 = vmatpush1.bf16.msra.mxu0 %v20693_v22  ;;  %v20731_v22 = vld [vmem:[#allocation5 + $0x3ec] ss:$44 sps:$4 sm:$0xff]  }
 0x2f6   :  { %6146 = vmatpush1.bf16.msra.mxu1 %v20696_v42  ;;  %6104 = vmatprep.subr.bf16.mxu0 %v20701_v24  ;;  %v20734_v42 = vld [vmem:[#allocation5 + $0x96c] ss:$44 sps:$4 sm:$0xff]   ;;  %v20729_v24 = vld [vmem:[#allocation5 + $0x3e8] ss:$44 sps:$4 sm:$0xff]  }
 0x2f7   :  { %6147 = vmatprep.subr.bf16.mxu1 %v20704_v25  ;;  %v20732_v25 = vld [vmem:[#allocation5 + $0x968] ss:$44 sps:$4 sm:$0xff]  }
 0x2f9   :  { %6105 = vmatpush1.bf16.msra.mxu0 %v20699_v27 }
 0x2fa   :  { %6148 = vmatpush1.bf16.msra.mxu1 %v20702_v28  ;;  %6106 = vmatprep.subr.bf16.mxu0 %v20707_v15 }
 0x2fb   :  { %6149 = vmatprep.subr.bf16.mxu1 %v20710_v52 }
 0x2fd   :  { %6107 = vmatpush2.bf16.msra.mxu0 %v20705_v33 }
 0x2fe   :  { %6150 = vmatpush2.bf16.msra.mxu1 %v20708_v37  ;;  %6108 = vmatprep.subr.bf16.mxu0 %v20713_v40  ;;  %v20737_v37 = vld [vmem:[#allocation5 + $0x394] ss:$44 sps:$4 sm:$0xff]  }
 0x2ff   :  { %6151 = vmatprep.subr.bf16.mxu1 %v20716_v63  ;;  %v20740_v40 = vld [vmem:[#allocation5 + $0x914] ss:$44 sps:$4 sm:$0xff]  }
 0x301   :  { %6109 = vmatpush2.bf16.msra.mxu0 %v20711_v41  ;;  %v20735_v41 = vld [vmem:[#allocation5 + $0x390] ss:$44 sps:$4 sm:$0xff]  }
 0x302   :  { %6152 = vmatpush2.bf16.msra.mxu1 %v20714_v43  ;;  %6110 = vmatprep.subr.bf16.mxu0 %v20719_v46  ;;  %v20738_v43 = vld [vmem:[#allocation5 + $0x910] ss:$44 sps:$4 sm:$0xff]  }
 0x303   :  { %6153 = vmatprep.subr.bf16.mxu1 %v20722_v48 }
 0x305   :  { %6111 = vmatpush2.bf16.msra.mxu0 %v20717_v59 }
 0x306   :  { %6154 = vmatpush2.bf16.msra.mxu1 %v20720_v0  ;;  %6112 = vmatprep.subr.bf16.mxu0 %v20725_v1  ;;  %v20746_v0 = vld [vmem:[#allocation5 + $0x8bc] ss:$44 sps:$4 sm:$0xff]  }
 0x307   :  { %6155 = vmatprep.subr.bf16.mxu1 %v20728_v3  ;;  %v20741_v3 = vld [vmem:[#allocation5 + $0x338] ss:$44 sps:$4 sm:$0xff]  }
 0x308   :  { %v5780_v27 = vpop.f32.mrf.mxu0 }
 0x309   :  { %v5823_v28 = vpop.f32.mrf.mxu1  ;;  %v5781_v15 = vadd.f32 %v5780_v27, %v23459_v55  ;;  %6113 = vmatpush2.bf16.msra.mxu0 %v20723_v4  ;;  %v20743_v55 = vld [vmem:[#allocation5 + $0x33c] ss:$44 sps:$4 sm:$0xff]   ;;  %v20744_v4 = vld [vmem:[#allocation5 + $0x8b8] ss:$44 sps:$4 sm:$0xff]   ;;  %v20750_v27 = vld [vmem:[#allocation5 + $0x860] ss:$44 sps:$4 sm:$0xff]  }
 0x30a   :  { %6156 = vmatpush2.bf16.msra.mxu1 %v20726_v9  ;;  %v23474_v52 = vpop.f32.mrf.mxu0  ;;  %6114 = vmatprep.subr.bf16.mxu0 %v20731_v22  ;;  %v20749_v9 = vld [vmem:[#allocation5 + $0x2e4] ss:$44 sps:$4 sm:$0xff]  }
 0x30b   :  { %v23476_v33 = vpop.f32.mrf.mxu1  ;;  %6157 = vmatprep.subr.bf16.mxu1 %v20734_v42  ;;  %v5824_v63 = vadd.f32 %v5823_v28, %v5781_v15  ;;  %v20752_v22 = vld [vmem:[#allocation5 + $0x864] ss:$44 sps:$4 sm:$0xff]   ;;  %v20747_v42 = vld [vmem:[#allocation5 + $0x2e0] ss:$44 sps:$4 sm:$0xff]   ;;  %v20756_v28 = vld [vmem:[#allocation5 + $0x1308] ss:$44 sps:$4 sm:$0xff]  }
 0x30c   :  { %v5784_v46 = vpop.f32.mrf.mxu0 }
 0x30d   :  { %v5827_v48 = vpop.f32.mrf.mxu1  ;;  %v5785_v59 = vadd.f32 %v5784_v46, %v23462_v51  ;;  %6115 = vmatpush2.bf16.msra.mxu0 %v20729_v24  ;;  %v20755_v51 = vld [vmem:[#allocation5 + $0xd8c] ss:$44 sps:$4 sm:$0xff]  }
 0x30e   :  { %6158 = vmatpush2.bf16.msra.mxu1 %v20732_v25  ;;  %6116 = vmatprep.subr.bf16.mxu0 %v20737_v37  ;;  %v20758_v24 = vld [vmem:[#allocation5 + $0x130c] ss:$44 sps:$4 sm:$0xff]   ;;  %v20753_v25 = vld [vmem:[#allocation5 + $0xd88] ss:$44 sps:$4 sm:$0xff]   ;;  %v23479_v15 = vpop.f32.mrf.mxu0 }
 0x30f   :  { %6159 = vmatprep.subr.bf16.mxu1 %v20740_v40  ;;  %v5828_v1 = vadd.f32 %v5827_v48, %v5785_v59  ;;  %v20761_v37 = vld [vmem:[#allocation5 + $0xd34] ss:$44 sps:$4 sm:$0xff]   ;;  %v20767_v48 = vld [vmem:[#allocation5 + $0xcdc] ss:$44 sps:$4 sm:$0xff]  }
 0x310   :  { %v20764_v40 = vld [vmem:[#allocation5 + $0x12b4] ss:$44 sps:$4 sm:$0xff]  }
 0x311   :  { %6117 = vmatpush2.bf16.msra.mxu0 %v20735_v41  ;;  %v20759_v41 = vld [vmem:[#allocation5 + $0xd30] ss:$44 sps:$4 sm:$0xff]  }
 0x312   :  { %6160 = vmatpush2.bf16.msra.mxu1 %v20738_v43  ;;  %6118 = vmatprep.subr.bf16.mxu0 %v20743_v55  ;;  %v20762_v43 = vld [vmem:[#allocation5 + $0x12b0] ss:$44 sps:$4 sm:$0xff]  }
 0x313   :  { %6161 = vmatprep.subr.bf16.mxu1 %v20746_v0  ;;  %v20770_v0 = vld [vmem:[#allocation5 + $0x125c] ss:$44 sps:$4 sm:$0xff]  }
 0x315   :  { %6119 = vmatpush2.bf16.msra.mxu0 %v20741_v3  ;;  %v20765_v3 = vld [vmem:[#allocation5 + $0xcd8] ss:$44 sps:$4 sm:$0xff]  }
 0x316   :  { %6162 = vmatpush2.bf16.msra.mxu1 %v20744_v4  ;;  %6120 = vmatprep.subr.bf16.mxu0 %v20749_v9  ;;  %v20768_v4 = vld [vmem:[#allocation5 + $0x1258] ss:$44 sps:$4 sm:$0xff]  }
 0x317   :  { %6163 = vmatprep.subr.bf16.mxu1 %v20752_v22  ;;  %v20773_v22 = vld [vmem:[#allocation5 + $0xc84] ss:$44 sps:$4 sm:$0xff]  }
 0x319   :  { %6121 = vmatpush2.bf16.msra.mxu0 %v20747_v42 }
 0x31a   :  { %6164 = vmatpush2.bf16.msra.mxu1 %v20750_v27  ;;  %6176 = vmatprep.subr.bf16.mxu0 %v20755_v51 }
 0x31b   :  { %6219 = vmatprep.subr.bf16.mxu1 %v20758_v24  ;;  %v20771_v24 = vld [vmem:[#allocation5 + $0xc80] ss:$44 sps:$4 sm:$0xff]  }
 0x31c   :  { %v5866_v46 = vpop.f32.mrf.mxu0  ;;  %6123 = vmatmul.mubr.bf16.vlgmr.msra.gmra.mxu0 %v23298_v26 }
 0x31d   :  { %6166 = vmatmul.mubr.bf16.vlgmr.msra.gmra.mxu1 %v23300_v29  ;;  %v5867_v59 = vadd.f32 %v5866_v46, %v5824_v63  ;;  %6177 = vmatpush1.bf16.msra.mxu0 %v20753_v25  ;;  %v20776_v63 = vld [vmem:[#allocation5 + $0x1204] ss:$44 sps:$4 sm:$0xff]   ;;  %v20774_v25 = vld [vmem:[#allocation5 + $0x1200] ss:$44 sps:$4 sm:$0xff]   ;;  %v20777_v46 = vld [vmem:[#allocation5 + $0xc28] ss:$44 sps:$4 sm:$0xff]  }
 0x31e   :  { %6220 = vmatpush1.bf16.msra.mxu1 %v20756_v28  ;;  %v23483_v55 = vpop.f32.mrf.mxu0  ;;  %6178 = vmatprep.subr.bf16.mxu0 %v20761_v37  ;;  %v20779_v28 = vld [vmem:[#allocation5 + $0xc2c] ss:$44 sps:$4 sm:$0xff]  }
 0x31f   :  { %6221 = vmatprep.subr.bf16.mxu1 %v20764_v40  ;;  %6208 = vmatprep.mubr.bf16.mxu0 %v23322_v16  ;;  %v6514_v27 = vmax.f32 %v5867_v59, 0.0  ;;  %v20782_v40 = vld [vmem:[#allocation5 + $0x11ac] ss:$44 sps:$4 sm:$0xff]   ;;  %v20791_v59 = vld [vmem:[#allocation5 + $0xb7c] ss:$44 sps:$4 sm:$0xff]  }
 0x320   :  { %6251 = vmatprep.mubr.bf16.mxu1 %v23324_v17  ;;  %v5870_v9 = vpop.f32.mrf.mxu0 }
 0x321   :  { %v5871_v42 = vadd.f32 %v5870_v9, %v5828_v1  ;;  %6179 = vmatpush1.bf16.msra.mxu0 %v20759_v41  ;;  %v20785_v1 = vld [vmem:[#allocation5 + $0xbd4] ss:$44 sps:$4 sm:$0xff]   ;;  %v20797_v9 = vld [vmem:[#allocation5 + $0xb24] ss:$44 sps:$4 sm:$0xff]  }
 0x322   :  { %6222 = vmatpush1.bf16.msra.mxu1 %v20762_v43  ;;  %6180 = vmatprep.subr.bf16.mxu0 %v20767_v48  ;;  %v20788_v41 = vld [vmem:[#allocation5 + $0x1154] ss:$44 sps:$4 sm:$0xff]   ;;  %v20783_v43 = vld [vmem:[#allocation5 + $0xbd0] ss:$44 sps:$4 sm:$0xff]  }
 0x323   :  { %6223 = vmatprep.subr.bf16.mxu1 %v20770_v0  ;;  %v6525_v51 = vmax.f32 %v5871_v42, 0.0  ;;  %v20786_v48 = vld [vmem:[#allocation5 + $0x1150] ss:$44 sps:$4 sm:$0xff]   ;;  %v20795_v42 = vld [vmem:[#allocation5 + $0xb20] ss:$44 sps:$4 sm:$0xff]  }
 0x324   :  { %v20794_v0 = vld [vmem:[#allocation5 + $0x10fc] ss:$44 sps:$4 sm:$0xff]  }
 0x325   :  { %v23487_v37 = vpack.c.bf16 %v6525_v51, %v6514_v27  ;;  %6181 = vmatpush1.bf16.msra.mxu0 %v20765_v3  ;;  %v20789_v3 = vld [vmem:[#allocation5 + $0xb78] ss:$44 sps:$4 sm:$0xff]   ;;  %v20801_v51 = vld [vmem:[#allocation5 + $0x1048] ss:$44 sps:$4 sm:$0xff]  }
 0x326   :  { %6224 = vmatpush1.bf16.msra.mxu1 %v20768_v4  ;;  %6182 = vmatprep.subr.bf16.mxu0 %v20773_v22  ;;  %v20792_v4 = vld [vmem:[#allocation5 + $0x10f8] ss:$44 sps:$4 sm:$0xff]  }
 0x327   :  { %24147 = vst [vmem:[#allocation48_spill] sm:$0xff] %v23487_v37  ;;  %6225 = vmatprep.subr.bf16.mxu1 %v20776_v63  ;;  %v20800_v22 = vld [vmem:[#allocation5 + $0x10a4] ss:$44 sps:$4 sm:$0xff]   ;;  %v20798_v63 = vld [vmem:[#allocation5 + $0x10a0] ss:$44 sps:$4 sm:$0xff]  }
 0x328   :  { %v20803_v27 = vld [vmem:[#allocation5 + $0x104c] ss:$44 sps:$4 sm:$0xff]   ;;  %v20866_v37 = vld [vmem:[#allocation5 + $0x167c] ss:$44 sps:$4 sm:$0xff]  }
 0x329   :  { %6183 = vmatpush1.bf16.msra.mxu0 %v20771_v24  ;;  %v20804_v24 = vld [vmem:[#allocation5 + $0x15c8] ss:$44 sps:$4 sm:$0xff]  }
 0x32a   :  { %6226 = vmatpush1.bf16.msra.mxu1 %v20774_v25  ;;  %6184 = vmatprep.subr.bf16.mxu0 %v20779_v28  ;;  %v20809_v25 = vld [vmem:[#allocation5 + $0xff4] ss:$44 sps:$4 sm:$0xff]  }
 0x32b   :  { %6227 = vmatprep.subr.bf16.mxu1 %v20782_v40  ;;  %v20812_v28 = vld [vmem:[#allocation5 + $0x1574] ss:$44 sps:$4 sm:$0xff]   ;;  %v20807_v40 = vld [vmem:[#allocation5 + $0xff0] ss:$44 sps:$4 sm:$0xff]  }
 0x32d   :  { %6185 = vmatpush1.bf16.msra.mxu0 %v20777_v46  ;;  %v20810_v46 = vld [vmem:[#allocation5 + $0x1570] ss:$44 sps:$4 sm:$0xff]  }
 0x32e   :  { %6228 = vmatpush1.bf16.msra.mxu1 %v20780_v62  ;;  %6186 = vmatprep.subr.bf16.mxu0 %v20785_v1  ;;  %v20806_v62 = vld [vmem:[#allocation5 + $0x15cc] ss:$44 sps:$4 sm:$0xff]   ;;  %v20815_v1 = vld [vmem:[#allocation5 + $0xf9c] ss:$44 sps:$4 sm:$0xff]  }
 0x32f   :  { %6229 = vmatprep.subr.bf16.mxu1 %v20788_v41  ;;  %v20818_v41 = vld [vmem:[#allocation5 + $0x151c] ss:$44 sps:$4 sm:$0xff]  }
 0x331   :  { %6187 = vmatpush1.bf16.msra.mxu0 %v20783_v43  ;;  %v20813_v43 = vld [vmem:[#allocation5 + $0xf98] ss:$44 sps:$4 sm:$0xff]  }
 0x332   :  { %6230 = vmatpush1.bf16.msra.mxu1 %v20786_v48  ;;  %6188 = vmatprep.subr.bf16.mxu0 %v20791_v59  ;;  %v20816_v48 = vld [vmem:[#allocation5 + $0x1518] ss:$44 sps:$4 sm:$0xff]  }
 0x333   :  { %6231 = vmatprep.subr.bf16.mxu1 %v20794_v0  ;;  %v20821_v59 = vld [vmem:[#allocation5 + $0xf44] ss:$44 sps:$4 sm:$0xff]  }
 0x334   :  { %v20824_v0 = vld [vmem:[#allocation5 + $0x14c4] ss:$44 sps:$4 sm:$0xff]  }
 0x335   :  { %6189 = vmatpush1.bf16.msra.mxu0 %v20789_v3  ;;  %v20819_v3 = vld [vmem:[#allocation5 + $0xf40] ss:$44 sps:$4 sm:$0xff]  }
 0x336   :  { %6232 = vmatpush1.bf16.msra.mxu1 %v20792_v4  ;;  %6190 = vmatprep.subr.bf16.mxu0 %v20797_v9  ;;  %v20822_v4 = vld [vmem:[#allocation5 + $0x14c0] ss:$44 sps:$4 sm:$0xff]  }
 0x337   :  { %6233 = vmatprep.subr.bf16.mxu1 %v20800_v22  ;;  %v20827_v9 = vld [vmem:[#allocation5 + $0xeec] ss:$44 sps:$4 sm:$0xff]  }
 0x338   :  { %v20830_v22 = vld [vmem:[#allocation5 + $0x146c] ss:$44 sps:$4 sm:$0xff]  }
 0x339   :  { %6191 = vmatpush1.bf16.msra.mxu0 %v20795_v42  ;;  %v20825_v42 = vld [vmem:[#allocation5 + $0xee8] ss:$44 sps:$4 sm:$0xff]  }
 0x33a   :  { %6234 = vmatpush1.bf16.msra.mxu1 %v20798_v63  ;;  %6192 = vmatprep.subr.bf16.mxu0 %v20803_v27  ;;  %v20828_v63 = vld [vmem:[#allocation5 + $0x1468] ss:$44 sps:$4 sm:$0xff]  }
 0x33b   :  { %6235 = vmatprep.subr.bf16.mxu1 %v20806_v62  ;;  %v20833_v27 = vld [vmem:[#allocation5 + $0xe94] ss:$44 sps:$4 sm:$0xff]  }
 0x33c   :  { %v20836_v62 = vld [vmem:[#allocation5 + $0x1414] ss:$44 sps:$4 sm:$0xff]  }
 0x33d   :  { %6193 = vmatpush2.bf16.msra.mxu0 %v20801_v51  ;;  %v20831_v51 = vld [vmem:[#allocation5 + $0xe90] ss:$44 sps:$4 sm:$0xff]  }
 0x33e   :  { %6236 = vmatpush2.bf16.msra.mxu1 %v20804_v24  ;;  %6194 = vmatprep.subr.bf16.mxu0 %v20809_v25  ;;  %v20834_v24 = vld [vmem:[#allocation5 + $0x1410] ss:$44 sps:$4 sm:$0xff]  }
 0x33f   :  { %6237 = vmatprep.subr.bf16.mxu1 %v20812_v28  ;;  %v20839_v25 = vld [vmem:[#allocation5 + $0xe3c] ss:$44 sps:$4 sm:$0xff]  }
 0x340   :  { %v20842_v28 = vld [vmem:[#allocation5 + $0x13bc] ss:$44 sps:$4 sm:$0xff]  }
 0x341   :  { %6195 = vmatpush2.bf16.msra.mxu0 %v20807_v40  ;;  %v20837_v40 = vld [vmem:[#allocation5 + $0xe38] ss:$44 sps:$4 sm:$0xff]  }
 0x342   :  { %6238 = vmatpush2.bf16.msra.mxu1 %v20810_v46  ;;  %6196 = vmatprep.subr.bf16.mxu0 %v20815_v1  ;;  %v20840_v46 = vld [vmem:[#allocation5 + $0x13b8] ss:$44 sps:$4 sm:$0xff]  }
 0x343   :  { %6239 = vmatprep.subr.bf16.mxu1 %v20818_v41  ;;  %v20845_v1 = vld [vmem:[#allocation5 + $0xde4] ss:$44 sps:$4 sm:$0xff]  }
 0x344   :  { %v20848_v41 = vld [vmem:[#allocation5 + $0x1364] ss:$44 sps:$4 sm:$0xff]  }
 0x345   :  { %6197 = vmatpush2.bf16.msra.mxu0 %v20813_v43  ;;  %v24108_v43 = vsub.s32 6, %v23279_v47 }
 0x346   :  { %6240 = vmatpush2.bf16.msra.mxu1 %v20816_v48  ;;  %6198 = vmatprep.subr.bf16.mxu0 %v20821_v59  ;;  %v20843_v48 = vld [vmem:[#allocation5 + $0xde0] ss:$44 sps:$4 sm:$0xff]  }
 0x347   :  { %6241 = vmatprep.subr.bf16.mxu1 %v20824_v0  ;;  %v20846_v59 = vld [vmem:[#allocation5 + $0x1360] ss:$44 sps:$4 sm:$0xff]   ;;  %v23490_v0 = vpop.f32.mrf.mxu1 }
 0x349   :  { %6199 = vmatpush2.bf16.msra.mxu0 %v20819_v3  ;;  %v20849_v3 = vld [vmem:[#allocation5 + $0x1784] ss:$44 sps:$4 sm:$0x3f]  }
 0x34a   :  { %6242 = vmatpush2.bf16.msra.mxu1 %v20822_v4  ;;  %6200 = vmatprep.subr.bf16.mxu0 %v20827_v9  ;;  %v5909_v4 = vpop.f32.mrf.mxu1  ;;  %v20851_v9 = vld [vmem:[#allocation5 + $0x550] ss:$44 sps:$4 sm:$0xff]  }
 0x34b   :  { %6243 = vmatprep.subr.bf16.mxu1 %v20830_v22  ;;  %v20852_v22 = vld [vmem:[#allocation5 + $0x1780] ss:$44 sps:$4 sm:$0x3f]  }
 0x34d   :  { %6201 = vmatpush2.bf16.msra.mxu0 %v20825_v42  ;;  %v23492_v42 = vld [vmem:[#allocation7] sm:$0xff] }
 0x34e   :  { %6244 = vmatpush2.bf16.msra.mxu1 %v20828_v63  ;;  %6202 = vmatprep.subr.bf16.mxu0 %v20833_v27  ;;  %v1102_v63 = vrot.slane %v23492_v42, %v24108_v43  ;;  %v20853_v27 = vld [vmem:[#allocation5 + $0x290] ss:$44 sps:$4 sm:$0xff]  }
 0x34f   :  { %6245 = vmatprep.subr.bf16.mxu1 %v20836_v62  ;;  %v20856_v62 = vld [vmem:[#allocation5 + $0x172c] ss:$44 sps:$4 sm:$0xff]  }
 0x351   :  { %6203 = vmatpush2.bf16.msra.mxu0 %v20831_v51  ;;  %v23497_v51 = vpop.f32.mrf.mxu0 }
 0x352   :  { %6246 = vmatpush2.bf16.msra.mxu1 %v20834_v24  ;;  %6204 = vmatprep.subr.bf16.mxu0 %v20839_v25  ;;  %v23499_v24 = vpop.f32.mrf.mxu1  ;;  %v5222_v25 = vsel %vm5196_vm0, %v20852_v22, 0  ;;  %v20863_v22 = vld [vmem:[#allocation5 + $0x1e0] ss:$44 sps:$4 sm:$0xff]  }
 0x353   :  { %6247 = vmatprep.subr.bf16.mxu1 %v20842_v28  ;;  %v20857_v28 = vld [vmem:[#allocation5 + $0x4f8] ss:$44 sps:$4 sm:$0xff]  }
 0x354   :  { %v5913_v5 = vpop.f32.mrf.mxu1 }
 0x355   :  { %6205 = vmatpush2.bf16.msra.mxu0 %v20837_v40  ;;  %v5910_v40 = vadd.f32 %v5909_v4, %v1102_v63  ;;  %v20859_v4 = vld [vmem:[#allocation5 + $0x16d0] ss:$44 sps:$4 sm:$0xff]  }
 0x356   :  { %6248 = vmatpush2.bf16.msra.mxu1 %v20840_v46  ;;  %6206 = vmatprep.subr.bf16.mxu0 %v20845_v1  ;;  %v20854_v46 = vld [vmem:[#allocation5 + $0x1728] ss:$44 sps:$4 sm:$0xff]   ;;  %v20858_v1 = vld [vmem:[#allocation5 + $0x238] ss:$44 sps:$4 sm:$0xff]  }
 0x357   :  { %6249 = vmatprep.subr.bf16.mxu1 %v20848_v41 }
 0x359   :  { %6207 = vmatpush2.bf16.msra.mxu0 %v20843_v48  ;;  %v20861_v48 = vld [vmem:[#allocation5 + $0x16d4] ss:$44 sps:$4 sm:$0xff]  }
 0x35a   :  { %6250 = vmatpush2.bf16.msra.mxu1 %v20846_v59  ;;  %18010 = vmatprep.subr.msk.bf16.mxu0 %vm5196_vm0, %v20849_v3  ;;  %v20862_v59 = vld [vmem:[#allocation5 + $0x4a0] ss:$44 sps:$4 sm:$0xff]  }
 0x35b   :  { %19325 = vmatprep.subr.bf16.mxu1 %v20851_v9  ;;  %v5914_v9 = vadd.f32 %v5913_v5, %v1102_v63  ;;  %v20871_v5 = vld [vmem:[#allocation5 + $0x1624] ss:$44 sps:$4 sm:$0xff]  }
 0x35c   :  { %v5952_v41 = vpop.f32.mrf.mxu0  ;;  %6209 = vmatmul.mubr.bf16.vlgmr.msra.gmra.mxu0 %v23334_v54  ;;  %v20872_v63 = vld [vmem:[#allocation5 + $0x3f0] ss:$44 sps:$4 sm:$0xff]  }
 0x35d   :  { %6252 = vmatmul.mubr.bf16.vlgmr.msra.gmra.mxu1 %v23336_v56  ;;  %v23505_v43 = vadd.f32 %v5952_v41, %v5910_v40  ;;  %6269 = vmatpush1.bf16.msra.mxu0 %v5222_v25  ;;  %v20868_v25 = vld [vmem:[#allocation5 + $0x188] ss:$44 sps:$4 sm:$0xff]   ;;  %v20875_v40 = vld [vmem:[#allocation5 + $0xad0] ss:$44 sps:$4 sm:$0xff]   ;;  %v20878_v41 = vld [vmem:[#allocation5 + $0x340] ss:$44 sps:$4 sm:$0xff]  }
 0x35e   :  { %19326 = vmatpush3.bf16.msra.mxu1 %v20853_v27  ;;  %v23507_v3 = vpop.f32.mrf.mxu0  ;;  %6270 = vmatprep.subr.bf16.mxu0 %v20856_v62  ;;  %v20864_v27 = vld [vmem:[#allocation5 + $0x1678] ss:$44 sps:$4 sm:$0xff]   ;;  %v20869_v62 = vld [vmem:[#allocation5 + $0x1620] ss:$44 sps:$4 sm:$0xff]  }
 0x35f   :  { %19327 = vmatprep.subr.bf16.mxu1 %v20857_v28  ;;  %6294 = vmatprep.mubr.bf16.mxu0 %v24148_v19  ;;  %v20873_v28 = vld [vmem:[#allocation5 + $0x130] ss:$44 sps:$4 sm:$0xff]  }
 0x360   :  { %6337 = vmatprep.mubr.bf16.mxu1 %v23290_v12  ;;  %v5956_v35 = vpop.f32.mrf.mxu0  ;;  %v21896_v12 = vld [vmem:[#allocation8 + $0x13b0] ss:$44 sps:$4 sm:$0xff]  }
 0x361   :  { %v23511_v11 = vadd.f32 %v5956_v35, %v5914_v9  ;;  %6271 = vmatpush1.bf16.msra.mxu0 %v20854_v46  ;;  %v20874_v35 = vld [vmem:[#allocation5 + $0x398] ss:$44 sps:$4 sm:$0xff]   ;;  %v20883_v9 = vld [vmem:[#allocation5 + $0xa20] ss:$44 sps:$4 sm:$0xff]  }
 0x362   :  { %19328 = vmatpush3.bf16.msra.mxu1 %v20858_v1  ;;  %6272 = vmatprep.subr.bf16.mxu0 %v20861_v48  ;;  %v20876_v46 = vld [vmem:[#allocation5 + $0xd8] ss:$44 sps:$4 sm:$0xff]   ;;  %v20877_v1 = vld [vmem:[#allocation5 + $0x810] ss:$44 sps:$4 sm:$0xff]  }
 0x363   :  { %19329 = vmatprep.subr.bf16.mxu1 %v20862_v59  ;;  %v20879_v48 = vld [vmem:[#allocation5 + $0xa78] ss:$44 sps:$4 sm:$0xff]   ;;  %v20882_v59 = vld [vmem:[#allocation5 + $0x2e8] ss:$44 sps:$4 sm:$0xff]  }
 0x365   :  { %6273 = vmatpush1.bf16.msra.mxu0 %v20859_v4  ;;  %v20884_v4 = vld [vmem:[#allocation5 + $0x28] ss:$44 sps:$4 sm:$0xff]  }
 0x366   :  { %19330 = vmatpush3.bf16.msra.mxu1 %v20863_v22  ;;  %6274 = vmatprep.subr.bf16.mxu0 %v20866_v37  ;;  %v20880_v37 = vld [vmem:[#allocation5 + $0x80] ss:$44 sps:$4 sm:$0xff]  }
 0x367   :  { %19331 = vmatprep.subr.bf16.mxu1 %v20867_v30  ;;  %v20881_v30 = vld [vmem:[#allocation5 + $0x7b8] ss:$44 sps:$4 sm:$0xff]   ;;  %v20885_v22 = vld [vmem:[#allocation5 + $0x760] ss:$44 sps:$4 sm:$0xff]  }
 0x369   :  { %6275 = vmatpush1.bf16.msra.mxu0 %v20864_v27  ;;  %v20886_v27 = vld [vmem:[#allocation5 + $0x9c8] ss:$44 sps:$4 sm:$0xff]  }
 0x36a   :  { %19332 = vmatpush3.bf16.msra.mxu1 %v20868_v25  ;;  %6276 = vmatprep.subr.bf16.mxu0 %v20871_v5  ;;  %v20887_v25 = vld [vmem:[#allocation5 + $0x1050] ss:$44 sps:$4 sm:$0xff]   ;;  %v20888_v5 = vld [vmem:[#allocation5 + $0x708] ss:$44 sps:$4 sm:$0xff]  }
 0x36b   :  { %19333 = vmatprep.subr.bf16.mxu1 %v20872_v63  ;;  %v20889_v63 = vld [vmem:[#allocation5 + $0xd90] ss:$44 sps:$4 sm:$0xff]  }
 0x36d   :  { %6277 = vmatpush1.bf16.msra.mxu0 %v20869_v62  ;;  %v20890_v62 = vld [vmem:[#allocation5 + $0x970] ss:$44 sps:$4 sm:$0xff]  }
 0x36e   :  { %19334 = vmatpush3.bf16.msra.mxu1 %v20873_v28  ;;  %19347 = vmatprep.subr.bf16.mxu0 %v20875_v40  ;;  %v20891_v28 = vld [vmem:[#allocation5 + $0xff8] ss:$44 sps:$4 sm:$0xff]  }
 0x36f   :  { %19335 = vmatprep.subr.bf16.mxu1 %v20874_v35  ;;  %v20892_v35 = vld [vmem:[#allocation5 + $0x6b0] ss:$44 sps:$4 sm:$0xff]   ;;  %v20893_v40 = vld [vmem:[#allocation5 + $0xd38] ss:$44 sps:$4 sm:$0xff]  }
 0x370   :  { %18011 = vmatmul.mubr.msk.bf16.vlgmr.msra.gmra.mxu0 %vm5192_vm1, %v23350_v32 }
 0x371   :  { %19348 = vmatpush3.bf16.msra.mxu0 %v20877_v1  ;;  %6378 = vmatprep.mubr.bf16.mxu0 %v23292_v13  ;;  %v20895_v1 = vld [vmem:[#allocation5 + $0xfa0] ss:$44 sps:$4 sm:$0xff]  }
 0x372   :  { %19336 = vmatpush3.bf16.msra.mxu1 %v20876_v46  ;;  %19349 = vmatprep.subr.bf16.mxu0 %v20879_v48  ;;  %v20894_v46 = vld [vmem:[#allocation5 + $0x918] ss:$44 sps:$4 sm:$0xff]   ;;  %v20897_v48 = vld [vmem:[#allocation5 + $0xce0] ss:$44 sps:$4 sm:$0xff]  }
 0x373   :  { %19337 = vmatprep.subr.bf16.mxu1 %v20878_v41  ;;  %v20896_v41 = vld [vmem:[#allocation5 + $0x658] ss:$44 sps:$4 sm:$0xff]   ;;  %v21904_v13 = vld [vmem:[#allocation8 + $0x135c] ss:$44 sps:$4 sm:$0xff]  }
 0x375   :  { %19350 = vmatpush3.bf16.msra.mxu0 %v20881_v30  ;;  %v20899_v30 = vld [vmem:[#allocation5 + $0xf48] ss:$44 sps:$4 sm:$0xff]  }
 0x376   :  { %19338 = vmatpush3.bf16.msra.mxu1 %v20880_v37  ;;  %19351 = vmatprep.subr.bf16.mxu0 %v20883_v9  ;;  %v20898_v37 = vld [vmem:[#allocation5 + $0x8c0] ss:$44 sps:$4 sm:$0xff]   ;;  %v20901_v9 = vld [vmem:[#allocation5 + $0xc88] ss:$44 sps:$4 sm:$0xff]  }
 0x377   :  { %19339 = vmatprep.subr.bf16.mxu1 %v20882_v59  ;;  %v20900_v59 = vld [vmem:[#allocation5 + $0x600] ss:$44 sps:$4 sm:$0xff]  }
 0x379   :  { %19352 = vmatpush3.bf16.msra.mxu0 %v20885_v22  ;;  %v20902_v22 = vld [vmem:[#allocation5 + $0x868] ss:$44 sps:$4 sm:$0xff]  }
 0x37a   :  { %19340 = vmatpush3.bf16.msra.mxu1 %v20884_v4  ;;  %19353 = vmatprep.subr.bf16.mxu0 %v20886_v27  ;;  %v23518_v4 = vpop.f32.mrf.mxu1  ;;  %v20903_v27 = vld [vmem:[#allocation5 + $0xef0] ss:$44 sps:$4 sm:$0xff]  }
 0x37b   :  { %19369 = vmatprep.subr.bf16.mxu1 %v20887_v25  ;;  %v20904_v25 = vld [vmem:[#allocation5 + $0x5a8] ss:$44 sps:$4 sm:$0xff]  }
 0x37d   :  { %6338 = vmatmul.mubr.bf16.vlgmr.msra.gmra.mxu1 %v23298_v26  ;;  %19354 = vmatpush3.bf16.msra.mxu0 %v20888_v5  ;;  %v20905_v5 = vld [vmem:[#allocation5 + $0xc30] ss:$44 sps:$4 sm:$0xff]   ;;  %v20924_v26 = vld [vmem:[#allocation5 + $0x1418] ss:$44 sps:$4 sm:$0xff]  }
 0x37e   :  { %19370 = vmatpush3.bf16.msra.mxu1 %v20889_v63  ;;  %19355 = vmatprep.subr.bf16.mxu0 %v20890_v62 }
 0x37f   :  { %19371 = vmatprep.subr.bf16.mxu1 %v20891_v28  ;;  %6419 = vmatprep.mubr.bf16.mxu1 %v23322_v16 }
 0x381   :  { %19356 = vmatpush3.bf16.msra.mxu0 %v20892_v35  ;;  %v20906_v35 = vld [vmem:[#allocation5 + $0xe98] ss:$44 sps:$4 sm:$0xff]  }
 0x382   :  { %19372 = vmatpush3.bf16.msra.mxu1 %v20893_v40  ;;  %19357 = vmatprep.subr.bf16.mxu0 %v20894_v46  ;;  %v20907_v40 = vld [vmem:[#allocation5 + $0x15d0] ss:$44 sps:$4 sm:$0xff]   ;;  %v20908_v46 = vld [vmem:[#allocation5 + $0xbd8] ss:$44 sps:$4 sm:$0xff]  }
 0x383   :  { %19373 = vmatprep.subr.bf16.mxu1 %v20895_v1  ;;  %v20909_v1 = vld [vmem:[#allocation5 + $0x1310] ss:$44 sps:$4 sm:$0xff]  }
 0x385   :  { %19358 = vmatpush3.bf16.msra.mxu0 %v20896_v41 }
 0x386   :  { %19374 = vmatpush3.bf16.msra.mxu1 %v20897_v48  ;;  %19359 = vmatprep.subr.bf16.mxu0 %v20898_v37  ;;  %v20910_v37 = vld [vmem:[#allocation5 + $0xe40] ss:$44 sps:$4 sm:$0xff]  }
 0x387   :  { %19375 = vmatprep.subr.bf16.mxu1 %v20899_v30  ;;  %v20912_v30 = vld [vmem:[#allocation5 + $0xb80] ss:$44 sps:$4 sm:$0xff]  }
 0x389   :  { %v5995_v63 = vpop.f32.mrf.mxu1  ;;  %19360 = vmatpush3.bf16.msra.mxu0 %v20900_v59  ;;  %v20913_v59 = vld [vmem:[#allocation5 + $0x12b8] ss:$44 sps:$4 sm:$0xff]  }
 0x38a   :  { %v5996_v62 = vadd.f32 %v5995_v63, %v23505_v43  ;;  %19376 = vmatpush3.bf16.msra.mxu1 %v20901_v9  ;;  %19361 = vmatprep.subr.bf16.mxu0 %v20902_v22  ;;  %v20911_v43 = vld [vmem:[#allocation5 + $0x1578] ss:$44 sps:$4 sm:$0xff]   ;;  %v20914_v9 = vld [vmem:[#allocation5 + $0xde8] ss:$44 sps:$4 sm:$0xff]   ;;  %v20915_v22 = vld [vmem:[#allocation5 + $0x1520] ss:$44 sps:$4 sm:$0xff]  }
 0x38b   :  { %v23521_v28 = vpop.f32.mrf.mxu1  ;;  %19377 = vmatprep.subr.bf16.mxu1 %v20903_v27  ;;  %v20916_v27 = vld [vmem:[#allocation5 + $0xb28] ss:$44 sps:$4 sm:$0xff]   ;;  %v20917_v63 = vld [vmem:[#allocation5 + $0x1260] ss:$44 sps:$4 sm:$0xff]  }
 0x38d   :  { %v5999_v41 = vpop.f32.mrf.mxu1  ;;  %19362 = vmatpush3.bf16.msra.mxu0 %v20904_v25  ;;  %v24119_v25 = vsub.s32 3, %v23279_v47 }
 0x38e   :  { %v23524_v48 = vadd.f32 %v5999_v41, %v23511_v11  ;;  %19378 = vmatpush3.bf16.msra.mxu1 %v20905_v5  ;;  %19391 = vmatprep.subr.bf16.mxu0 %v20907_v40  ;;  %v23529_v11 = vsub.s32 1, %v23279_v47  ;;  %v20918_v5 = vld [vmem:[#allocation5 + $0x14c8] ss:$44 sps:$4 sm:$0xff]  }
 0x38f   :  { %19379 = vmatprep.subr.bf16.mxu1 %v20906_v35  ;;  %v20920_v35 = vld [vmem:[#allocation5 + $0x1788] ss:$44 sps:$4 sm:$0x3f]   ;;  %v1090_v41 = vrot.slane %v23492_v42, %v24119_v25  ;;  %v20923_v25 = vld [vmem:[#allocation5 + $0x1730] ss:$44 sps:$4 sm:$0xff]  }
 0x390   :  { %6379 = vmatmul.mubr.bf16.vlgmr.msra.gmra.mxu0 %v23300_v29  ;;  %v20919_v40 = vld [vmem:[#allocation5 + $0x1208] ss:$44 sps:$4 sm:$0xff]  }
 0x391   :  { %19392 = vmatpush3.bf16.msra.mxu0 %v20909_v1  ;;  %6460 = vmatprep.mubr.bf16.mxu0 %v23324_v17  ;;  %v1082_v1 = vrot.slane %v23492_v42, %v23529_v11 }
 0x392   :  { %19380 = vmatpush3.bf16.msra.mxu1 %v20908_v46  ;;  %19393 = vmatprep.subr.bf16.mxu0 %v20911_v43  ;;  %v20921_v46 = vld [vmem:[#allocation5 + $0x1470] ss:$44 sps:$4 sm:$0xff]   ;;  %v23539_v43 = vpop.f32.mrf.mxu1 }
 0x393   :  { %19381 = vmatprep.subr.bf16.mxu1 %v20910_v37  ;;  %v23537_v37 = vpop.f32.mrf.mxu0  ;;  %v5267_v16 = vadd.f32 %v23366_v49, %v1082_v1  ;;  %v5482_v49 = vadd.f32 %v23408_v36, %v1090_v41 }
 0x395   :  { %19394 = vmatpush3.bf16.msra.mxu0 %v20913_v59  ;;  %v5228_v59 = vsel %vm5196_vm0, %v20920_v35, 0 }
 0x396   :  { %19382 = vmatpush3.bf16.msra.mxu1 %v20912_v30  ;;  %19395 = vmatprep.subr.bf16.mxu0 %v20915_v22  ;;  %v24122_v30 = vmov 0.0  }
 0x397   :  { %19383 = vmatprep.subr.bf16.mxu1 %v20914_v9  ;;  %v5271_v9 = vadd.f32 %v23380_v7, %v1082_v1  ;;  %v24149_v7 = vmov 0.0   ;;  %v20925_v1 = vld [vmem:[#allocation5 + $0x1158] ss:$44 sps:$4 sm:$0xff]  }
 0x399   :  { %19396 = vmatpush3.bf16.msra.mxu0 %v20917_v63  ;;  %v20922_v63 = vld [vmem:[#allocation5 + $0x11b0] ss:$44 sps:$4 sm:$0xff]   ;;  %v5314_v35 = vadd.f32 %v23382_v8, %v5271_v9  ;;  %v20926_v8 = vld [vmem:[#allocation5 + $0x16d8] ss:$44 sps:$4 sm:$0xff]   ;;  %v20927_v9 = vld [vmem:[#allocation5 + $0x13c0] ss:$44 sps:$4 sm:$0xff]  }
 0x39a   :  { %19384 = vmatpush3.bf16.msra.mxu1 %v20916_v27  ;;  %19397 = vmatprep.subr.bf16.mxu0 %v20918_v5  ;;  %v5486_v5 = vadd.f32 %v23425_v61, %v1090_v41 }
 0x39b   :  { %19694 = vmatprep.subr.bf16.mxu1 %v24122_v30 }
 0x39c   :  { %v6038_v22 = vpop.f32.mrf.mxu0 }
 0x39d   :  { %6420 = vmatmul.mubr.bf16.vlgmr.msra.gmra.mxu1 %v23334_v54  ;;  %v6081_v27 = vpop.f32.mrf.mxu1  ;;  %v6039_v42 = vadd.f32 %v6038_v22, %v5996_v62  ;;  %19398 = vmatpush3.bf16.msra.mxu0 %v20919_v40  ;;  %v5529_v62 = vadd.f32 %v23431_v38, %v5486_v5  ;;  %v20932_v5 = vld [vmem:[#allocation5 + $0x1628] ss:$44 sps:$4 sm:$0xff]  }
 0x39e   :  { %19695 = vmatpush3.bf16.msra.mxu1 %v5228_v59  ;;  %v23547_v17 = vpop.f32.mrf.mxu0  ;;  %19399 = vmatprep.subr.bf16.mxu0 %v20921_v46  ;;  %v5310_v59 = vadd.f32 %v23368_v50, %v5267_v16  ;;  %v5357_v46 = vadd.f32 %v23390_v44, %v5314_v35  ;;  %v20928_v44 = vld [vmem:[#allocation5 + $0x1100] ss:$44 sps:$4 sm:$0xff]   ;;  %v20935_v35 = vld [vmem:[#allocation8 + $0x26c] ss:$44 sps:$4 sm:$0xff]  }
 0x39f   :  { %v23549_v30 = vpop.f32.mrf.mxu1  ;;  %19696 = vmatprep.subr.bf16.mxu1 %v24149_v7  ;;  %v6082_v54 = vadd.f32 %v6081_v27, %v6039_v42  ;;  %19704 = vmatprep.mubr.msk.bf16.mxu1 %vm23146_vm2, %v24149_v7  ;;  %v5525_v27 = vadd.f32 %v23416_v45, %v5482_v49  ;;  %v5572_v42 = vadd.f32 %v23433_v39, %v5529_v62  ;;  %v20929_v45 = vld [vmem:[#allocation5 + $0x1680] ss:$44 sps:$4 sm:$0xff]   ;;  %v20938_v49 = vld [vmem:[#allocation8 + $0x7ec] ss:$44 sps:$4 sm:$0xff]  }
 0x3a0   :  { %v6042_v40 = vpop.f32.mrf.mxu0  ;;  %v5353_v36 = vadd.f32 %v23385_v20, %v5310_v59  ;;  %v20933_v62 = vld [vmem:[#allocation8 + $0x268] ss:$44 sps:$4 sm:$0xff]  }
 0x3a1   :  { %v6085_v61 = vpop.f32.mrf.mxu1  ;;  %v6043_v22 = vadd.f32 %v6042_v40, %v23524_v48  ;;  %19400 = vmatpush3.bf16.msra.mxu0 %v20922_v63  ;;  %v5568_v16 = vadd.f32 %v23428_v6, %v5525_v27  ;;  %v5615_v50 = vadd.f32 %v23448_v2, %v5572_v42  ;;  %v5400_v48 = vadd.f32 %v23403_v23, %v5357_v46  ;;  %v20931_v2 = vld [vmem:[#allocation5 + $0x10a8] ss:$44 sps:$4 sm:$0xff]   ;;  %v20936_v40 = vld [vmem:[#allocation8 + $0x7e8] ss:$44 sps:$4 sm:$0xff]  }
 0x3a2   :  { %19697 = vmatpush3.bf16.msra.mxu1 %v20923_v25  ;;  %19401 = vmatprep.subr.bf16.mxu0 %v20924_v26  ;;  %v6516_v25 = vmax.f32 %v6082_v54, 0.0  ;;  %v20930_v26 = vld [vmem:[#allocation5 + $0x1368] ss:$44 sps:$4 sm:$0xff]   ;;  %v5396_v20 = vadd.f32 %v23387_v21, %v5353_v36 }
 0x3a3   :  { %19698 = vmatprep.subr.bf16.mxu1 %v24149_v7  ;;  %v6086_v38 = vadd.f32 %v6085_v61, %v6043_v22  ;;  %v5611_v39 = vadd.f32 %v23436_v53, %v5568_v16  ;;  %v5443_v6 = vadd.f32 %v23406_v34, %v5400_v48  ;;  %v5658_v54 = vadd.f32 %v23450_v14, %v5615_v50  ;;  %v20944_v14 = vld [vmem:[#allocation8 + $0x794] ss:$44 sps:$4 sm:$0xff]   ;;  %v20942_v22 = vld [vmem:[#allocation8 + $0x790] ss:$44 sps:$4 sm:$0xff]   ;;  %v20945_v27 = vld [vmem:[#allocation8 + $0x1b8] ss:$44 sps:$4 sm:$0xff]  }
 0x3a4   :  { %v5439_v23 = vadd.f32 %v23394_v58, %v5396_v20  ;;  %v20948_v42 = vld [vmem:[#allocation8 + $0x738] ss:$44 sps:$4 sm:$0xff]   ;;  %v20951_v16 = vld [vmem:[#allocation8 + $0x160] ss:$44 sps:$4 sm:$0xff]   ;;  %v20957_v48 = vld [vmem:[#allocation8 + $0x108] ss:$44 sps:$4 sm:$0xff]  }
 0x3a5   :  { %v6527_v41 = vmax.f32 %v6086_v38, 0.0  ;;  %19402 = vmatpush3.bf16.msra.mxu0 %v20925_v1  ;;  %v5654_v53 = vadd.f32 %v23438_v57, %v5611_v39  ;;  %v6522_v21 = vmax.f32 %v5443_v6, 0.0  ;;  %v6524_v34 = vmax.f32 %v5658_v54, 0.0  ;;  %v20941_v1 = vld [vmem:[#allocation8 + $0x214] ss:$44 sps:$4 sm:$0xff]  }
 0x3a6   :  { %19699 = vmatpush3.bf16.msra.mxu1 %v20926_v8  ;;  %19403 = vmatprep.subr.bf16.mxu0 %v20927_v9  ;;  %v6511_v61 = vmax.f32 %v5439_v23, 0.0  ;;  %v20939_v57 = vld [vmem:[#allocation8 + $0x210] ss:$44 sps:$4 sm:$0xff]   ;;  %v20954_v50 = vld [vmem:[#allocation8 + $0x6e0] ss:$44 sps:$4 sm:$0xff]  }
 0x3a7   :  { %19700 = vmatprep.subr.bf16.mxu1 %v24149_v7  ;;  %v23571_v63 = vpack.c.bf16 %v6527_v41, %v6516_v25  ;;  %v6513_v59 = vmax.f32 %v5654_v53, 0.0  ;;  %v20947_v8 = vld [vmem:[#allocation8 + $0x1bc] ss:$44 sps:$4 sm:$0xff]   ;;  %v20953_v36 = vld [vmem:[#allocation8 + $0x164] ss:$44 sps:$4 sm:$0xff]  }
 0x3a8   :  { %v23577_v58 = vpack.c.bf16 %v6522_v21, %v6511_v61  ;;  %v20950_v9 = vld [vmem:[#allocation8 + $0x73c] ss:$44 sps:$4 sm:$0xff]   ;;  %v20956_v38 = vld [vmem:[#allocation8 + $0x6e4] ss:$44 sps:$4 sm:$0xff]   ;;  %v20962_v25 = vld [vmem:[#allocation8 + $0x68c] ss:$44 sps:$4 sm:$0xff]  }
 0x3a9   :  { %19404 = vmatpush3.bf16.msra.mxu0 %v20928_v44  ;;  %v23579_v46 = vpack.c.bf16 %v6524_v34, %v6513_v59  ;;  %v20959_v44 = vld [vmem:[#allocation8 + $0x10c] ss:$44 sps:$4 sm:$0xff]   ;;  %v20960_v41 = vld [vmem:[#allocation8 + $0x688] ss:$44 sps:$4 sm:$0xff]   ;;  %v20966_v20 = vld [vmem:[#allocation8 + $0x630] ss:$44 sps:$4 sm:$0xff]  }
 0x3aa   :  { %19701 = vmatpush3.bf16.msra.mxu1 %v20929_v45  ;;  %19405 = vmatprep.subr.bf16.mxu0 %v20930_v26  ;;  %v20965_v45 = vld [vmem:[#allocation8 + $0xb4] ss:$44 sps:$4 sm:$0xff]   ;;  %v20963_v26 = vld [vmem:[#allocation8 + $0xb0] ss:$44 sps:$4 sm:$0xff]   ;;  %v20972_v54 = vld [vmem:[#allocation8 + $0x5d8] ss:$44 sps:$4 sm:$0xff]  }
 0x3ab   :  { %19702 = vmatprep.subr.bf16.mxu1 %v24149_v7  ;;  %v20968_v39 = vld [vmem:[#allocation8 + $0x634] ss:$44 sps:$4 sm:$0xff]   ;;  %v20971_v6 = vld [vmem:[#allocation8 + $0x5c] ss:$44 sps:$4 sm:$0xff]   ;;  %v20977_v23 = vld [vmem:[#allocation8 + $0x4] ss:$44 sps:$4 sm:$0xff]  }
 0x3ac   :  { %v20980_v53 = vld [vmem:[#allocation8 + $0x584] ss:$44 sps:$4 sm:$0xff]   ;;  %v20983_v21 = vld [vmem:[#allocation8 + $0x52c] ss:$44 sps:$4 sm:$0xff]   ;;  %v20981_v34 = vld [vmem:[#allocation8 + $0x528] ss:$44 sps:$4 sm:$0xff]  }
 0x3ad   :  { %19406 = vmatpush3.bf16.msra.mxu0 %v20931_v2  ;;  %v20974_v2 = vld [vmem:[#allocation8 + $0x5dc] ss:$44 sps:$4 sm:$0xff]   ;;  %v20989_v61 = vld [vmem:[#allocation8 + $0x4d4] ss:$44 sps:$4 sm:$0xff]  }
 0x3ae   :  { %19703 = vmatpush3.bf16.msra.mxu1 %v20932_v5  ;;  %12586 = vmatprep.subr.bf16.mxu0 %v20935_v35  ;;  %v20969_v5 = vld [vmem:[#allocation8 + $0x58] ss:$44 sps:$4 sm:$0xff]   ;;  %v20975_v35 = vld [vmem:[#allocation8] ss:$44 sps:$4 sm:$0xff]   ;;  %v20990_v59 = vld [vmem:[#allocation8 + $0xa50] ss:$44 sps:$4 sm:$0xff]  }
 0x3af   :  { %12629 = vmatprep.subr.bf16.mxu1 %v20938_v49  ;;  %v20978_v49 = vld [vmem:[#allocation8 + $0x580] ss:$44 sps:$4 sm:$0xff]  }
 0x3b0   :  { %6461 = vmatmul.mubr.bf16.vlgmr.msra.gmra.mxu0 %v23336_v56 }
 0x3b1   :  { %19705 = vmatmul.mubr.msk.bf16.vlgmr.msra.gmra.mxu1 %vm5192_vm1, %v23350_v32  ;;  %12587 = vmatpush1.bf16.msra.mxu0 %v20933_v62  ;;  %v20986_v62 = vld [vmem:[#allocation8 + $0xaac] ss:$44 sps:$4 sm:$0xff]  }
 0x3b2   :  { %12618 = vmatprep.mubr.bf16.mxu0 %v23577_v58  ;;  %12630 = vmatpush1.bf16.msra.mxu1 %v20936_v40  ;;  %v20984_v40 = vld [vmem:[#allocation8 + $0xaa8] ss:$44 sps:$4 sm:$0xff]  }
 0x3b3   :  { %12661 = vmatprep.mubr.bf16.mxu1 %v23579_v46  ;;  %12588 = vmatprep.subr.bf16.mxu0 %v20941_v1  ;;  %v20992_v1 = vld [vmem:[#allocation8 + $0xa54] ss:$44 sps:$4 sm:$0xff]  }
 0x3b4   :  { %12631 = vmatprep.subr.bf16.mxu1 %v20944_v14  ;;  %v20987_v14 = vld [vmem:[#allocation8 + $0x4d0] ss:$44 sps:$4 sm:$0xff]  }
 0x3b5   :  { %12589 = vmatpush1.bf16.msra.mxu0 %v20939_v57  ;;  %v20995_v57 = vld [vmem:[#allocation8 + $0x47c] ss:$44 sps:$4 sm:$0xff]  }
 0x3b6   :  { %12632 = vmatpush1.bf16.msra.mxu1 %v20942_v22  ;;  %12590 = vmatprep.subr.bf16.mxu0 %v20947_v8  ;;  %v20998_v22 = vld [vmem:[#allocation8 + $0x9fc] ss:$44 sps:$4 sm:$0xff]   ;;  %v20993_v8 = vld [vmem:[#allocation8 + $0x478] ss:$44 sps:$4 sm:$0xff]  }
 0x3b7   :  { %12633 = vmatprep.subr.bf16.mxu1 %v20950_v9  ;;  %v20996_v9 = vld [vmem:[#allocation8 + $0x9f8] ss:$44 sps:$4 sm:$0xff]  }
 0x3b9   :  { %12591 = vmatpush1.bf16.msra.mxu0 %v20945_v27  ;;  %v21001_v27 = vld [vmem:[#allocation8 + $0x424] ss:$44 sps:$4 sm:$0xff]  }
 0x3ba   :  { %12634 = vmatpush1.bf16.msra.mxu1 %v20948_v42  ;;  %12592 = vmatprep.subr.bf16.mxu0 %v20953_v36  ;;  %v21004_v42 = vld [vmem:[#allocation8 + $0x9a4] ss:$44 sps:$4 sm:$0xff]   ;;  %v24125_v36 = vsub.s32 5, %v23279_v47 }
 0x3bb   :  { %12635 = vmatprep.subr.bf16.mxu1 %v20956_v38  ;;  %v24126_v38 = vsub.s32 7, %v23279_v47 }
 0x3bd   :  { %12593 = vmatpush1.bf16.msra.mxu0 %v20951_v16  ;;  %v20999_v16 = vld [vmem:[#allocation8 + $0x420] ss:$44 sps:$4 sm:$0xff]  }
 0x3be   :  { %12636 = vmatpush1.bf16.msra.mxu1 %v20954_v50  ;;  %12594 = vmatprep.subr.bf16.mxu0 %v20959_v44  ;;  %v21002_v50 = vld [vmem:[#allocation8 + $0x9a0] ss:$44 sps:$4 sm:$0xff]  }
 0x3bf   :  { %12637 = vmatprep.subr.bf16.mxu1 %v20962_v25  ;;  %v21007_v44 = vld [vmem:[#allocation8 + $0x3cc] ss:$44 sps:$4 sm:$0xff]  }
 0x3c0   :  { %v22797_v25 = vld [vmem:[#allocation7] sm:$0xff] }
 0x3c1   :  { %12595 = vmatpush1.bf16.msra.mxu0 %v20957_v48  ;;  %v21010_v48 = vld [vmem:[#allocation8 + $0x94c] ss:$44 sps:$4 sm:$0xff]  }
 0x3c2   :  { %12638 = vmatpush1.bf16.msra.mxu1 %v20960_v41  ;;  %12596 = vmatprep.subr.bf16.mxu0 %v20965_v45  ;;  %v1098_v41 = vrot.slane %v22797_v25, %v24125_v36  ;;  %v1106_v45 = vrot.slane %v22797_v25, %v24126_v38  ;;  %v21035_v25 = vld [vmem:[#allocation8 + $0xd10] ss:$44 sps:$4 sm:$0xff]   ;;  %v21806_v38 = vld [vmem:[#allocation8 + $0x858] ss:$44 sps:$4 sm:$0xff]  }
 0x3c3   :  { %12639 = vmatprep.subr.bf16.mxu1 %v20968_v39  ;;  %v21005_v39 = vld [vmem:[#allocation8 + $0x3c8] ss:$44 sps:$4 sm:$0xff]  }
 0x3c5   :  { %12597 = vmatpush1.bf16.msra.mxu0 %v20963_v26  ;;  %v5701_v26 = vadd.f32 %v23469_v10, %v1098_v41  ;;  %v21019_v10 = vld [vmem:[#allocation8 + $0x31c] ss:$44 sps:$4 sm:$0xff]  }
 0x3c6   :  { %12640 = vmatpush1.bf16.msra.mxu1 %v20966_v20  ;;  %12598 = vmatprep.subr.bf16.mxu0 %v20971_v6  ;;  %v21008_v20 = vld [vmem:[#allocation8 + $0x948] ss:$44 sps:$4 sm:$0xff]  }
 0x3c7   :  { %12641 = vmatprep.subr.bf16.mxu1 %v20974_v2  ;;  %v21013_v6 = vld [vmem:[#allocation8 + $0x374] ss:$44 sps:$4 sm:$0xff]  }
 0x3c8   :  { %v21016_v2 = vld [vmem:[#allocation8 + $0x8f4] ss:$44 sps:$4 sm:$0xff]  }
 0x3c9   :  { %12599 = vmatpush1.bf16.msra.mxu0 %v20969_v5  ;;  %v5697_v5 = vadd.f32 %v23455_v31, %v1098_v41  ;;  %v24150_v41 = vld [vmem:[#allocation45_spill] sm:$0xff] }
 0x3ca   :  { %12642 = vmatpush1.bf16.msra.mxu1 %v20972_v54  ;;  %12600 = vmatprep.subr.bf16.mxu0 %v20977_v23  ;;  %v5916_v54 = vadd.f32 %v23518_v4, %v1106_v45  ;;  %v5744_v23 = vadd.f32 %v23471_v18, %v5701_v26 }
 0x3cb   :  { %12643 = vmatprep.subr.bf16.mxu1 %v20980_v53  ;;  %v21011_v53 = vld [vmem:[#allocation8 + $0x370] ss:$44 sps:$4 sm:$0xff]  }
 0x3cc   :  { %v5787_v31 = vadd.f32 %v23479_v15, %v5744_v23  ;;  %v21020_v15 = vld [vmem:[#allocation8 + $0x898] ss:$44 sps:$4 sm:$0xff]  }
 0x3cd   :  { %12601 = vmatpush1.bf16.msra.mxu0 %v20975_v35  ;;  %v21014_v35 = vld [vmem:[#allocation8 + $0x8f0] ss:$44 sps:$4 sm:$0xff]  }
 0x3ce   :  { %12644 = vmatpush1.bf16.msra.mxu1 %v20978_v49  ;;  %12602 = vmatprep.subr.bf16.mxu0 %v20983_v21  ;;  %v5912_v49 = vadd.f32 %v23499_v24, %v1106_v45  ;;  %v5959_v21 = vadd.f32 %v23537_v37, %v5916_v54  ;;  %v21038_v45 = vld [vmem:[#allocation8 + $0x1290] ss:$44 sps:$4 sm:$0xff]  }
 0x3cf   :  { %12645 = vmatprep.subr.bf16.mxu1 %v20986_v62  ;;  %v21022_v62 = vld [vmem:[#allocation8 + $0x89c] ss:$44 sps:$4 sm:$0xff]   ;;  %v21049_v54 = vld [vmem:[#allocation8 + $0xc64] ss:$44 sps:$4 sm:$0xff]  }
 0x3d0   :  { %v5955_v4 = vadd.f32 %v23507_v3, %v5912_v49  ;;  %v6002_v18 = vadd.f32 %v23539_v43, %v5959_v21  ;;  %v21052_v23 = vld [vmem:[#allocation8 + $0x11e4] ss:$44 sps:$4 sm:$0xff]   ;;  %v21055_v49 = vld [vmem:[#allocation8 + $0xc0c] ss:$44 sps:$4 sm:$0xff]  }
 0x3d1   :  { %12603 = vmatpush2.bf16.msra.mxu0 %v20981_v34  ;;  %v5740_v34 = vadd.f32 %v23457_v60, %v5697_v5  ;;  %v6087_v60 = vpop.f32.mrf.mxu1  ;;  %v21044_v5 = vld [vmem:[#allocation8 + $0x1238] ss:$44 sps:$4 sm:$0xff]  }
 0x3d2   :  { %12646 = vmatpush2.bf16.msra.mxu1 %v20984_v40  ;;  %12604 = vmatprep.subr.bf16.mxu0 %v20989_v61  ;;  %v6044_v40 = vpop.f32.mrf.mxu0  ;;  %v5998_v24 = vadd.f32 %v23521_v28, %v5955_v4  ;;  %v21023_v28 = vld [vmem:[#allocation8 + $0x2c0] ss:$44 sps:$4 sm:$0xff]   ;;  %v21062_v4 = vld [vmem:[#allocation8 + $0x1130] ss:$44 sps:$4 sm:$0xff]  }
 0x3d3   :  { %12647 = vmatprep.subr.bf16.mxu1 %v20992_v1  ;;  %v5783_v61 = vadd.f32 %v23474_v52, %v5740_v34  ;;  %v6045_v37 = vadd.f32 %v6044_v40, %v6002_v18  ;;  %v21017_v1 = vld [vmem:[#allocation8 + $0x318] ss:$44 sps:$4 sm:$0xff]   ;;  %v21061_v34 = vld [vmem:[#allocation8 + $0xbb4] ss:$44 sps:$4 sm:$0xff]   ;;  %v21059_v40 = vld [vmem:[#allocation8 + $0xbb0] ss:$44 sps:$4 sm:$0xff]  }
 0x3d4   :  { %v6041_v3 = vadd.f32 %v23547_v17, %v5998_v24  ;;  %v21058_v21 = vld [vmem:[#allocation8 + $0x118c] ss:$44 sps:$4 sm:$0xff]   ;;  %v21067_v18 = vld [vmem:[#allocation8 + $0xb5c] ss:$44 sps:$4 sm:$0xff]  }
 0x3d5   :  { %12605 = vmatpush2.bf16.msra.mxu0 %v20987_v14  ;;  %v5830_v14 = vadd.f32 %v23490_v0, %v5787_v31  ;;  %v5826_v43 = vadd.f32 %v23476_v33, %v5783_v61  ;;  %v21031_v0 = vld [vmem:[#allocation8 + $0xd6c] ss:$44 sps:$4 sm:$0xff]   ;;  %v21037_v33 = vld [vmem:[#allocation8 + $0xd14] ss:$44 sps:$4 sm:$0xff]   ;;  %v21070_v24 = vld [vmem:[#allocation8 + $0x10dc] ss:$44 sps:$4 sm:$0xff]  }
 0x3d6   :  { %12648 = vmatpush2.bf16.msra.mxu1 %v20990_v59  ;;  %12606 = vmatprep.subr.bf16.mxu0 %v20995_v57  ;;  %v21025_v59 = vld [vmem:[#allocation8 + $0x2c4] ss:$44 sps:$4 sm:$0xff]   ;;  %v21064_v31 = vld [vmem:[#allocation8 + $0x1134] ss:$44 sps:$4 sm:$0xff]  }
 0x3d7   :  { %12649 = vmatprep.subr.bf16.mxu1 %v20998_v22  ;;  %v21028_v57 = vld [vmem:[#allocation8 + $0x844] ss:$44 sps:$4 sm:$0xff]   ;;  %v5873_v52 = vadd.f32 %v23497_v51, %v5830_v14  ;;  %v6088_v22 = vadd.f32 %v6087_v60, %v6045_v37  ;;  %v21071_v14 = vld [vmem:[#allocation8 + $0xb00] ss:$44 sps:$4 sm:$0xff]  }
 0x3d8   :  { %v21065_v61 = vld [vmem:[#allocation8 + $0xb58] ss:$44 sps:$4 sm:$0xff]  }
 0x3d9   :  { %12607 = vmatpush2.bf16.msra.mxu0 %v20993_v8  ;;  %v21026_v8 = vld [vmem:[#allocation8 + $0x840] ss:$44 sps:$4 sm:$0xff]   ;;  %v6526_v17 = vmax.f32 %v5873_v52, 0.0  ;;  %v21068_v37 = vld [vmem:[#allocation8 + $0x10d8] ss:$44 sps:$4 sm:$0xff]  }
 0x3da   :  { %12650 = vmatpush2.bf16.msra.mxu1 %v20996_v9  ;;  %12608 = vmatprep.subr.bf16.mxu0 %v21001_v27  ;;  %v5869_v9 = vadd.f32 %v23483_v55, %v5826_v43  ;;  %v21034_v27 = vld [vmem:[#allocation8 + $0x12ec] ss:$44 sps:$4 sm:$0xff]   ;;  %v21076_v60 = vld [vmem:[#allocation8 + $0x1084] ss:$44 sps:$4 sm:$0xff]   ;;  %v21080_v43 = vld [vmem:[#allocation8 + $0x15a8] ss:$44 sps:$4 sm:$0xff]  }
 0x3db   :  { %12651 = vmatprep.subr.bf16.mxu1 %v21004_v42  ;;  %v6084_v42 = vadd.f32 %v23549_v30, %v6041_v3  ;;  %v21043_v30 = vld [vmem:[#allocation8 + $0xcbc] ss:$44 sps:$4 sm:$0xff]   ;;  %v21082_v3 = vld [vmem:[#allocation8 + $0x15ac] ss:$44 sps:$4 sm:$0xff]   ;;  %v21085_v52 = vld [vmem:[#allocation8 + $0xfd4] ss:$44 sps:$4 sm:$0xff]  }
 0x3dc   :  { %v6515_v51 = vmax.f32 %v5869_v9, 0.0  ;;  %v21091_v9 = vld [vmem:[#allocation8 + $0xf7c] ss:$44 sps:$4 sm:$0xff]  }
 0x3dd   :  { %12609 = vmatpush2.bf16.msra.mxu0 %v20999_v16  ;;  %v21029_v16 = vld [vmem:[#allocation8 + $0xd68] ss:$44 sps:$4 sm:$0xff]  }
 0x3de   :  { %12652 = vmatpush2.bf16.msra.mxu1 %v21002_v50  ;;  %12610 = vmatprep.subr.bf16.mxu0 %v21007_v44  ;;  %v21032_v50 = vld [vmem:[#allocation8 + $0x12e8] ss:$44 sps:$4 sm:$0xff]   ;;  %v6528_v44 = vmax.f32 %v6088_v22, 0.0  ;;  %v23610_v55 = vpack.c.bf16 %v6526_v17, %v6515_v51  ;;  %v21083_v22 = vld [vmem:[#allocation8 + $0xfd0] ss:$44 sps:$4 sm:$0xff]  }
 0x3df   :  { %12653 = vmatprep.subr.bf16.mxu1 %v21010_v48  ;;  %v6517_v48 = vmax.f32 %v6084_v42, 0.0  ;;  %v23618_v42 = vpop.f32.mrf.mxu0  ;;  %v21097_v17 = vld [vmem:[#allocation8 + $0xf24] ss:$44 sps:$4 sm:$0xff]  }
 0x3e1   :  { %12611 = vmatpush2.bf16.msra.mxu0 %v21005_v39  ;;  %v21040_v39 = vld [vmem:[#allocation8 + $0x1294] ss:$44 sps:$4 sm:$0xff]   ;;  %v23613_v26 = vpack.c.bf16 %v6528_v44, %v6517_v48  ;;  %v21100_v44 = vld [vmem:[#allocation8 + $0x14a4] ss:$44 sps:$4 sm:$0xff]   ;;  %v6126_v51 = vpop.f32.mrf.mxu0 }
 0x3e2   :  { %12654 = vmatpush2.bf16.msra.mxu1 %v21008_v20  ;;  %12612 = vmatprep.subr.bf16.mxu0 %v21013_v6  ;;  %v24151_v20 = vld [vmem:[#allocation47_spill] sm:$0xff]  ;;  %v21046_v6 = vld [vmem:[#allocation8 + $0x123c] ss:$44 sps:$4 sm:$0xff]  }
 0x3e3   :  { %12655 = vmatprep.subr.bf16.mxu1 %v21016_v2  ;;  %v21041_v2 = vld [vmem:[#allocation8 + $0xcb8] ss:$44 sps:$4 sm:$0xff]   ;;  %v21098_v48 = vld [vmem:[#allocation8 + $0x14a0] ss:$44 sps:$4 sm:$0xff]  }
 0x3e5   :  { %12613 = vmatpush2.bf16.msra.mxu0 %v21011_v53  ;;  %v21047_v53 = vld [vmem:[#allocation8 + $0xc60] ss:$44 sps:$4 sm:$0xff]  }
 0x3e6   :  { %12656 = vmatpush2.bf16.msra.mxu1 %v21014_v35  ;;  %12614 = vmatprep.subr.bf16.mxu0 %v21019_v10  ;;  %v21050_v35 = vld [vmem:[#allocation8 + $0x11e0] ss:$44 sps:$4 sm:$0xff]   ;;  %v21053_v10 = vld [vmem:[#allocation8 + $0xc08] ss:$44 sps:$4 sm:$0xff]  }
 0x3e7   :  { %12657 = vmatprep.subr.bf16.mxu1 %v21022_v62  ;;  %v21056_v62 = vld [vmem:[#allocation8 + $0x1188] ss:$44 sps:$4 sm:$0xff]  }
 0x3e9   :  { %12615 = vmatpush2.bf16.msra.mxu0 %v21017_v1  ;;  %v21073_v1 = vld [vmem:[#allocation8 + $0xb04] ss:$44 sps:$4 sm:$0xff]  }
 0x3ea   :  { %12658 = vmatpush2.bf16.msra.mxu1 %v21020_v15  ;;  %12616 = vmatprep.subr.bf16.mxu0 %v21025_v59  ;;  %v21074_v15 = vld [vmem:[#allocation8 + $0x1080] ss:$44 sps:$4 sm:$0xff]  }
 0x3eb   :  { %12659 = vmatprep.subr.bf16.mxu1 %v21028_v57  ;;  %v21079_v59 = vld [vmem:[#allocation8 + $0x102c] ss:$44 sps:$4 sm:$0xff]   ;;  %v21077_v57 = vld [vmem:[#allocation8 + $0x1028] ss:$44 sps:$4 sm:$0xff]  }
 0x3ed   :  { %12617 = vmatpush2.bf16.msra.mxu0 %v21023_v28  ;;  %v21088_v28 = vld [vmem:[#allocation8 + $0x1554] ss:$44 sps:$4 sm:$0xff]  }
 0x3ee   :  { %12660 = vmatpush2.bf16.msra.mxu1 %v21026_v8  ;;  %12672 = vmatprep.subr.bf16.mxu0 %v21031_v0  ;;  %v21086_v8 = vld [vmem:[#allocation8 + $0x1550] ss:$44 sps:$4 sm:$0xff]   ;;  %v21089_v0 = vld [vmem:[#allocation8 + $0xf78] ss:$44 sps:$4 sm:$0xff]  }
 0x3ef   :  { %12715 = vmatprep.subr.bf16.mxu1 %v21034_v27  ;;  %v21094_v27 = vld [vmem:[#allocation8 + $0x14fc] ss:$44 sps:$4 sm:$0xff]  }
 0x3f0   :  { %12619 = vmatmul.mubr.bf16.vlgmr.msra.gmra.mxu0 %v24150_v41 }
 0x3f1   :  { %12662 = vmatmul.mubr.bf16.vlgmr.msra.gmra.mxu1 %v24151_v20  ;;  %12673 = vmatpush1.bf16.msra.mxu0 %v21029_v16  ;;  %v21092_v16 = vld [vmem:[#allocation8 + $0x14f8] ss:$44 sps:$4 sm:$0xff]  }
 0x3f2   :  { %12704 = vmatprep.mubr.bf16.mxu0 %v23610_v55  ;;  %12716 = vmatpush1.bf16.msra.mxu1 %v21032_v50  ;;  %v21095_v50 = vld [vmem:[#allocation8 + $0xf20] ss:$44 sps:$4 sm:$0xff]  }
 0x3f3   :  { %12747 = vmatprep.mubr.bf16.mxu1 %v23613_v26  ;;  %12674 = vmatprep.subr.bf16.mxu0 %v21037_v33  ;;  %v23620_v33 = vpop.f32.mrf.mxu1 }
 0x3f4   :  { %12717 = vmatprep.subr.bf16.mxu1 %v21040_v39  ;;  %v21106_v39 = vld [vmem:[#allocation8 + $0x144c] ss:$44 sps:$4 sm:$0xff]  }
 0x3f5   :  { %12675 = vmatpush1.bf16.msra.mxu0 %v21035_v25  ;;  %v21103_v25 = vld [vmem:[#allocation8 + $0xecc] ss:$44 sps:$4 sm:$0xff]  }
 0x3f6   :  { %12718 = vmatpush1.bf16.msra.mxu1 %v21038_v45  ;;  %12676 = vmatprep.subr.bf16.mxu0 %v21043_v30  ;;  %v21101_v45 = vld [vmem:[#allocation8 + $0xec8] ss:$44 sps:$4 sm:$0xff]   ;;  %v6169_v30 = vpop.f32.mrf.mxu1 }
 0x3f7   :  { %12719 = vmatprep.subr.bf16.mxu1 %v21046_v6  ;;  %v23622_v6 = vpop.f32.mrf.mxu0 }
 0x3f9   :  { %12677 = vmatpush1.bf16.msra.mxu0 %v21041_v2  ;;  %v21104_v2 = vld [vmem:[#allocation8 + $0x1448] ss:$44 sps:$4 sm:$0xff]  }
 0x3fa   :  { %12720 = vmatpush1.bf16.msra.mxu1 %v21044_v5  ;;  %12678 = vmatprep.subr.bf16.mxu0 %v21049_v54  ;;  %v21109_v5 = vld [vmem:[#allocation8 + $0xe74] ss:$44 sps:$4 sm:$0xff]   ;;  %v21107_v54 = vld [vmem:[#allocation8 + $0xe70] ss:$44 sps:$4 sm:$0xff]  }
 0x3fb   :  { %12721 = vmatprep.subr.bf16.mxu1 %v21052_v23  ;;  %v21112_v23 = vld [vmem:[#allocation8 + $0x13f4] ss:$44 sps:$4 sm:$0xff]  }
 0x3fd   :  { %12679 = vmatpush1.bf16.msra.mxu0 %v21047_v53  ;;  %v23624_v53 = vld [vmem:[#allocation7 + $0x8] sm:$0x7] }
 0x3fe   :  { %12722 = vmatpush1.bf16.msra.mxu1 %v21050_v35  ;;  %12680 = vmatprep.subr.bf16.mxu0 %v21055_v49  ;;  %v23626_v35 = vpop.f32.mrf.mxu1  ;;  %v6130_v49 = vpop.f32.mrf.mxu0 }
 0x3ff   :  { %12723 = vmatprep.subr.bf16.mxu1 %v21058_v21 }
 0x401   :  { %12681 = vmatpush1.bf16.msra.mxu0 %v21053_v10  ;;  %v21110_v10 = vld [vmem:[#allocation8 + $0x13f0] ss:$44 sps:$4 sm:$0xff]  }
 0x402   :  { %12724 = vmatpush1.bf16.msra.mxu1 %v21056_v62  ;;  %12682 = vmatprep.subr.bf16.mxu0 %v21061_v34  ;;  %v21115_v62 = vld [vmem:[#allocation8 + $0xe1c] ss:$44 sps:$4 sm:$0xff]   ;;  %v21113_v34 = vld [vmem:[#allocation8 + $0xe18] ss:$44 sps:$4 sm:$0xff]  }
 0x403   :  { %12725 = vmatprep.subr.bf16.mxu1 %v21064_v31  ;;  %v21118_v31 = vld [vmem:[#allocation8 + $0x139c] ss:$44 sps:$4 sm:$0xff]  }
 0x405   :  { %12683 = vmatpush1.bf16.msra.mxu0 %v21059_v40  ;;  %v6173_v40 = vpop.f32.mrf.mxu1 }
 0x406   :  { %12726 = vmatpush1.bf16.msra.mxu1 %v21062_v4  ;;  %12684 = vmatprep.subr.bf16.mxu0 %v21067_v18  ;;  %v1114_v4 = vrot.slane %v23624_v53, %v23529_v11 }
 0x407   :  { %12727 = vmatprep.subr.bf16.mxu1 %v21070_v24  ;;  %v21116_v24 = vld [vmem:[#allocation8 + $0x1398] ss:$44 sps:$4 sm:$0xff]  }
 0x409   :  { %12685 = vmatpush1.bf16.msra.mxu0 %v21065_v61 }
 0x40a   :  { %12728 = vmatpush1.bf16.msra.mxu1 %v21068_v37  ;;  %12686 = vmatprep.subr.bf16.mxu0 %v21073_v1  ;;  %v21121_v37 = vld [vmem:[#allocation8 + $0xdc4] ss:$44 sps:$4 sm:$0xff]   ;;  %v21119_v1 = vld [vmem:[#allocation8 + $0xdc0] ss:$44 sps:$4 sm:$0xff]  }
 0x40b   :  { %12729 = vmatprep.subr.bf16.mxu1 %v21076_v60  ;;  %v6127_v60 = vadd.f32 %v6126_v51, %v1114_v4  ;;  %v24152_v51 = vld [vmem:[#allocation48_spill] sm:$0xff] }
 0x40d   :  { %12687 = vmatpush1.bf16.msra.mxu0 %v21071_v14  ;;  %v21124_v14 = vld [vmem:[#allocation8 + $0x1344] ss:$44 sps:$4 sm:$0xff]  }
 0x40e   :  { %12730 = vmatpush1.bf16.msra.mxu1 %v21074_v15  ;;  %12688 = vmatprep.subr.bf16.mxu0 %v21079_v59 }
 0x40f   :  { %12731 = vmatprep.subr.bf16.mxu1 %v21082_v3  ;;  %v21127_v3 = vld [vmem:[#allocation8 + $0x186c] ss:$44 sps:$4 sm:$0xff]  }
 0x411   :  { %12689 = vmatpush2.bf16.msra.mxu0 %v21077_v57  ;;  %v21122_v57 = vld [vmem:[#allocation8 + $0x1340] ss:$44 sps:$4 sm:$0xff]  }
 0x412   :  { %12732 = vmatpush2.bf16.msra.mxu1 %v21080_v43  ;;  %12690 = vmatprep.subr.bf16.mxu0 %v21085_v52  ;;  %v6131_v43 = vadd.f32 %v6130_v49, %v1114_v4  ;;  %v21125_v52 = vld [vmem:[#allocation8 + $0x1868] ss:$44 sps:$4 sm:$0xff]   ;;  %v21131_v49 = vld [vmem:[#allocation8 + $0x17b8] ss:$44 sps:$4 sm:$0xff]  }
 0x413   :  { %12733 = vmatprep.subr.bf16.mxu1 %v21088_v28  ;;  %v21130_v28 = vld [vmem:[#allocation8 + $0x1814] ss:$44 sps:$4 sm:$0xff]  }
 0x415   :  { %12691 = vmatpush2.bf16.msra.mxu0 %v21083_v22  ;;  %v21166_v22 = vld [vmem:[#allocation8 + $0x1dec] ss:$44 sps:$4 sm:$0xff]  }
 0x416   :  { %12734 = vmatpush2.bf16.msra.mxu1 %v21086_v8  ;;  %12692 = vmatprep.subr.bf16.mxu0 %v21091_v9  ;;  %v21164_v8 = vld [vmem:[#allocation8 + $0x1de8] ss:$44 sps:$4 sm:$0xff]   ;;  %v6170_v9 = vadd.f32 %v6169_v30, %v6127_v60  ;;  %v21182_v60 = vld [vmem:[#allocation8 + $0x1ce0] ss:$44 sps:$4 sm:$0xff]  }
 0x417   :  { %12735 = vmatprep.subr.bf16.mxu1 %v21094_v27  ;;  %v21178_v30 = vld [vmem:[#allocation8 + $0x1d3c] ss:$44 sps:$4 sm:$0xff]  }
 0x419   :  { %12693 = vmatpush2.bf16.msra.mxu0 %v21089_v0 }
 0x41a   :  { %12736 = vmatpush2.bf16.msra.mxu1 %v21092_v16  ;;  %12694 = vmatprep.subr.bf16.mxu0 %v21097_v17  ;;  %v21172_v16 = vld [vmem:[#allocation8 + $0x1d94] ss:$44 sps:$4 sm:$0xff]   ;;  %v6174_v17 = vadd.f32 %v6173_v40, %v6131_v43  ;;  %v21184_v40 = vld [vmem:[#allocation8 + $0x1ce4] ss:$44 sps:$4 sm:$0xff]  }
 0x41b   :  { %12737 = vmatprep.subr.bf16.mxu1 %v21100_v44  ;;  %v21142_v43 = vld [vmem:[#allocation8 + $0x16b4] ss:$44 sps:$4 sm:$0xff]  }
 0x41c   :  { %v23628_v21 = vpop.f32.mrf.mxu0 }
 0x41d   :  { %12695 = vmatpush2.bf16.msra.mxu0 %v21095_v50  ;;  %v23632_v18 = vpop.f32.mrf.mxu1 }
 0x41e   :  { %12738 = vmatpush2.bf16.msra.mxu1 %v21098_v48  ;;  %12696 = vmatprep.subr.bf16.mxu0 %v21103_v25  ;;  %v6212_v61 = vpop.f32.mrf.mxu0  ;;  %v21128_v48 = vld [vmem:[#allocation8 + $0x1810] ss:$44 sps:$4 sm:$0xff]  }
 0x41f   :  { %12739 = vmatprep.subr.bf16.mxu1 %v21106_v39  ;;  %v6255_v15 = vpop.f32.mrf.mxu1  ;;  %v6213_v50 = vadd.f32 %v6212_v61, %v6170_v9  ;;  %v21133_v25 = vld [vmem:[#allocation8 + $0x17bc] ss:$44 sps:$4 sm:$0xff]  }
 0x420   :  { %v23634_v59 = vpop.f32.mrf.mxu0  ;;  %v21170_v39 = vld [vmem:[#allocation8 + $0x1d90] ss:$44 sps:$4 sm:$0xff]  }
 0x421   :  { %12697 = vmatpush2.bf16.msra.mxu0 %v21101_v45  ;;  %v23636_v0 = vpop.f32.mrf.mxu1  ;;  %v21191_v9 = vld [vmem:[#allocation8 + $0x1c30] ss:$44 sps:$4 sm:$0xff]  }
 0x422   :  { %12740 = vmatpush2.bf16.msra.mxu1 %v21104_v2  ;;  %12698 = vmatprep.subr.bf16.mxu0 %v21109_v5  ;;  %v6216_v27 = vpop.f32.mrf.mxu0 }
 0x423   :  { %12741 = vmatprep.subr.bf16.mxu1 %v21112_v23  ;;  %v6217_v45 = vadd.f32 %v6216_v27, %v6174_v17  ;;  %v6259_v2 = vpop.f32.mrf.mxu1  ;;  %v21143_v27 = vld [vmem:[#allocation8 + $0x1658] ss:$44 sps:$4 sm:$0xff]  }
 0x424   :  { %v21148_v17 = vld [vmem:[#allocation8 + $0x1604] ss:$44 sps:$4 sm:$0xff]  }
 0x425   :  { %12699 = vmatpush2.bf16.msra.mxu0 %v21107_v54  ;;  %v6256_v54 = vadd.f32 %v6255_v15, %v6213_v50  ;;  %v21197_v50 = vld [vmem:[#allocation8 + $0x1bd8] ss:$44 sps:$4 sm:$0xff]  }
 0x426   :  { %12742 = vmatpush2.bf16.msra.mxu1 %v21110_v10  ;;  %12700 = vmatprep.subr.bf16.mxu0 %v21115_v62  ;;  %v21136_v10 = vld [vmem:[#allocation8 + $0x1764] ss:$44 sps:$4 sm:$0xff]   ;;  %v6260_v62 = vadd.f32 %v6259_v2, %v6217_v45  ;;  %v21151_v45 = vld [vmem:[#allocation8 + $0x1b2c] ss:$44 sps:$4 sm:$0xff]   ;;  %v21211_v2 = vld [vmem:[#allocation8 + $0x274] ss:$44 sps:$4 sm:$0xff]  }
 0x427   :  { %12743 = vmatprep.subr.bf16.mxu1 %v21118_v31  ;;  %v21176_v31 = vld [vmem:[#allocation8 + $0x1d38] ss:$44 sps:$4 sm:$0xff]  }
 0x429   :  { %12701 = vmatpush2.bf16.msra.mxu0 %v21113_v34 }
 0x42a   :  { %12744 = vmatpush2.bf16.msra.mxu1 %v21116_v24  ;;  %12702 = vmatprep.subr.bf16.mxu0 %v21121_v37 }
 0x42b   :  { %12745 = vmatprep.subr.bf16.mxu1 %v21124_v14  ;;  %v21139_v14 = vld [vmem:[#allocation8 + $0x170c] ss:$44 sps:$4 sm:$0xff]  }
 0x42d   :  { %12703 = vmatpush2.bf16.msra.mxu0 %v21119_v1  ;;  %v21134_v1 = vld [vmem:[#allocation8 + $0x1760] ss:$44 sps:$4 sm:$0xff]  }
 0x42e   :  { %12746 = vmatpush2.bf16.msra.mxu1 %v21122_v57  ;;  %12758 = vmatprep.subr.bf16.mxu0 %v21127_v3  ;;  %v21137_v57 = vld [vmem:[#allocation8 + $0x1708] ss:$44 sps:$4 sm:$0xff]   ;;  %v21187_v3 = vld [vmem:[#allocation8 + $0x1c8c] ss:$44 sps:$4 sm:$0xff]  }
 0x42f   :  { %12801 = vmatprep.subr.bf16.mxu1 %v21166_v22  ;;  %v21193_v22 = vld [vmem:[#allocation8 + $0x1c34] ss:$44 sps:$4 sm:$0xff]  }
 0x430   :  { %v23638_v44 = vpop.f32.mrf.mxu0  ;;  %12705 = vmatmul.mubr.bf16.vlgmr.msra.gmra.mxu0 %v24152_v51 }
 0x431   :  { %12748 = vmatmul.mubr.bf16.vlgmr.msra.gmra.mxu1 %v23571_v63  ;;  %12759 = vmatpush1.bf16.msra.mxu0 %v21125_v52  ;;  %v21185_v52 = vld [vmem:[#allocation8 + $0x1c88] ss:$44 sps:$4 sm:$0xff]  }
 0x432   :  { %v6298_v5 = vpop.f32.mrf.mxu0  ;;  %12760 = vmatprep.subr.bf16.mxu0 %v21130_v28  ;;  %12802 = vmatpush1.bf16.msra.mxu1 %v21164_v8  ;;  %v21140_v28 = vld [vmem:[#allocation8 + $0x16b0] ss:$44 sps:$4 sm:$0xff]  }
 0x433   :  { %12803 = vmatprep.subr.bf16.mxu1 %v21172_v16  ;;  %12833 = vmatprep.mubr.bf16.mxu1 %v24148_v19  ;;  %v6299_v34 = vadd.f32 %v6298_v5, %v6256_v54  ;;  %v21145_v8 = vld [vmem:[#allocation8 + $0x165c] ss:$44 sps:$4 sm:$0xff]   ;;  %v21154_v5 = vld [vmem:[#allocation8 + $0x1ad4] ss:$44 sps:$4 sm:$0xff]  }
 0x434   :  { %v23643_v23 = vpop.f32.mrf.mxu0  ;;  %v21199_v16 = vld [vmem:[#allocation8 + $0x1bdc] ss:$44 sps:$4 sm:$0xff]  }
 0x435   :  { %12761 = vmatpush1.bf16.msra.mxu0 %v21128_v48  ;;  %v6519_v24 = vmax.f32 %v6299_v34, 0.0  ;;  %v21146_v48 = vld [vmem:[#allocation8 + $0x1600] ss:$44 sps:$4 sm:$0xff]   ;;  %v21152_v54 = vld [vmem:[#allocation8 + $0x1ad0] ss:$44 sps:$4 sm:$0xff]  }
 0x436   :  { %v6302_v4 = vpop.f32.mrf.mxu0  ;;  %12762 = vmatprep.subr.bf16.mxu0 %v21133_v25  ;;  %12804 = vmatpush1.bf16.msra.mxu1 %v21170_v39  ;;  %v21205_v25 = vld [vmem:[#allocation8 + $0x1b84] ss:$44 sps:$4 sm:$0xff]   ;;  %v21203_v39 = vld [vmem:[#allocation8 + $0x1b80] ss:$44 sps:$4 sm:$0xff]  }
 0x437   :  { %v6303_v61 = vadd.f32 %v6302_v4, %v6260_v62  ;;  %12805 = vmatprep.subr.bf16.mxu1 %v21178_v30  ;;  %v21149_v30 = vld [vmem:[#allocation8 + $0x1b28] ss:$44 sps:$4 sm:$0xff]   ;;  %v21160_v34 = vld [vmem:[#allocation8 + $0x1a24] ss:$44 sps:$4 sm:$0xff]   ;;  %v21158_v4 = vld [vmem:[#allocation8 + $0x1a20] ss:$44 sps:$4 sm:$0xff]  }
 0x439   :  { %v6530_v37 = vmax.f32 %v6303_v61, 0.0  ;;  %12763 = vmatpush1.bf16.msra.mxu0 %v21131_v49  ;;  %v21157_v49 = vld [vmem:[#allocation8 + $0x1a7c] ss:$44 sps:$4 sm:$0xff]  }
 0x43a   :  { %12764 = vmatprep.subr.bf16.mxu0 %v21136_v10  ;;  %12806 = vmatpush1.bf16.msra.mxu1 %v21176_v31  ;;  %v21155_v10 = vld [vmem:[#allocation8 + $0x1a78] ss:$44 sps:$4 sm:$0xff]  }
 0x43b   :  { %v23645_v15 = vpack.c.bf16 %v6530_v37, %v6519_v24  ;;  %12807 = vmatprep.subr.bf16.mxu1 %v21184_v40  ;;  %v24153_v31 = vld [vmem:[#allocation44_spill] sm:$0xff] }
 0x43c   :  { %v1110_v40 = vrot.slane %v23624_v53, %v24153_v31  ;;  %v21163_v37 = vld [vmem:[#allocation8 + $0x19cc] ss:$44 sps:$4 sm:$0xff]  }
 0x43d   :  { %12765 = vmatpush1.bf16.msra.mxu0 %v21134_v1  ;;  %12790 = vmatprep.mubr.bf16.mxu0 %v23645_v15  ;;  %v19341_v62 = vpop.f32.mrf.mxu1 }
 0x43e   :  { %12766 = vmatprep.subr.bf16.mxu0 %v21139_v14  ;;  %12808 = vmatpush1.bf16.msra.mxu1 %v21182_v60  ;;  %v6129_v24 = vadd.f32 %v23622_v6, %v1110_v40  ;;  %v6125_v1 = vadd.f32 %v23618_v42, %v1110_v40  ;;  %v21161_v14 = vld [vmem:[#allocation8 + $0x19c8] ss:$44 sps:$4 sm:$0xff]  }
 0x43f   :  { %12809 = vmatprep.subr.bf16.mxu1 %v21187_v3  ;;  %v19342_v61 = vpop.f32.mrf.mxu1  ;;  %v21169_v3 = vld [vmem:[#allocation8 + $0x1974] ss:$44 sps:$4 sm:$0xff]   ;;  %v21175_v42 = vld [vmem:[#allocation8 + $0x191c] ss:$44 sps:$4 sm:$0xff]  }
 0x441   :  { %12767 = vmatpush1.bf16.msra.mxu0 %v21137_v57  ;;  %v19344_v60 = vpop.f32.mrf.mxu1  ;;  %v6172_v57 = vadd.f32 %v23626_v35, %v6129_v24 }
 0x442   :  { %12768 = vmatprep.subr.bf16.mxu0 %v21142_v43  ;;  %12810 = vmatpush1.bf16.msra.mxu1 %v21185_v52  ;;  %v6168_v43 = vadd.f32 %v23620_v33, %v6125_v1  ;;  %v21167_v52 = vld [vmem:[#allocation8 + $0x1970] ss:$44 sps:$4 sm:$0xff]  }
 0x443   :  { %12811 = vmatprep.subr.bf16.mxu1 %v21193_v22  ;;  %v6215_v22 = vadd.f32 %v23634_v59, %v6172_v57  ;;  %v21181_v59 = vld [vmem:[#allocation8 + $0x18c4] ss:$44 sps:$4 sm:$0xff]  }
 0x445   :  { %12769 = vmatpush1.bf16.msra.mxu0 %v21140_v28  ;;  %v19345_v28 = vpop.f32.mrf.mxu1 }
 0x446   :  { %12770 = vmatprep.subr.bf16.mxu0 %v21145_v8  ;;  %12812 = vmatpush1.bf16.msra.mxu1 %v21191_v9  ;;  %v6211_v8 = vadd.f32 %v23628_v21, %v6168_v43  ;;  %v21179_v21 = vld [vmem:[#allocation8 + $0x18c0] ss:$44 sps:$4 sm:$0xff]  }
 0x447   :  { %12813 = vmatprep.subr.bf16.mxu1 %v21199_v16  ;;  %v6258_v16 = vadd.f32 %v23636_v0, %v6215_v22  ;;  %v24154_v0 = vld [vmem:[#allocation46_spill] sm:$0xff] }
 0x448   :  { %v6254_v35 = vadd.f32 %v23632_v18, %v6211_v8  ;;  %v1118_v18 = vrot.slane %v23624_v53, %v24154_v0  ;;  %v21194_v53 = vld [vmem:[#allocation8 + $0x798] ss:$44 sps:$4 sm:$0xff]  }
 0x449   :  { %12771 = vmatpush1.bf16.msra.mxu0 %v21143_v27  ;;  %v21173_v27 = vld [vmem:[#allocation8 + $0x1918] ss:$44 sps:$4 sm:$0xff]  }
 0x44a   :  { %12772 = vmatprep.subr.bf16.mxu0 %v21148_v17  ;;  %12814 = vmatpush1.bf16.msra.mxu1 %v21197_v50  ;;  %v6301_v17 = vadd.f32 %v23643_v23, %v6258_v16  ;;  %v21196_v23 = vld [vmem:[#allocation8 + $0x79c] ss:$44 sps:$4 sm:$0xff]  }
 0x44b   :  { %12815 = vmatprep.subr.bf16.mxu1 %v21205_v25 }
 0x44c   :  { %v6529_v25 = vmax.f32 %v6301_v17, 0.0 }
 0x44d   :  { %12773 = vmatpush1.bf16.msra.mxu0 %v21146_v48  ;;  %v6297_v48 = vadd.f32 %v23638_v44, %v6254_v35 }
 0x44e   :  { %12774 = vmatprep.subr.bf16.mxu0 %v21151_v45  ;;  %12816 = vmatpush1.bf16.msra.mxu1 %v21203_v39 }
 0x44f   :  { %12844 = vmatprep.subr.bf16.mxu1 %v21211_v2  ;;  %v6518_v2 = vmax.f32 %v6297_v48, 0.0  ;;  %v21206_v48 = vld [vmem:[#allocation8 + $0x6e8] ss:$44 sps:$4 sm:$0xff]  }
 0x450   :  { %v19363_v6 = vpop.f32.mrf.mxu0 }
 0x451   :  { %12775 = vmatpush2.bf16.msra.mxu0 %v21149_v30  ;;  %v21190_v30 = vld [vmem:[#allocation8 + $0x7f4] ss:$44 sps:$4 sm:$0xff]  }
 0x452   :  { %12776 = vmatprep.subr.bf16.mxu0 %v21154_v5  ;;  %v19364_v33 = vpop.f32.mrf.mxu0  ;;  %v19343_v5 = vadd.f32 %v19342_v61, %v19341_v62  ;;  %v21202_v62 = vld [vmem:[#allocation8 + $0x744] ss:$44 sps:$4 sm:$0xff]  }
 0x454   :  { %v19366_v45 = vpop.f32.mrf.mxu0  ;;  %v6340_v40 = vadd.f32 %v19343_v5, %v1118_v18  ;;  %v21220_v5 = vld [vmem:[#allocation8 + $0x63c] ss:$44 sps:$4 sm:$0xff]  }
 0x455   :  { %12777 = vmatpush2.bf16.msra.mxu0 %v21152_v54  ;;  %v21188_v54 = vld [vmem:[#allocation8 + $0x7f0] ss:$44 sps:$4 sm:$0xff]  }
 0x456   :  { %12778 = vmatprep.subr.bf16.mxu0 %v21157_v49  ;;  %v19365_v49 = vadd.f32 %v19364_v33, %v19363_v6 }
 0x459   :  { %12779 = vmatpush2.bf16.msra.mxu0 %v21155_v10  ;;  %v23662_v10 = vpack.c.bf16 %v6529_v25, %v6518_v2 }
 0x45a   :  { %12780 = vmatprep.subr.bf16.mxu0 %v21160_v34  ;;  %v19367_v34 = vpop.f32.mrf.mxu0 }
 0x45b   :  { %v19368_v57 = vadd.f32 %v19367_v34, %v19366_v45  ;;  %v21226_v34 = vld [vmem:[#allocation8 + $0x5e4] ss:$44 sps:$4 sm:$0xff]  }
 0x45d   :  { %12781 = vmatpush2.bf16.msra.mxu0 %v21158_v4  ;;  %v19385_v9 = vpop.f32.mrf.mxu1  ;;  %v19346_v4 = vadd.f32 %v19345_v28, %v19344_v60 }
 0x45e   :  { %12782 = vmatprep.subr.bf16.mxu0 %v21163_v37 }
 0x45f   :  { %v19386_v50 = vpop.f32.mrf.mxu1  ;;  %v6343_v43 = vadd.f32 %v19346_v4, %v1118_v18  ;;  %v21217_v18 = vld [vmem:[#allocation8 + $0x21c] ss:$44 sps:$4 sm:$0xff]   ;;  %v21221_v4 = vld [vmem:[#allocation8 + $0x1c0] ss:$44 sps:$4 sm:$0xff]  }
 0x460   :  { %v19387_v24 = vadd.f32 %v19386_v50, %v19385_v9 }
 0x461   :  { %12783 = vmatpush2.bf16.msra.mxu0 %v21161_v14  ;;  %v19388_v39 = vpop.f32.mrf.mxu1  ;;  %v6381_v14 = vadd.f32 %v19365_v49, %v6340_v40  ;;  %v6384_v6 = vadd.f32 %v19368_v57, %v6343_v43  ;;  %v21215_v49 = vld [vmem:[#allocation8 + $0x218] ss:$44 sps:$4 sm:$0xff]   ;;  %v21224_v40 = vld [vmem:[#allocation8 + $0x5e0] ss:$44 sps:$4 sm:$0xff]   ;;  %v21244_v43 = vld [vmem:[#allocation8 + $0xa5c] ss:$44 sps:$4 sm:$0xff]  }
 0x462   :  { %12784 = vmatprep.subr.bf16.mxu0 %v21169_v3  ;;  %v21238_v57 = vld [vmem:[#allocation8 + $0xab4] ss:$44 sps:$4 sm:$0xff]  }
 0x463   :  { %v19389_v44 = vpop.f32.mrf.mxu1 }
 0x464   :  { %v19390_v22 = vadd.f32 %v19389_v44, %v19388_v39  ;;  %v21212_v39 = vld [vmem:[#allocation8 + $0x690] ss:$44 sps:$4 sm:$0xff]  }
 0x465   :  { %12785 = vmatpush2.bf16.msra.mxu0 %v21167_v52  ;;  %v6422_v52 = vadd.f32 %v19387_v24, %v6381_v14  ;;  %v21223_v44 = vld [vmem:[#allocation8 + $0x1c4] ss:$44 sps:$4 sm:$0xff]   ;;  %v21232_v24 = vld [vmem:[#allocation8 + $0x58c] ss:$44 sps:$4 sm:$0xff]   ;;  %v21227_v14 = vld [vmem:[#allocation8 + $0x168] ss:$44 sps:$4 sm:$0xff]  }
 0x466   :  { %12786 = vmatprep.subr.bf16.mxu0 %v21175_v42  ;;  %v21200_v42 = vld [vmem:[#allocation8 + $0x740] ss:$44 sps:$4 sm:$0xff]   ;;  %v6425_v17 = vadd.f32 %v19390_v22, %v6384_v6  ;;  %v21239_v22 = vld [vmem:[#allocation8 + $0xb8] ss:$44 sps:$4 sm:$0xff]  }
 0x467   :  { %v21245_v6 = vld [vmem:[#allocation8 + $0x60] ss:$44 sps:$4 sm:$0xff]  }
 0x469   :  { %12787 = vmatpush2.bf16.msra.mxu0 %v21173_v27  ;;  %v21208_v27 = vld [vmem:[#allocation8 + $0x6ec] ss:$44 sps:$4 sm:$0xff]  }
 0x46a   :  { %12788 = vmatprep.subr.bf16.mxu0 %v21181_v59 }
 0x46d   :  { %12789 = vmatpush2.bf16.msra.mxu0 %v21179_v21  ;;  %v21214_v21 = vld [vmem:[#allocation8 + $0x694] ss:$44 sps:$4 sm:$0xff]  }
 0x46e   :  { %12887 = vmatprep.subr.bf16.mxu0 %v21190_v30  ;;  %v21209_v30 = vld [vmem:[#allocation8 + $0x270] ss:$44 sps:$4 sm:$0xff]  }
 0x470   :  { %v19407_v37 = vpop.f32.mrf.mxu0  ;;  %12791 = vmatmul.mubr.bf16.vlgmr.msra.gmra.mxu0 %v23662_v10 }
 0x471   :  { %v6503_v1 = vpop.f32.mrf.mxu1  ;;  %12888 = vmatpush1.bf16.msra.mxu0 %v21188_v54  ;;  %12919 = vmatprep.mubr.bf16.mxu0 %v23579_v46 }
 0x472   :  { %v19408_v61 = vpop.f32.mrf.mxu0  ;;  %12889 = vmatprep.subr.bf16.mxu0 %v21196_v23  ;;  %v21218_v23 = vld [vmem:[#allocation8 + $0x638] ss:$44 sps:$4 sm:$0xff]  }
 0x473   :  { %v19706_v3 = vpop.f32.mrf.mxu1  ;;  %v19409_v8 = vadd.f32 %v19408_v61, %v19407_v37  ;;  %v21229_v37 = vld [vmem:[#allocation8 + $0x16c] ss:$44 sps:$4 sm:$0xff]   ;;  %v21233_v61 = vld [vmem:[#allocation8 + $0x110] ss:$44 sps:$4 sm:$0xff]  }
 0x474   :  { %v19410_v60 = vpop.f32.mrf.mxu0  ;;  %v21241_v3 = vld [vmem:[#allocation8 + $0xbc] ss:$44 sps:$4 sm:$0xff]  }
 0x475   :  { %v6506_v28 = vpop.f32.mrf.mxu1  ;;  %v6463_v9 = vadd.f32 %v19409_v8, %v6422_v52  ;;  %12890 = vmatpush1.bf16.msra.mxu0 %v21194_v53  ;;  %v21235_v53 = vld [vmem:[#allocation8 + $0x114] ss:$44 sps:$4 sm:$0xff]   ;;  %v21242_v52 = vld [vmem:[#allocation8 + $0xa58] ss:$44 sps:$4 sm:$0xff]  }
 0x476   :  { %v19411_v16 = vpop.f32.mrf.mxu0  ;;  %12891 = vmatprep.subr.bf16.mxu0 %v21202_v62  ;;  %v21236_v62 = vld [vmem:[#allocation8 + $0xab0] ss:$44 sps:$4 sm:$0xff]  }
 0x477   :  { %v19707_v35 = vpop.f32.mrf.mxu1  ;;  %v6504_v33 = vadd.f32 %v6503_v1, %v6463_v9  ;;  %v19412_v50 = vadd.f32 %v19411_v16, %v19410_v60  ;;  %v21230_v1 = vld [vmem:[#allocation8 + $0x588] ss:$44 sps:$4 sm:$0xff]   ;;  %v21250_v8 = vld [vmem:[#allocation8 + $0xa04] ss:$44 sps:$4 sm:$0xff]   ;;  %v21256_v9 = vld [vmem:[#allocation8 + $0x9ac] ss:$44 sps:$4 sm:$0xff]  }
 0x478   :  { %v21247_v60 = vld [vmem:[#allocation8 + $0x64] ss:$44 sps:$4 sm:$0xff]   ;;  %v21251_v16 = vld [vmem:[#allocation8 + $0x8] ss:$44 sps:$4 sm:$0xff]  }
 0x479   :  { %v6466_v59 = vadd.f32 %v19412_v50, %v6425_v17  ;;  %12892 = vmatpush1.bf16.msra.mxu0 %v21200_v42  ;;  %v6520_v25 = vmax.f32 %v6504_v33, 0.0  ;;  %v21253_v42 = vld [vmem:[#allocation8 + $0xc] ss:$44 sps:$4 sm:$0xff]   ;;  %v21262_v35 = vld [vmem:[#allocation8 + $0x954] ss:$44 sps:$4 sm:$0xff]  }
 0x47a   :  { %12893 = vmatprep.subr.bf16.mxu0 %v21208_v27  ;;  %v21254_v27 = vld [vmem:[#allocation8 + $0x9a8] ss:$44 sps:$4 sm:$0xff]   ;;  %v21260_v33 = vld [vmem:[#allocation8 + $0x950] ss:$44 sps:$4 sm:$0xff]  }
 0x47b   :  { %v6507_v45 = vadd.f32 %v6506_v28, %v6466_v59  ;;  %v21248_v28 = vld [vmem:[#allocation8 + $0xa00] ss:$44 sps:$4 sm:$0xff]   ;;  %v21257_v50 = vld [vmem:[#allocation8 + $0x530] ss:$44 sps:$4 sm:$0xff]  }
 0x47c   :  { %v21259_v17 = vld [vmem:[#allocation8 + $0x534] ss:$44 sps:$4 sm:$0xff]   ;;  %v21268_v59 = vld [vmem:[#allocation8 + $0x8fc] ss:$44 sps:$4 sm:$0xff]  }
 0x47d   :  { %v6531_v2 = vmax.f32 %v6507_v45, 0.0  ;;  %12894 = vmatpush1.bf16.msra.mxu0 %v21206_v48  ;;  %v21265_v48 = vld [vmem:[#allocation8 + $0x4dc] ss:$44 sps:$4 sm:$0xff]   ;;  %v21274_v45 = vld [vmem:[#allocation8 + $0x8a4] ss:$44 sps:$4 sm:$0xff]  }
 0x47e   :  { %12895 = vmatprep.subr.bf16.mxu0 %v21214_v21  ;;  %v21266_v21 = vld [vmem:[#allocation8 + $0x8f8] ss:$44 sps:$4 sm:$0xff]  }
 0x47f   :  { %v23666_v54 = vpack.c.bf16 %v6531_v2, %v6520_v25  ;;  %v21263_v25 = vld [vmem:[#allocation8 + $0x4d8] ss:$44 sps:$4 sm:$0xff]   ;;  %v21269_v2 = vld [vmem:[#allocation8 + $0x480] ss:$44 sps:$4 sm:$0xff]  }
 0x481   :  { %12834 = vmatmul.mubr.bf16.vlgmr.msra.gmra.mxu1 %v23666_v54  ;;  %12896 = vmatpush1.bf16.msra.mxu0 %v21212_v39  ;;  %v21271_v39 = vld [vmem:[#allocation8 + $0x484] ss:$44 sps:$4 sm:$0xff]  }
 0x482   :  { %12845 = vmatpush1.bf16.msra.mxu1 %v21209_v30  ;;  %12876 = vmatprep.mubr.bf16.mxu1 %v23577_v58  ;;  %v21272_v30 = vld [vmem:[#allocation8 + $0x8a0] ss:$44 sps:$4 sm:$0xff]  }
 0x483   :  { %12846 = vmatprep.subr.bf16.mxu1 %v21217_v18  ;;  %12897 = vmatprep.subr.bf16.mxu0 %v21220_v5  ;;  %v21280_v18 = vld [vmem:[#allocation8 + $0x84c] ss:$44 sps:$4 sm:$0xff]  }
 0x484   :  { %v21277_v5 = vld [vmem:[#allocation8 + $0x42c] ss:$44 sps:$4 sm:$0xff]  }
 0x485   :  { %12898 = vmatpush1.bf16.msra.mxu0 %v21218_v23  ;;  %v21278_v23 = vld [vmem:[#allocation8 + $0x848] ss:$44 sps:$4 sm:$0xff]  }
 0x486   :  { %12847 = vmatpush1.bf16.msra.mxu1 %v21215_v49  ;;  %12899 = vmatprep.subr.bf16.mxu0 %v21226_v34  ;;  %v21275_v49 = vld [vmem:[#allocation8 + $0x428] ss:$44 sps:$4 sm:$0xff]   ;;  %v7599_v34 = vld [vmem:[#allocation10] sm:$0xff] }
 0x487   :  { %12848 = vmatprep.subr.bf16.mxu1 %v21223_v44  ;;  %v21286_v44 = vld [vmem:[#allocation8 + $0x12f4] ss:$44 sps:$4 sm:$0xff]  }
 0x489   :  { %12900 = vmatpush1.bf16.msra.mxu0 %v21224_v40  ;;  %v21283_v40 = vld [vmem:[#allocation8 + $0x3d4] ss:$44 sps:$4 sm:$0xff]  }
 0x48a   :  { %12849 = vmatpush1.bf16.msra.mxu1 %v21221_v4  ;;  %12901 = vmatprep.subr.bf16.mxu0 %v21232_v24  ;;  %v21284_v4 = vld [vmem:[#allocation8 + $0x12f0] ss:$44 sps:$4 sm:$0xff]  }
 0x48b   :  { %12850 = vmatprep.subr.bf16.mxu1 %v21229_v37  ;;  %v21281_v24 = vld [vmem:[#allocation8 + $0x3d0] ss:$44 sps:$4 sm:$0xff]  }
 0x48c   :  { %v21292_v37 = vld [vmem:[#allocation8 + $0x129c] ss:$44 sps:$4 sm:$0xff]  }
 0x48d   :  { %12902 = vmatpush1.bf16.msra.mxu0 %v21230_v1  ;;  %v7606_v1 = vrot.slane %v7599_v34, %v24153_v31  ;;  %v21325_v34 = vld [vmem:[#allocation8 + $0xc6c] ss:$44 sps:$4 sm:$0xff]  }
 0x48e   :  { %12851 = vmatpush1.bf16.msra.mxu1 %v21227_v14  ;;  %12903 = vmatprep.subr.bf16.mxu0 %v21238_v57  ;;  %v21289_v14 = vld [vmem:[#allocation8 + $0x37c] ss:$44 sps:$4 sm:$0xff]  }
 0x48f   :  { %12852 = vmatprep.subr.bf16.mxu1 %v21235_v53  ;;  %v21287_v53 = vld [vmem:[#allocation8 + $0x378] ss:$44 sps:$4 sm:$0xff]  }
 0x491   :  { %12904 = vmatpush2.bf16.msra.mxu0 %v21236_v62  ;;  %v21290_v62 = vld [vmem:[#allocation8 + $0x1298] ss:$44 sps:$4 sm:$0xff]  }
 0x492   :  { %12853 = vmatpush1.bf16.msra.mxu1 %v21233_v61  ;;  %12905 = vmatprep.subr.bf16.mxu0 %v21244_v43  ;;  %v21295_v43 = vld [vmem:[#allocation8 + $0x324] ss:$44 sps:$4 sm:$0xff]  }
 0x493   :  { %12854 = vmatprep.subr.bf16.mxu1 %v21241_v3 }
 0x495   :  { %12906 = vmatpush2.bf16.msra.mxu0 %v21242_v52  ;;  %v21298_v52 = vld [vmem:[#allocation8 + $0x1244] ss:$44 sps:$4 sm:$0xff]  }
 0x496   :  { %12855 = vmatpush1.bf16.msra.mxu1 %v21239_v22  ;;  %12907 = vmatprep.subr.bf16.mxu0 %v21250_v8 }
 0x497   :  { %12856 = vmatprep.subr.bf16.mxu1 %v21247_v60 }
 0x499   :  { %12908 = vmatpush2.bf16.msra.mxu0 %v21248_v28 }
 0x49a   :  { %12857 = vmatpush1.bf16.msra.mxu1 %v21245_v6  ;;  %12909 = vmatprep.subr.bf16.mxu0 %v21256_v9  ;;  %v21293_v6 = vld [vmem:[#allocation8 + $0x320] ss:$44 sps:$4 sm:$0xff]  }
 0x49b   :  { %12858 = vmatprep.subr.bf16.mxu1 %v21253_v42  ;;  %v21296_v42 = vld [vmem:[#allocation8 + $0x1240] ss:$44 sps:$4 sm:$0xff]  }
 0x49d   :  { %12910 = vmatpush2.bf16.msra.mxu0 %v21254_v27  ;;  %v21304_v27 = vld [vmem:[#allocation8 + $0x11ec] ss:$44 sps:$4 sm:$0xff]  }
 0x49e   :  { %12859 = vmatpush1.bf16.msra.mxu1 %v21251_v16  ;;  %12911 = vmatprep.subr.bf16.mxu0 %v21262_v35 }
 0x49f   :  { %12860 = vmatprep.subr.bf16.mxu1 %v21259_v17  ;;  %v21301_v17 = vld [vmem:[#allocation8 + $0x2cc] ss:$44 sps:$4 sm:$0xff]  }
 0x4a1   :  { %12912 = vmatpush2.bf16.msra.mxu0 %v21260_v33  ;;  %v21302_v33 = vld [vmem:[#allocation8 + $0x11e8] ss:$44 sps:$4 sm:$0xff]  }
 0x4a2   :  { %12861 = vmatpush2.bf16.msra.mxu1 %v21257_v50  ;;  %12913 = vmatprep.subr.bf16.mxu0 %v21268_v59  ;;  %v21299_v50 = vld [vmem:[#allocation8 + $0x2c8] ss:$44 sps:$4 sm:$0xff]  }
 0x4a3   :  { %12862 = vmatprep.subr.bf16.mxu1 %v21265_v48  ;;  %v21310_v59 = vld [vmem:[#allocation8 + $0x1194] ss:$44 sps:$4 sm:$0xff]  }
 0x4a4   :  { %v21307_v48 = vld [vmem:[#allocation8 + $0xd74] ss:$44 sps:$4 sm:$0xff]  }
 0x4a5   :  { %12914 = vmatpush2.bf16.msra.mxu0 %v21266_v21  ;;  %v21308_v21 = vld [vmem:[#allocation8 + $0x1190] ss:$44 sps:$4 sm:$0xff]  }
 0x4a6   :  { %12863 = vmatpush2.bf16.msra.mxu1 %v21263_v25  ;;  %12915 = vmatprep.subr.bf16.mxu0 %v21274_v45  ;;  %v21305_v25 = vld [vmem:[#allocation8 + $0xd70] ss:$44 sps:$4 sm:$0xff]  }
 0x4a7   :  { %12864 = vmatprep.subr.bf16.mxu1 %v21271_v39  ;;  %v21313_v45 = vld [vmem:[#allocation8 + $0xd1c] ss:$44 sps:$4 sm:$0xff]  }
 0x4a8   :  { %v21316_v39 = vld [vmem:[#allocation8 + $0x113c] ss:$44 sps:$4 sm:$0xff]  }
 0x4a9   :  { %12916 = vmatpush2.bf16.msra.mxu0 %v21272_v30  ;;  %v21311_v30 = vld [vmem:[#allocation8 + $0xd18] ss:$44 sps:$4 sm:$0xff]  }
 0x4aa   :  { %12865 = vmatpush2.bf16.msra.mxu1 %v21269_v2  ;;  %12917 = vmatprep.subr.bf16.mxu0 %v21280_v18  ;;  %v21314_v2 = vld [vmem:[#allocation8 + $0x1138] ss:$44 sps:$4 sm:$0xff]  }
 0x4ab   :  { %12866 = vmatprep.subr.bf16.mxu1 %v21277_v5  ;;  %v21319_v18 = vld [vmem:[#allocation8 + $0xcc4] ss:$44 sps:$4 sm:$0xff]  }
 0x4ac   :  { %v21322_v5 = vld [vmem:[#allocation8 + $0x10e4] ss:$44 sps:$4 sm:$0xff]  }
 0x4ad   :  { %12918 = vmatpush2.bf16.msra.mxu0 %v21278_v23  ;;  %v21317_v23 = vld [vmem:[#allocation8 + $0xcc0] ss:$44 sps:$4 sm:$0xff]  }
 0x4ae   :  { %12867 = vmatpush2.bf16.msra.mxu1 %v21275_v49  ;;  %12973 = vmatprep.subr.bf16.mxu0 %v21286_v44  ;;  %v21320_v49 = vld [vmem:[#allocation8 + $0x10e0] ss:$44 sps:$4 sm:$0xff]  }
 0x4af   :  { %12868 = vmatprep.subr.bf16.mxu1 %v21283_v40  ;;  %v21328_v44 = vld [vmem:[#allocation8 + $0x108c] ss:$44 sps:$4 sm:$0xff]   ;;  %v21323_v40 = vld [vmem:[#allocation8 + $0xc68] ss:$44 sps:$4 sm:$0xff]  }
 0x4b0   :  { %v12620_v57 = vpop.f32.mrf.mxu0  ;;  %12920 = vmatmul.mubr.bf16.vlgmr.msra.gmra.mxu0 %v24151_v20 }
 0x4b1   :  { %v12621_v61 = vadd.f32 %v12620_v57, %v7606_v1  ;;  %v12663_v3 = vpop.f32.mrf.mxu1  ;;  %12974 = vmatpush1.bf16.msra.mxu0 %v21284_v4  ;;  %13005 = vmatprep.mubr.bf16.mxu0 %v23613_v26  ;;  %v21326_v4 = vld [vmem:[#allocation8 + $0x1088] ss:$44 sps:$4 sm:$0xff]  }
 0x4b2   :  { %12869 = vmatpush2.bf16.msra.mxu1 %v21281_v24  ;;  %v23673_v22 = vpop.f32.mrf.mxu0  ;;  %12975 = vmatprep.subr.bf16.mxu0 %v21292_v37  ;;  %v21331_v24 = vld [vmem:[#allocation8 + $0xc14] ss:$44 sps:$4 sm:$0xff]   ;;  %v21337_v57 = vld [vmem:[#allocation8 + $0xbbc] ss:$44 sps:$4 sm:$0xff]  }
 0x4b3   :  { %v23675_v8 = vadd.f32 %v12663_v3, %v12621_v61  ;;  %v23677_v60 = vpop.f32.mrf.mxu1  ;;  %12870 = vmatprep.subr.bf16.mxu1 %v21289_v14  ;;  %v21334_v37 = vld [vmem:[#allocation8 + $0x15b4] ss:$44 sps:$4 sm:$0xff]   ;;  %v21332_v14 = vld [vmem:[#allocation8 + $0x15b0] ss:$44 sps:$4 sm:$0xff]   ;;  %v21335_v61 = vld [vmem:[#allocation8 + $0xbb8] ss:$44 sps:$4 sm:$0xff]  }
 0x4b4   :  { %v12624_v28 = vpop.f32.mrf.mxu0  ;;  %v21346_v3 = vld [vmem:[#allocation8 + $0x1504] ss:$44 sps:$4 sm:$0xff]  }
 0x4b5   :  { %v12625_v9 = vadd.f32 %v12624_v28, %v7606_v1  ;;  %12976 = vmatpush1.bf16.msra.mxu0 %v21290_v62  ;;  %v12667_v16 = vpop.f32.mrf.mxu1  ;;  %v21329_v1 = vld [vmem:[#allocation8 + $0xc10] ss:$44 sps:$4 sm:$0xff]   ;;  %v21338_v62 = vld [vmem:[#allocation8 + $0x1558] ss:$44 sps:$4 sm:$0xff]   ;;  %v21341_v28 = vld [vmem:[#allocation8 + $0xb60] ss:$44 sps:$4 sm:$0xff]  }
 0x4b6   :  { %12871 = vmatpush2.bf16.msra.mxu1 %v21287_v53  ;;  %12977 = vmatprep.subr.bf16.mxu0 %v21298_v52  ;;  %v21340_v53 = vld [vmem:[#allocation8 + $0x155c] ss:$44 sps:$4 sm:$0xff]   ;;  %v21344_v52 = vld [vmem:[#allocation8 + $0x1500] ss:$44 sps:$4 sm:$0xff]  }
 0x4b7   :  { %v23679_v35 = vadd.f32 %v12667_v16, %v12625_v9  ;;  %12872 = vmatprep.subr.bf16.mxu1 %v21295_v43  ;;  %v21343_v43 = vld [vmem:[#allocation8 + $0xb64] ss:$44 sps:$4 sm:$0xff]   ;;  %v21349_v9 = vld [vmem:[#allocation8 + $0xb0c] ss:$44 sps:$4 sm:$0xff]   ;;  %v21358_v16 = vld [vmem:[#allocation8 + $0x1454] ss:$44 sps:$4 sm:$0xff]  }
 0x4b9   :  { %12978 = vmatpush1.bf16.msra.mxu0 %v21296_v42  ;;  %v21350_v42 = vld [vmem:[#allocation8 + $0x14a8] ss:$44 sps:$4 sm:$0xff]  }
 0x4ba   :  { %12873 = vmatpush2.bf16.msra.mxu1 %v21293_v6  ;;  %12979 = vmatprep.subr.bf16.mxu0 %v21304_v27  ;;  %v21352_v6 = vld [vmem:[#allocation8 + $0x14ac] ss:$44 sps:$4 sm:$0xff]   ;;  %v21347_v27 = vld [vmem:[#allocation8 + $0xb08] ss:$44 sps:$4 sm:$0xff]  }
 0x4bb   :  { %12874 = vmatprep.subr.bf16.mxu1 %v21301_v17  ;;  %v21355_v17 = vld [vmem:[#allocation8 + $0x1034] ss:$44 sps:$4 sm:$0xff]  }
 0x4bd   :  { %12980 = vmatpush1.bf16.msra.mxu0 %v21302_v33  ;;  %v21356_v33 = vld [vmem:[#allocation8 + $0x1450] ss:$44 sps:$4 sm:$0xff]  }
 0x4be   :  { %12875 = vmatpush2.bf16.msra.mxu1 %v21299_v50  ;;  %12981 = vmatprep.subr.bf16.mxu0 %v21310_v59  ;;  %v21353_v50 = vld [vmem:[#allocation8 + $0x1030] ss:$44 sps:$4 sm:$0xff]  }
 0x4bf   :  { %12930 = vmatprep.subr.bf16.mxu1 %v21307_v48  ;;  %v21364_v59 = vld [vmem:[#allocation8 + $0x13fc] ss:$44 sps:$4 sm:$0xff]  }
 0x4c0   :  { %v21361_v48 = vld [vmem:[#allocation8 + $0xfdc] ss:$44 sps:$4 sm:$0xff]  }
 0x4c1   :  { %12877 = vmatmul.mubr.bf16.vlgmr.msra.gmra.mxu1 %v24150_v41  ;;  %12982 = vmatpush1.bf16.msra.mxu0 %v21308_v21  ;;  %v21362_v21 = vld [vmem:[#allocation8 + $0x13f8] ss:$44 sps:$4 sm:$0xff]  }
 0x4c2   :  { %12931 = vmatpush1.bf16.msra.mxu1 %v21305_v25  ;;  %12962 = vmatprep.mubr.bf16.mxu1 %v23610_v55  ;;  %v21359_v25 = vld [vmem:[#allocation8 + $0xfd8] ss:$44 sps:$4 sm:$0xff]  }
 0x4c3   :  { %12932 = vmatprep.subr.bf16.mxu1 %v21313_v45  ;;  %12983 = vmatprep.subr.bf16.mxu0 %v21316_v39  ;;  %v21370_v45 = vld [vmem:[#allocation8 + $0x13a4] ss:$44 sps:$4 sm:$0xff]  }
 0x4c4   :  { %v21367_v39 = vld [vmem:[#allocation8 + $0xf84] ss:$44 sps:$4 sm:$0xff]  }
 0x4c5   :  { %12984 = vmatpush1.bf16.msra.mxu0 %v21314_v2  ;;  %v21365_v2 = vld [vmem:[#allocation8 + $0xf80] ss:$44 sps:$4 sm:$0xff]  }
 0x4c6   :  { %12933 = vmatpush1.bf16.msra.mxu1 %v21311_v30  ;;  %12985 = vmatprep.subr.bf16.mxu0 %v21322_v5  ;;  %v21368_v30 = vld [vmem:[#allocation8 + $0x13a0] ss:$44 sps:$4 sm:$0xff]  }
 0x4c7   :  { %12934 = vmatprep.subr.bf16.mxu1 %v21319_v18  ;;  %v21376_v18 = vld [vmem:[#allocation8 + $0x134c] ss:$44 sps:$4 sm:$0xff]  }
 0x4c8   :  { %v21373_v5 = vld [vmem:[#allocation8 + $0xf2c] ss:$44 sps:$4 sm:$0xff]  }
 0x4c9   :  { %12986 = vmatpush1.bf16.msra.mxu0 %v21320_v49  ;;  %v21371_v49 = vld [vmem:[#allocation8 + $0xf28] ss:$44 sps:$4 sm:$0xff]  }
 0x4ca   :  { %12935 = vmatpush1.bf16.msra.mxu1 %v21317_v23  ;;  %12987 = vmatprep.subr.bf16.mxu0 %v21328_v44  ;;  %v21374_v23 = vld [vmem:[#allocation8 + $0x1348] ss:$44 sps:$4 sm:$0xff]  }
 0x4cb   :  { %12936 = vmatprep.subr.bf16.mxu1 %v21325_v34  ;;  %v21382_v34 = vld [vmem:[#allocation8 + $0x1df4] ss:$44 sps:$4 sm:$0xff]  }
 0x4cc   :  { %v21379_v44 = vld [vmem:[#allocation8 + $0xed4] ss:$44 sps:$4 sm:$0xff]  }
 0x4cd   :  { %12988 = vmatpush1.bf16.msra.mxu0 %v21326_v4  ;;  %v21377_v4 = vld [vmem:[#allocation8 + $0xed0] ss:$44 sps:$4 sm:$0xff]  }
 0x4ce   :  { %12937 = vmatpush1.bf16.msra.mxu1 %v21323_v40  ;;  %12989 = vmatprep.subr.bf16.mxu0 %v21334_v37  ;;  %v21380_v40 = vld [vmem:[#allocation8 + $0x1df0] ss:$44 sps:$4 sm:$0xff]  }
 0x4cf   :  { %12938 = vmatprep.subr.bf16.mxu1 %v21331_v24  ;;  %v21388_v24 = vld [vmem:[#allocation8 + $0x1d9c] ss:$44 sps:$4 sm:$0xff]  }
 0x4d0   :  { %v21385_v37 = vld [vmem:[#allocation8 + $0xe7c] ss:$44 sps:$4 sm:$0xff]  }
 0x4d1   :  { %12990 = vmatpush2.bf16.msra.mxu0 %v21332_v14  ;;  %v23685_v14 = vpop.f32.mrf.mxu1 }
 0x4d2   :  { %12939 = vmatpush1.bf16.msra.mxu1 %v21329_v1  ;;  %12991 = vmatprep.subr.bf16.mxu0 %v21340_v53  ;;  %v23683_v1 = vpop.f32.mrf.mxu0  ;;  %v21383_v53 = vld [vmem:[#allocation8 + $0xe78] ss:$44 sps:$4 sm:$0xff]  }
 0x4d3   :  { %12940 = vmatprep.subr.bf16.mxu1 %v21337_v57 }
 0x4d5   :  { %12992 = vmatpush2.bf16.msra.mxu0 %v21338_v62  ;;  %v21386_v62 = vld [vmem:[#allocation8 + $0x1d98] ss:$44 sps:$4 sm:$0xff]  }
 0x4d6   :  { %12941 = vmatpush1.bf16.msra.mxu1 %v21335_v61  ;;  %12993 = vmatprep.subr.bf16.mxu0 %v21346_v3 }
 0x4d7   :  { %12942 = vmatprep.subr.bf16.mxu1 %v21343_v43  ;;  %v21391_v43 = vld [vmem:[#allocation8 + $0xe24] ss:$44 sps:$4 sm:$0xff]  }
 0x4d9   :  { %12994 = vmatpush2.bf16.msra.mxu0 %v21344_v52  ;;  %v21394_v52 = vld [vmem:[#allocation8 + $0x1d44] ss:$44 sps:$4 sm:$0xff]  }
 0x4da   :  { %12943 = vmatpush1.bf16.msra.mxu1 %v21341_v28  ;;  %12995 = vmatprep.subr.bf16.mxu0 %v21352_v6 }
 0x4db   :  { %12944 = vmatprep.subr.bf16.mxu1 %v21349_v9 }
 0x4dd   :  { %12996 = vmatpush2.bf16.msra.mxu0 %v21350_v42 }
 0x4de   :  { %12945 = vmatpush1.bf16.msra.mxu1 %v21347_v27  ;;  %12997 = vmatprep.subr.bf16.mxu0 %v21358_v16 }
 0x4df   :  { %12946 = vmatprep.subr.bf16.mxu1 %v21355_v17  ;;  %v21389_v17 = vld [vmem:[#allocation8 + $0xe20] ss:$44 sps:$4 sm:$0xff]  }
 0x4e1   :  { %12998 = vmatpush2.bf16.msra.mxu0 %v21356_v33  ;;  %v21400_v33 = vld [vmem:[#allocation8 + $0x1cec] ss:$44 sps:$4 sm:$0xff]  }
 0x4e2   :  { %12947 = vmatpush2.bf16.msra.mxu1 %v21353_v50  ;;  %12999 = vmatprep.subr.bf16.mxu0 %v21364_v59  ;;  %v21397_v59 = vld [vmem:[#allocation8 + $0xdcc] ss:$44 sps:$4 sm:$0xff]  }
 0x4e3   :  { %12948 = vmatprep.subr.bf16.mxu1 %v21361_v48  ;;  %v21398_v48 = vld [vmem:[#allocation8 + $0x1ce8] ss:$44 sps:$4 sm:$0xff]  }
 0x4e5   :  { %13000 = vmatpush2.bf16.msra.mxu0 %v21362_v21  ;;  %v21395_v21 = vld [vmem:[#allocation8 + $0xdc8] ss:$44 sps:$4 sm:$0xff]  }
 0x4e6   :  { %12949 = vmatpush2.bf16.msra.mxu1 %v21359_v25  ;;  %13001 = vmatprep.subr.bf16.mxu0 %v21370_v45  ;;  %v21406_v25 = vld [vmem:[#allocation8 + $0x1c94] ss:$44 sps:$4 sm:$0xff]  }
 0x4e7   :  { %12950 = vmatprep.subr.bf16.mxu1 %v21367_v39  ;;  %v21403_v45 = vld [vmem:[#allocation8 + $0x1874] ss:$44 sps:$4 sm:$0xff]   ;;  %v21401_v39 = vld [vmem:[#allocation8 + $0x1870] ss:$44 sps:$4 sm:$0xff]  }
 0x4e9   :  { %13002 = vmatpush2.bf16.msra.mxu0 %v21368_v30  ;;  %v21409_v30 = vld [vmem:[#allocation8 + $0x181c] ss:$44 sps:$4 sm:$0xff]  }
 0x4ea   :  { %12951 = vmatpush2.bf16.msra.mxu1 %v21365_v2  ;;  %13003 = vmatprep.subr.bf16.mxu0 %v21376_v18  ;;  %v21412_v2 = vld [vmem:[#allocation8 + $0x1c3c] ss:$44 sps:$4 sm:$0xff]   ;;  %v21407_v18 = vld [vmem:[#allocation8 + $0x1818] ss:$44 sps:$4 sm:$0xff]  }
 0x4eb   :  { %12952 = vmatprep.subr.bf16.mxu1 %v21373_v5  ;;  %v21410_v5 = vld [vmem:[#allocation8 + $0x1c38] ss:$44 sps:$4 sm:$0xff]  }
 0x4ed   :  { %13004 = vmatpush2.bf16.msra.mxu0 %v21374_v23  ;;  %v21415_v23 = vld [vmem:[#allocation8 + $0x17c4] ss:$44 sps:$4 sm:$0xff]  }
 0x4ee   :  { %12953 = vmatpush2.bf16.msra.mxu1 %v21371_v49  ;;  %13059 = vmatprep.subr.bf16.mxu0 %v21382_v34  ;;  %v21418_v49 = vld [vmem:[#allocation8 + $0x1be4] ss:$44 sps:$4 sm:$0xff]   ;;  %v21413_v34 = vld [vmem:[#allocation8 + $0x17c0] ss:$44 sps:$4 sm:$0xff]  }
 0x4ef   :  { %12954 = vmatprep.subr.bf16.mxu1 %v21379_v44  ;;  %v21416_v44 = vld [vmem:[#allocation8 + $0x1be0] ss:$44 sps:$4 sm:$0xff]  }
 0x4f0   :  { %v12706_v57 = vpop.f32.mrf.mxu0  ;;  %13006 = vmatmul.mubr.bf16.vlgmr.msra.gmra.mxu0 %v23571_v63 }
 0x4f1   :  { %v12707_v61 = vadd.f32 %v12706_v57, %v23675_v8  ;;  %v12749_v3 = vpop.f32.mrf.mxu1  ;;  %13060 = vmatpush1.bf16.msra.mxu0 %v21380_v40  ;;  %13091 = vmatprep.mubr.bf16.mxu0 %v24148_v19  ;;  %v21392_v8 = vld [vmem:[#allocation8 + $0x1d40] ss:$44 sps:$4 sm:$0xff]  }
 0x4f2   :  { %12955 = vmatpush2.bf16.msra.mxu1 %v21377_v4  ;;  %v23690_v28 = vpop.f32.mrf.mxu0  ;;  %13061 = vmatprep.subr.bf16.mxu0 %v21388_v24  ;;  %v21421_v40 = vld [vmem:[#allocation8 + $0x176c] ss:$44 sps:$4 sm:$0xff]   ;;  %v21422_v24 = vld [vmem:[#allocation8 + $0x1b88] ss:$44 sps:$4 sm:$0xff]  }
 0x4f3   :  { %v23692_v6 = vadd.f32 %v12749_v3, %v12707_v61  ;;  %v23694_v9 = vpop.f32.mrf.mxu1  ;;  %12956 = vmatprep.subr.bf16.mxu1 %v21385_v37  ;;  %v21424_v4 = vld [vmem:[#allocation8 + $0x1b8c] ss:$44 sps:$4 sm:$0xff]   ;;  %v21419_v37 = vld [vmem:[#allocation8 + $0x1768] ss:$44 sps:$4 sm:$0xff]   ;;  %v21425_v61 = vld [vmem:[#allocation8 + $0x1710] ss:$44 sps:$4 sm:$0xff]  }
 0x4f4   :  { %v12710_v42 = vpop.f32.mrf.mxu0  ;;  %v21427_v57 = vld [vmem:[#allocation8 + $0x1714] ss:$44 sps:$4 sm:$0xff]   ;;  %v21436_v3 = vld [vmem:[#allocation8 + $0x224] ss:$44 sps:$4 sm:$0xff]  }
 0x4f5   :  { %v12711_v27 = vadd.f32 %v12710_v42, %v23679_v35  ;;  %13062 = vmatpush1.bf16.msra.mxu0 %v21386_v62  ;;  %v12753_v16 = vpop.f32.mrf.mxu1  ;;  %v21404_v35 = vld [vmem:[#allocation8 + $0x1c90] ss:$44 sps:$4 sm:$0xff]   ;;  %v21428_v62 = vld [vmem:[#allocation8 + $0x278] ss:$44 sps:$4 sm:$0xff]  }
 0x4f6   :  { %12957 = vmatpush2.bf16.msra.mxu1 %v21383_v53  ;;  %13063 = vmatprep.subr.bf16.mxu0 %v21394_v52  ;;  %v21430_v53 = vld [vmem:[#allocation8 + $0x27c] ss:$44 sps:$4 sm:$0xff]   ;;  %v21434_v52 = vld [vmem:[#allocation8 + $0x220] ss:$44 sps:$4 sm:$0xff]   ;;  %v21431_v42 = vld [vmem:[#allocation8 + $0x16b8] ss:$44 sps:$4 sm:$0xff]  }
 0x4f7   :  { %v23697_v50 = vadd.f32 %v12753_v16, %v12711_v27  ;;  %12958 = vmatprep.subr.bf16.mxu1 %v21391_v43  ;;  %v21433_v43 = vld [vmem:[#allocation8 + $0x16bc] ss:$44 sps:$4 sm:$0xff]   ;;  %v21442_v27 = vld [vmem:[#allocation8 + $0x1cc] ss:$44 sps:$4 sm:$0xff]  }
 0x4f8   :  { %v21440_v16 = vld [vmem:[#allocation8 + $0x1c8] ss:$44 sps:$4 sm:$0xff]  }
 0x4f9   :  { %13064 = vmatpush1.bf16.msra.mxu0 %v21392_v8  ;;  %v21439_v8 = vld [vmem:[#allocation8 + $0x1664] ss:$44 sps:$4 sm:$0xff]  }
 0x4fa   :  { %12959 = vmatpush2.bf16.msra.mxu1 %v21389_v17  ;;  %13065 = vmatprep.subr.bf16.mxu0 %v21400_v33  ;;  %v21437_v17 = vld [vmem:[#allocation8 + $0x1660] ss:$44 sps:$4 sm:$0xff]  }
 0x4fb   :  { %12960 = vmatprep.subr.bf16.mxu1 %v21397_v59  ;;  %v21448_v33 = vld [vmem:[#allocation8 + $0x174] ss:$44 sps:$4 sm:$0xff]   ;;  %v21445_v59 = vld [vmem:[#allocation8 + $0x160c] ss:$44 sps:$4 sm:$0xff]  }
 0x4fd   :  { %13066 = vmatpush1.bf16.msra.mxu0 %v21398_v48  ;;  %v21446_v48 = vld [vmem:[#allocation8 + $0x170] ss:$44 sps:$4 sm:$0xff]  }
 0x4fe   :  { %12961 = vmatpush2.bf16.msra.mxu1 %v21395_v21  ;;  %13067 = vmatprep.subr.bf16.mxu0 %v21406_v25  ;;  %v21443_v21 = vld [vmem:[#allocation8 + $0x1608] ss:$44 sps:$4 sm:$0xff]  }
 0x4ff   :  { %13016 = vmatprep.subr.bf16.mxu1 %v21403_v45  ;;  %v21454_v25 = vld [vmem:[#allocation8 + $0x11c] ss:$44 sps:$4 sm:$0xff]   ;;  %v21451_v45 = vld [vmem:[#allocation8 + $0x1b34] ss:$44 sps:$4 sm:$0xff]  }
 0x501   :  { %12963 = vmatmul.mubr.bf16.vlgmr.msra.gmra.mxu1 %v24152_v51  ;;  %13068 = vmatpush1.bf16.msra.mxu0 %v21404_v35  ;;  %v21452_v35 = vld [vmem:[#allocation8 + $0x118] ss:$44 sps:$4 sm:$0xff]  }
 0x502   :  { %13017 = vmatpush1.bf16.msra.mxu1 %v21401_v39  ;;  %13048 = vmatprep.mubr.bf16.mxu1 %v23645_v15  ;;  %v21449_v39 = vld [vmem:[#allocation8 + $0x1b30] ss:$44 sps:$4 sm:$0xff]  }
 0x503   :  { %13018 = vmatprep.subr.bf16.mxu1 %v21409_v30  ;;  %13069 = vmatprep.subr.bf16.mxu0 %v21412_v2  ;;  %v21460_v30 = vld [vmem:[#allocation8 + $0xc4] ss:$44 sps:$4 sm:$0xff]   ;;  %v21457_v2 = vld [vmem:[#allocation8 + $0x1adc] ss:$44 sps:$4 sm:$0xff]  }
 0x505   :  { %13070 = vmatpush1.bf16.msra.mxu0 %v21410_v5  ;;  %v21455_v5 = vld [vmem:[#allocation8 + $0x1ad8] ss:$44 sps:$4 sm:$0xff]  }
 0x506   :  { %13019 = vmatpush1.bf16.msra.mxu1 %v21407_v18  ;;  %13071 = vmatprep.subr.bf16.mxu0 %v21418_v49  ;;  %v21458_v18 = vld [vmem:[#allocation8 + $0xc0] ss:$44 sps:$4 sm:$0xff]   ;;  %v21463_v49 = vld [vmem:[#allocation8 + $0x1a84] ss:$44 sps:$4 sm:$0xff]  }
 0x507   :  { %13020 = vmatprep.subr.bf16.mxu1 %v21415_v23  ;;  %v21466_v23 = vld [vmem:[#allocation8 + $0x6c] ss:$44 sps:$4 sm:$0xff]  }
 0x509   :  { %13072 = vmatpush1.bf16.msra.mxu0 %v21416_v44  ;;  %v21461_v44 = vld [vmem:[#allocation8 + $0x1a80] ss:$44 sps:$4 sm:$0xff]  }
 0x50a   :  { %13021 = vmatpush1.bf16.msra.mxu1 %v21413_v34  ;;  %13073 = vmatprep.subr.bf16.mxu0 %v21424_v4  ;;  %v21464_v34 = vld [vmem:[#allocation8 + $0x68] ss:$44 sps:$4 sm:$0xff]   ;;  %v21469_v4 = vld [vmem:[#allocation8 + $0x1a2c] ss:$44 sps:$4 sm:$0xff]  }
 0x50b   :  { %13022 = vmatprep.subr.bf16.mxu1 %v21421_v40  ;;  %v21472_v40 = vld [vmem:[#allocation8 + $0x14] ss:$44 sps:$4 sm:$0xff]  }
 0x50d   :  { %13074 = vmatpush1.bf16.msra.mxu0 %v21422_v24  ;;  %v21470_v24 = vld [vmem:[#allocation8 + $0x10] ss:$44 sps:$4 sm:$0xff]  }
 0x50e   :  { %13023 = vmatpush1.bf16.msra.mxu1 %v21419_v37  ;;  %13102 = vmatprep.subr.bf16.mxu0 %v21430_v53  ;;  %v21467_v37 = vld [vmem:[#allocation8 + $0x1a28] ss:$44 sps:$4 sm:$0xff]  }
 0x50f   :  { %13024 = vmatprep.subr.bf16.mxu1 %v21427_v57  ;;  %v21478_v57 = vld [vmem:[#allocation8 + $0x53c] ss:$44 sps:$4 sm:$0xff]   ;;  %v21475_v53 = vld [vmem:[#allocation8 + $0x19d4] ss:$44 sps:$4 sm:$0xff]  }
 0x510   :  { %13092 = vmatmul.mubr.bf16.vlgmr.msra.gmra.mxu0 %v23666_v54 }
 0x511   :  { %13103 = vmatpush1.bf16.msra.mxu0 %v21428_v62  ;;  %13134 = vmatprep.mubr.bf16.mxu0 %v23577_v58  ;;  %v21476_v62 = vld [vmem:[#allocation8 + $0x538] ss:$44 sps:$4 sm:$0xff]  }
 0x512   :  { %13025 = vmatpush1.bf16.msra.mxu1 %v21425_v61  ;;  %13104 = vmatprep.subr.bf16.mxu0 %v21436_v3  ;;  %v21473_v61 = vld [vmem:[#allocation8 + $0x19d0] ss:$44 sps:$4 sm:$0xff]  }
 0x513   :  { %13026 = vmatprep.subr.bf16.mxu1 %v21433_v43  ;;  %v21484_v3 = vld [vmem:[#allocation8 + $0x4e4] ss:$44 sps:$4 sm:$0xff]   ;;  %v21481_v43 = vld [vmem:[#allocation8 + $0x197c] ss:$44 sps:$4 sm:$0xff]  }
 0x515   :  { %13105 = vmatpush1.bf16.msra.mxu0 %v21434_v52  ;;  %v23703_v52 = vpop.f32.mrf.mxu0 }
 0x516   :  { %13027 = vmatpush1.bf16.msra.mxu1 %v21431_v42  ;;  %13106 = vmatprep.subr.bf16.mxu0 %v21442_v27  ;;  %v21479_v27 = vld [vmem:[#allocation8 + $0x1978] ss:$44 sps:$4 sm:$0xff]  }
 0x517   :  { %13028 = vmatprep.subr.bf16.mxu1 %v21439_v8  ;;  %v21482_v8 = vld [vmem:[#allocation8 + $0x4e0] ss:$44 sps:$4 sm:$0xff]  }
 0x519   :  { %13107 = vmatpush1.bf16.msra.mxu0 %v21440_v16 }
 0x51a   :  { %13029 = vmatpush1.bf16.msra.mxu1 %v21437_v17  ;;  %13108 = vmatprep.subr.bf16.mxu0 %v21448_v33  ;;  %v21487_v17 = vld [vmem:[#allocation8 + $0x1924] ss:$44 sps:$4 sm:$0xff]   ;;  %v21490_v33 = vld [vmem:[#allocation8 + $0x48c] ss:$44 sps:$4 sm:$0xff]  }
 0x51b   :  { %13030 = vmatprep.subr.bf16.mxu1 %v21445_v59 }
 0x51d   :  { %13109 = vmatpush1.bf16.msra.mxu0 %v21446_v48 }
 0x51e   :  { %13031 = vmatpush1.bf16.msra.mxu1 %v21443_v21  ;;  %13110 = vmatprep.subr.bf16.mxu0 %v21454_v25  ;;  %v21488_v25 = vld [vmem:[#allocation8 + $0x488] ss:$44 sps:$4 sm:$0xff]  }
 0x51f   :  { %13032 = vmatprep.subr.bf16.mxu1 %v21451_v45  ;;  %v21485_v45 = vld [vmem:[#allocation8 + $0x1920] ss:$44 sps:$4 sm:$0xff]  }
 0x521   :  { %13111 = vmatpush1.bf16.msra.mxu0 %v21452_v35  ;;  %v21496_v35 = vld [vmem:[#allocation8 + $0x434] ss:$44 sps:$4 sm:$0xff]  }
 0x522   :  { %13033 = vmatpush2.bf16.msra.mxu1 %v21449_v39  ;;  %13112 = vmatprep.subr.bf16.mxu0 %v21460_v30  ;;  %v21493_v39 = vld [vmem:[#allocation8 + $0x18cc] ss:$44 sps:$4 sm:$0xff]   ;;  %v21491_v30 = vld [vmem:[#allocation8 + $0x18c8] ss:$44 sps:$4 sm:$0xff]  }
 0x523   :  { %13034 = vmatprep.subr.bf16.mxu1 %v21457_v2  ;;  %v21499_v2 = vld [vmem:[#allocation8 + $0x3dc] ss:$44 sps:$4 sm:$0xff]  }
 0x525   :  { %13113 = vmatpush1.bf16.msra.mxu0 %v21458_v18  ;;  %v21497_v18 = vld [vmem:[#allocation8 + $0x3d8] ss:$44 sps:$4 sm:$0xff]  }
 0x526   :  { %13035 = vmatpush2.bf16.msra.mxu1 %v21455_v5  ;;  %13114 = vmatprep.subr.bf16.mxu0 %v21466_v23  ;;  %v21502_v5 = vld [vmem:[#allocation8 + $0x7fc] ss:$44 sps:$4 sm:$0xff]   ;;  %v21500_v23 = vld [vmem:[#allocation8 + $0x7f8] ss:$44 sps:$4 sm:$0xff]  }
 0x527   :  { %13036 = vmatprep.subr.bf16.mxu1 %v21463_v49  ;;  %v21508_v49 = vld [vmem:[#allocation8 + $0x7a4] ss:$44 sps:$4 sm:$0xff]  }
 0x529   :  { %13115 = vmatpush1.bf16.msra.mxu0 %v21464_v34  ;;  %v23709_v34 = vpop.f32.mrf.mxu1 }
 0x52a   :  { %13037 = vmatpush2.bf16.msra.mxu1 %v21461_v44  ;;  %13116 = vmatprep.subr.bf16.mxu0 %v21472_v40  ;;  %v21503_v44 = vld [vmem:[#allocation8 + $0x380] ss:$44 sps:$4 sm:$0xff]  }
 0x52b   :  { %13038 = vmatprep.subr.bf16.mxu1 %v21469_v4  ;;  %v21506_v40 = vld [vmem:[#allocation8 + $0x7a0] ss:$44 sps:$4 sm:$0xff]  }
 0x52d   :  { %13117 = vmatpush1.bf16.msra.mxu0 %v21470_v24  ;;  %v21511_v24 = vld [vmem:[#allocation8 + $0x32c] ss:$44 sps:$4 sm:$0xff]  }
 0x52e   :  { %13039 = vmatpush2.bf16.msra.mxu1 %v21467_v37  ;;  %13118 = vmatprep.subr.bf16.mxu0 %v21478_v57  ;;  %v21514_v37 = vld [vmem:[#allocation8 + $0x74c] ss:$44 sps:$4 sm:$0xff]  }
 0x52f   :  { %13040 = vmatprep.subr.bf16.mxu1 %v21475_v53 }
 0x530   :  { %v12792_v42 = vpop.f32.mrf.mxu0 }
 0x531   :  { %v12793_v16 = vadd.f32 %v12792_v42, %v23692_v6  ;;  %13119 = vmatpush2.bf16.msra.mxu0 %v21476_v62  ;;  %v21494_v6 = vld [vmem:[#allocation8 + $0x430] ss:$44 sps:$4 sm:$0xff]   ;;  %v21509_v62 = vld [vmem:[#allocation8 + $0x328] ss:$44 sps:$4 sm:$0xff]  }
 0x532   :  { %13041 = vmatpush2.bf16.msra.mxu1 %v21473_v61  ;;  %v23706_v59 = vpop.f32.mrf.mxu0  ;;  %13120 = vmatprep.subr.bf16.mxu0 %v21484_v3  ;;  %v21512_v61 = vld [vmem:[#allocation8 + $0x748] ss:$44 sps:$4 sm:$0xff]  }
 0x533   :  { %13042 = vmatprep.subr.bf16.mxu1 %v21481_v43  ;;  %v21517_v43 = vld [vmem:[#allocation8 + $0x2d4] ss:$44 sps:$4 sm:$0xff]  }
 0x534   :  { %v12796_v48 = vpop.f32.mrf.mxu0  ;;  %v21520_v42 = vld [vmem:[#allocation8 + $0x6f4] ss:$44 sps:$4 sm:$0xff]  }
 0x535   :  { %v12797_v21 = vadd.f32 %v12796_v48, %v23697_v50  ;;  %13121 = vmatpush2.bf16.msra.mxu0 %v21482_v8  ;;  %v21505_v50 = vld [vmem:[#allocation8 + $0x384] ss:$44 sps:$4 sm:$0xff]  }
 0x536   :  { %13043 = vmatpush2.bf16.msra.mxu1 %v21479_v27  ;;  %13122 = vmatprep.subr.bf16.mxu0 %v21490_v33  ;;  %v21518_v48 = vld [vmem:[#allocation8 + $0x6f0] ss:$44 sps:$4 sm:$0xff]  }
 0x537   :  { %13044 = vmatprep.subr.bf16.mxu1 %v21487_v17 }
 0x539   :  { %13123 = vmatpush2.bf16.msra.mxu0 %v21488_v25  ;;  %v21526_v25 = vld [vmem:[#allocation8 + $0xd7c] ss:$44 sps:$4 sm:$0xff]  }
 0x53a   :  { %13045 = vmatpush2.bf16.msra.mxu1 %v21485_v45  ;;  %13124 = vmatprep.subr.bf16.mxu0 %v21496_v35  ;;  %v21523_v45 = vld [vmem:[#allocation8 + $0x69c] ss:$44 sps:$4 sm:$0xff]   ;;  %v21524_v35 = vld [vmem:[#allocation8 + $0xd78] ss:$44 sps:$4 sm:$0xff]  }
 0x53b   :  { %13046 = vmatprep.subr.bf16.mxu1 %v21493_v39  ;;  %v21521_v39 = vld [vmem:[#allocation8 + $0x698] ss:$44 sps:$4 sm:$0xff]  }
 0x53d   :  { %13125 = vmatpush2.bf16.msra.mxu0 %v21494_v6  ;;  %v21532_v6 = vld [vmem:[#allocation8 + $0xd24] ss:$44 sps:$4 sm:$0xff]  }
 0x53e   :  { %13047 = vmatpush2.bf16.msra.mxu1 %v21491_v30  ;;  %13126 = vmatprep.subr.bf16.mxu0 %v21499_v2  ;;  %v21527_v30 = vld [vmem:[#allocation8 + $0x640] ss:$44 sps:$4 sm:$0xff]  }
 0x53f   :  { %13145 = vmatprep.subr.bf16.mxu1 %v21502_v5  ;;  %v21530_v2 = vld [vmem:[#allocation8 + $0xd20] ss:$44 sps:$4 sm:$0xff]  }
 0x540   :  { %v21538_v5 = vld [vmem:[#allocation8 + $0xccc] ss:$44 sps:$4 sm:$0xff]  }
 0x541   :  { %13049 = vmatmul.mubr.bf16.vlgmr.msra.gmra.mxu1 %v23662_v10  ;;  %v12835_v4 = vpop.f32.mrf.mxu1  ;;  %13127 = vmatpush2.bf16.msra.mxu0 %v21497_v18  ;;  %v21535_v18 = vld [vmem:[#allocation8 + $0x5ec] ss:$44 sps:$4 sm:$0xff]  }
 0x542   :  { %v12836_v57 = vadd.f32 %v12835_v4, %v12793_v16  ;;  %13146 = vmatpush1.bf16.msra.mxu1 %v21500_v23  ;;  %13177 = vmatprep.mubr.bf16.mxu1 %v23579_v46  ;;  %v21515_v16 = vld [vmem:[#allocation8 + $0x2d0] ss:$44 sps:$4 sm:$0xff]   ;;  %v21536_v23 = vld [vmem:[#allocation8 + $0xcc8] ss:$44 sps:$4 sm:$0xff]  }
 0x543   :  { %v23713_v53 = vpop.f32.mrf.mxu1  ;;  %13128 = vmatprep.subr.bf16.mxu0 %v21505_v50  ;;  %13147 = vmatprep.subr.bf16.mxu1 %v21508_v49  ;;  %v21533_v50 = vld [vmem:[#allocation8 + $0x5e8] ss:$44 sps:$4 sm:$0xff]   ;;  %v21539_v4 = vld [vmem:[#allocation8 + $0x590] ss:$44 sps:$4 sm:$0xff]  }
 0x544   :  { %v14122_v8 = vmax.f32 %v12836_v57, 0.0  ;;  %v21544_v49 = vld [vmem:[#allocation8 + $0xc74] ss:$44 sps:$4 sm:$0xff]   ;;  %v21548_v57 = vld [vmem:[#allocation8 + $0xc18] ss:$44 sps:$4 sm:$0xff]  }
 0x545   :  { %v12839_v3 = vpop.f32.mrf.mxu1  ;;  %13129 = vmatpush2.bf16.msra.mxu0 %v21503_v44  ;;  %v21541_v44 = vld [vmem:[#allocation8 + $0x594] ss:$44 sps:$4 sm:$0xff]  }
 0x546   :  { %v12840_v27 = vadd.f32 %v12839_v3, %v12797_v21  ;;  %13148 = vmatpush1.bf16.msra.mxu1 %v21506_v40  ;;  %13130 = vmatprep.subr.bf16.mxu0 %v21511_v24  ;;  %v21529_v21 = vld [vmem:[#allocation8 + $0x644] ss:$44 sps:$4 sm:$0xff]   ;;  %v21550_v24 = vld [vmem:[#allocation8 + $0xc1c] ss:$44 sps:$4 sm:$0xff]  }
 0x547   :  { %13149 = vmatprep.subr.bf16.mxu1 %v21514_v37  ;;  %v21542_v40 = vld [vmem:[#allocation8 + $0xc70] ss:$44 sps:$4 sm:$0xff]  }
 0x548   :  { %v14133_v17 = vmax.f32 %v12840_v27, 0.0  ;;  %v21547_v37 = vld [vmem:[#allocation8 + $0xabc] ss:$44 sps:$4 sm:$0xff]   ;;  %v21553_v3 = vld [vmem:[#allocation8 + $0xa64] ss:$44 sps:$4 sm:$0xff]  }
 0x549   :  { %13131 = vmatpush2.bf16.msra.mxu0 %v21509_v62  ;;  %v21545_v62 = vld [vmem:[#allocation8 + $0xab8] ss:$44 sps:$4 sm:$0xff]  }
 0x54a   :  { %v23715_v33 = vpack.c.bf16 %v14133_v17, %v14122_v8  ;;  %13150 = vmatpush1.bf16.msra.mxu1 %v21512_v61  ;;  %13132 = vmatprep.subr.bf16.mxu0 %v21517_v43  ;;  %v21556_v61 = vld [vmem:[#allocation8 + $0xbc4] ss:$44 sps:$4 sm:$0xff]   ;;  %v21554_v43 = vld [vmem:[#allocation8 + $0xbc0] ss:$44 sps:$4 sm:$0xff]   ;;  %v21560_v17 = vld [vmem:[#allocation8 + $0xb68] ss:$44 sps:$4 sm:$0xff]  }
 0x54b   :  { %13151 = vmatprep.subr.bf16.mxu1 %v21520_v42  ;;  %v21551_v42 = vld [vmem:[#allocation8 + $0xa60] ss:$44 sps:$4 sm:$0xff]  }
 0x54c   :  { %24155 = vst [vmem:[#allocation45_spill] sm:$0xff] %v23715_v33  ;;  %v21562_v27 = vld [vmem:[#allocation8 + $0xb6c] ss:$44 sps:$4 sm:$0xff]   ;;  %v21997_v33 = vld [vmem:[#allocation8 + $0x1a3c] ss:$44 sps:$4 sm:$0xff]  }
 0x54d   :  { %13133 = vmatpush2.bf16.msra.mxu0 %v21515_v16  ;;  %v21559_v8 = vld [vmem:[#allocation8 + $0xa0c] ss:$44 sps:$4 sm:$0xff]   ;;  %v21557_v16 = vld [vmem:[#allocation8 + $0xa08] ss:$44 sps:$4 sm:$0xff]  }
 0x54e   :  { %13152 = vmatpush1.bf16.msra.mxu1 %v21518_v48  ;;  %13188 = vmatprep.subr.bf16.mxu0 %v21526_v25  ;;  %v21568_v48 = vld [vmem:[#allocation8 + $0xb14] ss:$44 sps:$4 sm:$0xff]  }
 0x54f   :  { %13153 = vmatprep.subr.bf16.mxu1 %v21523_v45  ;;  %v21565_v25 = vld [vmem:[#allocation8 + $0x9b4] ss:$44 sps:$4 sm:$0xff]   ;;  %v21566_v45 = vld [vmem:[#allocation8 + $0xb10] ss:$44 sps:$4 sm:$0xff]  }
 0x550   :  { %13135 = vmatmul.mubr.bf16.vlgmr.msra.gmra.mxu0 %v24150_v41 }
 0x551   :  { %13189 = vmatpush1.bf16.msra.mxu0 %v21524_v35  ;;  %13220 = vmatprep.mubr.bf16.mxu0 %v23610_v55  ;;  %v21563_v35 = vld [vmem:[#allocation8 + $0x9b0] ss:$44 sps:$4 sm:$0xff]  }
 0x552   :  { %13154 = vmatpush1.bf16.msra.mxu1 %v21521_v39  ;;  %13190 = vmatprep.subr.bf16.mxu0 %v21532_v6  ;;  %v21574_v39 = vld [vmem:[#allocation8 + $0x103c] ss:$44 sps:$4 sm:$0xff]  }
 0x553   :  { %13155 = vmatprep.subr.bf16.mxu1 %v21529_v21  ;;  %v21571_v6 = vld [vmem:[#allocation8 + $0x95c] ss:$44 sps:$4 sm:$0xff]   ;;  %v21572_v21 = vld [vmem:[#allocation8 + $0x1038] ss:$44 sps:$4 sm:$0xff]  }
 0x555   :  { %13191 = vmatpush1.bf16.msra.mxu0 %v21530_v2  ;;  %v21580_v2 = vld [vmem:[#allocation8 + $0xfe4] ss:$44 sps:$4 sm:$0xff]  }
 0x556   :  { %13156 = vmatpush1.bf16.msra.mxu1 %v21527_v30  ;;  %13192 = vmatprep.subr.bf16.mxu0 %v21538_v5  ;;  %v21569_v30 = vld [vmem:[#allocation8 + $0x958] ss:$44 sps:$4 sm:$0xff]   ;;  %v21578_v5 = vld [vmem:[#allocation8 + $0xfe0] ss:$44 sps:$4 sm:$0xff]  }
 0x557   :  { %13157 = vmatprep.subr.bf16.mxu1 %v21535_v18  ;;  %v21577_v18 = vld [vmem:[#allocation8 + $0x904] ss:$44 sps:$4 sm:$0xff]  }
 0x559   :  { %13193 = vmatpush1.bf16.msra.mxu0 %v21536_v23  ;;  %v21575_v23 = vld [vmem:[#allocation8 + $0x900] ss:$44 sps:$4 sm:$0xff]  }
 0x55a   :  { %13158 = vmatpush1.bf16.msra.mxu1 %v21533_v50  ;;  %13194 = vmatprep.subr.bf16.mxu0 %v21544_v49  ;;  %v21586_v50 = vld [vmem:[#allocation8 + $0xf8c] ss:$44 sps:$4 sm:$0xff]  }
 0x55b   :  { %13159 = vmatprep.subr.bf16.mxu1 %v21541_v44  ;;  %v21583_v49 = vld [vmem:[#allocation8 + $0x8ac] ss:$44 sps:$4 sm:$0xff]   ;;  %v21584_v44 = vld [vmem:[#allocation8 + $0xf88] ss:$44 sps:$4 sm:$0xff]  }
 0x55d   :  { %13195 = vmatpush1.bf16.msra.mxu0 %v21542_v40  ;;  %v21581_v40 = vld [vmem:[#allocation8 + $0x8a8] ss:$44 sps:$4 sm:$0xff]  }
 0x55e   :  { %13160 = vmatpush1.bf16.msra.mxu1 %v21539_v4  ;;  %13196 = vmatprep.subr.bf16.mxu0 %v21550_v24  ;;  %v21592_v4 = vld [vmem:[#allocation8 + $0xf34] ss:$44 sps:$4 sm:$0xff]  }
 0x55f   :  { %13161 = vmatprep.subr.bf16.mxu1 %v21547_v37  ;;  %v21589_v24 = vld [vmem:[#allocation8 + $0x854] ss:$44 sps:$4 sm:$0xff]   ;;  %v21590_v37 = vld [vmem:[#allocation8 + $0xf30] ss:$44 sps:$4 sm:$0xff]  }
 0x561   :  { %13197 = vmatpush1.bf16.msra.mxu0 %v21548_v57  ;;  %v21587_v57 = vld [vmem:[#allocation8 + $0x850] ss:$44 sps:$4 sm:$0xff]  }
 0x562   :  { %13162 = vmatpush2.bf16.msra.mxu1 %v21545_v62  ;;  %13198 = vmatprep.subr.bf16.mxu0 %v21556_v61  ;;  %v21595_v62 = vld [vmem:[#allocation8 + $0xedc] ss:$44 sps:$4 sm:$0xff]   ;;  %v21593_v61 = vld [vmem:[#allocation8 + $0xed8] ss:$44 sps:$4 sm:$0xff]  }
 0x563   :  { %13163 = vmatprep.subr.bf16.mxu1 %v21553_v3  ;;  %v21598_v3 = vld [vmem:[#allocation8 + $0x12fc] ss:$44 sps:$4 sm:$0xff]  }
 0x565   :  { %13199 = vmatpush1.bf16.msra.mxu0 %v21554_v43  ;;  %v21596_v43 = vld [vmem:[#allocation8 + $0x12f8] ss:$44 sps:$4 sm:$0xff]  }
 0x566   :  { %13164 = vmatpush2.bf16.msra.mxu1 %v21551_v42  ;;  %13200 = vmatprep.subr.bf16.mxu0 %v21562_v27  ;;  %v23719_v42 = vpop.f32.mrf.mxu0  ;;  %v21601_v27 = vld [vmem:[#allocation8 + $0xe84] ss:$44 sps:$4 sm:$0xff]  }
 0x567   :  { %13165 = vmatprep.subr.bf16.mxu1 %v21559_v8  ;;  %v21604_v8 = vld [vmem:[#allocation8 + $0x12a4] ss:$44 sps:$4 sm:$0xff]  }
 0x569   :  { %13201 = vmatpush1.bf16.msra.mxu0 %v21560_v17  ;;  %v23721_v17 = vld [vmem:[#allocation10] sm:$0xff] }
 0x56a   :  { %13166 = vmatpush2.bf16.msra.mxu1 %v21557_v16  ;;  %13202 = vmatprep.subr.bf16.mxu0 %v21568_v48  ;;  %v7614_v16 = vrot.slane %v23721_v17, %v24154_v0  ;;  %v23725_v48 = vpop.f32.mrf.mxu1 }
 0x56b   :  { %13167 = vmatprep.subr.bf16.mxu1 %v21565_v25 }
 0x56d   :  { %13203 = vmatpush1.bf16.msra.mxu0 %v21566_v45  ;;  %v21599_v45 = vld [vmem:[#allocation8 + $0xe80] ss:$44 sps:$4 sm:$0xff]  }
 0x56e   :  { %13168 = vmatpush2.bf16.msra.mxu1 %v21563_v35  ;;  %13204 = vmatprep.subr.bf16.mxu0 %v21574_v39  ;;  %v21602_v35 = vld [vmem:[#allocation8 + $0x12a0] ss:$44 sps:$4 sm:$0xff]  }
 0x56f   :  { %13169 = vmatprep.subr.bf16.mxu1 %v21571_v6  ;;  %v21607_v6 = vld [vmem:[#allocation8 + $0xe2c] ss:$44 sps:$4 sm:$0xff]  }
 0x570   :  { %v12921_v25 = vpop.f32.mrf.mxu0 }
 0x571   :  { %13205 = vmatpush2.bf16.msra.mxu0 %v21572_v21  ;;  %v21610_v21 = vld [vmem:[#allocation8 + $0x124c] ss:$44 sps:$4 sm:$0xff]  }
 0x572   :  { %13170 = vmatpush2.bf16.msra.mxu1 %v21569_v30  ;;  %13206 = vmatprep.subr.bf16.mxu0 %v21580_v2  ;;  %v23729_v2 = vpop.f32.mrf.mxu0 }
 0x573   :  { %13171 = vmatprep.subr.bf16.mxu1 %v21577_v18 }
 0x575   :  { %13207 = vmatpush2.bf16.msra.mxu0 %v21578_v5 }
 0x576   :  { %13172 = vmatpush2.bf16.msra.mxu1 %v21575_v23  ;;  %13208 = vmatprep.subr.bf16.mxu0 %v21586_v50  ;;  %v21605_v50 = vld [vmem:[#allocation8 + $0xe28] ss:$44 sps:$4 sm:$0xff]  }
 0x577   :  { %13173 = vmatprep.subr.bf16.mxu1 %v21583_v49 }
 0x579   :  { %13209 = vmatpush2.bf16.msra.mxu0 %v21584_v44  ;;  %v21608_v44 = vld [vmem:[#allocation8 + $0x1248] ss:$44 sps:$4 sm:$0xff]  }
 0x57a   :  { %13174 = vmatpush2.bf16.msra.mxu1 %v21581_v40  ;;  %13210 = vmatprep.subr.bf16.mxu0 %v21592_v4  ;;  %v21613_v40 = vld [vmem:[#allocation8 + $0xdd4] ss:$44 sps:$4 sm:$0xff]   ;;  %v12925_v4 = vpop.f32.mrf.mxu0 }
 0x57b   :  { %13175 = vmatprep.subr.bf16.mxu1 %v21589_v24  ;;  %v21616_v24 = vld [vmem:[#allocation8 + $0x11f4] ss:$44 sps:$4 sm:$0xff]  }
 0x57d   :  { %13211 = vmatpush2.bf16.msra.mxu0 %v21590_v37 }
 0x57e   :  { %13176 = vmatpush2.bf16.msra.mxu1 %v21587_v57  ;;  %13212 = vmatprep.subr.bf16.mxu0 %v21595_v62  ;;  %v21611_v57 = vld [vmem:[#allocation8 + $0xdd0] ss:$44 sps:$4 sm:$0xff]  }
 0x57f   :  { %13231 = vmatprep.subr.bf16.mxu1 %v21598_v3  ;;  %v21614_v62 = vld [vmem:[#allocation8 + $0x11f0] ss:$44 sps:$4 sm:$0xff]  }
 0x580   :  { %v21619_v3 = vld [vmem:[#allocation8 + $0x119c] ss:$44 sps:$4 sm:$0xff]  }
 0x581   :  { %v12878_v39 = vpop.f32.mrf.mxu1  ;;  %13178 = vmatmul.mubr.bf16.vlgmr.msra.gmra.mxu1 %v24151_v20  ;;  %13213 = vmatpush2.bf16.msra.mxu0 %v21593_v61  ;;  %v21622_v61 = vld [vmem:[#allocation8 + $0x187c] ss:$44 sps:$4 sm:$0xff]  }
 0x582   :  { %v12879_v30 = vadd.f32 %v12878_v39, %v7614_v16  ;;  %13232 = vmatpush1.bf16.msra.mxu1 %v21596_v43  ;;  %13263 = vmatprep.mubr.bf16.mxu1 %v23613_v26  ;;  %v21620_v43 = vld [vmem:[#allocation8 + $0x1878] ss:$44 sps:$4 sm:$0xff]  }
 0x583   :  { %v23731_v18 = vpop.f32.mrf.mxu1  ;;  %13214 = vmatprep.subr.bf16.mxu0 %v21601_v27  ;;  %13233 = vmatprep.subr.bf16.mxu1 %v21604_v8  ;;  %v21617_v27 = vld [vmem:[#allocation8 + $0x1198] ss:$44 sps:$4 sm:$0xff]  }
 0x584   :  { %v23733_v5 = vadd.f32 %v12921_v25, %v12879_v30  ;;  %v21628_v8 = vld [vmem:[#allocation8 + $0x1824] ss:$44 sps:$4 sm:$0xff]   ;;  %v21626_v25 = vld [vmem:[#allocation8 + $0x1820] ss:$44 sps:$4 sm:$0xff]  }
 0x585   :  { %v12882_v23 = vpop.f32.mrf.mxu1  ;;  %13215 = vmatpush2.bf16.msra.mxu0 %v21599_v45  ;;  %v21623_v45 = vld [vmem:[#allocation8 + $0x1140] ss:$44 sps:$4 sm:$0xff]  }
 0x586   :  { %v12883_v49 = vadd.f32 %v12882_v23, %v7614_v16  ;;  %13234 = vmatpush1.bf16.msra.mxu1 %v21602_v35  ;;  %13216 = vmatprep.subr.bf16.mxu0 %v21607_v6  ;;  %v21625_v16 = vld [vmem:[#allocation8 + $0x1144] ss:$44 sps:$4 sm:$0xff]   ;;  %v21634_v35 = vld [vmem:[#allocation8 + $0x17cc] ss:$44 sps:$4 sm:$0xff]   ;;  %v21632_v6 = vld [vmem:[#allocation8 + $0x17c8] ss:$44 sps:$4 sm:$0xff]  }
 0x587   :  { %13235 = vmatprep.subr.bf16.mxu1 %v21610_v21  ;;  %v21631_v39 = vld [vmem:[#allocation8 + $0x10ec] ss:$44 sps:$4 sm:$0xff]   ;;  %v21629_v21 = vld [vmem:[#allocation8 + $0x10e8] ss:$44 sps:$4 sm:$0xff]  }
 0x588   :  { %v23735_v37 = vadd.f32 %v12925_v4, %v12883_v49  ;;  %v21640_v30 = vld [vmem:[#allocation8 + $0x1774] ss:$44 sps:$4 sm:$0xff]   ;;  %v21635_v49 = vld [vmem:[#allocation8 + $0x1090] ss:$44 sps:$4 sm:$0xff]   ;;  %v21644_v4 = vld [vmem:[#allocation8 + $0x1718] ss:$44 sps:$4 sm:$0xff]  }
 0x589   :  { %13217 = vmatpush2.bf16.msra.mxu0 %v21605_v50  ;;  %v21637_v23 = vld [vmem:[#allocation8 + $0x1094] ss:$44 sps:$4 sm:$0xff]   ;;  %v21638_v50 = vld [vmem:[#allocation8 + $0x1770] ss:$44 sps:$4 sm:$0xff]  }
 0x58a   :  { %13236 = vmatpush1.bf16.msra.mxu1 %v21608_v44  ;;  %13218 = vmatprep.subr.bf16.mxu0 %v21613_v40  ;;  %v21646_v44 = vld [vmem:[#allocation8 + $0x171c] ss:$44 sps:$4 sm:$0xff]  }
 0x58b   :  { %13237 = vmatprep.subr.bf16.mxu1 %v21616_v24  ;;  %v21643_v40 = vld [vmem:[#allocation8 + $0x15bc] ss:$44 sps:$4 sm:$0xff]   ;;  %v21641_v24 = vld [vmem:[#allocation8 + $0x15b8] ss:$44 sps:$4 sm:$0xff]  }
 0x58d   :  { %13219 = vmatpush2.bf16.msra.mxu0 %v21611_v57  ;;  %v21652_v57 = vld [vmem:[#allocation8 + $0x16c4] ss:$44 sps:$4 sm:$0xff]  }
 0x58e   :  { %13238 = vmatpush1.bf16.msra.mxu1 %v21614_v62  ;;  %13274 = vmatprep.subr.bf16.mxu0 %v21622_v61  ;;  %v21649_v62 = vld [vmem:[#allocation8 + $0x1564] ss:$44 sps:$4 sm:$0xff]   ;;  %v21650_v61 = vld [vmem:[#allocation8 + $0x16c0] ss:$44 sps:$4 sm:$0xff]  }
 0x58f   :  { %13239 = vmatprep.subr.bf16.mxu1 %v21619_v3  ;;  %v21647_v3 = vld [vmem:[#allocation8 + $0x1560] ss:$44 sps:$4 sm:$0xff]  }
 0x590   :  { %13221 = vmatmul.mubr.bf16.vlgmr.msra.gmra.mxu0 %v24152_v51 }
 0x591   :  { %13275 = vmatpush1.bf16.msra.mxu0 %v21620_v43  ;;  %13306 = vmatprep.mubr.bf16.mxu0 %v23645_v15  ;;  %v21658_v43 = vld [vmem:[#allocation8 + $0x166c] ss:$44 sps:$4 sm:$0xff]  }
 0x592   :  { %13240 = vmatpush1.bf16.msra.mxu1 %v21617_v27  ;;  %13276 = vmatprep.subr.bf16.mxu0 %v21628_v8  ;;  %v21655_v27 = vld [vmem:[#allocation8 + $0x150c] ss:$44 sps:$4 sm:$0xff]   ;;  %v21656_v8 = vld [vmem:[#allocation8 + $0x1668] ss:$44 sps:$4 sm:$0xff]  }
 0x593   :  { %13241 = vmatprep.subr.bf16.mxu1 %v21625_v16  ;;  %v21653_v16 = vld [vmem:[#allocation8 + $0x1508] ss:$44 sps:$4 sm:$0xff]  }
 0x595   :  { %13277 = vmatpush1.bf16.msra.mxu0 %v21626_v25  ;;  %v21664_v25 = vld [vmem:[#allocation8 + $0x1614] ss:$44 sps:$4 sm:$0xff]  }
 0x596   :  { %13242 = vmatpush1.bf16.msra.mxu1 %v21623_v45  ;;  %13278 = vmatprep.subr.bf16.mxu0 %v21634_v35  ;;  %v21661_v45 = vld [vmem:[#allocation8 + $0x14b4] ss:$44 sps:$4 sm:$0xff]   ;;  %v21662_v35 = vld [vmem:[#allocation8 + $0x1610] ss:$44 sps:$4 sm:$0xff]  }
 0x597   :  { %13243 = vmatprep.subr.bf16.mxu1 %v21631_v39  ;;  %v21659_v39 = vld [vmem:[#allocation8 + $0x14b0] ss:$44 sps:$4 sm:$0xff]  }
 0x599   :  { %13279 = vmatpush1.bf16.msra.mxu0 %v21632_v6  ;;  %v21670_v6 = vld [vmem:[#allocation8 + $0x1b3c] ss:$44 sps:$4 sm:$0xff]  }
 0x59a   :  { %13244 = vmatpush1.bf16.msra.mxu1 %v21629_v21  ;;  %13280 = vmatprep.subr.bf16.mxu0 %v21640_v30  ;;  %v21667_v21 = vld [vmem:[#allocation8 + $0x145c] ss:$44 sps:$4 sm:$0xff]   ;;  %v21668_v30 = vld [vmem:[#allocation8 + $0x1b38] ss:$44 sps:$4 sm:$0xff]  }
 0x59b   :  { %13245 = vmatprep.subr.bf16.mxu1 %v21637_v23  ;;  %v21665_v23 = vld [vmem:[#allocation8 + $0x1458] ss:$44 sps:$4 sm:$0xff]  }
 0x59d   :  { %13281 = vmatpush1.bf16.msra.mxu0 %v21638_v50  ;;  %v21676_v50 = vld [vmem:[#allocation8 + $0x1ae4] ss:$44 sps:$4 sm:$0xff]  }
 0x59e   :  { %13246 = vmatpush1.bf16.msra.mxu1 %v21635_v49  ;;  %13282 = vmatprep.subr.bf16.mxu0 %v21646_v44  ;;  %v21673_v49 = vld [vmem:[#allocation8 + $0x1404] ss:$44 sps:$4 sm:$0xff]   ;;  %v21674_v44 = vld [vmem:[#allocation8 + $0x1ae0] ss:$44 sps:$4 sm:$0xff]  }
 0x59f   :  { %13247 = vmatprep.subr.bf16.mxu1 %v21643_v40  ;;  %v21671_v40 = vld [vmem:[#allocation8 + $0x1400] ss:$44 sps:$4 sm:$0xff]  }
 0x5a1   :  { %13283 = vmatpush1.bf16.msra.mxu0 %v21644_v4  ;;  %v21682_v4 = vld [vmem:[#allocation8 + $0x1a8c] ss:$44 sps:$4 sm:$0xff]  }
 0x5a2   :  { %13248 = vmatpush2.bf16.msra.mxu1 %v21641_v24  ;;  %13284 = vmatprep.subr.bf16.mxu0 %v21652_v57  ;;  %v21679_v24 = vld [vmem:[#allocation8 + $0x13ac] ss:$44 sps:$4 sm:$0xff]   ;;  %v21680_v57 = vld [vmem:[#allocation8 + $0x1a88] ss:$44 sps:$4 sm:$0xff]  }
 0x5a3   :  { %13249 = vmatprep.subr.bf16.mxu1 %v21649_v62  ;;  %v21677_v62 = vld [vmem:[#allocation8 + $0x13a8] ss:$44 sps:$4 sm:$0xff]  }
 0x5a5   :  { %13285 = vmatpush1.bf16.msra.mxu0 %v21650_v61  ;;  %v21688_v61 = vld [vmem:[#allocation8 + $0x1a34] ss:$44 sps:$4 sm:$0xff]  }
 0x5a6   :  { %13250 = vmatpush2.bf16.msra.mxu1 %v21647_v3  ;;  %13286 = vmatprep.subr.bf16.mxu0 %v21658_v43  ;;  %v21685_v3 = vld [vmem:[#allocation8 + $0x1354] ss:$44 sps:$4 sm:$0xff]   ;;  %v21686_v43 = vld [vmem:[#allocation8 + $0x1a30] ss:$44 sps:$4 sm:$0xff]  }
 0x5a7   :  { %13251 = vmatprep.subr.bf16.mxu1 %v21655_v27  ;;  %v21683_v27 = vld [vmem:[#allocation8 + $0x1350] ss:$44 sps:$4 sm:$0xff]  }
 0x5a9   :  { %13287 = vmatpush1.bf16.msra.mxu0 %v21656_v8  ;;  %v21691_v8 = vld [vmem:[#allocation8 + $0x19dc] ss:$44 sps:$4 sm:$0xff]  }
 0x5aa   :  { %13252 = vmatpush2.bf16.msra.mxu1 %v21653_v16  ;;  %13288 = vmatprep.subr.bf16.mxu0 %v21664_v25  ;;  %v21694_v16 = vld [vmem:[#allocation8 + $0x1dfc] ss:$44 sps:$4 sm:$0xff]   ;;  %v23739_v25 = vpop.f32.mrf.mxu0 }
 0x5ab   :  { %13253 = vmatprep.subr.bf16.mxu1 %v21661_v45  ;;  %v21689_v45 = vld [vmem:[#allocation8 + $0x19d8] ss:$44 sps:$4 sm:$0xff]  }
 0x5ad   :  { %13289 = vmatpush1.bf16.msra.mxu0 %v21662_v35  ;;  %v21692_v35 = vld [vmem:[#allocation8 + $0x1df8] ss:$44 sps:$4 sm:$0xff]  }
 0x5ae   :  { %13254 = vmatpush2.bf16.msra.mxu1 %v21659_v39  ;;  %13290 = vmatprep.subr.bf16.mxu0 %v21670_v6  ;;  %v21697_v39 = vld [vmem:[#allocation8 + $0x1984] ss:$44 sps:$4 sm:$0xff]   ;;  %v23741_v6 = vpop.f32.mrf.mxu1 }
 0x5af   :  { %13255 = vmatprep.subr.bf16.mxu1 %v21667_v21 }
 0x5b0   :  { %v13007_v21 = vpop.f32.mrf.mxu0 }
 0x5b1   :  { %13291 = vmatpush2.bf16.msra.mxu0 %v21668_v30  ;;  %v21700_v30 = vld [vmem:[#allocation8 + $0x1da4] ss:$44 sps:$4 sm:$0xff]  }
 0x5b2   :  { %13256 = vmatpush2.bf16.msra.mxu1 %v21665_v23  ;;  %13292 = vmatprep.subr.bf16.mxu0 %v21676_v50  ;;  %v21695_v50 = vld [vmem:[#allocation8 + $0x1980] ss:$44 sps:$4 sm:$0xff]  }
 0x5b3   :  { %13257 = vmatprep.subr.bf16.mxu1 %v21673_v49 }
 0x5b5   :  { %13293 = vmatpush2.bf16.msra.mxu0 %v21674_v44  ;;  %v21698_v44 = vld [vmem:[#allocation8 + $0x1da0] ss:$44 sps:$4 sm:$0xff]  }
 0x5b6   :  { %13258 = vmatpush2.bf16.msra.mxu1 %v21671_v40  ;;  %13294 = vmatprep.subr.bf16.mxu0 %v21682_v4  ;;  %v21703_v40 = vld [vmem:[#allocation8 + $0x192c] ss:$44 sps:$4 sm:$0xff]   ;;  %v23745_v4 = vpop.f32.mrf.mxu0 }
 0x5b7   :  { %13259 = vmatprep.subr.bf16.mxu1 %v21679_v24 }
 0x5b9   :  { %13295 = vmatpush2.bf16.msra.mxu0 %v21680_v57  ;;  %v21706_v57 = vld [vmem:[#allocation8 + $0x1d4c] ss:$44 sps:$4 sm:$0xff]  }
 0x5ba   :  { %13260 = vmatpush2.bf16.msra.mxu1 %v21677_v62  ;;  %13296 = vmatprep.subr.bf16.mxu0 %v21688_v61 }
 0x5bb   :  { %13261 = vmatprep.subr.bf16.mxu1 %v21685_v3  ;;  %v21701_v3 = vld [vmem:[#allocation8 + $0x1928] ss:$44 sps:$4 sm:$0xff]  }
 0x5bd   :  { %13297 = vmatpush2.bf16.msra.mxu0 %v21686_v43 }
 0x5be   :  { %13262 = vmatpush2.bf16.msra.mxu1 %v21683_v27  ;;  %13298 = vmatprep.subr.bf16.mxu0 %v21691_v8  ;;  %v21709_v27 = vld [vmem:[#allocation8 + $0x18d4] ss:$44 sps:$4 sm:$0xff]   ;;  %v13011_v8 = vpop.f32.mrf.mxu0 }
 0x5bf   :  { %13317 = vmatprep.subr.bf16.mxu1 %v21694_v16  ;;  %v21712_v16 = vld [vmem:[#allocation8 + $0x1cf4] ss:$44 sps:$4 sm:$0xff]  }
 0x5c1   :  { %v12964_v23 = vpop.f32.mrf.mxu1  ;;  %13264 = vmatmul.mubr.bf16.vlgmr.msra.gmra.mxu1 %v23571_v63  ;;  %13299 = vmatpush2.bf16.msra.mxu0 %v21689_v45 }
 0x5c2   :  { %v12965_v49 = vadd.f32 %v12964_v23, %v23733_v5  ;;  %13318 = vmatpush1.bf16.msra.mxu1 %v21692_v35  ;;  %13300 = vmatprep.subr.bf16.mxu0 %v21697_v39  ;;  %v21704_v5 = vld [vmem:[#allocation8 + $0x1d48] ss:$44 sps:$4 sm:$0xff]   ;;  %v21707_v35 = vld [vmem:[#allocation8 + $0x18d0] ss:$44 sps:$4 sm:$0xff]   ;;  %v21716_v23 = vld [vmem:[#allocation8 + $0x800] ss:$44 sps:$4 sm:$0xff]  }
 0x5c3   :  { %v23747_v24 = vpop.f32.mrf.mxu1  ;;  %13319 = vmatprep.subr.bf16.mxu1 %v21700_v30  ;;  %13349 = vmatprep.mubr.bf16.mxu1 %v24148_v19  ;;  %v21710_v39 = vld [vmem:[#allocation8 + $0x1cf0] ss:$44 sps:$4 sm:$0xff]  }
 0x5c4   :  { %v23750_v62 = vadd.f32 %v13007_v21, %v12965_v49  ;;  %v21718_v21 = vld [vmem:[#allocation8 + $0x804] ss:$44 sps:$4 sm:$0xff]   ;;  %v21715_v30 = vld [vmem:[#allocation8 + $0x1c9c] ss:$44 sps:$4 sm:$0xff]  }
 0x5c5   :  { %v12968_v61 = vpop.f32.mrf.mxu1  ;;  %13301 = vmatpush2.bf16.msra.mxu0 %v21695_v50  ;;  %v21724_v50 = vld [vmem:[#allocation8 + $0x7ac] ss:$44 sps:$4 sm:$0xff]   ;;  %v21721_v49 = vld [vmem:[#allocation8 + $0x1c44] ss:$44 sps:$4 sm:$0xff]  }
 0x5c6   :  { %v12969_v43 = vadd.f32 %v12968_v61, %v23735_v37  ;;  %13320 = vmatpush1.bf16.msra.mxu1 %v21698_v44  ;;  %13302 = vmatprep.subr.bf16.mxu0 %v21703_v40  ;;  %v21713_v37 = vld [vmem:[#allocation8 + $0x1c98] ss:$44 sps:$4 sm:$0xff]   ;;  %v21722_v44 = vld [vmem:[#allocation8 + $0x7a8] ss:$44 sps:$4 sm:$0xff]   ;;  %v21719_v40 = vld [vmem:[#allocation8 + $0x1c40] ss:$44 sps:$4 sm:$0xff]  }
 0x5c7   :  { %13321 = vmatprep.subr.bf16.mxu1 %v21706_v57  ;;  %v21730_v57 = vld [vmem:[#allocation8 + $0x754] ss:$44 sps:$4 sm:$0xff]   ;;  %v21727_v61 = vld [vmem:[#allocation8 + $0x1bec] ss:$44 sps:$4 sm:$0xff]  }
 0x5c8   :  { %v23753_v45 = vadd.f32 %v13011_v8, %v12969_v43  ;;  %v21725_v43 = vld [vmem:[#allocation8 + $0x1be8] ss:$44 sps:$4 sm:$0xff]   ;;  %v21734_v8 = vld [vmem:[#allocation8 + $0x6f8] ss:$44 sps:$4 sm:$0xff]  }
 0x5c9   :  { %13303 = vmatpush2.bf16.msra.mxu0 %v21701_v3  ;;  %v21728_v3 = vld [vmem:[#allocation8 + $0x750] ss:$44 sps:$4 sm:$0xff]  }
 0x5ca   :  { %13322 = vmatpush1.bf16.msra.mxu1 %v21704_v5  ;;  %13304 = vmatprep.subr.bf16.mxu0 %v21709_v27  ;;  %v21736_v5 = vld [vmem:[#allocation8 + $0x6fc] ss:$44 sps:$4 sm:$0xff]   ;;  %v21733_v27 = vld [vmem:[#allocation8 + $0x1b94] ss:$44 sps:$4 sm:$0xff]  }
 0x5cb   :  { %13323 = vmatprep.subr.bf16.mxu1 %v21712_v16  ;;  %v21731_v16 = vld [vmem:[#allocation8 + $0x1b90] ss:$44 sps:$4 sm:$0xff]  }
 0x5cd   :  { %13305 = vmatpush2.bf16.msra.mxu0 %v21707_v35  ;;  %v21742_v35 = vld [vmem:[#allocation8 + $0x6a4] ss:$44 sps:$4 sm:$0xff]  }
 0x5ce   :  { %13324 = vmatpush1.bf16.msra.mxu1 %v21710_v39  ;;  %13403 = vmatprep.subr.bf16.mxu0 %v21718_v21  ;;  %v21739_v39 = vld [vmem:[#allocation8 + $0x284] ss:$44 sps:$4 sm:$0xff]   ;;  %v21740_v21 = vld [vmem:[#allocation8 + $0x6a0] ss:$44 sps:$4 sm:$0xff]  }
 0x5cf   :  { %13325 = vmatprep.subr.bf16.mxu1 %v21715_v30  ;;  %v21737_v30 = vld [vmem:[#allocation8 + $0x280] ss:$44 sps:$4 sm:$0xff]  }
 0x5d0   :  { %13307 = vmatmul.mubr.bf16.vlgmr.msra.gmra.mxu0 %v23662_v10 }
 0x5d1   :  { %13404 = vmatpush1.bf16.msra.mxu0 %v21716_v23  ;;  %13435 = vmatprep.mubr.bf16.mxu0 %v23579_v46  ;;  %v21745_v23 = vld [vmem:[#allocation8 + $0x22c] ss:$44 sps:$4 sm:$0xff]  }
 0x5d2   :  { %13326 = vmatpush1.bf16.msra.mxu1 %v21713_v37  ;;  %13405 = vmatprep.subr.bf16.mxu0 %v21724_v50  ;;  %v21748_v37 = vld [vmem:[#allocation8 + $0x64c] ss:$44 sps:$4 sm:$0xff]   ;;  %v21746_v50 = vld [vmem:[#allocation8 + $0x648] ss:$44 sps:$4 sm:$0xff]  }
 0x5d3   :  { %13327 = vmatprep.subr.bf16.mxu1 %v21721_v49  ;;  %v21743_v49 = vld [vmem:[#allocation8 + $0x228] ss:$44 sps:$4 sm:$0xff]  }
 0x5d5   :  { %13406 = vmatpush1.bf16.msra.mxu0 %v21722_v44  ;;  %v21754_v44 = vld [vmem:[#allocation8 + $0x5f4] ss:$44 sps:$4 sm:$0xff]  }
 0x5d6   :  { %13328 = vmatpush1.bf16.msra.mxu1 %v21719_v40  ;;  %13407 = vmatprep.subr.bf16.mxu0 %v21730_v57  ;;  %v21751_v40 = vld [vmem:[#allocation8 + $0x1d4] ss:$44 sps:$4 sm:$0xff]   ;;  %v21752_v57 = vld [vmem:[#allocation8 + $0x5f0] ss:$44 sps:$4 sm:$0xff]  }
 0x5d7   :  { %13329 = vmatprep.subr.bf16.mxu1 %v21727_v61  ;;  %v21749_v61 = vld [vmem:[#allocation8 + $0x1d0] ss:$44 sps:$4 sm:$0xff]  }
 0x5d9   :  { %13408 = vmatpush1.bf16.msra.mxu0 %v21728_v3  ;;  %v21760_v3 = vld [vmem:[#allocation8 + $0x59c] ss:$44 sps:$4 sm:$0xff]  }
 0x5da   :  { %13330 = vmatpush1.bf16.msra.mxu1 %v21725_v43  ;;  %13409 = vmatprep.subr.bf16.mxu0 %v21736_v5  ;;  %v21757_v43 = vld [vmem:[#allocation8 + $0x17c] ss:$44 sps:$4 sm:$0xff]   ;;  %v21758_v5 = vld [vmem:[#allocation8 + $0x598] ss:$44 sps:$4 sm:$0xff]  }
 0x5db   :  { %13331 = vmatprep.subr.bf16.mxu1 %v21733_v27  ;;  %v21755_v27 = vld [vmem:[#allocation8 + $0x178] ss:$44 sps:$4 sm:$0xff]  }
 0x5dd   :  { %13410 = vmatpush1.bf16.msra.mxu0 %v21734_v8  ;;  %v21766_v8 = vld [vmem:[#allocation8 + $0xac4] ss:$44 sps:$4 sm:$0xff]  }
 0x5de   :  { %13332 = vmatpush1.bf16.msra.mxu1 %v21731_v16  ;;  %13411 = vmatprep.subr.bf16.mxu0 %v21742_v35  ;;  %v21763_v16 = vld [vmem:[#allocation8 + $0x124] ss:$44 sps:$4 sm:$0xff]   ;;  %v21764_v35 = vld [vmem:[#allocation8 + $0xac0] ss:$44 sps:$4 sm:$0xff]  }
 0x5df   :  { %13360 = vmatprep.subr.bf16.mxu1 %v21739_v39  ;;  %v21761_v39 = vld [vmem:[#allocation8 + $0x120] ss:$44 sps:$4 sm:$0xff]  }
 0x5e1   :  { %13350 = vmatmul.mubr.bf16.vlgmr.msra.gmra.mxu1 %v23666_v54  ;;  %13412 = vmatpush1.bf16.msra.mxu0 %v21740_v21  ;;  %v21772_v21 = vld [vmem:[#allocation8 + $0xa6c] ss:$44 sps:$4 sm:$0xff]  }
 0x5e2   :  { %13361 = vmatpush1.bf16.msra.mxu1 %v21737_v30  ;;  %13392 = vmatprep.mubr.bf16.mxu1 %v23577_v58  ;;  %v21769_v30 = vld [vmem:[#allocation8 + $0xcc] ss:$44 sps:$4 sm:$0xff]  }
 0x5e3   :  { %13362 = vmatprep.subr.bf16.mxu1 %v21745_v23  ;;  %13413 = vmatprep.subr.bf16.mxu0 %v21748_v37  ;;  %v21770_v23 = vld [vmem:[#allocation8 + $0xa68] ss:$44 sps:$4 sm:$0xff]  }
 0x5e4   :  { %v21767_v37 = vld [vmem:[#allocation8 + $0xc8] ss:$44 sps:$4 sm:$0xff]  }
 0x5e5   :  { %13414 = vmatpush1.bf16.msra.mxu0 %v21746_v50  ;;  %v21778_v50 = vld [vmem:[#allocation8 + $0xa14] ss:$44 sps:$4 sm:$0xff]  }
 0x5e6   :  { %13363 = vmatpush1.bf16.msra.mxu1 %v21743_v49  ;;  %13415 = vmatprep.subr.bf16.mxu0 %v21754_v44  ;;  %v21775_v49 = vld [vmem:[#allocation8 + $0x74] ss:$44 sps:$4 sm:$0xff]   ;;  %v21776_v44 = vld [vmem:[#allocation8 + $0xa10] ss:$44 sps:$4 sm:$0xff]  }
 0x5e7   :  { %13364 = vmatprep.subr.bf16.mxu1 %v21751_v40  ;;  %v21773_v40 = vld [vmem:[#allocation8 + $0x70] ss:$44 sps:$4 sm:$0xff]  }
 0x5e9   :  { %13416 = vmatpush1.bf16.msra.mxu0 %v21752_v57  ;;  %v21784_v57 = vld [vmem:[#allocation8 + $0x9bc] ss:$44 sps:$4 sm:$0xff]  }
 0x5ea   :  { %13365 = vmatpush1.bf16.msra.mxu1 %v21749_v61  ;;  %13417 = vmatprep.subr.bf16.mxu0 %v21760_v3  ;;  %v21781_v61 = vld [vmem:[#allocation8 + $0x1c] ss:$44 sps:$4 sm:$0xff]   ;;  %v21782_v3 = vld [vmem:[#allocation8 + $0x9b8] ss:$44 sps:$4 sm:$0xff]  }
 0x5eb   :  { %13366 = vmatprep.subr.bf16.mxu1 %v21757_v43  ;;  %v21779_v43 = vld [vmem:[#allocation8 + $0x18] ss:$44 sps:$4 sm:$0xff]  }
 0x5ed   :  { %13418 = vmatpush1.bf16.msra.mxu0 %v21758_v5  ;;  %v21790_v5 = vld [vmem:[#allocation8 + $0x964] ss:$44 sps:$4 sm:$0xff]  }
 0x5ee   :  { %13367 = vmatpush1.bf16.msra.mxu1 %v21755_v27  ;;  %13419 = vmatprep.subr.bf16.mxu0 %v21766_v8  ;;  %v21787_v27 = vld [vmem:[#allocation8 + $0x544] ss:$44 sps:$4 sm:$0xff]   ;;  %v23759_v8 = vpop.f32.mrf.mxu0 }
 0x5ef   :  { %13368 = vmatprep.subr.bf16.mxu1 %v21763_v16  ;;  %v21788_v16 = vld [vmem:[#allocation8 + $0x960] ss:$44 sps:$4 sm:$0xff]  }
 0x5f1   :  { %13420 = vmatpush2.bf16.msra.mxu0 %v21764_v35  ;;  %v21785_v35 = vld [vmem:[#allocation8 + $0x540] ss:$44 sps:$4 sm:$0xff]  }
 0x5f2   :  { %13369 = vmatpush1.bf16.msra.mxu1 %v21761_v39  ;;  %13421 = vmatprep.subr.bf16.mxu0 %v21772_v21  ;;  %v21796_v39 = vld [vmem:[#allocation8 + $0x90c] ss:$44 sps:$4 sm:$0xff]   ;;  %v23761_v21 = vpop.f32.mrf.mxu1 }
 0x5f3   :  { %13370 = vmatprep.subr.bf16.mxu1 %v21769_v30  ;;  %v13093_v30 = vpop.f32.mrf.mxu0 }
 0x5f5   :  { %13422 = vmatpush2.bf16.msra.mxu0 %v21770_v23  ;;  %v21793_v23 = vld [vmem:[#allocation8 + $0x4ec] ss:$44 sps:$4 sm:$0xff]  }
 0x5f6   :  { %13371 = vmatpush1.bf16.msra.mxu1 %v21767_v37  ;;  %13423 = vmatprep.subr.bf16.mxu0 %v21778_v50  ;;  %v21794_v50 = vld [vmem:[#allocation8 + $0x908] ss:$44 sps:$4 sm:$0xff]  }
 0x5f7   :  { %13372 = vmatprep.subr.bf16.mxu1 %v21775_v49 }
 0x5f9   :  { %13424 = vmatpush2.bf16.msra.mxu0 %v21776_v44  ;;  %v21791_v44 = vld [vmem:[#allocation8 + $0x4e8] ss:$44 sps:$4 sm:$0xff]  }
 0x5fa   :  { %13373 = vmatpush1.bf16.msra.mxu1 %v21773_v40  ;;  %13425 = vmatprep.subr.bf16.mxu0 %v21784_v57  ;;  %v21802_v40 = vld [vmem:[#allocation8 + $0x8b4] ss:$44 sps:$4 sm:$0xff]   ;;  %v23764_v57 = vpop.f32.mrf.mxu0 }
 0x5fb   :  { %13374 = vmatprep.subr.bf16.mxu1 %v21781_v61 }
 0x5fd   :  { %13426 = vmatpush2.bf16.msra.mxu0 %v21782_v3  ;;  %v21799_v3 = vld [vmem:[#allocation8 + $0x494] ss:$44 sps:$4 sm:$0xff]  }
 0x5fe   :  { %13375 = vmatpush1.bf16.msra.mxu1 %v21779_v43  ;;  %13427 = vmatprep.subr.bf16.mxu0 %v21790_v5 }
 0x5ff   :  { %13376 = vmatprep.subr.bf16.mxu1 %v21787_v27  ;;  %v21800_v27 = vld [vmem:[#allocation8 + $0x8b0] ss:$44 sps:$4 sm:$0xff]  }
 0x601   :  { %v13050_v37 = vpop.f32.mrf.mxu1  ;;  %13428 = vmatpush2.bf16.msra.mxu0 %v21788_v16  ;;  %v21797_v16 = vld [vmem:[#allocation8 + $0x490] ss:$44 sps:$4 sm:$0xff]  }
 0x602   :  { %v13051_v49 = vadd.f32 %v13050_v37, %v23750_v62  ;;  %13377 = vmatpush2.bf16.msra.mxu1 %v21785_v35  ;;  %13429 = vmatprep.subr.bf16.mxu0 %v21796_v39  ;;  %v21808_v62 = vld [vmem:[#allocation8 + $0x85c] ss:$44 sps:$4 sm:$0xff]   ;;  %v13097_v35 = vpop.f32.mrf.mxu0 }
 0x603   :  { %v23766_v61 = vpop.f32.mrf.mxu1  ;;  %13378 = vmatprep.subr.bf16.mxu1 %v21793_v23  ;;  %v21805_v39 = vld [vmem:[#allocation8 + $0x43c] ss:$44 sps:$4 sm:$0xff]   ;;  %v21803_v23 = vld [vmem:[#allocation8 + $0x438] ss:$44 sps:$4 sm:$0xff]  }
 0x604   :  { %v13094_v43 = vadd.f32 %v13093_v30, %v13051_v49  ;;  %v21814_v30 = vld [vmem:[#allocation8 + $0x1304] ss:$44 sps:$4 sm:$0xff]  }
 0x605   :  { %v13054_v5 = vpop.f32.mrf.mxu1  ;;  %13430 = vmatpush2.bf16.msra.mxu0 %v21794_v50  ;;  %v21811_v50 = vld [vmem:[#allocation8 + $0x3e4] ss:$44 sps:$4 sm:$0xff]  }
 0x606   :  { %v13055_v36 = vadd.f32 %v13054_v5, %v23753_v45  ;;  %13379 = vmatpush2.bf16.msra.mxu1 %v21791_v44  ;;  %13431 = vmatprep.subr.bf16.mxu0 %v21802_v40  ;;  %v14124_v32 = vmax.f32 %v13094_v43, 0.0  ;;  %v21812_v45 = vld [vmem:[#allocation8 + $0x1300] ss:$44 sps:$4 sm:$0xff]   ;;  %v21815_v43 = vld [vmem:[#allocation8 + $0x388] ss:$44 sps:$4 sm:$0xff]  }
 0x607   :  { %13380 = vmatprep.subr.bf16.mxu1 %v21799_v3  ;;  %v21809_v44 = vld [vmem:[#allocation8 + $0x3e0] ss:$44 sps:$4 sm:$0xff]   ;;  %v21818_v3 = vld [vmem:[#allocation8 + $0x12a8] ss:$44 sps:$4 sm:$0xff]  }
 0x608   :  { %v13098_v37 = vadd.f32 %v13097_v35, %v13055_v36  ;;  %v21820_v40 = vld [vmem:[#allocation8 + $0x12ac] ss:$44 sps:$4 sm:$0xff]   ;;  %v21826_v5 = vld [vmem:[#allocation8 + $0x1254] ss:$44 sps:$4 sm:$0xff]  }
 0x609   :  { %13432 = vmatpush2.bf16.msra.mxu0 %v21800_v27  ;;  %v21817_v36 = vld [vmem:[#allocation8 + $0x38c] ss:$44 sps:$4 sm:$0xff]   ;;  %v21832_v27 = vld [vmem:[#allocation8 + $0x11fc] ss:$44 sps:$4 sm:$0xff]  }
 0x60a   :  { %v14135_v56 = vmax.f32 %v13098_v37, 0.0  ;;  %13381 = vmatpush2.bf16.msra.mxu1 %v21797_v16  ;;  %13433 = vmatprep.subr.bf16.mxu0 %v21808_v62  ;;  %v21829_v16 = vld [vmem:[#allocation8 + $0x2dc] ss:$44 sps:$4 sm:$0xff]   ;;  %v21830_v62 = vld [vmem:[#allocation8 + $0x11f8] ss:$44 sps:$4 sm:$0xff]  }
 0x60b   :  { %13382 = vmatprep.subr.bf16.mxu1 %v21805_v39  ;;  %v21827_v35 = vld [vmem:[#allocation8 + $0x2d8] ss:$44 sps:$4 sm:$0xff]  }
 0x60c   :  { %v23769_v49 = vpack.c.bf16 %v14135_v56, %v14124_v32  ;;  %v21823_v56 = vld [vmem:[#allocation8 + $0x334] ss:$44 sps:$4 sm:$0xff]   ;;  %v21824_v32 = vld [vmem:[#allocation8 + $0x1250] ss:$44 sps:$4 sm:$0xff]  }
 0x60d   :  { %13434 = vmatpush2.bf16.msra.mxu0 %v21806_v38  ;;  %v21821_v38 = vld [vmem:[#allocation8 + $0x330] ss:$44 sps:$4 sm:$0xff]  }
 0x60e   :  { %24156 = vst [vmem:[#allocation47_spill] sm:$0xff] %v23769_v49  ;;  %13383 = vmatpush2.bf16.msra.mxu1 %v21803_v23  ;;  %13489 = vmatprep.subr.bf16.mxu0 %v21814_v30  ;;  %v21838_v39 = vld [vmem:[#allocation8 + $0x11a4] ss:$44 sps:$4 sm:$0xff]   ;;  %v21836_v23 = vld [vmem:[#allocation8 + $0x11a0] ss:$44 sps:$4 sm:$0xff]  }
 0x60f   :  { %13384 = vmatprep.subr.bf16.mxu1 %v21811_v50  ;;  %v21835_v37 = vld [vmem:[#allocation8 + $0xd84] ss:$44 sps:$4 sm:$0xff]   ;;  %v21833_v30 = vld [vmem:[#allocation8 + $0xd80] ss:$44 sps:$4 sm:$0xff]  }
 0x610   :  { %13436 = vmatmul.mubr.bf16.vlgmr.msra.gmra.mxu0 %v24151_v20  ;;  %v21841_v50 = vld [vmem:[#allocation8 + $0xd2c] ss:$44 sps:$4 sm:$0xff]  }
 0x611   :  { %13490 = vmatpush1.bf16.msra.mxu0 %v21812_v45  ;;  %13521 = vmatprep.mubr.bf16.mxu0 %v23613_v26  ;;  %v21844_v45 = vld [vmem:[#allocation8 + $0x114c] ss:$44 sps:$4 sm:$0xff]  }
 0x612   :  { %13385 = vmatpush2.bf16.msra.mxu1 %v21809_v44  ;;  %13491 = vmatprep.subr.bf16.mxu0 %v21820_v40  ;;  %v21842_v44 = vld [vmem:[#allocation8 + $0x1148] ss:$44 sps:$4 sm:$0xff]  }
 0x613   :  { %13386 = vmatprep.subr.bf16.mxu1 %v21817_v36  ;;  %v21839_v40 = vld [vmem:[#allocation8 + $0xd28] ss:$44 sps:$4 sm:$0xff]  }
 0x614   :  { %v21850_v36 = vld [vmem:[#allocation8 + $0x10f4] ss:$44 sps:$4 sm:$0xff]  }
 0x615   :  { %13492 = vmatpush1.bf16.msra.mxu0 %v21818_v3  ;;  %v21847_v3 = vld [vmem:[#allocation8 + $0xcd4] ss:$44 sps:$4 sm:$0xff]  }
 0x616   :  { %13387 = vmatpush2.bf16.msra.mxu1 %v21815_v43  ;;  %13493 = vmatprep.subr.bf16.mxu0 %v21826_v5  ;;  %v21848_v43 = vld [vmem:[#allocation8 + $0x10f0] ss:$44 sps:$4 sm:$0xff]  }
 0x617   :  { %13388 = vmatprep.subr.bf16.mxu1 %v21823_v56  ;;  %v21845_v5 = vld [vmem:[#allocation8 + $0xcd0] ss:$44 sps:$4 sm:$0xff]  }
 0x618   :  { %v21856_v56 = vld [vmem:[#allocation8 + $0x109c] ss:$44 sps:$4 sm:$0xff]  }
 0x619   :  { %13494 = vmatpush1.bf16.msra.mxu0 %v21824_v32  ;;  %v21853_v32 = vld [vmem:[#allocation8 + $0xc7c] ss:$44 sps:$4 sm:$0xff]  }
 0x61a   :  { %13389 = vmatpush2.bf16.msra.mxu1 %v21821_v38  ;;  %13495 = vmatprep.subr.bf16.mxu0 %v21832_v27  ;;  %v21854_v38 = vld [vmem:[#allocation8 + $0x1098] ss:$44 sps:$4 sm:$0xff]  }
 0x61b   :  { %13390 = vmatprep.subr.bf16.mxu1 %v21829_v16  ;;  %v21851_v27 = vld [vmem:[#allocation8 + $0xc78] ss:$44 sps:$4 sm:$0xff]  }
 0x61c   :  { %v21862_v16 = vld [vmem:[#allocation8 + $0x15c4] ss:$44 sps:$4 sm:$0xff]  }
 0x61d   :  { %13496 = vmatpush1.bf16.msra.mxu0 %v21830_v62  ;;  %v21859_v62 = vld [vmem:[#allocation8 + $0xc24] ss:$44 sps:$4 sm:$0xff]  }
 0x61e   :  { %13391 = vmatpush2.bf16.msra.mxu1 %v21827_v35  ;;  %13497 = vmatprep.subr.bf16.mxu0 %v21838_v39  ;;  %v21860_v35 = vld [vmem:[#allocation8 + $0x15c0] ss:$44 sps:$4 sm:$0xff]  }
 0x61f   :  { %13446 = vmatprep.subr.bf16.mxu1 %v21835_v37  ;;  %v21857_v39 = vld [vmem:[#allocation8 + $0xc20] ss:$44 sps:$4 sm:$0xff]  }
 0x620   :  { %v21868_v37 = vld [vmem:[#allocation8 + $0x156c] ss:$44 sps:$4 sm:$0xff]  }
 0x621   :  { %13393 = vmatmul.mubr.bf16.vlgmr.msra.gmra.mxu1 %v24150_v41  ;;  %13498 = vmatpush1.bf16.msra.mxu0 %v21836_v23  ;;  %v21865_v23 = vld [vmem:[#allocation8 + $0xbcc] ss:$44 sps:$4 sm:$0xff]  }
 0x622   :  { %13447 = vmatpush1.bf16.msra.mxu1 %v21833_v30  ;;  %13478 = vmatprep.mubr.bf16.mxu1 %v23610_v55  ;;  %v21866_v30 = vld [vmem:[#allocation8 + $0x1568] ss:$44 sps:$4 sm:$0xff]  }
 0x623   :  { %13448 = vmatprep.subr.bf16.mxu1 %v21841_v50  ;;  %13499 = vmatprep.subr.bf16.mxu0 %v21844_v45  ;;  %v21863_v50 = vld [vmem:[#allocation8 + $0xbc8] ss:$44 sps:$4 sm:$0xff]  }
 0x624   :  { %v21874_v45 = vld [vmem:[#allocation8 + $0x1514] ss:$44 sps:$4 sm:$0xff]  }
 0x625   :  { %13500 = vmatpush1.bf16.msra.mxu0 %v21842_v44  ;;  %v21871_v44 = vld [vmem:[#allocation8 + $0xb74] ss:$44 sps:$4 sm:$0xff]  }
 0x626   :  { %13449 = vmatpush1.bf16.msra.mxu1 %v21839_v40  ;;  %13501 = vmatprep.subr.bf16.mxu0 %v21850_v36  ;;  %v21872_v40 = vld [vmem:[#allocation8 + $0x1510] ss:$44 sps:$4 sm:$0xff]  }
 0x627   :  { %13450 = vmatprep.subr.bf16.mxu1 %v21847_v3  ;;  %v21869_v36 = vld [vmem:[#allocation8 + $0xb70] ss:$44 sps:$4 sm:$0xff]  }
 0x628   :  { %v21880_v3 = vld [vmem:[#allocation8 + $0x14bc] ss:$44 sps:$4 sm:$0xff]  }
 0x629   :  { %13502 = vmatpush1.bf16.msra.mxu0 %v21848_v43  ;;  %v23775_v43 = vpop.f32.mrf.mxu0 }
 0x62a   :  { %13451 = vmatpush1.bf16.msra.mxu1 %v21845_v5  ;;  %13503 = vmatprep.subr.bf16.mxu0 %v21856_v56  ;;  %v21877_v5 = vld [vmem:[#allocation8 + $0xb1c] ss:$44 sps:$4 sm:$0xff]  }
 0x62b   :  { %13452 = vmatprep.subr.bf16.mxu1 %v21853_v32  ;;  %v13136_v56 = vpop.f32.mrf.mxu0  ;;  %v21878_v32 = vld [vmem:[#allocation8 + $0x14b8] ss:$44 sps:$4 sm:$0xff]  }
 0x62d   :  { %13504 = vmatpush1.bf16.msra.mxu0 %v21854_v38  ;;  %v21875_v38 = vld [vmem:[#allocation8 + $0xb18] ss:$44 sps:$4 sm:$0xff]  }
 0x62e   :  { %13453 = vmatpush1.bf16.msra.mxu1 %v21851_v27  ;;  %13505 = vmatprep.subr.bf16.mxu0 %v21862_v16  ;;  %v21886_v27 = vld [vmem:[#allocation8 + $0x1464] ss:$44 sps:$4 sm:$0xff]  }
 0x62f   :  { %13454 = vmatprep.subr.bf16.mxu1 %v21859_v62  ;;  %v21883_v16 = vld [vmem:[#allocation8 + $0x1044] ss:$44 sps:$4 sm:$0xff]   ;;  %v24157_v62 = vsub.s32 4, %v23279_v47 }
 0x631   :  { %13506 = vmatpush2.bf16.msra.mxu0 %v21860_v35  ;;  %v7622_v35 = vrot.slane %v23721_v17, %v24157_v62  ;;  %v21887_v17 = vld [vmem:[#allocation8 + $0xfe8] ss:$44 sps:$4 sm:$0xff]  }
 0x632   :  { %13455 = vmatpush1.bf16.msra.mxu1 %v21857_v39  ;;  %13507 = vmatprep.subr.bf16.mxu0 %v21868_v37  ;;  %v23780_v39 = vpop.f32.mrf.mxu0  ;;  %v21884_v37 = vld [vmem:[#allocation8 + $0x1460] ss:$44 sps:$4 sm:$0xff]  }
 0x633   :  { %13456 = vmatprep.subr.bf16.mxu1 %v21865_v23  ;;  %24158 = vst [vmem:[#allocation48_spill] sm:$0xff] %v23780_v39  ;;  %v21881_v23 = vld [vmem:[#allocation8 + $0x1040] ss:$44 sps:$4 sm:$0xff]  }
 0x634   :  { %v21898_v62 = vld [vmem:[#allocation8 + $0x13b4] ss:$44 sps:$4 sm:$0xff]  }
 0x635   :  { %13508 = vmatpush2.bf16.msra.mxu0 %v21866_v30  ;;  %v21892_v30 = vld [vmem:[#allocation8 + $0x140c] ss:$44 sps:$4 sm:$0xff]  }
 0x636   :  { %13457 = vmatpush1.bf16.msra.mxu1 %v21863_v50  ;;  %13509 = vmatprep.subr.bf16.mxu0 %v21874_v45  ;;  %v23782_v50 = vpop.f32.mrf.mxu1  ;;  %v21889_v45 = vld [vmem:[#allocation8 + $0xfec] ss:$44 sps:$4 sm:$0xff]  }
 0x637   :  { %13458 = vmatprep.subr.bf16.mxu1 %v21871_v44  ;;  %v13137_v44 = vadd.f32 %v13136_v56, %v7622_v35  ;;  %v21893_v56 = vld [vmem:[#allocation8 + $0xf90] ss:$44 sps:$4 sm:$0xff]  }
 0x639   :  { %13510 = vmatpush2.bf16.msra.mxu0 %v21872_v40  ;;  %v13140_v40 = vpop.f32.mrf.mxu0 }
 0x63a   :  { %13459 = vmatpush1.bf16.msra.mxu1 %v21869_v36  ;;  %13511 = vmatprep.subr.bf16.mxu0 %v21880_v3  ;;  %v21890_v3 = vld [vmem:[#allocation8 + $0x1408] ss:$44 sps:$4 sm:$0xff]  }
 0x63b   :  { %13460 = vmatprep.subr.bf16.mxu1 %v21877_v5 }
 0x63d   :  { %13512 = vmatpush2.bf16.msra.mxu0 %v21878_v32 }
 0x63e   :  { %13461 = vmatpush1.bf16.msra.mxu1 %v21875_v38  ;;  %13513 = vmatprep.subr.bf16.mxu0 %v21886_v27  ;;  %v21895_v38 = vld [vmem:[#allocation8 + $0xf94] ss:$44 sps:$4 sm:$0xff]   ;;  %v13141_v27 = vadd.f32 %v13140_v40, %v7622_v35  ;;  %v23786_v40 = vpop.f32.mrf.mxu0 }
 0x63f   :  { %13462 = vmatprep.subr.bf16.mxu1 %v21883_v16  ;;  %v21908_v35 = vld [vmem:[#allocation8 + $0x1e00] ss:$44 sps:$4 sm:$0xff]   ;;  %24160 = vst [vmem:[#allocation49_spill] sm:$0xff] %v23786_v40 }
 0x641   :  { %v13179_v36 = vpop.f32.mrf.mxu1  ;;  %13514 = vmatpush2.bf16.msra.mxu0 %v21884_v37  ;;  %v21901_v37 = vld [vmem:[#allocation8 + $0xf3c] ss:$44 sps:$4 sm:$0xff]  }
 0x642   :  { %v13180_v5 = vadd.f32 %v13179_v36, %v13137_v44  ;;  %13463 = vmatpush2.bf16.msra.mxu1 %v21881_v23  ;;  %13515 = vmatprep.subr.bf16.mxu0 %v21892_v30  ;;  %v21902_v23 = vld [vmem:[#allocation8 + $0x1358] ss:$44 sps:$4 sm:$0xff]  }
 0x643   :  { %v23784_v32 = vpop.f32.mrf.mxu1  ;;  %13464 = vmatprep.subr.bf16.mxu1 %v21889_v45  ;;  %v21899_v30 = vld [vmem:[#allocation8 + $0xf38] ss:$44 sps:$4 sm:$0xff]  }
 0x644   :  { %24159 = vst [vmem:[#allocation44_spill] sm:$0xff] %v23784_v32  ;;  %v21910_v44 = vld [vmem:[#allocation8 + $0x1e04] ss:$44 sps:$4 sm:$0xff]   ;;  %v21916_v36 = vld [vmem:[#allocation8 + $0x1dac] ss:$44 sps:$4 sm:$0xff]  }
 0x645   :  { %v13183_v29 = vpop.f32.mrf.mxu1  ;;  %13516 = vmatpush2.bf16.msra.mxu0 %v21890_v3  ;;  %v21907_v45 = vld [vmem:[#allocation8 + $0xee4] ss:$44 sps:$4 sm:$0xff]   ;;  %v21913_v3 = vld [vmem:[#allocation8 + $0xe8c] ss:$44 sps:$4 sm:$0xff]  }
 0x646   :  { %v13184_v16 = vadd.f32 %v13183_v29, %v13141_v27  ;;  %13465 = vmatpush2.bf16.msra.mxu1 %v21887_v17  ;;  %13517 = vmatprep.subr.bf16.mxu0 %v21898_v62  ;;  %v21905_v29 = vld [vmem:[#allocation8 + $0xee0] ss:$44 sps:$4 sm:$0xff]   ;;  %v22144_v32 = vld [vmem:[#allocation8 + $0x1204] ss:$44 sps:$4 sm:$0xff]  }
 0x647   :  { %13466 = vmatprep.subr.bf16.mxu1 %v21895_v38  ;;  %v21911_v38 = vld [vmem:[#allocation8 + $0xe88] ss:$44 sps:$4 sm:$0xff]  }
 0x648   :  { %v21922_v27 = vld [vmem:[#allocation8 + $0x1d54] ss:$44 sps:$4 sm:$0xff]  }
 0x649   :  { %13518 = vmatpush2.bf16.msra.mxu0 %v21896_v12 }
 0x64a   :  { %13467 = vmatpush2.bf16.msra.mxu1 %v21893_v56  ;;  %13519 = vmatprep.subr.bf16.mxu0 %v21904_v13  ;;  %v21914_v13 = vld [vmem:[#allocation8 + $0x1da8] ss:$44 sps:$4 sm:$0xff]  }
 0x64b   :  { %13468 = vmatprep.subr.bf16.mxu1 %v21901_v37  ;;  %v21919_v56 = vld [vmem:[#allocation8 + $0xe34] ss:$44 sps:$4 sm:$0xff]  }
 0x64d   :  { %13520 = vmatpush2.bf16.msra.mxu0 %v21902_v23 }
 0x64e   :  { %13469 = vmatpush2.bf16.msra.mxu1 %v21899_v30  ;;  %13575 = vmatprep.subr.bf16.mxu0 %v21910_v44  ;;  %v21920_v30 = vld [vmem:[#allocation8 + $0x1d50] ss:$44 sps:$4 sm:$0xff]  }
 0x64f   :  { %13470 = vmatprep.subr.bf16.mxu1 %v21907_v45  ;;  %v21928_v44 = vld [vmem:[#allocation8 + $0x1cfc] ss:$44 sps:$4 sm:$0xff]  }
 0x650   :  { %v13222_v17 = vpop.f32.mrf.mxu0  ;;  %13522 = vmatmul.mubr.bf16.vlgmr.msra.gmra.mxu0 %v23571_v63  ;;  %v21925_v45 = vld [vmem:[#allocation8 + $0xddc] ss:$44 sps:$4 sm:$0xff]  }
 0x651   :  { %v23789_v12 = vadd.f32 %v13222_v17, %v13180_v5  ;;  %13576 = vmatpush1.bf16.msra.mxu0 %v21908_v35  ;;  %13607 = vmatprep.mubr.bf16.mxu0 %v24148_v19  ;;  %v21917_v5 = vld [vmem:[#allocation8 + $0xe30] ss:$44 sps:$4 sm:$0xff]   ;;  %v21926_v35 = vld [vmem:[#allocation8 + $0x1cf8] ss:$44 sps:$4 sm:$0xff]   ;;  %v21932_v17 = vld [vmem:[#allocation8 + $0x1ca0] ss:$44 sps:$4 sm:$0xff]  }
 0x652   :  { %13471 = vmatpush2.bf16.msra.mxu1 %v21905_v29  ;;  %v23792_v62 = vpop.f32.mrf.mxu0  ;;  %13577 = vmatprep.subr.bf16.mxu0 %v21916_v36  ;;  %v21923_v29 = vld [vmem:[#allocation8 + $0xdd8] ss:$44 sps:$4 sm:$0xff]  }
 0x653   :  { %24161 = vst [vmem:[#allocation50_spill] sm:$0xff] %v23792_v62  ;;  %13472 = vmatprep.subr.bf16.mxu1 %v21913_v3  ;;  %v21934_v36 = vld [vmem:[#allocation8 + $0x1ca4] ss:$44 sps:$4 sm:$0xff]  }
 0x654   :  { %v13226_v37 = vpop.f32.mrf.mxu0  ;;  %v21931_v3 = vld [vmem:[#allocation8 + $0x1884] ss:$44 sps:$4 sm:$0xff]  }
 0x655   :  { %v23794_v23 = vadd.f32 %v13226_v37, %v13184_v16  ;;  %13578 = vmatpush1.bf16.msra.mxu0 %v21914_v13  ;;  %v21929_v16 = vld [vmem:[#allocation8 + $0x1880] ss:$44 sps:$4 sm:$0xff]  }
 0x656   :  { %13473 = vmatpush2.bf16.msra.mxu1 %v21911_v38  ;;  %13579 = vmatprep.subr.bf16.mxu0 %v21922_v27  ;;  %v21937_v13 = vld [vmem:[#allocation8 + $0x182c] ss:$44 sps:$4 sm:$0xff]   ;;  %v21938_v27 = vld [vmem:[#allocation8 + $0x1c48] ss:$44 sps:$4 sm:$0xff]  }
 0x657   :  { %13474 = vmatprep.subr.bf16.mxu1 %v21919_v56  ;;  %v21940_v38 = vld [vmem:[#allocation8 + $0x1c4c] ss:$44 sps:$4 sm:$0xff]   ;;  %v21935_v56 = vld [vmem:[#allocation8 + $0x1828] ss:$44 sps:$4 sm:$0xff]  }
 0x658   :  { %v21946_v37 = vld [vmem:[#allocation8 + $0x1bf4] ss:$44 sps:$4 sm:$0xff]  }
 0x659   :  { %13580 = vmatpush1.bf16.msra.mxu0 %v21920_v30  ;;  %v21943_v30 = vld [vmem:[#allocation8 + $0x17d4] ss:$44 sps:$4 sm:$0xff]  }
 0x65a   :  { %13475 = vmatpush2.bf16.msra.mxu1 %v21917_v5  ;;  %13581 = vmatprep.subr.bf16.mxu0 %v21928_v44  ;;  %v21944_v5 = vld [vmem:[#allocation8 + $0x1bf0] ss:$44 sps:$4 sm:$0xff]  }
 0x65b   :  { %13476 = vmatprep.subr.bf16.mxu1 %v21925_v45  ;;  %v21941_v44 = vld [vmem:[#allocation8 + $0x17d0] ss:$44 sps:$4 sm:$0xff]  }
 0x65c   :  { %v21952_v45 = vld [vmem:[#allocation8 + $0x1b9c] ss:$44 sps:$4 sm:$0xff]  }
 0x65d   :  { %13582 = vmatpush1.bf16.msra.mxu0 %v21926_v35  ;;  %v21949_v35 = vld [vmem:[#allocation8 + $0x177c] ss:$44 sps:$4 sm:$0xff]  }
 0x65e   :  { %13477 = vmatpush2.bf16.msra.mxu1 %v21923_v29  ;;  %13583 = vmatprep.subr.bf16.mxu0 %v21934_v36  ;;  %v21950_v29 = vld [vmem:[#allocation8 + $0x1b98] ss:$44 sps:$4 sm:$0xff]  }
 0x65f   :  { %13532 = vmatprep.subr.bf16.mxu1 %v21931_v3  ;;  %v21947_v36 = vld [vmem:[#allocation8 + $0x1778] ss:$44 sps:$4 sm:$0xff]  }
 0x660   :  { %v21958_v3 = vld [vmem:[#allocation8 + $0x28c] ss:$44 sps:$4 sm:$0xff]  }
 0x661   :  { %13479 = vmatmul.mubr.bf16.vlgmr.msra.gmra.mxu1 %v24152_v51  ;;  %13584 = vmatpush1.bf16.msra.mxu0 %v21932_v17  ;;  %v21955_v17 = vld [vmem:[#allocation8 + $0x1724] ss:$44 sps:$4 sm:$0xff]  }
 0x662   :  { %13533 = vmatpush1.bf16.msra.mxu1 %v21929_v16  ;;  %13564 = vmatprep.mubr.bf16.mxu1 %v23645_v15  ;;  %v21956_v16 = vld [vmem:[#allocation8 + $0x288] ss:$44 sps:$4 sm:$0xff]  }
 0x663   :  { %13534 = vmatprep.subr.bf16.mxu1 %v21937_v13  ;;  %13585 = vmatprep.subr.bf16.mxu0 %v21940_v38  ;;  %v21953_v13 = vld [vmem:[#allocation8 + $0x1720] ss:$44 sps:$4 sm:$0xff]  }
 0x664   :  { %v21964_v38 = vld [vmem:[#allocation8 + $0x234] ss:$44 sps:$4 sm:$0xff]  }
 0x665   :  { %13586 = vmatpush1.bf16.msra.mxu0 %v21938_v27  ;;  %v21961_v27 = vld [vmem:[#allocation8 + $0x16cc] ss:$44 sps:$4 sm:$0xff]  }
 0x666   :  { %13535 = vmatpush1.bf16.msra.mxu1 %v21935_v56  ;;  %13587 = vmatprep.subr.bf16.mxu0 %v21946_v37  ;;  %v21962_v56 = vld [vmem:[#allocation8 + $0x230] ss:$44 sps:$4 sm:$0xff]   ;;  %v21959_v37 = vld [vmem:[#allocation8 + $0x16c8] ss:$44 sps:$4 sm:$0xff]  }
 0x667   :  { %13536 = vmatprep.subr.bf16.mxu1 %v21943_v30  ;;  %v21970_v30 = vld [vmem:[#allocation8 + $0x1dc] ss:$44 sps:$4 sm:$0xff]  }
 0x669   :  { %13588 = vmatpush1.bf16.msra.mxu0 %v21944_v5  ;;  %v21967_v5 = vld [vmem:[#allocation8 + $0x1674] ss:$44 sps:$4 sm:$0xff]  }
 0x66a   :  { %13537 = vmatpush1.bf16.msra.mxu1 %v21941_v44  ;;  %13589 = vmatprep.subr.bf16.mxu0 %v21952_v45  ;;  %v21968_v44 = vld [vmem:[#allocation8 + $0x1d8] ss:$44 sps:$4 sm:$0xff]   ;;  %v21965_v45 = vld [vmem:[#allocation8 + $0x1670] ss:$44 sps:$4 sm:$0xff]  }
 0x66b   :  { %13538 = vmatprep.subr.bf16.mxu1 %v21949_v35  ;;  %v21976_v35 = vld [vmem:[#allocation8 + $0x184] ss:$44 sps:$4 sm:$0xff]  }
 0x66d   :  { %13590 = vmatpush1.bf16.msra.mxu0 %v21950_v29  ;;  %v21973_v29 = vld [vmem:[#allocation8 + $0x161c] ss:$44 sps:$4 sm:$0xff]  }
 0x66e   :  { %13539 = vmatpush1.bf16.msra.mxu1 %v21947_v36  ;;  %13618 = vmatprep.subr.bf16.mxu0 %v21958_v3  ;;  %v21974_v36 = vld [vmem:[#allocation8 + $0x180] ss:$44 sps:$4 sm:$0xff]   ;;  %v21971_v3 = vld [vmem:[#allocation8 + $0x1618] ss:$44 sps:$4 sm:$0xff]  }
 0x66f   :  { %13540 = vmatprep.subr.bf16.mxu1 %v21955_v17  ;;  %v21982_v17 = vld [vmem:[#allocation8 + $0x12c] ss:$44 sps:$4 sm:$0xff]  }
 0x670   :  { %13608 = vmatmul.mubr.bf16.vlgmr.msra.gmra.mxu0 %v23666_v54 }
 0x671   :  { %13619 = vmatpush1.bf16.msra.mxu0 %v21956_v16  ;;  %13650 = vmatprep.mubr.bf16.mxu0 %v23577_v58  ;;  %v21979_v16 = vld [vmem:[#allocation8 + $0x1b44] ss:$44 sps:$4 sm:$0xff]  }
 0x672   :  { %13541 = vmatpush1.bf16.msra.mxu1 %v21953_v13  ;;  %13620 = vmatprep.subr.bf16.mxu0 %v21964_v38  ;;  %v21980_v13 = vld [vmem:[#allocation8 + $0x128] ss:$44 sps:$4 sm:$0xff]   ;;  %v21977_v38 = vld [vmem:[#allocation8 + $0x1b40] ss:$44 sps:$4 sm:$0xff]  }
 0x673   :  { %13542 = vmatprep.subr.bf16.mxu1 %v21961_v27  ;;  %v21988_v27 = vld [vmem:[#allocation8 + $0xd4] ss:$44 sps:$4 sm:$0xff]  }
 0x675   :  { %13621 = vmatpush1.bf16.msra.mxu0 %v21962_v56  ;;  %v23800_v56 = vpop.f32.mrf.mxu1 }
 0x676   :  { %13543 = vmatpush1.bf16.msra.mxu1 %v21959_v37  ;;  %13622 = vmatprep.subr.bf16.mxu0 %v21970_v30  ;;  %24162 = vst [vmem:[#allocation51_spill] sm:$0xff] %v23800_v56  ;;  %v21985_v37 = vld [vmem:[#allocation8 + $0x1aec] ss:$44 sps:$4 sm:$0xff]  }
 0x677   :  { %13544 = vmatprep.subr.bf16.mxu1 %v21967_v5  ;;  %v21986_v5 = vld [vmem:[#allocation8 + $0xd0] ss:$44 sps:$4 sm:$0xff]   ;;  %v22139_v56 = vld [vmem:[#allocation8 + $0xde0] ss:$44 sps:$4 sm:$0xff]  }
 0x679   :  { %13623 = vmatpush1.bf16.msra.mxu0 %v21968_v44 }
 0x67a   :  { %13545 = vmatpush1.bf16.msra.mxu1 %v21965_v45  ;;  %13624 = vmatprep.subr.bf16.mxu0 %v21976_v35  ;;  %v21983_v45 = vld [vmem:[#allocation8 + $0x1ae8] ss:$44 sps:$4 sm:$0xff]  }
 0x67b   :  { %13546 = vmatprep.subr.bf16.mxu1 %v21973_v29  ;;  %v21994_v35 = vld [vmem:[#allocation8 + $0x7c] ss:$44 sps:$4 sm:$0xff]  }
 0x67d   :  { %13625 = vmatpush1.bf16.msra.mxu0 %v21974_v36  ;;  %v21991_v36 = vld [vmem:[#allocation8 + $0x1a94] ss:$44 sps:$4 sm:$0xff]  }
 0x67e   :  { %13547 = vmatpush1.bf16.msra.mxu1 %v21971_v3  ;;  %13626 = vmatprep.subr.bf16.mxu0 %v21982_v17  ;;  %v21992_v17 = vld [vmem:[#allocation8 + $0x78] ss:$44 sps:$4 sm:$0xff]  }
 0x67f   :  { %13548 = vmatprep.subr.bf16.mxu1 %v21979_v16  ;;  %v21989_v16 = vld [vmem:[#allocation8 + $0x1a90] ss:$44 sps:$4 sm:$0xff]  }
 0x681   :  { %v13265_v30 = vpop.f32.mrf.mxu1  ;;  %13627 = vmatpush1.bf16.msra.mxu0 %v21980_v13  ;;  %v22000_v13 = vld [vmem:[#allocation8 + $0x24] ss:$44 sps:$4 sm:$0xff]  }
 0x682   :  { %v13266_v44 = vadd.f32 %v13265_v30, %v23789_v12  ;;  %13549 = vmatpush2.bf16.msra.mxu1 %v21977_v38  ;;  %13628 = vmatprep.subr.bf16.mxu0 %v21988_v27  ;;  %v21998_v12 = vld [vmem:[#allocation8 + $0x20] ss:$44 sps:$4 sm:$0xff]   ;;  %v21995_v38 = vld [vmem:[#allocation8 + $0x1a38] ss:$44 sps:$4 sm:$0xff]   ;;  %v22004_v30 = vld [vmem:[#allocation8 + $0x548] ss:$44 sps:$4 sm:$0xff]  }
 0x683   :  { %v23803_v29 = vpop.f32.mrf.mxu1  ;;  %13550 = vmatprep.subr.bf16.mxu1 %v21985_v37  ;;  %v22006_v27 = vld [vmem:[#allocation8 + $0x54c] ss:$44 sps:$4 sm:$0xff]   ;;  %v22003_v37 = vld [vmem:[#allocation8 + $0x19e4] ss:$44 sps:$4 sm:$0xff]  }
 0x684   :  { %24163 = vst [vmem:[#allocation52_spill] sm:$0xff] %v23803_v29 }
 0x685   :  { %v13269_v3 = vpop.f32.mrf.mxu1  ;;  %13629 = vmatpush1.bf16.msra.mxu0 %v21986_v5  ;;  %v23806_v5 = vpop.f32.mrf.mxu0 }
 0x686   :  { %v13270_v0 = vadd.f32 %v13269_v3, %v23794_v23  ;;  %13551 = vmatpush2.bf16.msra.mxu1 %v21983_v45  ;;  %13630 = vmatprep.subr.bf16.mxu0 %v21994_v35  ;;  %24164 = vst [vmem:[#allocation53_spill] sm:$0xff] %v23806_v5  ;;  %v22001_v23 = vld [vmem:[#allocation8 + $0x19e0] ss:$44 sps:$4 sm:$0xff]  }
 0x687   :  { %13552 = vmatprep.subr.bf16.mxu1 %v21991_v36  ;;  %v22012_v45 = vld [vmem:[#allocation8 + $0x4f4] ss:$44 sps:$4 sm:$0xff]   ;;  %v22009_v35 = vld [vmem:[#allocation8 + $0x198c] ss:$44 sps:$4 sm:$0xff]  }
 0x689   :  { %13631 = vmatpush1.bf16.msra.mxu0 %v21992_v17  ;;  %v22010_v17 = vld [vmem:[#allocation8 + $0x4f0] ss:$44 sps:$4 sm:$0xff]  }
 0x68a   :  { %13553 = vmatpush2.bf16.msra.mxu1 %v21989_v16  ;;  %13632 = vmatprep.subr.bf16.mxu0 %v22000_v13  ;;  %v22007_v13 = vld [vmem:[#allocation8 + $0x1988] ss:$44 sps:$4 sm:$0xff]  }
 0x68b   :  { %13554 = vmatprep.subr.bf16.mxu1 %v21997_v33  ;;  %v22018_v33 = vld [vmem:[#allocation8 + $0x49c] ss:$44 sps:$4 sm:$0xff]  }
 0x68d   :  { %13633 = vmatpush1.bf16.msra.mxu0 %v21998_v12  ;;  %v22015_v12 = vld [vmem:[#allocation8 + $0x1934] ss:$44 sps:$4 sm:$0xff]  }
 0x68e   :  { %13555 = vmatpush2.bf16.msra.mxu1 %v21995_v38  ;;  %13634 = vmatprep.subr.bf16.mxu0 %v22006_v27  ;;  %v22016_v38 = vld [vmem:[#allocation8 + $0x498] ss:$44 sps:$4 sm:$0xff]   ;;  %v22013_v27 = vld [vmem:[#allocation8 + $0x1930] ss:$44 sps:$4 sm:$0xff]  }
 0x68f   :  { %13556 = vmatprep.subr.bf16.mxu1 %v22003_v37  ;;  %v22024_v37 = vld [vmem:[#allocation8 + $0x444] ss:$44 sps:$4 sm:$0xff]  }
 0x690   :  { %v13308_v36 = vpop.f32.mrf.mxu0 }
 0x691   :  { %v13309_v3 = vadd.f32 %v13308_v36, %v13266_v44  ;;  %13635 = vmatpush2.bf16.msra.mxu0 %v22004_v30  ;;  %v22021_v44 = vld [vmem:[#allocation8 + $0x18dc] ss:$44 sps:$4 sm:$0xff]   ;;  %v22022_v30 = vld [vmem:[#allocation8 + $0x440] ss:$44 sps:$4 sm:$0xff]  }
 0x692   :  { %13557 = vmatpush2.bf16.msra.mxu1 %v22001_v23  ;;  %v23808_v16 = vpop.f32.mrf.mxu0  ;;  %13636 = vmatprep.subr.bf16.mxu0 %v22012_v45  ;;  %v22019_v23 = vld [vmem:[#allocation8 + $0x18d8] ss:$44 sps:$4 sm:$0xff]  }
 0x693   :  { %24165 = vst [vmem:[#allocation54_spill] sm:$0xff] %v23808_v16  ;;  %13558 = vmatprep.subr.bf16.mxu1 %v22009_v35  ;;  %v22027_v36 = vld [vmem:[#allocation8 + $0x3ec] ss:$44 sps:$4 sm:$0xff]   ;;  %v22025_v35 = vld [vmem:[#allocation8 + $0x3e8] ss:$44 sps:$4 sm:$0xff]  }
 0x694   :  { %v13312_v29 = vpop.f32.mrf.mxu0  ;;  %v22030_v45 = vld [vmem:[#allocation8 + $0x80c] ss:$44 sps:$4 sm:$0xff]  }
 0x695   :  { %v13313_v62 = vadd.f32 %v13312_v29, %v13270_v0  ;;  %13637 = vmatpush2.bf16.msra.mxu0 %v22010_v17  ;;  %v22028_v0 = vld [vmem:[#allocation8 + $0x808] ss:$44 sps:$4 sm:$0xff]   ;;  %v23810_v29 = vpop.f32.mrf.mxu1  ;;  %v22040_v16 = vld [vmem:[#allocation8 + $0x758] ss:$44 sps:$4 sm:$0xff]  }
 0x696   :  { %13559 = vmatpush2.bf16.msra.mxu1 %v22007_v13  ;;  %13638 = vmatprep.subr.bf16.mxu0 %v22018_v33  ;;  %24166 = vst [vmem:[#allocation55_spill] sm:$0xff] %v23810_v29  ;;  %v22033_v17 = vld [vmem:[#allocation8 + $0x394] ss:$44 sps:$4 sm:$0xff]  }
 0x697   :  { %13560 = vmatprep.subr.bf16.mxu1 %v22015_v12  ;;  %v22036_v13 = vld [vmem:[#allocation8 + $0x7b4] ss:$44 sps:$4 sm:$0xff]   ;;  %v22031_v12 = vld [vmem:[#allocation8 + $0x390] ss:$44 sps:$4 sm:$0xff]  }
 0x698   :  { %v22043_v29 = vld [vmem:[#allocation8 + $0x2e0] ss:$44 sps:$4 sm:$0xff]  }
 0x699   :  { %13639 = vmatpush2.bf16.msra.mxu0 %v22016_v38 }
 0x69a   :  { %13561 = vmatpush2.bf16.msra.mxu1 %v22013_v27  ;;  %13640 = vmatprep.subr.bf16.mxu0 %v22024_v37  ;;  %v22034_v27 = vld [vmem:[#allocation8 + $0x7b0] ss:$44 sps:$4 sm:$0xff]  }
 0x69b   :  { %13562 = vmatprep.subr.bf16.mxu1 %v22021_v44  ;;  %v22039_v37 = vld [vmem:[#allocation8 + $0x33c] ss:$44 sps:$4 sm:$0xff]  }
 0x69d   :  { %13641 = vmatpush2.bf16.msra.mxu0 %v22022_v30  ;;  %v22042_v30 = vld [vmem:[#allocation8 + $0x75c] ss:$44 sps:$4 sm:$0xff]  }
 0x69e   :  { %13563 = vmatpush2.bf16.msra.mxu1 %v22019_v23  ;;  %13642 = vmatprep.subr.bf16.mxu0 %v22027_v36  ;;  %v22037_v36 = vld [vmem:[#allocation8 + $0x338] ss:$44 sps:$4 sm:$0xff]  }
 0x69f   :  { %13661 = vmatprep.subr.bf16.mxu1 %v22030_v45 }
 0x6a1   :  { %v13351_v33 = vpop.f32.mrf.mxu1  ;;  %13565 = vmatmul.mubr.bf16.vlgmr.msra.gmra.mxu1 %v23662_v10  ;;  %13643 = vmatpush2.bf16.msra.mxu0 %v22025_v35  ;;  %v22045_v35 = vld [vmem:[#allocation8 + $0x2e4] ss:$44 sps:$4 sm:$0xff]  }
 0x6a2   :  { %v13352_v38 = vadd.f32 %v13351_v33, %v13309_v3  ;;  %13662 = vmatpush1.bf16.msra.mxu1 %v22028_v0  ;;  %13693 = vmatprep.mubr.bf16.mxu1 %v23579_v46  ;;  %v22048_v3 = vld [vmem:[#allocation8 + $0x704] ss:$44 sps:$4 sm:$0xff]  }
 0x6a3   :  { %v23814_v44 = vpop.f32.mrf.mxu1  ;;  %13644 = vmatprep.subr.bf16.mxu0 %v22033_v17  ;;  %13663 = vmatprep.subr.bf16.mxu1 %v22036_v13  ;;  %v22046_v17 = vld [vmem:[#allocation8 + $0x700] ss:$44 sps:$4 sm:$0xff]  }
 0x6a4   :  { %24167 = vst [vmem:[#allocation56_spill] sm:$0xff] %v23814_v44  ;;  %v14126_v0 = vmax.f32 %v13352_v38, 0.0  ;;  %v22054_v13 = vld [vmem:[#allocation8 + $0xd8c] ss:$44 sps:$4 sm:$0xff]   ;;  %v22058_v38 = vld [vmem:[#allocation8 + $0xd30] ss:$44 sps:$4 sm:$0xff]  }
 0x6a5   :  { %v13355_v23 = vpop.f32.mrf.mxu1  ;;  %13645 = vmatpush2.bf16.msra.mxu0 %v22031_v12  ;;  %v22051_v12 = vld [vmem:[#allocation8 + $0x6ac] ss:$44 sps:$4 sm:$0xff]  }
 0x6a6   :  { %v13356_v45 = vadd.f32 %v13355_v23, %v13313_v62  ;;  %13664 = vmatpush1.bf16.msra.mxu1 %v22034_v27  ;;  %13646 = vmatprep.subr.bf16.mxu0 %v22039_v37  ;;  %v22052_v62 = vld [vmem:[#allocation8 + $0xd88] ss:$44 sps:$4 sm:$0xff]  }
 0x6a7   :  { %13665 = vmatprep.subr.bf16.mxu1 %v22042_v30  ;;  %v22049_v27 = vld [vmem:[#allocation8 + $0x6a8] ss:$44 sps:$4 sm:$0xff]  }
 0x6a8   :  { %v14137_v33 = vmax.f32 %v13356_v45, 0.0  ;;  %v22060_v37 = vld [vmem:[#allocation8 + $0xd34] ss:$44 sps:$4 sm:$0xff]   ;;  %v22066_v23 = vld [vmem:[#allocation8 + $0xcdc] ss:$44 sps:$4 sm:$0xff]  }
 0x6a9   :  { %13647 = vmatpush2.bf16.msra.mxu0 %v22037_v36  ;;  %v22057_v30 = vld [vmem:[#allocation8 + $0x654] ss:$44 sps:$4 sm:$0xff]   ;;  %v22063_v36 = vld [vmem:[#allocation8 + $0x5fc] ss:$44 sps:$4 sm:$0xff]   ;;  %v22061_v45 = vld [vmem:[#allocation8 + $0x5f8] ss:$44 sps:$4 sm:$0xff]  }
 0x6aa   :  { %v23816_v5 = vpack.c.bf16 %v14137_v33, %v14126_v0  ;;  %13666 = vmatpush1.bf16.msra.mxu1 %v22040_v16  ;;  %13648 = vmatprep.subr.bf16.mxu0 %v22045_v35  ;;  %v22055_v16 = vld [vmem:[#allocation8 + $0x650] ss:$44 sps:$4 sm:$0xff]   ;;  %v22070_v0 = vld [vmem:[#allocation8 + $0xc80] ss:$44 sps:$4 sm:$0xff]  }
 0x6ab   :  { %13667 = vmatprep.subr.bf16.mxu1 %v22048_v3  ;;  %v22072_v35 = vld [vmem:[#allocation8 + $0xc84] ss:$44 sps:$4 sm:$0xff]   ;;  %v22067_v33 = vld [vmem:[#allocation8 + $0x5a0] ss:$44 sps:$4 sm:$0xff]  }
 0x6ac   :  { %24168 = vst [vmem:[#allocation57_spill] sm:$0xff] %v23816_v5  ;;  %v22069_v3 = vld [vmem:[#allocation8 + $0x5a4] ss:$44 sps:$4 sm:$0xff]  }
 0x6ad   :  { %13649 = vmatpush2.bf16.msra.mxu0 %v22043_v29  ;;  %v22064_v29 = vld [vmem:[#allocation8 + $0xcd8] ss:$44 sps:$4 sm:$0xff]  }
 0x6ae   :  { %13668 = vmatpush1.bf16.msra.mxu1 %v22046_v17  ;;  %13704 = vmatprep.subr.bf16.mxu0 %v22054_v13  ;;  %v22078_v17 = vld [vmem:[#allocation8 + $0xc2c] ss:$44 sps:$4 sm:$0xff]  }
 0x6af   :  { %13669 = vmatprep.subr.bf16.mxu1 %v22051_v12  ;;  %v22075_v13 = vld [vmem:[#allocation8 + $0xacc] ss:$44 sps:$4 sm:$0xff]   ;;  %v22076_v12 = vld [vmem:[#allocation8 + $0xc28] ss:$44 sps:$4 sm:$0xff]  }
 0x6b0   :  { %13651 = vmatmul.mubr.bf16.vlgmr.msra.gmra.mxu0 %v24150_v41 }
 0x6b1   :  { %13705 = vmatpush1.bf16.msra.mxu0 %v22052_v62  ;;  %13736 = vmatprep.mubr.bf16.mxu0 %v23610_v55  ;;  %v22073_v62 = vld [vmem:[#allocation8 + $0xac8] ss:$44 sps:$4 sm:$0xff]  }
 0x6b2   :  { %13670 = vmatpush1.bf16.msra.mxu1 %v22049_v27  ;;  %13706 = vmatprep.subr.bf16.mxu0 %v22060_v37  ;;  %v22084_v27 = vld [vmem:[#allocation8 + $0xbd4] ss:$44 sps:$4 sm:$0xff]  }
 0x6b3   :  { %13671 = vmatprep.subr.bf16.mxu1 %v22057_v30  ;;  %v22081_v37 = vld [vmem:[#allocation8 + $0xa74] ss:$44 sps:$4 sm:$0xff]   ;;  %v22082_v30 = vld [vmem:[#allocation8 + $0xbd0] ss:$44 sps:$4 sm:$0xff]  }
 0x6b5   :  { %13707 = vmatpush1.bf16.msra.mxu0 %v22058_v38  ;;  %v22079_v38 = vld [vmem:[#allocation8 + $0xa70] ss:$44 sps:$4 sm:$0xff]  }
 0x6b6   :  { %13672 = vmatpush1.bf16.msra.mxu1 %v22055_v16  ;;  %13708 = vmatprep.subr.bf16.mxu0 %v22066_v23  ;;  %v22090_v16 = vld [vmem:[#allocation8 + $0xb7c] ss:$44 sps:$4 sm:$0xff]  }
 0x6b7   :  { %13673 = vmatprep.subr.bf16.mxu1 %v22063_v36  ;;  %v22087_v23 = vld [vmem:[#allocation8 + $0xa1c] ss:$44 sps:$4 sm:$0xff]   ;;  %v22088_v36 = vld [vmem:[#allocation8 + $0xb78] ss:$44 sps:$4 sm:$0xff]  }
 0x6b9   :  { %13709 = vmatpush1.bf16.msra.mxu0 %v22064_v29  ;;  %v22085_v29 = vld [vmem:[#allocation8 + $0xa18] ss:$44 sps:$4 sm:$0xff]  }
 0x6ba   :  { %13674 = vmatpush1.bf16.msra.mxu1 %v22061_v45  ;;  %13710 = vmatprep.subr.bf16.mxu0 %v22072_v35  ;;  %v22096_v45 = vld [vmem:[#allocation8 + $0xb24] ss:$44 sps:$4 sm:$0xff]  }
 0x6bb   :  { %13675 = vmatprep.subr.bf16.mxu1 %v22069_v3  ;;  %v22093_v35 = vld [vmem:[#allocation8 + $0x9c4] ss:$44 sps:$4 sm:$0xff]   ;;  %v22094_v3 = vld [vmem:[#allocation8 + $0xb20] ss:$44 sps:$4 sm:$0xff]  }
 0x6bd   :  { %13711 = vmatpush1.bf16.msra.mxu0 %v22070_v0  ;;  %v22091_v0 = vld [vmem:[#allocation8 + $0x9c0] ss:$44 sps:$4 sm:$0xff]  }
 0x6be   :  { %13676 = vmatpush1.bf16.msra.mxu1 %v22067_v33  ;;  %13712 = vmatprep.subr.bf16.mxu0 %v22078_v17  ;;  %v22102_v33 = vld [vmem:[#allocation8 + $0x104c] ss:$44 sps:$4 sm:$0xff]  }
 0x6bf   :  { %13677 = vmatprep.subr.bf16.mxu1 %v22075_v13  ;;  %v22099_v17 = vld [vmem:[#allocation8 + $0x96c] ss:$44 sps:$4 sm:$0xff]   ;;  %v22100_v13 = vld [vmem:[#allocation8 + $0x1048] ss:$44 sps:$4 sm:$0xff]  }
 0x6c1   :  { %13713 = vmatpush1.bf16.msra.mxu0 %v22076_v12  ;;  %v22097_v12 = vld [vmem:[#allocation8 + $0x968] ss:$44 sps:$4 sm:$0xff]  }
 0x6c2   :  { %13678 = vmatpush2.bf16.msra.mxu1 %v22073_v62  ;;  %13714 = vmatprep.subr.bf16.mxu0 %v22084_v27  ;;  %v22108_v62 = vld [vmem:[#allocation8 + $0xff4] ss:$44 sps:$4 sm:$0xff]  }
 0x6c3   :  { %13679 = vmatprep.subr.bf16.mxu1 %v22081_v37  ;;  %v22105_v27 = vld [vmem:[#allocation8 + $0x914] ss:$44 sps:$4 sm:$0xff]   ;;  %v22106_v37 = vld [vmem:[#allocation8 + $0xff0] ss:$44 sps:$4 sm:$0xff]  }
 0x6c5   :  { %13715 = vmatpush1.bf16.msra.mxu0 %v22082_v30  ;;  %v22103_v30 = vld [vmem:[#allocation8 + $0x910] ss:$44 sps:$4 sm:$0xff]  }
 0x6c6   :  { %13680 = vmatpush2.bf16.msra.mxu1 %v22079_v38  ;;  %13716 = vmatprep.subr.bf16.mxu0 %v22090_v16  ;;  %v22114_v38 = vld [vmem:[#allocation8 + $0xf9c] ss:$44 sps:$4 sm:$0xff]  }
 0x6c7   :  { %13681 = vmatprep.subr.bf16.mxu1 %v22087_v23  ;;  %v22111_v16 = vld [vmem:[#allocation8 + $0x8bc] ss:$44 sps:$4 sm:$0xff]   ;;  %v22112_v23 = vld [vmem:[#allocation8 + $0xf98] ss:$44 sps:$4 sm:$0xff]  }
 0x6c9   :  { %13717 = vmatpush1.bf16.msra.mxu0 %v22088_v36  ;;  %v22109_v36 = vld [vmem:[#allocation8 + $0x8b8] ss:$44 sps:$4 sm:$0xff]  }
 0x6ca   :  { %13682 = vmatpush2.bf16.msra.mxu1 %v22085_v29  ;;  %13718 = vmatprep.subr.bf16.mxu0 %v22096_v45  ;;  %v22120_v29 = vld [vmem:[#allocation8 + $0xf44] ss:$44 sps:$4 sm:$0xff]  }
 0x6cb   :  { %13683 = vmatprep.subr.bf16.mxu1 %v22093_v35  ;;  %v22117_v45 = vld [vmem:[#allocation8 + $0x864] ss:$44 sps:$4 sm:$0xff]   ;;  %v22118_v35 = vld [vmem:[#allocation8 + $0xf40] ss:$44 sps:$4 sm:$0xff]  }
 0x6cd   :  { %13719 = vmatpush1.bf16.msra.mxu0 %v22094_v3  ;;  %v22115_v3 = vld [vmem:[#allocation8 + $0x860] ss:$44 sps:$4 sm:$0xff]  }
 0x6ce   :  { %13684 = vmatpush2.bf16.msra.mxu1 %v22091_v0  ;;  %13720 = vmatprep.subr.bf16.mxu0 %v22102_v33  ;;  %v22123_v0 = vld [vmem:[#allocation8 + $0xeec] ss:$44 sps:$4 sm:$0xff]  }
 0x6cf   :  { %13685 = vmatprep.subr.bf16.mxu1 %v22099_v17  ;;  %v22126_v33 = vld [vmem:[#allocation8 + $0x130c] ss:$44 sps:$4 sm:$0xff]   ;;  %v23820_v17 = vpop.f32.mrf.mxu0 }
 0x6d0   :  { %24169 = vst [vmem:[#allocation58_spill] sm:$0xff] %v23820_v17 }
 0x6d1   :  { %13721 = vmatpush2.bf16.msra.mxu0 %v22100_v13  ;;  %v22121_v13 = vld [vmem:[#allocation8 + $0xee8] ss:$44 sps:$4 sm:$0xff]  }
 0x6d2   :  { %13686 = vmatpush2.bf16.msra.mxu1 %v22097_v12  ;;  %13722 = vmatprep.subr.bf16.mxu0 %v22108_v62  ;;  %v23822_v12 = vld [vmem:[#allocation10] sm:$0xff]  ;;  %v24170_v62 = vsub.s32 6, %v23279_v47 }
 0x6d3   :  { %13687 = vmatprep.subr.bf16.mxu1 %v22105_v27 }
 0x6d4   :  { %v7630_v27 = vrot.slane %v23822_v12, %v24170_v62 }
 0x6d5   :  { %13723 = vmatpush2.bf16.msra.mxu0 %v22106_v37  ;;  %v22124_v37 = vld [vmem:[#allocation8 + $0x1308] ss:$44 sps:$4 sm:$0xff]  }
 0x6d6   :  { %13688 = vmatpush2.bf16.msra.mxu1 %v22103_v30  ;;  %13724 = vmatprep.subr.bf16.mxu0 %v22114_v38  ;;  %v23827_v30 = vpop.f32.mrf.mxu1  ;;  %v13437_v38 = vpop.f32.mrf.mxu0 }
 0x6d7   :  { %13689 = vmatprep.subr.bf16.mxu1 %v22111_v16  ;;  %24171 = vst [vmem:[#allocation59_spill] sm:$0xff] %v23827_v30  ;;  %v22129_v16 = vld [vmem:[#allocation8 + $0xe94] ss:$44 sps:$4 sm:$0xff]   ;;  %v22133_v30 = vld [vmem:[#allocation8 + $0xe38] ss:$44 sps:$4 sm:$0xff]  }
 0x6d8   :  { %v23831_v62 = vpop.f32.mrf.mxu0 }
 0x6d9   :  { %13725 = vmatpush2.bf16.msra.mxu0 %v22112_v23  ;;  %v22132_v23 = vld [vmem:[#allocation8 + $0x12b4] ss:$44 sps:$4 sm:$0xff]  }
 0x6da   :  { %13690 = vmatpush2.bf16.msra.mxu1 %v22109_v36  ;;  %13726 = vmatprep.subr.bf16.mxu0 %v22120_v29  ;;  %v22127_v29 = vld [vmem:[#allocation8 + $0xe90] ss:$44 sps:$4 sm:$0xff]   ;;  %v13441_v17 = vpop.f32.mrf.mxu0 }
 0x6db   :  { %13691 = vmatprep.subr.bf16.mxu1 %v22117_v45 }
 0x6dd   :  { %13727 = vmatpush2.bf16.msra.mxu0 %v22118_v35  ;;  %v22130_v35 = vld [vmem:[#allocation8 + $0x12b0] ss:$44 sps:$4 sm:$0xff]  }
 0x6de   :  { %13692 = vmatpush2.bf16.msra.mxu1 %v22115_v3  ;;  %13728 = vmatprep.subr.bf16.mxu0 %v22123_v0  ;;  %v22135_v3 = vld [vmem:[#allocation8 + $0xe3c] ss:$44 sps:$4 sm:$0xff]  }
 0x6df   :  { %13747 = vmatprep.subr.bf16.mxu1 %v22126_v33  ;;  %v22138_v33 = vld [vmem:[#allocation8 + $0x125c] ss:$44 sps:$4 sm:$0xff]  }
 0x6e1   :  { %v13394_v36 = vpop.f32.mrf.mxu1  ;;  %13694 = vmatmul.mubr.bf16.vlgmr.msra.gmra.mxu1 %v24151_v20  ;;  %13729 = vmatpush2.bf16.msra.mxu0 %v22121_v13 }
 0x6e2   :  { %v13395_v45 = vadd.f32 %v13394_v36, %v7630_v27  ;;  %13748 = vmatpush1.bf16.msra.mxu1 %v22124_v37  ;;  %13779 = vmatprep.mubr.bf16.mxu1 %v23613_v26  ;;  %v22136_v37 = vld [vmem:[#allocation8 + $0x1258] ss:$44 sps:$4 sm:$0xff]  }
 0x6e3   :  { %v23833_v0 = vpop.f32.mrf.mxu1  ;;  %13730 = vmatprep.subr.bf16.mxu0 %v22129_v16  ;;  %13749 = vmatprep.subr.bf16.mxu1 %v22132_v23  ;;  %v22141_v36 = vld [vmem:[#allocation8 + $0xde4] ss:$44 sps:$4 sm:$0xff]   ;;  %v22142_v16 = vld [vmem:[#allocation8 + $0x1200] ss:$44 sps:$4 sm:$0xff]  }
 0x6e4   :  { %v23835_v5 = vadd.f32 %v13437_v38, %v13395_v45  ;;  %v22150_v38 = vld [vmem:[#allocation8 + $0x188c] ss:$44 sps:$4 sm:$0xff]   ;;  %v22153_v45 = vld [vmem:[#allocation8 + $0x1154] ss:$44 sps:$4 sm:$0xff]  }
 0x6e5   :  { %v13398_v44 = vpop.f32.mrf.mxu1  ;;  %13731 = vmatpush2.bf16.msra.mxu0 %v22127_v29  ;;  %v22147_v23 = vld [vmem:[#allocation8 + $0x11ac] ss:$44 sps:$4 sm:$0xff]   ;;  %v22148_v29 = vld [vmem:[#allocation8 + $0x1888] ss:$44 sps:$4 sm:$0xff]  }
 0x6e6   :  { %v13399_v13 = vadd.f32 %v13398_v44, %v7630_v27  ;;  %13750 = vmatpush1.bf16.msra.mxu1 %v22130_v35  ;;  %13732 = vmatprep.subr.bf16.mxu0 %v22135_v3  ;;  %v22145_v44 = vld [vmem:[#allocation8 + $0x11a8] ss:$44 sps:$4 sm:$0xff]   ;;  %v22157_v3 = vld [vmem:[#allocation8 + $0x10f8] ss:$44 sps:$4 sm:$0xff]  }
 0x6e7   :  { %13751 = vmatprep.subr.bf16.mxu1 %v22138_v33  ;;  %v22156_v27 = vld [vmem:[#allocation8 + $0x1834] ss:$44 sps:$4 sm:$0xff]   ;;  %v22162_v35 = vld [vmem:[#allocation8 + $0x17dc] ss:$44 sps:$4 sm:$0xff]   ;;  %v22168_v33 = vld [vmem:[#allocation8 + $0x1784] ss:$44 sps:$4 sm:$0xff]  }
 0x6e8   :  { %v23837_v49 = vadd.f32 %v13441_v17, %v13399_v13  ;;  %v22154_v17 = vld [vmem:[#allocation8 + $0x1830] ss:$44 sps:$4 sm:$0xff]  }
 0x6e9   :  { %13733 = vmatpush2.bf16.msra.mxu0 %v22133_v30  ;;  %v22151_v30 = vld [vmem:[#allocation8 + $0x1150] ss:$44 sps:$4 sm:$0xff]  }
 0x6ea   :  { %13752 = vmatpush1.bf16.msra.mxu1 %v22136_v37  ;;  %13734 = vmatprep.subr.bf16.mxu0 %v22141_v36  ;;  %v22165_v13 = vld [vmem:[#allocation8 + $0x10a4] ss:$44 sps:$4 sm:$0xff]   ;;  %v22166_v37 = vld [vmem:[#allocation8 + $0x1780] ss:$44 sps:$4 sm:$0xff]  }
 0x6eb   :  { %13753 = vmatprep.subr.bf16.mxu1 %v22144_v32  ;;  %v22159_v32 = vld [vmem:[#allocation8 + $0x10fc] ss:$44 sps:$4 sm:$0xff]   ;;  %v22163_v36 = vld [vmem:[#allocation8 + $0x10a0] ss:$44 sps:$4 sm:$0xff]  }
 0x6ed   :  { %13735 = vmatpush2.bf16.msra.mxu0 %v22139_v56  ;;  %v22160_v56 = vld [vmem:[#allocation8 + $0x17d8] ss:$44 sps:$4 sm:$0xff]  }
 0x6ee   :  { %13754 = vmatpush1.bf16.msra.mxu1 %v22142_v16  ;;  %13790 = vmatprep.subr.bf16.mxu0 %v22150_v38  ;;  %v22174_v16 = vld [vmem:[#allocation8 + $0x172c] ss:$44 sps:$4 sm:$0xff]  }
 0x6ef   :  { %13755 = vmatprep.subr.bf16.mxu1 %v22147_v23  ;;  %v22171_v38 = vld [vmem:[#allocation8 + $0x15cc] ss:$44 sps:$4 sm:$0xff]   ;;  %v22172_v23 = vld [vmem:[#allocation8 + $0x1728] ss:$44 sps:$4 sm:$0xff]  }
 0x6f0   :  { %13737 = vmatmul.mubr.bf16.vlgmr.msra.gmra.mxu0 %v24152_v51 }
 0x6f1   :  { %13791 = vmatpush1.bf16.msra.mxu0 %v22148_v29  ;;  %13822 = vmatprep.mubr.bf16.mxu0 %v23645_v15  ;;  %v22169_v29 = vld [vmem:[#allocation8 + $0x15c8] ss:$44 sps:$4 sm:$0xff]  }
 0x6f2   :  { %13756 = vmatpush1.bf16.msra.mxu1 %v22145_v44  ;;  %13792 = vmatprep.subr.bf16.mxu0 %v22156_v27  ;;  %v22180_v44 = vld [vmem:[#allocation8 + $0x16d4] ss:$44 sps:$4 sm:$0xff]  }
 0x6f3   :  { %13757 = vmatprep.subr.bf16.mxu1 %v22153_v45  ;;  %v22177_v27 = vld [vmem:[#allocation8 + $0x1574] ss:$44 sps:$4 sm:$0xff]   ;;  %v22178_v45 = vld [vmem:[#allocation8 + $0x16d0] ss:$44 sps:$4 sm:$0xff]  }
 0x6f5   :  { %13793 = vmatpush1.bf16.msra.mxu0 %v22154_v17  ;;  %v22175_v17 = vld [vmem:[#allocation8 + $0x1570] ss:$44 sps:$4 sm:$0xff]  }
 0x6f6   :  { %13758 = vmatpush1.bf16.msra.mxu1 %v22151_v30  ;;  %13794 = vmatprep.subr.bf16.mxu0 %v22162_v35  ;;  %v22186_v30 = vld [vmem:[#allocation8 + $0x167c] ss:$44 sps:$4 sm:$0xff]  }
 0x6f7   :  { %13759 = vmatprep.subr.bf16.mxu1 %v22159_v32  ;;  %v22183_v35 = vld [vmem:[#allocation8 + $0x151c] ss:$44 sps:$4 sm:$0xff]   ;;  %v22184_v32 = vld [vmem:[#allocation8 + $0x1678] ss:$44 sps:$4 sm:$0xff]  }
 0x6f9   :  { %13795 = vmatpush1.bf16.msra.mxu0 %v22160_v56  ;;  %v22181_v56 = vld [vmem:[#allocation8 + $0x1518] ss:$44 sps:$4 sm:$0xff]  }
 0x6fa   :  { %13760 = vmatpush1.bf16.msra.mxu1 %v22157_v3  ;;  %13796 = vmatprep.subr.bf16.mxu0 %v22168_v33  ;;  %v22192_v3 = vld [vmem:[#allocation8 + $0x1624] ss:$44 sps:$4 sm:$0xff]  }
 0x6fb   :  { %13761 = vmatprep.subr.bf16.mxu1 %v22165_v13  ;;  %v22189_v33 = vld [vmem:[#allocation8 + $0x14c4] ss:$44 sps:$4 sm:$0xff]   ;;  %v22190_v13 = vld [vmem:[#allocation8 + $0x1620] ss:$44 sps:$4 sm:$0xff]  }
 0x6fd   :  { %13797 = vmatpush1.bf16.msra.mxu0 %v22166_v37  ;;  %v22187_v37 = vld [vmem:[#allocation8 + $0x14c0] ss:$44 sps:$4 sm:$0xff]  }
 0x6fe   :  { %13762 = vmatpush1.bf16.msra.mxu1 %v22163_v36  ;;  %13798 = vmatprep.subr.bf16.mxu0 %v22174_v16  ;;  %v22198_v36 = vld [vmem:[#allocation8 + $0x1b4c] ss:$44 sps:$4 sm:$0xff]  }
 0x6ff   :  { %13763 = vmatprep.subr.bf16.mxu1 %v22171_v38  ;;  %v22195_v16 = vld [vmem:[#allocation8 + $0x146c] ss:$44 sps:$4 sm:$0xff]   ;;  %v22196_v38 = vld [vmem:[#allocation8 + $0x1b48] ss:$44 sps:$4 sm:$0xff]  }
 0x701   :  { %13799 = vmatpush1.bf16.msra.mxu0 %v22172_v23  ;;  %v22193_v23 = vld [vmem:[#allocation8 + $0x1468] ss:$44 sps:$4 sm:$0xff]  }
 0x702   :  { %13764 = vmatpush2.bf16.msra.mxu1 %v22169_v29  ;;  %13800 = vmatprep.subr.bf16.mxu0 %v22180_v44  ;;  %v22204_v29 = vld [vmem:[#allocation8 + $0x1af4] ss:$44 sps:$4 sm:$0xff]  }
 0x703   :  { %13765 = vmatprep.subr.bf16.mxu1 %v22177_v27  ;;  %v22201_v44 = vld [vmem:[#allocation8 + $0x1414] ss:$44 sps:$4 sm:$0xff]   ;;  %v22202_v27 = vld [vmem:[#allocation8 + $0x1af0] ss:$44 sps:$4 sm:$0xff]  }
 0x705   :  { %13801 = vmatpush1.bf16.msra.mxu0 %v22178_v45  ;;  %v22199_v45 = vld [vmem:[#allocation8 + $0x1410] ss:$44 sps:$4 sm:$0xff]  }
 0x706   :  { %13766 = vmatpush2.bf16.msra.mxu1 %v22175_v17  ;;  %13802 = vmatprep.subr.bf16.mxu0 %v22186_v30  ;;  %v22210_v17 = vld [vmem:[#allocation8 + $0x1a9c] ss:$44 sps:$4 sm:$0xff]  }
 0x707   :  { %13767 = vmatprep.subr.bf16.mxu1 %v22183_v35  ;;  %v22207_v30 = vld [vmem:[#allocation8 + $0x13bc] ss:$44 sps:$4 sm:$0xff]   ;;  %v22208_v35 = vld [vmem:[#allocation8 + $0x1a98] ss:$44 sps:$4 sm:$0xff]  }
 0x709   :  { %13803 = vmatpush1.bf16.msra.mxu0 %v22184_v32  ;;  %v22205_v32 = vld [vmem:[#allocation8 + $0x13b8] ss:$44 sps:$4 sm:$0xff]  }
 0x70a   :  { %13768 = vmatpush2.bf16.msra.mxu1 %v22181_v56  ;;  %13804 = vmatprep.subr.bf16.mxu0 %v22192_v3  ;;  %v22216_v56 = vld [vmem:[#allocation8 + $0x1a44] ss:$44 sps:$4 sm:$0xff]  }
 0x70b   :  { %13769 = vmatprep.subr.bf16.mxu1 %v22189_v33  ;;  %v22213_v3 = vld [vmem:[#allocation8 + $0x1364] ss:$44 sps:$4 sm:$0xff]   ;;  %v22214_v33 = vld [vmem:[#allocation8 + $0x1a40] ss:$44 sps:$4 sm:$0xff]  }
 0x70d   :  { %13805 = vmatpush1.bf16.msra.mxu0 %v22190_v13  ;;  %v22211_v13 = vld [vmem:[#allocation8 + $0x1360] ss:$44 sps:$4 sm:$0xff]  }
 0x70e   :  { %13770 = vmatpush2.bf16.msra.mxu1 %v22187_v37  ;;  %13806 = vmatprep.subr.bf16.mxu0 %v22198_v36  ;;  %v22219_v37 = vld [vmem:[#allocation8 + $0x19ec] ss:$44 sps:$4 sm:$0xff]  }
 0x70f   :  { %13771 = vmatprep.subr.bf16.mxu1 %v22195_v16  ;;  %v22222_v36 = vld [vmem:[#allocation8 + $0x1e0c] ss:$44 sps:$4 sm:$0xff]   ;;  %v23841_v16 = vpop.f32.mrf.mxu0 }
 0x711   :  { %13807 = vmatpush2.bf16.msra.mxu0 %v22196_v38  ;;  %v22217_v38 = vld [vmem:[#allocation8 + $0x19e8] ss:$44 sps:$4 sm:$0xff]  }
 0x712   :  { %13772 = vmatpush2.bf16.msra.mxu1 %v22193_v23  ;;  %13808 = vmatprep.subr.bf16.mxu0 %v22204_v29  ;;  %v22220_v23 = vld [vmem:[#allocation8 + $0x1e08] ss:$44 sps:$4 sm:$0xff]  }
 0x713   :  { %13773 = vmatprep.subr.bf16.mxu1 %v22201_v44  ;;  %v22225_v29 = vld [vmem:[#allocation8 + $0x1994] ss:$44 sps:$4 sm:$0xff]   ;;  %v23843_v44 = vpop.f32.mrf.mxu1 }
 0x715   :  { %13809 = vmatpush2.bf16.msra.mxu0 %v22202_v27  ;;  %v13523_v27 = vpop.f32.mrf.mxu0 }
 0x716   :  { %13774 = vmatpush2.bf16.msra.mxu1 %v22199_v45  ;;  %13810 = vmatprep.subr.bf16.mxu0 %v22210_v17  ;;  %v22228_v45 = vld [vmem:[#allocation8 + $0x1db4] ss:$44 sps:$4 sm:$0xff]  }
 0x717   :  { %13775 = vmatprep.subr.bf16.mxu1 %v22207_v30  ;;  %v22223_v30 = vld [vmem:[#allocation8 + $0x1990] ss:$44 sps:$4 sm:$0xff]  }
 0x719   :  { %13811 = vmatpush2.bf16.msra.mxu0 %v22208_v35 }
 0x71a   :  { %13776 = vmatpush2.bf16.msra.mxu1 %v22205_v32  ;;  %13812 = vmatprep.subr.bf16.mxu0 %v22216_v56  ;;  %v22226_v32 = vld [vmem:[#allocation8 + $0x1db0] ss:$44 sps:$4 sm:$0xff]  }
 0x71b   :  { %13777 = vmatprep.subr.bf16.mxu1 %v22213_v3  ;;  %v22231_v56 = vld [vmem:[#allocation8 + $0x193c] ss:$44 sps:$4 sm:$0xff]   ;;  %v23847_v3 = vpop.f32.mrf.mxu0 }
 0x71d   :  { %13813 = vmatpush2.bf16.msra.mxu0 %v22214_v33 }
 0x71e   :  { %13778 = vmatpush2.bf16.msra.mxu1 %v22211_v13  ;;  %13814 = vmatprep.subr.bf16.mxu0 %v22219_v37  ;;  %v22234_v13 = vld [vmem:[#allocation8 + $0x1d5c] ss:$44 sps:$4 sm:$0xff]  }
 0x71f   :  { %13833 = vmatprep.subr.bf16.mxu1 %v22222_v36 }
 0x721   :  { %v13480_v17 = vpop.f32.mrf.mxu1  ;;  %13780 = vmatmul.mubr.bf16.vlgmr.msra.gmra.mxu1 %v23571_v63  ;;  %13815 = vmatpush2.bf16.msra.mxu0 %v22217_v38  ;;  %v22229_v38 = vld [vmem:[#allocation8 + $0x1938] ss:$44 sps:$4 sm:$0xff]  }
 0x722   :  { %v13481_v35 = vadd.f32 %v13480_v17, %v23835_v5  ;;  %13834 = vmatpush1.bf16.msra.mxu1 %v22220_v23  ;;  %13816 = vmatprep.subr.bf16.mxu0 %v22225_v29  ;;  %v22232_v5 = vld [vmem:[#allocation8 + $0x1d58] ss:$44 sps:$4 sm:$0xff]   ;;  %v13527_v29 = vpop.f32.mrf.mxu0 }
 0x723   :  { %v23849_v33 = vpop.f32.mrf.mxu1  ;;  %13835 = vmatprep.subr.bf16.mxu1 %v22228_v45  ;;  %13865 = vmatprep.mubr.bf16.mxu1 %v24148_v19  ;;  %v22237_v23 = vld [vmem:[#allocation8 + $0x18e4] ss:$44 sps:$4 sm:$0xff]   ;;  %v22235_v45 = vld [vmem:[#allocation8 + $0x18e0] ss:$44 sps:$4 sm:$0xff]  }
 0x724   :  { %v23852_v37 = vadd.f32 %v13523_v27, %v13481_v35  ;;  %v22240_v17 = vld [vmem:[#allocation8 + $0x1d04] ss:$44 sps:$4 sm:$0xff]   ;;  %v22238_v27 = vld [vmem:[#allocation8 + $0x1d00] ss:$44 sps:$4 sm:$0xff]  }
 0x725   :  { %v13484_v36 = vpop.f32.mrf.mxu1  ;;  %13817 = vmatpush2.bf16.msra.mxu0 %v22223_v30  ;;  %v22244_v35 = vld [vmem:[#allocation8 + $0xad0] ss:$44 sps:$4 sm:$0xff]   ;;  %v22243_v30 = vld [vmem:[#allocation8 + $0x1cac] ss:$44 sps:$4 sm:$0xff]  }
 0x726   :  { %v13485_v39 = vadd.f32 %v13484_v36, %v23837_v49  ;;  %13836 = vmatpush1.bf16.msra.mxu1 %v22226_v32  ;;  %13818 = vmatprep.subr.bf16.mxu0 %v22231_v56  ;;  %v22245_v19 = vld [vmem:[#allocation8 + $0x810] ss:$44 sps:$4 sm:$0xff]   ;;  %v22241_v49 = vld [vmem:[#allocation8 + $0x1ca8] ss:$44 sps:$4 sm:$0xff]   ;;  %v22249_v32 = vld [vmem:[#allocation8 + $0xa78] ss:$44 sps:$4 sm:$0xff]  }
 0x727   :  { %13837 = vmatprep.subr.bf16.mxu1 %v22234_v13  ;;  %v22248_v56 = vld [vmem:[#allocation8 + $0x1c54] ss:$44 sps:$4 sm:$0xff]   ;;  %v22246_v13 = vld [vmem:[#allocation8 + $0x1c50] ss:$44 sps:$4 sm:$0xff]  }
 0x728   :  { %v23855_v40 = vadd.f32 %v13527_v29, %v13485_v39  ;;  %v22250_v39 = vld [vmem:[#allocation8 + $0x7b8] ss:$44 sps:$4 sm:$0xff]   ;;  %v22254_v36 = vld [vmem:[#allocation8 + $0xa20] ss:$44 sps:$4 sm:$0xff]   ;;  %v22259_v29 = vld [vmem:[#allocation8 + $0x9c8] ss:$44 sps:$4 sm:$0xff]  }
 0x729   :  { %13819 = vmatpush2.bf16.msra.mxu0 %v22229_v38  ;;  %v22253_v38 = vld [vmem:[#allocation8 + $0x1bfc] ss:$44 sps:$4 sm:$0xff]  }
 0x72a   :  { %13838 = vmatpush1.bf16.msra.mxu1 %v22232_v5  ;;  %13820 = vmatprep.subr.bf16.mxu0 %v22237_v23  ;;  %v22255_v5 = vld [vmem:[#allocation8 + $0x760] ss:$44 sps:$4 sm:$0xff]   ;;  %v22251_v23 = vld [vmem:[#allocation8 + $0x1bf8] ss:$44 sps:$4 sm:$0xff]  }
 0x72b   :  { %13839 = vmatprep.subr.bf16.mxu1 %v22240_v17  ;;  %v22258_v17 = vld [vmem:[#allocation8 + $0x1ba4] ss:$44 sps:$4 sm:$0xff]  }
 0x72d   :  { %13821 = vmatpush2.bf16.msra.mxu0 %v22235_v45  ;;  %v22260_v45 = vld [vmem:[#allocation8 + $0x708] ss:$44 sps:$4 sm:$0xff]  }
 0x72e   :  { %13840 = vmatpush1.bf16.msra.mxu1 %v22238_v27  ;;  %19441 = vmatprep.subr.bf16.mxu0 %v22244_v35  ;;  %v22261_v27 = vld [vmem:[#allocation8 + $0x550] ss:$44 sps:$4 sm:$0xff]  }
 0x72f   :  { %13841 = vmatprep.subr.bf16.mxu1 %v22243_v30  ;;  %v22264_v35 = vld [vmem:[#allocation8 + $0x6b0] ss:$44 sps:$4 sm:$0xff]  }
 0x730   :  { %13823 = vmatmul.mubr.bf16.vlgmr.msra.gmra.mxu0 %v23662_v10  ;;  %v22263_v30 = vld [vmem:[#allocation8 + $0x290] ss:$44 sps:$4 sm:$0xff]  }
 0x731   :  { %19442 = vmatpush3.bf16.msra.mxu0 %v22245_v19  ;;  %13949 = vmatprep.mubr.bf16.mxu0 %v23579_v46  ;;  %v22256_v19 = vld [vmem:[#allocation8 + $0x1ba0] ss:$44 sps:$4 sm:$0xff]   ;;  %v22262_v46 = vld [vmem:[#allocation8 + $0x970] ss:$44 sps:$4 sm:$0xff]  }
 0x732   :  { %13842 = vmatpush1.bf16.msra.mxu1 %v22241_v49  ;;  %19443 = vmatprep.subr.bf16.mxu0 %v22249_v32  ;;  %v22265_v49 = vld [vmem:[#allocation8 + $0x4f8] ss:$44 sps:$4 sm:$0xff]  }
 0x733   :  { %13843 = vmatprep.subr.bf16.mxu1 %v22248_v56  ;;  %v22266_v32 = vld [vmem:[#allocation8 + $0x918] ss:$44 sps:$4 sm:$0xff]  }
 0x734   :  { %v22268_v56 = vld [vmem:[#allocation8 + $0x658] ss:$44 sps:$4 sm:$0xff]  }
 0x735   :  { %19444 = vmatpush3.bf16.msra.mxu0 %v22250_v39  ;;  %v22267_v39 = vld [vmem:[#allocation8 + $0x238] ss:$44 sps:$4 sm:$0xff]  }
 0x736   :  { %13844 = vmatpush1.bf16.msra.mxu1 %v22246_v13  ;;  %19445 = vmatprep.subr.bf16.mxu0 %v22254_v36  ;;  %v22270_v13 = vld [vmem:[#allocation8 + $0x8c0] ss:$44 sps:$4 sm:$0xff]  }
 0x737   :  { %13845 = vmatprep.subr.bf16.mxu1 %v22253_v38  ;;  %v22269_v36 = vld [vmem:[#allocation8 + $0x4a0] ss:$44 sps:$4 sm:$0xff]  }
 0x738   :  { %v22272_v38 = vld [vmem:[#allocation8 + $0x600] ss:$44 sps:$4 sm:$0xff]  }
 0x739   :  { %19446 = vmatpush3.bf16.msra.mxu0 %v22255_v5  ;;  %v22271_v5 = vld [vmem:[#allocation8 + $0x1e0] ss:$44 sps:$4 sm:$0xff]  }
 0x73a   :  { %13846 = vmatpush1.bf16.msra.mxu1 %v22251_v23  ;;  %19447 = vmatprep.subr.bf16.mxu0 %v22259_v29  ;;  %v22274_v23 = vld [vmem:[#allocation8 + $0x868] ss:$44 sps:$4 sm:$0xff]  }
 0x73b   :  { %13847 = vmatprep.subr.bf16.mxu1 %v22258_v17  ;;  %v22273_v29 = vld [vmem:[#allocation8 + $0x448] ss:$44 sps:$4 sm:$0xff]  }
 0x73c   :  { %v22276_v17 = vld [vmem:[#allocation8 + $0x5a8] ss:$44 sps:$4 sm:$0xff]  }
 0x73d   :  { %19448 = vmatpush3.bf16.msra.mxu0 %v22260_v45  ;;  %v22275_v45 = vld [vmem:[#allocation8 + $0x188] ss:$44 sps:$4 sm:$0xff]  }
 0x73e   :  { %13848 = vmatpush1.bf16.msra.mxu1 %v22256_v19  ;;  %19449 = vmatprep.subr.bf16.mxu0 %v22262_v46  ;;  %v22278_v19 = vld [vmem:[#allocation8 + $0x15d0] ss:$44 sps:$4 sm:$0xff]  }
 0x73f   :  { %19419 = vmatprep.subr.bf16.mxu1 %v22261_v27  ;;  %v22280_v46 = vld [vmem:[#allocation8 + $0x1310] ss:$44 sps:$4 sm:$0xff]  }
 0x740   :  { %v22279_v27 = vld [vmem:[#allocation8 + $0x130] ss:$44 sps:$4 sm:$0xff]  }
 0x741   :  { %13866 = vmatmul.mubr.bf16.vlgmr.msra.gmra.mxu1 %v23666_v54  ;;  %19450 = vmatpush3.bf16.msra.mxu0 %v22264_v35  ;;  %v22282_v35 = vld [vmem:[#allocation8 + $0x1578] ss:$44 sps:$4 sm:$0xff]  }
 0x742   :  { %19420 = vmatpush3.bf16.msra.mxu1 %v22263_v30  ;;  %13908 = vmatprep.mubr.bf16.mxu1 %v23577_v58  ;;  %v22277_v58 = vld [vmem:[#allocation8 + $0x3f0] ss:$44 sps:$4 sm:$0xff]   ;;  %v22281_v30 = vld [vmem:[#allocation8 + $0x398] ss:$44 sps:$4 sm:$0xff]  }
 0x743   :  { %19421 = vmatprep.subr.bf16.mxu1 %v22265_v49  ;;  %19451 = vmatprep.subr.bf16.mxu0 %v22266_v32  ;;  %v22284_v49 = vld [vmem:[#allocation8 + $0x12b8] ss:$44 sps:$4 sm:$0xff]  }
 0x744   :  { %v22283_v32 = vld [vmem:[#allocation8 + $0xd8] ss:$44 sps:$4 sm:$0xff]  }
 0x745   :  { %19452 = vmatpush3.bf16.msra.mxu0 %v22268_v56  ;;  %v22286_v56 = vld [vmem:[#allocation8 + $0x1520] ss:$44 sps:$4 sm:$0xff]  }
 0x746   :  { %19422 = vmatpush3.bf16.msra.mxu1 %v22267_v39  ;;  %19453 = vmatprep.subr.bf16.mxu0 %v22270_v13  ;;  %v22285_v39 = vld [vmem:[#allocation8 + $0x340] ss:$44 sps:$4 sm:$0xff]  }
 0x747   :  { %19423 = vmatprep.subr.bf16.mxu1 %v22269_v36  ;;  %v22288_v13 = vld [vmem:[#allocation8 + $0x1260] ss:$44 sps:$4 sm:$0xff]  }
 0x748   :  { %v22287_v36 = vld [vmem:[#allocation8 + $0x80] ss:$44 sps:$4 sm:$0xff]  }
 0x749   :  { %19454 = vmatpush3.bf16.msra.mxu0 %v22272_v38  ;;  %v22290_v38 = vld [vmem:[#allocation8 + $0x14c8] ss:$44 sps:$4 sm:$0xff]  }
 0x74a   :  { %19424 = vmatpush3.bf16.msra.mxu1 %v22271_v5  ;;  %19455 = vmatprep.subr.bf16.mxu0 %v22274_v23  ;;  %v22289_v5 = vld [vmem:[#allocation8 + $0x2e8] ss:$44 sps:$4 sm:$0xff]   ;;  %v22294_v23 = vld [vmem:[#allocation8 + $0x1470] ss:$44 sps:$4 sm:$0xff]  }
 0x74b   :  { %19425 = vmatprep.subr.bf16.mxu1 %v22273_v29  ;;  %v22293_v29 = vld [vmem:[#allocation8 + $0x1050] ss:$44 sps:$4 sm:$0xff]  }
 0x74d   :  { %19456 = vmatpush3.bf16.msra.mxu0 %v22276_v17  ;;  %v23863_v17 = vpop.f32.mrf.mxu0 }
 0x74e   :  { %19426 = vmatpush3.bf16.msra.mxu1 %v22275_v45  ;;  %19485 = vmatprep.subr.bf16.mxu0 %v22278_v19  ;;  %v22296_v45 = vld [vmem:[#allocation8 + $0x11b0] ss:$44 sps:$4 sm:$0xff]  }
 0x74f   :  { %19427 = vmatprep.subr.bf16.mxu1 %v22277_v58  ;;  %v22295_v19 = vld [vmem:[#allocation8 + $0xd90] ss:$44 sps:$4 sm:$0xff]   ;;  %v23865_v58 = vpop.f32.mrf.mxu1 }
 0x750   :  { %13950 = vmatmul.mubr.bf16.vlgmr.msra.gmra.mxu0 %v24151_v20  ;;  %v22292_v20 = vld [vmem:[#allocation8 + $0x1208] ss:$44 sps:$4 sm:$0xff]  }
 0x751   :  { %19486 = vmatpush3.bf16.msra.mxu0 %v22280_v46  ;;  %14031 = vmatprep.mubr.bf16.mxu0 %v23613_v26  ;;  %v22291_v26 = vld [vmem:[#allocation8 + $0x28] ss:$44 sps:$4 sm:$0xff]   ;;  %v13609_v46 = vpop.f32.mrf.mxu0 }
 0x752   :  { %19428 = vmatpush3.bf16.msra.mxu1 %v22279_v27  ;;  %19487 = vmatprep.subr.bf16.mxu0 %v22282_v35  ;;  %v22297_v27 = vld [vmem:[#allocation8 + $0xff8] ss:$44 sps:$4 sm:$0xff]  }
 0x753   :  { %19429 = vmatprep.subr.bf16.mxu1 %v22281_v30  ;;  %v22298_v35 = vld [vmem:[#allocation8 + $0x1418] ss:$44 sps:$4 sm:$0xff]  }
 0x755   :  { %19488 = vmatpush3.bf16.msra.mxu0 %v22284_v49  ;;  %v22300_v49 = vld [vmem:[#allocation8 + $0x1158] ss:$44 sps:$4 sm:$0xff]  }
 0x756   :  { %19430 = vmatpush3.bf16.msra.mxu1 %v22283_v32  ;;  %19489 = vmatprep.subr.bf16.mxu0 %v22286_v56  ;;  %v22299_v56 = vld [vmem:[#allocation8 + $0xd38] ss:$44 sps:$4 sm:$0xff]  }
 0x757   :  { %19431 = vmatprep.subr.bf16.mxu1 %v22285_v39  ;;  %v22302_v39 = vld [vmem:[#allocation8 + $0x13c0] ss:$44 sps:$4 sm:$0xff]  }
 0x759   :  { %19490 = vmatpush3.bf16.msra.mxu0 %v22288_v13  ;;  %v23870_v13 = vpop.f32.mrf.mxu0 }
 0x75a   :  { %19432 = vmatpush3.bf16.msra.mxu1 %v22287_v36  ;;  %19491 = vmatprep.subr.bf16.mxu0 %v22290_v38  ;;  %v22301_v38 = vld [vmem:[#allocation8 + $0xfa0] ss:$44 sps:$4 sm:$0xff]  }
 0x75b   :  { %19433 = vmatprep.subr.bf16.mxu1 %v22289_v5 }
 0x75d   :  { %19492 = vmatpush3.bf16.msra.mxu0 %v22292_v20 }
 0x75e   :  { %19434 = vmatpush3.bf16.msra.mxu1 %v22291_v26  ;;  %19493 = vmatprep.subr.bf16.mxu0 %v22294_v23  ;;  %v22306_v23 = vld [vmem:[#allocation8 + $0x1368] ss:$44 sps:$4 sm:$0xff]  }
 0x75f   :  { %19463 = vmatprep.subr.bf16.mxu1 %v22293_v29  ;;  %v22305_v29 = vld [vmem:[#allocation8 + $0xf48] ss:$44 sps:$4 sm:$0xff]  }
 0x761   :  { %v13566_v30 = vpop.f32.mrf.mxu1  ;;  %13909 = vmatmul.mubr.bf16.vlgmr.msra.gmra.mxu1 %v24150_v41  ;;  %19494 = vmatpush3.bf16.msra.mxu0 %v22296_v45  ;;  %v22304_v41 = vld [vmem:[#allocation8 + $0x1100] ss:$44 sps:$4 sm:$0xff]  }
 0x762   :  { %v13567_v32 = vadd.f32 %v13566_v30, %v23852_v37  ;;  %19464 = vmatpush3.bf16.msra.mxu1 %v22295_v19  ;;  %13990 = vmatprep.mubr.bf16.mxu1 %v23610_v55  ;;  %v22303_v37 = vld [vmem:[#allocation8 + $0xce0] ss:$44 sps:$4 sm:$0xff]   ;;  %v13613_v55 = vpop.f32.mrf.mxu0  ;;  %v22308_v19 = vld [vmem:[#allocation8 + $0x10a8] ss:$44 sps:$4 sm:$0xff]  }
 0x763   :  { %v23872_v36 = vpop.f32.mrf.mxu1  ;;  %19465 = vmatprep.subr.bf16.mxu1 %v22297_v27  ;;  %19495 = vmatprep.subr.bf16.mxu0 %v22298_v35  ;;  %v22309_v35 = vld [vmem:[#allocation8 + $0xef0] ss:$44 sps:$4 sm:$0xff]  }
 0x764   :  { %v13610_v5 = vadd.f32 %v13609_v46, %v13567_v32  ;;  %v22307_v46 = vld [vmem:[#allocation8 + $0xc88] ss:$44 sps:$4 sm:$0xff]   ;;  %v22310_v32 = vld [vmem:[#allocation8 + $0xc30] ss:$44 sps:$4 sm:$0xff]  }
 0x765   :  { %v13570_v20 = vpop.f32.mrf.mxu1  ;;  %19496 = vmatpush3.bf16.msra.mxu0 %v22300_v49 }
 0x766   :  { %v13571_v26 = vadd.f32 %v13570_v20, %v23855_v40  ;;  %19466 = vmatpush3.bf16.msra.mxu1 %v22299_v56  ;;  %19497 = vmatprep.subr.bf16.mxu0 %v22302_v39  ;;  %v14128_v30 = vmax.f32 %v13610_v5, 0.0  ;;  %v22311_v40 = vld [vmem:[#allocation8 + $0x1e10] ss:$44 sps:$4 sm:$0xff]   ;;  %v22312_v56 = vld [vmem:[#allocation8 + $0xe98] ss:$44 sps:$4 sm:$0xff]   ;;  %v24172_v20 = vsub.s32 3, %v23279_v47 }
 0x767   :  { %19467 = vmatprep.subr.bf16.mxu1 %v22301_v38  ;;  %v22314_v39 = vld [vmem:[#allocation8 + $0x1db8] ss:$44 sps:$4 sm:$0xff]   ;;  %v22315_v5 = vld [vmem:[#allocation8 + $0xe40] ss:$44 sps:$4 sm:$0xff]  }
 0x768   :  { %v13614_v45 = vadd.f32 %v13613_v55, %v13571_v26  ;;  %v22313_v38 = vld [vmem:[#allocation8 + $0xbd8] ss:$44 sps:$4 sm:$0xff]   ;;  %v22317_v26 = vld [vmem:[#allocation8 + $0x1d60] ss:$44 sps:$4 sm:$0xff]  }
 0x769   :  { %19498 = vmatpush3.bf16.msra.mxu0 %v22304_v41  ;;  %v7618_v41 = vrot.slane %v23822_v12, %v24172_v20 }
 0x76a   :  { %v14139_v27 = vmax.f32 %v13614_v45, 0.0  ;;  %19468 = vmatpush3.bf16.msra.mxu1 %v22303_v37  ;;  %19499 = vmatprep.subr.bf16.mxu0 %v22306_v23  ;;  %v22318_v23 = vld [vmem:[#allocation8 + $0xde8] ss:$44 sps:$4 sm:$0xff]  }
 0x76b   :  { %19469 = vmatprep.subr.bf16.mxu1 %v22305_v29  ;;  %v12885_v37 = vadd.f32 %v23741_v6, %v7618_v41  ;;  %v12881_v55 = vadd.f32 %v23731_v18, %v7618_v41  ;;  %v22320_v29 = vld [vmem:[#allocation8 + $0x1d08] ss:$44 sps:$4 sm:$0xff]   ;;  %v22323_v6 = vld [vmem:[#allocation8 + $0x1cb0] ss:$44 sps:$4 sm:$0xff]  }
 0x76c   :  { %v23875_v49 = vpack.c.bf16 %v14139_v27, %v14128_v30  ;;  %v22319_v45 = vld [vmem:[#allocation8 + $0xb28] ss:$44 sps:$4 sm:$0xff]   ;;  %v22321_v30 = vld [vmem:[#allocation8 + $0x1b50] ss:$44 sps:$4 sm:$0xff]  }
 0x76d   :  { %19500 = vmatpush3.bf16.msra.mxu0 %v22308_v19  ;;  %v12928_v19 = vadd.f32 %v23739_v25, %v12885_v37  ;;  %v12924_v27 = vadd.f32 %v23729_v2, %v12881_v55  ;;  %v22322_v18 = vld [vmem:[#allocation8 + $0x1890] ss:$44 sps:$4 sm:$0xff]   ;;  %v22326_v25 = vld [vmem:[#allocation8 + $0x1c58] ss:$44 sps:$4 sm:$0xff]   ;;  %v22336_v41 = vld [vmem:[#allocation11 + $0x174] ss:$8 sps:$4 sm:$0xff]  }
 0x76e   :  { %19470 = vmatpush3.bf16.msra.mxu1 %v22307_v46  ;;  %19708 = vmatprep.subr.bf16.mxu0 %v24149_v7  ;;  %v22325_v2 = vld [vmem:[#allocation8 + $0x1838] ss:$44 sps:$4 sm:$0xff]  }
 0x76f   :  { %19471 = vmatprep.subr.bf16.mxu1 %v22309_v35  ;;  %v12971_v46 = vadd.f32 %v23761_v21, %v12928_v19  ;;  %v12967_v35 = vadd.f32 %v23747_v24, %v12924_v27  ;;  %v22327_v24 = vld [vmem:[#allocation8 + $0x1aa0] ss:$44 sps:$4 sm:$0xff]   ;;  %v22341_v55 = vld [vmem:[#allocation11 + $0x164] ss:$8 sps:$4 sm:$0xff]  }
 0x770   :  { %14032 = vmatmul.mubr.bf16.vlgmr.msra.gmra.mxu0 %v23571_v63  ;;  %v22316_v63 = vld [vmem:[#allocation8 + $0xb80] ss:$44 sps:$4 sm:$0xff]  }
 0x771   :  { %19709 = vmatpush3.bf16.msra.mxu0 %v22311_v40  ;;  %19724 = vmatprep.mubr.msk.bf16.mxu0 %vm23146_vm2, %v24149_v7  ;;  %v22324_v40 = vld [vmem:[#allocation8 + $0x1af8] ss:$44 sps:$4 sm:$0xff]   ;;  %v13010_v21 = vadd.f32 %v23745_v4, %v12967_v35  ;;  %v7610_v4 = vrot.slane %v23822_v12, %v23529_v11  ;;  %v22346_v27 = vld [vmem:[#allocation11 + $0x154] ss:$8 sps:$4 sm:$0xff]  }
 0x772   :  { %19472 = vmatpush3.bf16.msra.mxu1 %v22310_v32  ;;  %19710 = vmatprep.subr.bf16.mxu0 %v24149_v7  ;;  %v13014_v32 = vadd.f32 %v23759_v8, %v12971_v46  ;;  %v22329_v8 = vld [vmem:[#allocation8 + $0x1c00] ss:$44 sps:$4 sm:$0xff]   ;;  %v22351_v35 = vld [vmem:[#allocation11 + $0x144] ss:$8 sps:$4 sm:$0xff]  }
 0x773   :  { %19473 = vmatprep.subr.bf16.mxu1 %v22312_v56  ;;  %v12627_v20 = vadd.f32 %v23683_v1, %v7610_v4  ;;  %v22343_v46 = vld [vmem:[#allocation8 + $0x1940] ss:$44 sps:$4 sm:$0xff]  }
 0x774   :  { %v13057_v56 = vadd.f32 %v23782_v50, %v13014_v32 }
 0x775   :  { %19711 = vmatpush3.bf16.msra.mxu0 %v22314_v39  ;;  %v13053_v39 = vadd.f32 %v23766_v61, %v13010_v21  ;;  %v22331_v61 = vld [vmem:[#allocation8 + $0x1788] ss:$44 sps:$4 sm:$0xff]   ;;  %v12670_v12 = vadd.f32 %v23685_v14, %v12627_v20  ;;  %v22342_v14 = vld [vmem:[#allocation8 + $0x16d8] ss:$44 sps:$4 sm:$0xff]  }
 0x776   :  { %19474 = vmatpush3.bf16.msra.mxu1 %v22313_v38  ;;  %19712 = vmatprep.subr.bf16.mxu0 %v24149_v7  ;;  %v13100_v38 = vadd.f32 %v23775_v43, %v13057_v56  ;;  %v12623_v43 = vadd.f32 %v23673_v22, %v7610_v4  ;;  %v22339_v22 = vld [vmem:[#allocation11 + $0x160] ss:$8 sps:$4 sm:$0xff]   ;;  %v22358_v56 = vld [vmem:[#allocation11 + $0x134] ss:$8 sps:$4 sm:$0xff]   ;;  %v22364_v4 = vld [vmem:[#allocation11 + $0x124] ss:$8 sps:$4 sm:$0xff]  }
 0x777   :  { %19475 = vmatprep.subr.bf16.mxu1 %v22315_v5  ;;  %v13096_v50 = vadd.f32 %v23764_v57, %v13053_v39  ;;  %v22332_v5 = vld [vmem:[#allocation8 + $0x1ba8] ss:$44 sps:$4 sm:$0xff]   ;;  %v22337_v57 = vld [vmem:[#allocation8 + $0x1730] ss:$44 sps:$4 sm:$0xff]   ;;  %v12713_v19 = vadd.f32 %v23703_v52, %v12670_v12 }
 0x778   :  { %v22349_v21 = vld [vmem:[#allocation11 + $0x140] ss:$8 sps:$4 sm:$0xff]  }
 0x779   :  { %19713 = vmatpush3.bf16.msra.mxu0 %v22317_v26  ;;  %v14136_v26 = vmax.f32 %v13100_v38, 0.0  ;;  %v14125_v37 = vmax.f32 %v13096_v50, 0.0  ;;  %v22353_v38 = vld [vmem:[#allocation11 + $0x70] ss:$8 sps:$4 sm:$0xff]  }
 0x77a   :  { %19476 = vmatpush3.bf16.msra.mxu1 %v22316_v63  ;;  %19714 = vmatprep.subr.bf16.mxu0 %v24149_v7  ;;  %v22333_v63 = vld [vmem:[#allocation8 + $0x19f0] ss:$44 sps:$4 sm:$0xff]  }
 0x77b   :  { %19477 = vmatprep.subr.bf16.mxu1 %v22318_v23  ;;  %v22334_v23 = vld [vmem:[#allocation11 + $0x170] ss:$8 sps:$4 sm:$0xff]   ;;  %v14147_v1 = vpack.c.bf16 %v14136_v26, %v14125_v37 }
 0x77d   :  { %19715 = vmatpush3.bf16.msra.mxu0 %v22320_v29  ;;  %v22338_v29 = vld [vmem:[#allocation8 + $0x1998] ss:$44 sps:$4 sm:$0xff]  }
 0x77e   :  { %19478 = vmatpush3.bf16.msra.mxu1 %v22319_v45  ;;  %19716 = vmatprep.subr.bf16.mxu0 %v24149_v7  ;;  %v12666_v45 = vadd.f32 %v23677_v60, %v12623_v43  ;;  %v22370_v43 = vld [vmem:[#allocation11 + $0x114] ss:$8 sps:$4 sm:$0xff]  }
 0x77f   :  { %19507 = vmatprep.subr.bf16.mxu1 %v22321_v30 }
 0x780   :  { %v12709_v30 = vadd.f32 %v23690_v28, %v12666_v45  ;;  %v22348_v28 = vld [vmem:[#allocation8 + $0x18e8] ss:$44 sps:$4 sm:$0xff]   ;;  %v22373_v45 = vld [vmem:[#allocation11 + $0x44] ss:$8 sps:$4 sm:$0xff]  }
 0x781   :  { %13991 = vmatmul.mubr.bf16.vlgmr.msra.gmra.mxu1 %v24152_v51  ;;  %19717 = vmatpush3.bf16.msra.mxu0 %v22323_v6  ;;  %v22328_v51 = vld [vmem:[#allocation8 + $0x17e0] ss:$44 sps:$4 sm:$0xff]   ;;  %v12756_v6 = vadd.f32 %v23709_v34, %v12713_v19 }
 0x782   :  { %19508 = vmatpush3.bf16.msra.mxu1 %v22322_v18  ;;  %14072 = vmatprep.mubr.bf16.mxu1 %v23645_v15  ;;  %v22330_v15 = vld [vmem:[#allocation8 + $0x1a48] ss:$44 sps:$4 sm:$0xff]   ;;  %v22344_v18 = vld [vmem:[#allocation11 + $0x150] ss:$8 sps:$4 sm:$0xff]   ;;  %v12752_v60 = vadd.f32 %v23694_v9, %v12709_v30 }
 0x783   :  { %19509 = vmatprep.subr.bf16.mxu1 %v22324_v40  ;;  %19718 = vmatprep.subr.bf16.mxu0 %v24149_v7  ;;  %v12799_v52 = vadd.f32 %v23719_v42, %v12756_v6  ;;  %v23917_v40 = vpop.f32.mrf.mxu0  ;;  %v22352_v42 = vld [vmem:[#allocation8 + $0x1628] ss:$44 sps:$4 sm:$0xff]   ;;  %v22377_v6 = vld [vmem:[#allocation11 + $0x30] ss:$8 sps:$4 sm:$0xff]  }
 0x784   :  { %v12795_v32 = vadd.f32 %v23706_v59, %v12752_v60  ;;  %v22374_v19 = vld [vmem:[#allocation11 + $0x100] ss:$8 sps:$4 sm:$0xff]   ;;  %v22382_v30 = vld [vmem:[#allocation11 + $0x1f4] ss:$8 sps:$4 sm:$0xff]   ;;  %v22385_v60 = vld [vmem:[#allocation11 + $0x24] ss:$8 sps:$4 sm:$0xff]  }
 0x785   :  { %19719 = vmatpush3.bf16.msra.mxu0 %v22326_v25  ;;  %v12842_v25 = vadd.f32 %v23725_v48, %v12799_v52  ;;  %v13652_v34 = vpop.f32.mrf.mxu0  ;;  %v22356_v48 = vld [vmem:[#allocation11 + $0x130] ss:$8 sps:$4 sm:$0xff]  }
 0x786   :  { %19510 = vmatpush3.bf16.msra.mxu1 %v22325_v2  ;;  %19720 = vmatprep.subr.bf16.mxu0 %v24149_v7  ;;  %v23921_v2 = vld [vmem:[#allocation10 + $0x8] sm:$0x7]  ;;  %v12838_v9 = vadd.f32 %v23713_v53, %v12795_v32  ;;  %v22361_v53 = vld [vmem:[#allocation11 + $0x64] ss:$8 sps:$4 sm:$0xff]   ;;  %v22383_v32 = vld [vmem:[#allocation11 + $0x20] ss:$8 sps:$4 sm:$0xff]  }
 0x787   :  { %19511 = vmatprep.subr.bf16.mxu1 %v22327_v24  ;;  %v22355_v24 = vld [vmem:[#allocation11 + $0x74] ss:$8 sps:$4 sm:$0xff]   ;;  %v14134_v39 = vmax.f32 %v12842_v25, 0.0  ;;  %v23926_v59 = vpop.f32.mrf.mxu0 }
 0x788   :  { %v22394_v25 = vld [vmem:[#allocation11 + $0x1d4] ss:$8 sps:$4 sm:$0xff]  }
 0x789   :  { %19721 = vmatpush3.bf16.msra.mxu0 %v22329_v8  ;;  %v7638_v8 = vrot.slane %v23921_v2, %v24153_v31  ;;  %v13656_v20 = vpop.f32.mrf.mxu0 }
 0x78a   :  { %19512 = vmatpush3.bf16.msra.mxu1 %v22328_v51  ;;  %19722 = vmatprep.subr.bf16.mxu0 %v24149_v7  ;;  %v14123_v51 = vmax.f32 %v12838_v9, 0.0  ;;  %v23939_v9 = vld [vmem:[#allocation10] sm:$0xff] }
 0x78b   :  { %19513 = vmatprep.subr.bf16.mxu1 %v22330_v15  ;;  %v23928_v15 = vpop.f32.mrf.mxu1  ;;  %v13657_v12 = vadd.f32 %v13656_v20, %v7638_v8 }
 0x78c   :  { %v14145_v50 = vpack.c.bf16 %v14134_v39, %v14123_v51  ;;  %v22392_v39 = vld [vmem:[#allocation11 + $0x1d0] ss:$8 sps:$4 sm:$0xff]  }
 0x78d   :  { %19723 = vmatpush3.bf16.msra.mxu0 %v22332_v5  ;;  %v13653_v5 = vadd.f32 %v13652_v34, %v7638_v8  ;;  %v22391_v34 = vld [vmem:[#allocation11 + $0x14] ss:$8 sps:$4 sm:$0xff]   ;;  %v22389_v8 = vld [vmem:[#allocation11 + $0x10] ss:$8 sps:$4 sm:$0xff]  }
 0x78e   :  { %19514 = vmatpush3.bf16.msra.mxu1 %v22331_v61  ;;  %15266 = vmatprep.subr.bf16.mxu0 %v22336_v41  ;;  %v22362_v41 = vld [vmem:[#allocation11 + $0x120] ss:$8 sps:$4 sm:$0xff]  }
 0x78f   :  { %19515 = vmatprep.subr.bf16.mxu1 %v22333_v63  ;;  %v22359_v63 = vld [vmem:[#allocation11 + $0x60] ss:$8 sps:$4 sm:$0xff]  }
 0x790   :  { %19725 = vmatmul.mubr.bf16.vlgmr.msra.gmra.mxu0 %v23666_v54  ;;  %v22347_v54 = vld [vmem:[#allocation8 + $0x1680] ss:$44 sps:$4 sm:$0xff]  }
 0x791   :  { %15267 = vmatpush1.bf16.msra.mxu0 %v22334_v23  ;;  %15298 = vmatprep.mubr.bf16.mxu0 %v14147_v1  ;;  %v22367_v23 = vld [vmem:[#allocation11 + $0x54] ss:$8 sps:$4 sm:$0xff]  }
 0x792   :  { %19516 = vmatpush3.bf16.msra.mxu1 %v22337_v57  ;;  %15268 = vmatprep.subr.bf16.mxu0 %v22341_v55  ;;  %v22368_v55 = vld [vmem:[#allocation11 + $0x110] ss:$8 sps:$4 sm:$0xff]  }
 0x793   :  { %19517 = vmatprep.subr.bf16.mxu1 %v22338_v29  ;;  %v22365_v29 = vld [vmem:[#allocation11 + $0x50] ss:$8 sps:$4 sm:$0xff]  }
 0x795   :  { %15269 = vmatpush1.bf16.msra.mxu0 %v22339_v22  ;;  %v22371_v22 = vld [vmem:[#allocation11 + $0x40] ss:$8 sps:$4 sm:$0xff]  }
 0x796   :  { %19518 = vmatpush3.bf16.msra.mxu1 %v22342_v14  ;;  %15270 = vmatprep.subr.bf16.mxu0 %v22346_v27  ;;  %v22379_v14 = vld [vmem:[#allocation11 + $0x34] ss:$8 sps:$4 sm:$0xff]   ;;  %v22380_v27 = vld [vmem:[#allocation11 + $0x1f0] ss:$8 sps:$4 sm:$0xff]  }
 0x797   :  { %19519 = vmatprep.subr.bf16.mxu1 %v22343_v46  ;;  %v23933_v46 = vpop.f32.mrf.mxu0 }
 0x799   :  { %15271 = vmatpush1.bf16.msra.mxu0 %v22344_v18  ;;  %v22388_v18 = vld [vmem:[#allocation11 + $0x1e4] ss:$8 sps:$4 sm:$0xff]  }
 0x79a   :  { %19520 = vmatpush3.bf16.msra.mxu1 %v22347_v54  ;;  %15272 = vmatprep.subr.bf16.mxu0 %v22351_v35  ;;  %v22386_v35 = vld [vmem:[#allocation11 + $0x1e0] ss:$8 sps:$4 sm:$0xff]  }
 0x79b   :  { %19521 = vmatprep.subr.bf16.mxu1 %v22348_v28 }
 0x79d   :  { %15273 = vmatpush1.bf16.msra.mxu0 %v22349_v21 }
 0x79e   :  { %19522 = vmatpush3.bf16.msra.mxu1 %v22352_v42  ;;  %15274 = vmatprep.subr.bf16.mxu0 %v22358_v56  ;;  %v24173_v42 = vsub.s32 7, %v23279_v47 }
 0x79f   :  { %15223 = vmatprep.subr.bf16.mxu1 %v22355_v24 }
 0x7a0   :  { %v7634_v56 = vrot.slane %v23939_v9, %v24173_v42  ;;  %v24177_v42 = vld [vmem:[#allocation51_spill] sm:$0xff] }
 0x7a1   :  { %v13695_v61 = vpop.f32.mrf.mxu1  ;;  %14073 = vmatmul.mubr.bf16.vlgmr.msra.gmra.mxu1 %v23662_v10  ;;  %15275 = vmatpush1.bf16.msra.mxu0 %v22356_v48  ;;  %v22376_v10 = vld [vmem:[#allocation11 + $0x104] ss:$8 sps:$4 sm:$0xff]  }
 0x7a2   :  { %v13696_v26 = vadd.f32 %v13695_v61, %v13653_v5  ;;  %15224 = vmatpush1.bf16.msra.mxu1 %v22353_v38  ;;  %15255 = vmatprep.mubr.bf16.mxu1 %v14145_v50  ;;  %v22400_v48 = vld [vmem:[#allocation11 + $0x1c4] ss:$8 sps:$4 sm:$0xff]   ;;  %v13401_v51 = vadd.f32 %v23843_v44, %v7634_v56  ;;  %v22395_v50 = vld [vmem:[#allocation11] ss:$8 sps:$4 sm:$0xff]   ;;  %v22406_v5 = vld [vmem:[#allocation11 + $0x1b4] ss:$8 sps:$4 sm:$0xff]  }
 0x7a3   :  { %v23931_v37 = vpop.f32.mrf.mxu1  ;;  %15225 = vmatprep.subr.bf16.mxu1 %v22361_v53  ;;  %15276 = vmatprep.subr.bf16.mxu0 %v22364_v4  ;;  %v22397_v38 = vld [vmem:[#allocation11 + $0x4] ss:$8 sps:$4 sm:$0xff]   ;;  %v13397_v53 = vadd.f32 %v23833_v0, %v7634_v56  ;;  %v22398_v4 = vld [vmem:[#allocation11 + $0x1c0] ss:$8 sps:$4 sm:$0xff]   ;;  %v22403_v61 = vld [vmem:[#allocation11 + $0xf4] ss:$8 sps:$4 sm:$0xff]  }
 0x7a4   :  { %v13444_v20 = vadd.f32 %v23841_v16, %v13401_v51  ;;  %v22404_v44 = vld [vmem:[#allocation11 + $0x1b0] ss:$8 sps:$4 sm:$0xff]   ;;  %v22412_v0 = vld [vmem:[#allocation11 + $0x1a4] ss:$8 sps:$4 sm:$0xff]   ;;  %v22410_v16 = vld [vmem:[#allocation11 + $0x1a0] ss:$8 sps:$4 sm:$0xff]  }
 0x7a5   :  { %v13699_v57 = vpop.f32.mrf.mxu1  ;;  %15277 = vmatpush1.bf16.msra.mxu0 %v22362_v41  ;;  %v13440_v41 = vadd.f32 %v23831_v62, %v13397_v53  ;;  %v22418_v62 = vld [vmem:[#allocation11 + $0x194] ss:$8 sps:$4 sm:$0xff]  }
 0x7a6   :  { %v13700_v1 = vadd.f32 %v13699_v57, %v13657_v12  ;;  %15226 = vmatpush1.bf16.msra.mxu1 %v22359_v63  ;;  %15278 = vmatprep.subr.bf16.mxu0 %v22370_v43  ;;  %v22401_v63 = vld [vmem:[#allocation11 + $0xf0] ss:$8 sps:$4 sm:$0xff]   ;;  %v22407_v57 = vld [vmem:[#allocation11 + $0xe0] ss:$8 sps:$4 sm:$0xff]   ;;  %v22442_v53 = vld [vmem:[#allocation11 + $0x354] ss:$8 sps:$4 sm:$0xff]  }
 0x7a7   :  { %15227 = vmatprep.subr.bf16.mxu1 %v22367_v23  ;;  %v13483_v43 = vadd.f32 %v23849_v33, %v13440_v41  ;;  %v22409_v23 = vld [vmem:[#allocation11 + $0xe4] ss:$8 sps:$4 sm:$0xff]   ;;  %v22416_v33 = vld [vmem:[#allocation11 + $0x190] ss:$8 sps:$4 sm:$0xff]  }
 0x7a8   :  { %v22440_v41 = vld [vmem:[#allocation11 + $0x350] ss:$8 sps:$4 sm:$0xff]  }
 0x7a9   :  { %15279 = vmatpush1.bf16.msra.mxu0 %v22368_v55 }
 0x7aa   :  { %15228 = vmatpush1.bf16.msra.mxu1 %v22365_v29  ;;  %15280 = vmatprep.subr.bf16.mxu0 %v22376_v10  ;;  %v22413_v10 = vld [vmem:[#allocation11 + $0xd0] ss:$8 sps:$4 sm:$0xff]  }
 0x7ab   :  { %15229 = vmatprep.subr.bf16.mxu1 %v22373_v45 }
 0x7ad   :  { %15281 = vmatpush1.bf16.msra.mxu0 %v22374_v19  ;;  %v22421_v19 = vld [vmem:[#allocation11 + $0xc4] ss:$8 sps:$4 sm:$0xff]  }
 0x7ae   :  { %15230 = vmatpush1.bf16.msra.mxu1 %v22371_v22  ;;  %15282 = vmatprep.subr.bf16.mxu0 %v22382_v30  ;;  %v22430_v30 = vld [vmem:[#allocation11 + $0x374] ss:$8 sps:$4 sm:$0xff]  }
 0x7af   :  { %15231 = vmatprep.subr.bf16.mxu1 %v22379_v14 }
 0x7b0   :  { %v13738_v52 = vpop.f32.mrf.mxu0 }
 0x7b1   :  { %v23935_v54 = vadd.f32 %v13738_v52, %v13696_v26  ;;  %15283 = vmatpush2.bf16.msra.mxu0 %v22380_v27  ;;  %v13487_v26 = vadd.f32 %v23865_v58, %v13444_v20  ;;  %v13526_v58 = vadd.f32 %v23847_v3, %v13483_v43  ;;  %v22422_v3 = vld [vmem:[#allocation11 + $0x180] ss:$8 sps:$4 sm:$0xff]   ;;  %v24174_v27 = vsub.s32 5, %v23279_v47  ;;  %v22437_v43 = vld [vmem:[#allocation11 + $0x90] ss:$8 sps:$4 sm:$0xff]  }
 0x7b2   :  { %15232 = vmatpush1.bf16.msra.mxu1 %v22377_v6  ;;  %v23937_v28 = vpop.f32.mrf.mxu0  ;;  %15284 = vmatprep.subr.bf16.mxu0 %v22388_v18  ;;  %v22434_v47 = vld [vmem:[#allocation11 + $0x360] ss:$8 sps:$4 sm:$0xff]  }
 0x7b3   :  { %15233 = vmatprep.subr.bf16.mxu1 %v22385_v60  ;;  %v13530_v12 = vadd.f32 %v23863_v17, %v13487_v26  ;;  %v13569_v29 = vadd.f32 %v23872_v36, %v13526_v58  ;;  %v22424_v17 = vld [vmem:[#allocation11 + $0x184] ss:$8 sps:$4 sm:$0xff]   ;;  %v22427_v36 = vld [vmem:[#allocation11 + $0xb4] ss:$8 sps:$4 sm:$0xff]   ;;  %v7626_v6 = vrot.slane %v23939_v9, %v24174_v27 }
 0x7b4   :  { %v13742_v21 = vpop.f32.mrf.mxu0  ;;  %v24175_v60 = vld [vmem:[#allocation49_spill] sm:$0xff]  ;;  %v24179_v9 = vld [vmem:[#allocation44_spill] sm:$0xff]  ;;  %v24182_v20 = vld [vmem:[#allocation55_spill] sm:$0xff] }
 0x7b5   :  { %v23944_v24 = vadd.f32 %v13742_v21, %v13700_v1  ;;  %15285 = vmatpush2.bf16.msra.mxu0 %v22386_v35  ;;  %v13573_v55 = vadd.f32 %v23928_v15, %v13530_v12  ;;  %v22415_v1 = vld [vmem:[#allocation11 + $0xd4] ss:$8 sps:$4 sm:$0xff]   ;;  %v13612_v22 = vadd.f32 %v23870_v13, %v13569_v29  ;;  %v22419_v15 = vld [vmem:[#allocation11 + $0xc0] ss:$8 sps:$4 sm:$0xff]   ;;  %v13143_v52 = vadd.f32 %v24175_v60, %v7626_v6  ;;  %v22425_v13 = vld [vmem:[#allocation11 + $0xb0] ss:$8 sps:$4 sm:$0xff]  }
 0x7b6   :  { %15234 = vmatpush1.bf16.msra.mxu1 %v22383_v32  ;;  %15286 = vmatprep.subr.bf16.mxu0 %v22394_v25  ;;  %v22436_v35 = vld [vmem:[#allocation11 + $0x364] ss:$8 sps:$4 sm:$0xff]   ;;  %v22455_v60 = vld [vmem:[#allocation11 + $0x260] ss:$8 sps:$4 sm:$0xff]  }
 0x7b7   :  { %15235 = vmatprep.subr.bf16.mxu1 %v22391_v34  ;;  %v13616_v45 = vadd.f32 %v23917_v40, %v13573_v55  ;;  %v14129_v18 = vmax.f32 %v13612_v22, 0.0  ;;  %v22428_v40 = vld [vmem:[#allocation11 + $0x370] ss:$8 sps:$4 sm:$0xff]   ;;  %v22433_v25 = vld [vmem:[#allocation11 + $0xa4] ss:$8 sps:$4 sm:$0xff]   ;;  %v13186_v56 = vadd.f32 %v24177_v42, %v13143_v52 }
 0x7b8   :  { %v24176_v34 = vld [vmem:[#allocation48_spill] sm:$0xff]  ;;  %v22466_v52 = vld [vmem:[#allocation11 + $0x314] ss:$8 sps:$4 sm:$0xff]  }
 0x7b9   :  { %15287 = vmatpush2.bf16.msra.mxu0 %v22392_v39  ;;  %v14140_v14 = vmax.f32 %v13616_v45, 0.0  ;;  %v13139_v21 = vadd.f32 %v24176_v34, %v7626_v6  ;;  %v24178_v39 = vld [vmem:[#allocation47_spill] sm:$0xff]  ;;  %v24183_v26 = vld [vmem:[#allocation52_spill] sm:$0xff]  ;;  %v24188_v6 = vld [vmem:[#allocation45_spill] sm:$0xff] }
 0x7ba   :  { %15236 = vmatpush1.bf16.msra.mxu1 %v22389_v8  ;;  %15288 = vmatprep.subr.bf16.mxu0 %v22400_v48  ;;  %v24180_v48 = vld [vmem:[#allocation53_spill] sm:$0xff]  ;;  %v22445_v12 = vld [vmem:[#allocation11 + $0x84] ss:$8 sps:$4 sm:$0xff]   ;;  %v22446_v55 = vld [vmem:[#allocation11 + $0x340] ss:$8 sps:$4 sm:$0xff]  }
 0x7bb   :  { %15237 = vmatprep.subr.bf16.mxu1 %v22397_v38  ;;  %v14151_v32 = vpack.c.bf16 %v14140_v14, %v14129_v18  ;;  %v13182_v8 = vadd.f32 %v24179_v9, %v13139_v21  ;;  %v13229_v51 = vadd.f32 %v24180_v48, %v13186_v56  ;;  %v22431_v38 = vld [vmem:[#allocation11 + $0xa0] ss:$8 sps:$4 sm:$0xff]   ;;  %v22460_v14 = vld [vmem:[#allocation11 + $0x324] ss:$8 sps:$4 sm:$0xff]   ;;  %v22461_v21 = vld [vmem:[#allocation11 + $0x250] ss:$8 sps:$4 sm:$0xff]   ;;  %v23981_v48 = vpop.f32.mrf.mxu0 }
 0x7bc   :  { %v22458_v18 = vld [vmem:[#allocation11 + $0x320] ss:$8 sps:$4 sm:$0xff]   ;;  %v22472_v42 = vld [vmem:[#allocation11 + $0x304] ss:$8 sps:$4 sm:$0xff]   ;;  %v22475_v9 = vld [vmem:[#allocation11 + $0x234] ss:$8 sps:$4 sm:$0xff]  }
 0x7bd   :  { %15289 = vmatpush2.bf16.msra.mxu0 %v22398_v4  ;;  %v22439_v4 = vld [vmem:[#allocation11 + $0x94] ss:$8 sps:$4 sm:$0xff]   ;;  %v22470_v56 = vld [vmem:[#allocation11 + $0x300] ss:$8 sps:$4 sm:$0xff]  }
 0x7be   :  { %15238 = vmatpush1.bf16.msra.mxu1 %v22395_v50  ;;  %15290 = vmatprep.subr.bf16.mxu0 %v22406_v5  ;;  %v24181_v50 = vld [vmem:[#allocation50_spill] sm:$0xff] }
 0x7bf   :  { %15239 = vmatprep.subr.bf16.mxu1 %v22403_v61  ;;  %v13225_v5 = vadd.f32 %v24181_v50, %v13182_v8  ;;  %v13272_v61 = vadd.f32 %v24182_v20, %v13229_v51  ;;  %v22476_v8 = vld [vmem:[#allocation11 + $0x3f0] ss:$8 sps:$4 sm:$0xff]   ;;  %v22484_v51 = vld [vmem:[#allocation11 + $0x3e4] ss:$8 sps:$4 sm:$0xff]   ;;  %v22482_v50 = vld [vmem:[#allocation11 + $0x3e0] ss:$8 sps:$4 sm:$0xff]  }
 0x7c0   :  { %v22479_v20 = vld [vmem:[#allocation11 + $0x220] ss:$8 sps:$4 sm:$0xff]  }
 0x7c1   :  { %15291 = vmatpush2.bf16.msra.mxu0 %v22404_v44  ;;  %v13268_v44 = vadd.f32 %v24183_v26, %v13225_v5 }
 0x7c2   :  { %15240 = vmatpush2.bf16.msra.mxu1 %v22401_v63  ;;  %15292 = vmatprep.subr.bf16.mxu0 %v22412_v0  ;;  %v24184_v63 = vld [vmem:[#allocation58_spill] sm:$0xff] }
 0x7c3   :  { %15241 = vmatprep.subr.bf16.mxu1 %v22409_v23  ;;  %v13315_v0 = vadd.f32 %v24184_v63, %v13272_v61  ;;  %v22448_v23 = vld [vmem:[#allocation11 + $0x344] ss:$8 sps:$4 sm:$0xff]   ;;  %v22490_v61 = vld [vmem:[#allocation11 + $0x3d4] ss:$8 sps:$4 sm:$0xff]   ;;  %v22488_v63 = vld [vmem:[#allocation11 + $0x3d0] ss:$8 sps:$4 sm:$0xff]  }
 0x7c5   :  { %15293 = vmatpush2.bf16.msra.mxu0 %v22410_v16  ;;  %v24185_v16 = vld [vmem:[#allocation54_spill] sm:$0xff] }
 0x7c6   :  { %15242 = vmatpush2.bf16.msra.mxu1 %v22407_v57  ;;  %15294 = vmatprep.subr.bf16.mxu0 %v22418_v62  ;;  %v13311_v57 = vadd.f32 %v24185_v16, %v13268_v44  ;;  %v24186_v62 = vld [vmem:[#allocation59_spill] sm:$0xff] }
 0x7c7   :  { %15243 = vmatprep.subr.bf16.mxu1 %v22415_v1  ;;  %v13358_v58 = vadd.f32 %v24186_v62, %v13315_v0  ;;  %v24187_v1 = vld [vmem:[#allocation56_spill] sm:$0xff]  ;;  %v22499_v62 = vld [vmem:[#allocation11 + $0x2f4] ss:$8 sps:$4 sm:$0xff]  }
 0x7c8   :  { %v13354_v29 = vadd.f32 %v24187_v1, %v13311_v57  ;;  %v22485_v0 = vld [vmem:[#allocation11 + $0x210] ss:$8 sps:$4 sm:$0xff]   ;;  %v22491_v16 = vld [vmem:[#allocation11 + $0x200] ss:$8 sps:$4 sm:$0xff]   ;;  %v22502_v57 = vld [vmem:[#allocation11 + $0x3b4] ss:$8 sps:$4 sm:$0xff]  }
 0x7c9   :  { %15295 = vmatpush2.bf16.msra.mxu0 %v22416_v33  ;;  %v22443_v33 = vld [vmem:[#allocation11 + $0x80] ss:$8 sps:$4 sm:$0xff]   ;;  %v14138_v45 = vmax.f32 %v13358_v58, 0.0  ;;  %v22500_v58 = vld [vmem:[#allocation11 + $0x3b0] ss:$8 sps:$4 sm:$0xff]  }
 0x7ca   :  { %15244 = vmatpush2.bf16.msra.mxu1 %v22413_v10  ;;  %15296 = vmatprep.subr.bf16.mxu0 %v22424_v17  ;;  %v22454_v10 = vld [vmem:[#allocation11 + $0x334] ss:$8 sps:$4 sm:$0xff]   ;;  %v14127_v22 = vmax.f32 %v13354_v29, 0.0  ;;  %v22508_v1 = vld [vmem:[#allocation11 + $0x3a4] ss:$8 sps:$4 sm:$0xff]  }
 0x7cb   :  { %15245 = vmatprep.subr.bf16.mxu1 %v22421_v19  ;;  %v22451_v17 = vld [vmem:[#allocation11 + $0x274] ss:$8 sps:$4 sm:$0xff]   ;;  %v22452_v19 = vld [vmem:[#allocation11 + $0x330] ss:$8 sps:$4 sm:$0xff]  }
 0x7cd   :  { %15297 = vmatpush2.bf16.msra.mxu0 %v22422_v3  ;;  %v22449_v3 = vld [vmem:[#allocation11 + $0x270] ss:$8 sps:$4 sm:$0xff]  }
 0x7ce   :  { %15246 = vmatpush2.bf16.msra.mxu1 %v22419_v15  ;;  %15352 = vmatprep.subr.bf16.mxu0 %v22430_v30  ;;  %v23974_v15 = vpop.f32.mrf.mxu1  ;;  %v22457_v30 = vld [vmem:[#allocation11 + $0x264] ss:$8 sps:$4 sm:$0xff]  }
 0x7cf   :  { %15247 = vmatprep.subr.bf16.mxu1 %v22427_v36  ;;  %v14149_v36 = vpack.c.bf16 %v14138_v45, %v14127_v22  ;;  %v22514_v22 = vld [vmem:[#allocation11 + $0x394] ss:$8 sps:$4 sm:$0xff]  }
 0x7d0   :  { %15299 = vmatmul.mubr.bf16.vlgmr.msra.gmra.mxu0 %v24178_v39  ;;  %v22467_v39 = vld [vmem:[#allocation11 + $0x240] ss:$8 sps:$4 sm:$0xff]  }
 0x7d1   :  { %15353 = vmatpush1.bf16.msra.mxu0 %v22428_v40  ;;  %15384 = vmatprep.mubr.bf16.mxu0 %v14151_v32 }
 0x7d2   :  { %15248 = vmatpush2.bf16.msra.mxu1 %v22425_v13  ;;  %15354 = vmatprep.subr.bf16.mxu0 %v22436_v35  ;;  %v22463_v35 = vld [vmem:[#allocation11 + $0x254] ss:$8 sps:$4 sm:$0xff]  }
 0x7d3   :  { %15249 = vmatprep.subr.bf16.mxu1 %v22433_v25  ;;  %v22464_v25 = vld [vmem:[#allocation11 + $0x310] ss:$8 sps:$4 sm:$0xff]  }
 0x7d5   :  { %15355 = vmatpush1.bf16.msra.mxu0 %v22434_v47  ;;  %v22478_v47 = vld [vmem:[#allocation11 + $0x3f4] ss:$8 sps:$4 sm:$0xff]  }
 0x7d6   :  { %15250 = vmatpush2.bf16.msra.mxu1 %v22431_v38  ;;  %15356 = vmatprep.subr.bf16.mxu0 %v22442_v53  ;;  %v22481_v38 = vld [vmem:[#allocation11 + $0x224] ss:$8 sps:$4 sm:$0xff]  }
 0x7d7   :  { %15251 = vmatprep.subr.bf16.mxu1 %v22439_v4 }
 0x7d9   :  { %15357 = vmatpush1.bf16.msra.mxu0 %v22440_v41  ;;  %v22487_v41 = vld [vmem:[#allocation11 + $0x214] ss:$8 sps:$4 sm:$0xff]  }
 0x7da   :  { %15252 = vmatpush2.bf16.msra.mxu1 %v22437_v43  ;;  %15358 = vmatprep.subr.bf16.mxu0 %v22448_v23  ;;  %v22496_v43 = vld [vmem:[#allocation11 + $0x3c4] ss:$8 sps:$4 sm:$0xff]  }
 0x7db   :  { %15253 = vmatprep.subr.bf16.mxu1 %v22445_v12  ;;  %v22493_v23 = vld [vmem:[#allocation11 + $0x204] ss:$8 sps:$4 sm:$0xff]   ;;  %v22494_v12 = vld [vmem:[#allocation11 + $0x3c0] ss:$8 sps:$4 sm:$0xff]  }
 0x7dd   :  { %15359 = vmatpush1.bf16.msra.mxu0 %v22446_v55  ;;  %v22497_v55 = vld [vmem:[#allocation11 + $0x2f0] ss:$8 sps:$4 sm:$0xff]  }
 0x7de   :  { %15254 = vmatpush2.bf16.msra.mxu1 %v22443_v33  ;;  %15360 = vmatprep.subr.bf16.mxu0 %v22454_v10  ;;  %v22505_v33 = vld [vmem:[#allocation11 + $0x2e4] ss:$8 sps:$4 sm:$0xff]  }
 0x7df   :  { %15309 = vmatprep.subr.bf16.mxu1 %v22451_v17  ;;  %v22506_v17 = vld [vmem:[#allocation11 + $0x3a0] ss:$8 sps:$4 sm:$0xff]  }
 0x7e1   :  { %v13781_v27 = vpop.f32.mrf.mxu1  ;;  %15256 = vmatmul.mubr.bf16.vlgmr.msra.gmra.mxu1 %v24188_v6  ;;  %15361 = vmatpush1.bf16.msra.mxu0 %v22452_v19  ;;  %v22503_v19 = vld [vmem:[#allocation11 + $0x2e0] ss:$8 sps:$4 sm:$0xff]   ;;  %v22509_v6 = vld [vmem:[#allocation11 + $0x2d0] ss:$8 sps:$4 sm:$0xff]  }
 0x7e2   :  { %v13782_v40 = vadd.f32 %v13781_v27, %v23935_v54  ;;  %15310 = vmatpush1.bf16.msra.mxu1 %v22449_v3  ;;  %15341 = vmatprep.mubr.bf16.mxu1 %v14149_v36  ;;  %v22469_v54 = vld [vmem:[#allocation11 + $0x244] ss:$8 sps:$4 sm:$0xff]   ;;  %v22512_v36 = vld [vmem:[#allocation11 + $0x390] ss:$8 sps:$4 sm:$0xff]  }
 0x7e3   :  { %v23978_v13 = vpop.f32.mrf.mxu1  ;;  %15311 = vmatprep.subr.bf16.mxu1 %v22457_v30  ;;  %15362 = vmatprep.subr.bf16.mxu0 %v22460_v14  ;;  %v22511_v30 = vld [vmem:[#allocation11 + $0x2d4] ss:$8 sps:$4 sm:$0xff]  }
 0x7e5   :  { %v13785_v32 = vpop.f32.mrf.mxu1  ;;  %15363 = vmatpush1.bf16.msra.mxu0 %v22458_v18  ;;  %v22520_v18 = vld [vmem:[#allocation11 + $0x384] ss:$8 sps:$4 sm:$0xff]  }
 0x7e6   :  { %v13786_v34 = vadd.f32 %v13785_v32, %v23944_v24  ;;  %15312 = vmatpush1.bf16.msra.mxu1 %v22455_v60  ;;  %15364 = vmatprep.subr.bf16.mxu0 %v22466_v52  ;;  %v22473_v24 = vld [vmem:[#allocation11 + $0x230] ss:$8 sps:$4 sm:$0xff]  }
 0x7e7   :  { %15313 = vmatprep.subr.bf16.mxu1 %v22463_v35  ;;  %v13787_v29 = vpop.f32.mrf.mxu1  ;;  %v22518_v35 = vld [vmem:[#allocation11 + $0x380] ss:$8 sps:$4 sm:$0xff]  }
 0x7e9   :  { %15365 = vmatpush1.bf16.msra.mxu0 %v22464_v25  ;;  %v22515_v25 = vld [vmem:[#allocation11 + $0x2c0] ss:$8 sps:$4 sm:$0xff]  }
 0x7ea   :  { %15314 = vmatpush1.bf16.msra.mxu1 %v22461_v21  ;;  %15366 = vmatprep.subr.bf16.mxu0 %v22472_v42  ;;  %v22523_v21 = vld [vmem:[#allocation11 + $0x2b4] ss:$8 sps:$4 sm:$0xff]   ;;  %v7642_v42 = vrot.slane %v23921_v2, %v23529_v11 }
 0x7eb   :  { %15315 = vmatprep.subr.bf16.mxu1 %v22469_v54  ;;  %v22572_v54 = vld [vmem:[#allocation11 + $0x570] ss:$8 sps:$4 sm:$0xff]  }
 0x7ed   :  { %15367 = vmatpush1.bf16.msra.mxu0 %v22470_v56  ;;  %v13659_v56 = vadd.f32 %v23933_v46, %v7642_v42 }
 0x7ee   :  { %15316 = vmatpush1.bf16.msra.mxu1 %v22467_v39  ;;  %15368 = vmatprep.subr.bf16.mxu0 %v22478_v47  ;;  %v22521_v39 = vld [vmem:[#allocation11 + $0x2b0] ss:$8 sps:$4 sm:$0xff]   ;;  %v22580_v47 = vld [vmem:[#allocation11 + $0x564] ss:$8 sps:$4 sm:$0xff]  }
 0x7ef   :  { %15317 = vmatprep.subr.bf16.mxu1 %v22475_v9  ;;  %v22526_v9 = vld [vmem:[#allocation11 + $0x2a4] ss:$8 sps:$4 sm:$0xff]  }
 0x7f0   :  { %v13824_v53 = vpop.f32.mrf.mxu0 }
 0x7f1   :  { %v13825_v4 = vadd.f32 %v13824_v53, %v13782_v40  ;;  %15369 = vmatpush2.bf16.msra.mxu0 %v22476_v8  ;;  %v22517_v40 = vld [vmem:[#allocation11 + $0x2c4] ss:$8 sps:$4 sm:$0xff]   ;;  %v13655_v8 = vadd.f32 %v23926_v59, %v7642_v42 }
 0x7f2   :  { %15318 = vmatpush1.bf16.msra.mxu1 %v22473_v24  ;;  %v23983_v5 = vpop.f32.mrf.mxu0  ;;  %15370 = vmatprep.subr.bf16.mxu0 %v22484_v51  ;;  %v13702_v24 = vadd.f32 %v23974_v15, %v13659_v56  ;;  %v22578_v51 = vld [vmem:[#allocation11 + $0x560] ss:$8 sps:$4 sm:$0xff]   ;;  %v22559_v56 = vld [vmem:[#allocation11 + $0x4f4] ss:$8 sps:$4 sm:$0xff]  }
 0x7f3   :  { %15319 = vmatprep.subr.bf16.mxu1 %v22481_v38  ;;  %v24189_v38 = vmov 0   ;;  %v13698_v53 = vadd.f32 %v23931_v37, %v13655_v8  ;;  %v22527_v37 = vld [vmem:[#allocation11 + $0x290] ss:$8 sps:$4 sm:$0xff]  }
 0x7f4   :  { %v13828_v26 = vpop.f32.mrf.mxu0  ;;  %v13745_v46 = vadd.f32 %v23981_v48, %v13702_v24  ;;  %v22592_v48 = vld [vmem:[#allocation11 + $0x544] ss:$8 sps:$4 sm:$0xff]  }
 0x7f5   :  { %v13829_v44 = vadd.f32 %v13828_v26, %v13786_v34  ;;  %15371 = vmatpush2.bf16.msra.mxu0 %v22482_v50  ;;  %v22574_v34 = vld [vmem:[#allocation11 + $0x574] ss:$8 sps:$4 sm:$0xff]   ;;  %v13741_v59 = vadd.f32 %v23937_v28, %v13698_v53 }
 0x7f6   :  { %15320 = vmatpush1.bf16.msra.mxu1 %v22479_v20  ;;  %15372 = vmatprep.subr.bf16.mxu0 %v22490_v61  ;;  %v22586_v50 = vld [vmem:[#allocation11 + $0x554] ss:$8 sps:$4 sm:$0xff]   ;;  %v13830_v20 = vpop.f32.mrf.mxu0  ;;  %v13788_v15 = vadd.f32 %v13787_v29, %v13745_v46 }
 0x7f7   :  { %15321 = vmatprep.subr.bf16.mxu1 %v22487_v41  ;;  %v22529_v61 = vld [vmem:[#allocation11 + $0x294] ss:$8 sps:$4 sm:$0xff]   ;;  %v13784_v26 = vadd.f32 %v23978_v13, %v13741_v59 }
 0x7f8   :  { %v22535_v13 = vld [vmem:[#allocation11 + $0x474] ss:$8 sps:$4 sm:$0xff]  }
 0x7f9   :  { %15373 = vmatpush2.bf16.msra.mxu0 %v22488_v63  ;;  %v22532_v63 = vld [vmem:[#allocation11 + $0x284] ss:$8 sps:$4 sm:$0xff]   ;;  %v22565_v46 = vld [vmem:[#allocation11 + $0x4d4] ss:$8 sps:$4 sm:$0xff]  }
 0x7fa   :  { %15322 = vmatpush1.bf16.msra.mxu1 %v22485_v0  ;;  %15374 = vmatprep.subr.bf16.mxu0 %v22496_v43  ;;  %v13827_v0 = vadd.f32 %v23983_v5, %v13784_v26  ;;  %v22538_v5 = vld [vmem:[#allocation11 + $0x464] ss:$8 sps:$4 sm:$0xff]  }
 0x7fb   :  { %15323 = vmatprep.subr.bf16.mxu1 %v22493_v23  ;;  %v22590_v23 = vld [vmem:[#allocation11 + $0x540] ss:$8 sps:$4 sm:$0xff]  }
 0x7fd   :  { %15375 = vmatpush2.bf16.msra.mxu0 %v22494_v12  ;;  %v22530_v12 = vld [vmem:[#allocation11 + $0x280] ss:$8 sps:$4 sm:$0xff]  }
 0x7fe   :  { %15324 = vmatpush1.bf16.msra.mxu1 %v22491_v16  ;;  %15376 = vmatprep.subr.bf16.mxu0 %v22502_v57  ;;  %v22595_v16 = vld [vmem:[#allocation11 + $0x534] ss:$8 sps:$4 sm:$0xff]  }
 0x7ff   :  { %15325 = vmatprep.subr.bf16.mxu1 %v22499_v62  ;;  %v22593_v62 = vld [vmem:[#allocation11 + $0x530] ss:$8 sps:$4 sm:$0xff]  }
 0x801   :  { %v13867_v10 = vpop.f32.mrf.mxu1  ;;  %15377 = vmatpush2.bf16.msra.mxu0 %v22500_v58 }
 0x802   :  { %v13868_v45 = vadd.f32 %v13867_v10, %v13825_v4  ;;  %15326 = vmatpush2.bf16.msra.mxu1 %v22497_v55  ;;  %15378 = vmatprep.subr.bf16.mxu0 %v22508_v1  ;;  %v22524_v4 = vld [vmem:[#allocation11 + $0x2a0] ss:$8 sps:$4 sm:$0xff]   ;;  %v22533_v55 = vld [vmem:[#allocation11 + $0x470] ss:$8 sps:$4 sm:$0xff]   ;;  %v22598_v1 = vld [vmem:[#allocation11 + $0x524] ss:$8 sps:$4 sm:$0xff]  }
 0x803   :  { %v23985_v3 = vpop.f32.mrf.mxu1  ;;  %15327 = vmatprep.subr.bf16.mxu1 %v22505_v33  ;;  %v24190_v33 = vld [vmem:[#allocation57_spill] sm:$0xff]  ;;  %v22596_v10 = vld [vmem:[#allocation11 + $0x520] ss:$8 sps:$4 sm:$0xff]  }
 0x804   :  { %v14130_v60 = vmax.f32 %v13868_v45, 0.0  ;;  %v13870_v28 = vadd.f32 %v23985_v3, %v13827_v0  ;;  %v22601_v45 = vld [vmem:[#allocation11 + $0x514] ss:$8 sps:$4 sm:$0xff]   ;;  %v22539_v3 = vld [vmem:[#allocation11 + $0x450] ss:$8 sps:$4 sm:$0xff]  }
 0x805   :  { %v13871_v14 = vpop.f32.mrf.mxu1  ;;  %15379 = vmatpush2.bf16.msra.mxu0 %v22506_v17  ;;  %v22536_v17 = vld [vmem:[#allocation11 + $0x460] ss:$8 sps:$4 sm:$0xff]  }
 0x806   :  { %v13872_v27 = vadd.f32 %v13871_v14, %v13829_v44  ;;  %15328 = vmatpush2.bf16.msra.mxu1 %v22503_v19  ;;  %15380 = vmatprep.subr.bf16.mxu0 %v22514_v22  ;;  %v13831_v44 = vadd.f32 %v13830_v20, %v13788_v15  ;;  %v14131_v58 = vmax.f32 %v13870_v28, 0.0  ;;  %v22541_v19 = vld [vmem:[#allocation11 + $0x454] ss:$8 sps:$4 sm:$0xff]   ;;  %v22599_v22 = vld [vmem:[#allocation11 + $0x510] ss:$8 sps:$4 sm:$0xff]  }
 0x807   :  { %15329 = vmatprep.subr.bf16.mxu1 %v22511_v30  ;;  %v13873_v41 = vpop.f32.mrf.mxu1  ;;  %v22604_v30 = vld [vmem:[#allocation11 + $0x504] ss:$8 sps:$4 sm:$0xff]   ;;  %v22566_v15 = vld [vmem:[#allocation11 + $0x4c0] ss:$8 sps:$4 sm:$0xff]   ;;  %v22583_v28 = vld [vmem:[#allocation11 + $0x494] ss:$8 sps:$4 sm:$0xff]  }
 0x808   :  { %v14141_v52 = vmax.f32 %v13872_v27, 0.0  ;;  %v13874_v43 = vadd.f32 %v13873_v41, %v13831_v44  ;;  %v22544_v14 = vld [vmem:[#allocation11 + $0x444] ss:$8 sps:$4 sm:$0xff]   ;;  %v22542_v27 = vld [vmem:[#allocation11 + $0x440] ss:$8 sps:$4 sm:$0xff]  }
 0x809   :  { %15381 = vmatpush2.bf16.msra.mxu0 %v22512_v36  ;;  %v22602_v36 = vld [vmem:[#allocation11 + $0x500] ss:$8 sps:$4 sm:$0xff]   ;;  %v22569_v44 = vld [vmem:[#allocation11 + $0x4b0] ss:$8 sps:$4 sm:$0xff]  }
 0x80a   :  { %v23987_v32 = vpack.c.bf16 %v14141_v52, %v14130_v60  ;;  %15330 = vmatpush2.bf16.msra.mxu1 %v22509_v6  ;;  %15382 = vmatprep.subr.bf16.mxu0 %v22520_v18  ;;  %v14142_v57 = vmax.f32 %v13874_v43, 0.0  ;;  %v22605_v6 = vld [vmem:[#allocation14 + $0x78] sm:$0xff]   ;;  %v22550_v60 = vld [vmem:[#allocation11 + $0x424] ss:$8 sps:$4 sm:$0xff]  }
 0x80b   :  { %15331 = vmatprep.subr.bf16.mxu1 %v22517_v40  ;;  %v22547_v18 = vld [vmem:[#allocation11 + $0x434] ss:$8 sps:$4 sm:$0xff]   ;;  %v22545_v40 = vld [vmem:[#allocation11 + $0x430] ss:$8 sps:$4 sm:$0xff]   ;;  %v22548_v52 = vld [vmem:[#allocation11 + $0x420] ss:$8 sps:$4 sm:$0xff]  }
 0x80c   :  { %v14153_v29 = vpack.c.bf16 %v14142_v57, %v14131_v58 }
 0x80d   :  { %15383 = vmatpush2.bf16.msra.mxu0 %v22518_v35  ;;  %v22553_v35 = vld [vmem:[#allocation11 + $0x414] ss:$8 sps:$4 sm:$0xff]  }
 0x80e   :  { %15332 = vmatpush2.bf16.msra.mxu1 %v22515_v25  ;;  %15438 = vmatprep.subr.bf16.mxu0 %v22574_v34  ;;  %v22551_v34 = vld [vmem:[#allocation11 + $0x410] ss:$8 sps:$4 sm:$0xff]  }
 0x80f   :  { %15333 = vmatprep.subr.bf16.mxu1 %v22523_v21  ;;  %v22556_v21 = vld [vmem:[#allocation11 + $0x404] ss:$8 sps:$4 sm:$0xff]  }
 0x810   :  { %15385 = vmatmul.mubr.bf16.vlgmr.msra.gmra.mxu0 %v23875_v49  ;;  %v22584_v49 = vld [vmem:[#allocation11 + $0x550] ss:$8 sps:$4 sm:$0xff]   ;;  %v24003_v25 = vpop.f32.mrf.mxu0 }
 0x811   :  { %15439 = vmatpush1.bf16.msra.mxu0 %v22572_v54  ;;  %15470 = vmatprep.mubr.bf16.mxu0 %v24189_v38  ;;  %v22554_v54 = vld [vmem:[#allocation11 + $0x400] ss:$8 sps:$4 sm:$0xff]  }
 0x812   :  { %15334 = vmatpush2.bf16.msra.mxu1 %v22521_v39  ;;  %15440 = vmatprep.subr.bf16.mxu0 %v22580_v47  ;;  %v19458_v42 = vpop.f32.mrf.mxu0  ;;  %v22557_v47 = vld [vmem:[#allocation11 + $0x4f0] ss:$8 sps:$4 sm:$0xff]  }
 0x813   :  { %15335 = vmatprep.subr.bf16.mxu1 %v22526_v9  ;;  %v22562_v9 = vld [vmem:[#allocation11 + $0x4e4] ss:$8 sps:$4 sm:$0xff]  }
 0x814   :  { %v19460_v39 = vpop.f32.mrf.mxu0 }
 0x815   :  { %15441 = vmatpush1.bf16.msra.mxu0 %v22578_v51  ;;  %v22560_v51 = vld [vmem:[#allocation11 + $0x4e0] ss:$8 sps:$4 sm:$0xff]  }
 0x816   :  { %15336 = vmatpush2.bf16.msra.mxu1 %v22524_v4  ;;  %15442 = vmatprep.subr.bf16.mxu0 %v22586_v50  ;;  %v19461_v8 = vpop.f32.mrf.mxu0  ;;  %v22563_v50 = vld [vmem:[#allocation11 + $0x4d0] ss:$8 sps:$4 sm:$0xff]  }
 0x817   :  { %15337 = vmatprep.subr.bf16.mxu1 %v22529_v61  ;;  %v22568_v61 = vld [vmem:[#allocation11 + $0x4c4] ss:$8 sps:$4 sm:$0xff]  }
 0x819   :  { %15443 = vmatpush1.bf16.msra.mxu0 %v22584_v49  ;;  %v22571_v49 = vld [vmem:[#allocation11 + $0x4b4] ss:$8 sps:$4 sm:$0xff]  }
 0x81a   :  { %15338 = vmatpush2.bf16.msra.mxu1 %v22527_v37  ;;  %15444 = vmatprep.subr.bf16.mxu0 %v22592_v48  ;;  %v22577_v48 = vld [vmem:[#allocation11 + $0x4a4] ss:$8 sps:$4 sm:$0xff]  }
 0x81b   :  { %15339 = vmatprep.subr.bf16.mxu1 %v22532_v63 }
 0x81d   :  { %15445 = vmatpush1.bf16.msra.mxu0 %v22590_v23  ;;  %v22575_v23 = vld [vmem:[#allocation11 + $0x4a0] ss:$8 sps:$4 sm:$0xff]  }
 0x81e   :  { %15340 = vmatpush2.bf16.msra.mxu1 %v22530_v12  ;;  %15446 = vmatprep.subr.bf16.mxu0 %v22595_v16 }
 0x81f   :  { %15395 = vmatprep.subr.bf16.mxu1 %v22535_v13  ;;  %v24191_v13 = vld [vmem:[#allocation46_spill] sm:$0xff] }
 0x820   :  { %v7646_v57 = vrot.slane %v23921_v2, %v24191_v13  ;;  %v22608_v2 = vld [vmem:[#allocation14 + $0xb8] sm:$0xff]  }
 0x821   :  { %15342 = vmatmul.mubr.bf16.vlgmr.msra.gmra.mxu1 %v24190_v33  ;;  %15447 = vmatpush1.bf16.msra.mxu0 %v22593_v62  ;;  %v19435_v53 = vpop.f32.mrf.mxu1 }
 0x822   :  { %15396 = vmatpush1.bf16.msra.mxu1 %v22533_v55  ;;  %15427 = vmatprep.mubr.bf16.mxu1 %v14153_v29  ;;  %v22581_v55 = vld [vmem:[#allocation11 + $0x490] ss:$8 sps:$4 sm:$0xff]  }
 0x823   :  { %15397 = vmatprep.subr.bf16.mxu1 %v22538_v5  ;;  %15448 = vmatprep.subr.bf16.mxu0 %v22598_v1  ;;  %v19436_v20 = vpop.f32.mrf.mxu1  ;;  %v22589_v5 = vld [vmem:[#allocation11 + $0x484] ss:$8 sps:$4 sm:$0xff]  }
 0x824   :  { %v19437_v62 = vadd.f32 %v19436_v20, %v19435_v53 }
 0x825   :  { %15449 = vmatpush1.bf16.msra.mxu0 %v22596_v10  ;;  %v19438_v41 = vpop.f32.mrf.mxu1  ;;  %v22587_v10 = vld [vmem:[#allocation11 + $0x480] ss:$8 sps:$4 sm:$0xff]  }
 0x826   :  { %15398 = vmatpush1.bf16.msra.mxu1 %v22536_v17  ;;  %15450 = vmatprep.subr.bf16.mxu0 %v22601_v45  ;;  %v13911_v29 = vadd.f32 %v19437_v62, %v7646_v57  ;;  %v22607_v17 = vld [vmem:[#allocation14 + $0xf8] sm:$0xff]   ;;  %v19459_v45 = vadd.f32 %v19458_v42, %v24003_v25  ;;  %v22618_v62 = vld [vmem:[#allocation14 + $0x20] sm:$0xff]  }
 0x827   :  { %15399 = vmatprep.subr.bf16.mxu1 %v22541_v19  ;;  %v19439_v37 = vpop.f32.mrf.mxu1 }
 0x828   :  { %v19440_v33 = vadd.f32 %v19439_v37, %v19438_v41  ;;  %v22624_v41 = vld [vmem:[#allocation14 + $0x98] sm:$0xff]   ;;  %v22628_v37 = vld [vmem:[#allocation14 + $0x90] sm:$0xff]  }
 0x829   :  { %15451 = vmatpush1.bf16.msra.mxu0 %v22599_v22 }
 0x82a   :  { %15400 = vmatpush1.bf16.msra.mxu1 %v22539_v3  ;;  %15452 = vmatprep.subr.bf16.mxu0 %v22604_v30  ;;  %v13914_v3 = vadd.f32 %v19440_v33, %v7646_v57  ;;  %v13952_v30 = vadd.f32 %v19459_v45, %v13911_v29  ;;  %v22636_v57 = vld [vmem:[#allocation14 + $0x80] sm:$0xff]   ;;  %v22643_v29 = vld [vmem:[#allocation14 + $0x1f0] sm:$0xff]   ;;  %v24195_v45 = vld [vmem:[#allocation40_spill] sm:$0xff] }
 0x82b   :  { %15401 = vmatprep.subr.bf16.mxu1 %v22544_v14  ;;  %v22611_v14 = vld [vmem:[#allocation14 + $0xf0] sm:$0xff]  }
 0x82c   :  { %v22625_v33 = vld [vmem:[#allocation14 + $0x50] sm:$0xff]  }
 0x82d   :  { %15453 = vmatpush1.bf16.msra.mxu0 %v22602_v36  ;;  %v19462_v36 = vadd.f32 %v19461_v8, %v19460_v39 }
 0x82e   :  { %15402 = vmatpush1.bf16.msra.mxu1 %v22542_v27  ;;  %19538 = vmatprep.subr.bf16.mxu0 %v22605_v6 }
 0x82f   :  { %15403 = vmatprep.subr.bf16.mxu1 %v22547_v18 }
 0x830   :  { %v19501_v24 = vpop.f32.mrf.mxu0 }
 0x832   :  { %15404 = vmatpush1.bf16.msra.mxu1 %v22545_v40  ;;  %v19502_v4 = vpop.f32.mrf.mxu0 }
 0x833   :  { %15405 = vmatprep.subr.bf16.mxu1 %v22550_v60  ;;  %v19503_v40 = vadd.f32 %v19502_v4, %v19501_v24  ;;  %v13955_v60 = vadd.f32 %v19462_v36, %v13914_v3  ;;  %v22620_v4 = vld [vmem:[#allocation14 + $0xa0] sm:$0xff]   ;;  %v22629_v3 = vld [vmem:[#allocation14 + $0x48] sm:$0xff]  }
 0x834   :  { %v19504_v59 = vpop.f32.mrf.mxu0  ;;  %v22633_v36 = vld [vmem:[#allocation14 + $0x40] sm:$0xff]  }
 0x836   :  { %15406 = vmatpush1.bf16.msra.mxu1 %v22548_v52  ;;  %v19505_v26 = vpop.f32.mrf.mxu0  ;;  %v22612_v52 = vld [vmem:[#allocation14 + $0xb0] sm:$0xff]  }
 0x837   :  { %15407 = vmatprep.subr.bf16.mxu1 %v22553_v35  ;;  %v24192_v35 = vld [vmem:[#allocation36_spill] sm:$0xff] }
 0x83a   :  { %15408 = vmatpush1.bf16.msra.mxu1 %v22551_v34  ;;  %v22615_v34 = vld [vmem:[#allocation14 + $0xe8] sm:$0xff]  }
 0x83b   :  { %15409 = vmatprep.subr.bf16.mxu1 %v22556_v21 }
 0x83e   :  { %15410 = vmatpush1.bf16.msra.mxu1 %v22554_v54 }
 0x83f   :  { %15411 = vmatprep.subr.bf16.mxu1 %v22559_v56 }
 0x841   :  { %v19479_v0 = vpop.f32.mrf.mxu1 }
 0x842   :  { %15412 = vmatpush2.bf16.msra.mxu1 %v22557_v47  ;;  %v19506_v47 = vadd.f32 %v19505_v26, %v19504_v59  ;;  %v22606_v59 = vld [vmem:[#allocation14 + $0x38] sm:$0xff]  }
 0x843   :  { %15413 = vmatprep.subr.bf16.mxu1 %v22562_v9  ;;  %v19480_v16 = vpop.f32.mrf.mxu1  ;;  %v22616_v9 = vld [vmem:[#allocation14 + $0xa8] sm:$0xff]  }
 0x844   :  { %v19481_v19 = vadd.f32 %v19480_v16, %v19479_v0  ;;  %v22613_v0 = vld [vmem:[#allocation14 + $0x68] sm:$0xff]   ;;  %v22617_v16 = vld [vmem:[#allocation14 + $0x60] sm:$0xff]  }
 0x845   :  { %v19482_v1 = vpop.f32.mrf.mxu1 }
 0x846   :  { %15414 = vmatpush2.bf16.msra.mxu1 %v22560_v51  ;;  %v13993_v27 = vadd.f32 %v19481_v19, %v13952_v30  ;;  %v22626_v19 = vld [vmem:[#allocation14 + $0x10] sm:$0xff]   ;;  %v22648_v30 = vld [vmem:[#allocation14 + $0x1a8] sm:$0xff]  }
 0x847   :  { %15415 = vmatprep.subr.bf16.mxu1 %v22565_v46  ;;  %v19483_v22 = vpop.f32.mrf.mxu1 }
 0x848   :  { %v19484_v6 = vadd.f32 %v19483_v22, %v19482_v1  ;;  %v14034_v42 = vadd.f32 %v19503_v40, %v13993_v27  ;;  %v22622_v1 = vld [vmem:[#allocation14 + $0x18] sm:$0xff]   ;;  %v22647_v22 = vld [vmem:[#allocation14 + $0x1e8] sm:$0xff]   ;;  %v22652_v27 = vld [vmem:[#allocation14 + $0x1a0] sm:$0xff]  }
 0x849   :  { %v22637_v40 = vld [vmem:[#allocation14 + $0x178] sm:$0xff]  }
 0x84a   :  { %15416 = vmatpush2.bf16.msra.mxu1 %v22563_v50  ;;  %v13996_v21 = vadd.f32 %v19484_v6, %v13955_v60  ;;  %v22623_v50 = vld [vmem:[#allocation14 + $0xd8] sm:$0xff]   ;;  %v22634_v6 = vld [vmem:[#allocation14] sm:$0xff]  }
 0x84b   :  { %15417 = vmatprep.subr.bf16.mxu1 %v22568_v61  ;;  %v22656_v60 = vld [vmem:[#allocation14 + $0x198] sm:$0xff]  }
 0x84c   :  { %v14037_v24 = vadd.f32 %v19506_v47, %v13996_v21  ;;  %v22660_v21 = vld [vmem:[#allocation14 + $0x190] sm:$0xff]   ;;  %v24197_v47 = vld [vmem:[#allocation39_spill] sm:$0xff] }
 0x84e   :  { %15418 = vmatpush2.bf16.msra.mxu1 %v22566_v15 }
 0x84f   :  { %15419 = vmatprep.subr.bf16.mxu1 %v22571_v49  ;;  %v22627_v49 = vld [vmem:[#allocation14 + $0xd0] sm:$0xff]  }
 0x850   :  { %v14115_v63 = vpop.f32.mrf.mxu0 }
 0x852   :  { %15420 = vmatpush2.bf16.msra.mxu1 %v22569_v44  ;;  %v19726_v43 = vpop.f32.mrf.mxu0  ;;  %v22609_v44 = vld [vmem:[#allocation14 + $0x70] sm:$0xff]  }
 0x853   :  { %15421 = vmatprep.subr.bf16.mxu1 %v22577_v48  ;;  %v22610_v48 = vld [vmem:[#allocation14 + $0x30] sm:$0xff]   ;;  %v24193_v43 = vld [vmem:[#allocation35_spill] sm:$0xff] }
 0x854   :  { %v14118_v12 = vpop.f32.mrf.mxu0 }
 0x856   :  { %15422 = vmatpush2.bf16.msra.mxu1 %v22575_v23  ;;  %v19727_v58 = vpop.f32.mrf.mxu0  ;;  %v22632_v23 = vld [vmem:[#allocation14 + $0x88] sm:$0xff]  }
 0x857   :  { %15423 = vmatprep.subr.bf16.mxu1 %v22583_v28  ;;  %v22614_v28 = vld [vmem:[#allocation14 + $0x28] sm:$0xff]   ;;  %v22639_v58 = vld [vmem:[#allocation14 + $0x1f8] sm:$0xff]  }
 0x85a   :  { %15424 = vmatpush2.bf16.msra.mxu1 %v22581_v55  ;;  %v22621_v55 = vld [vmem:[#allocation14 + $0x58] sm:$0xff]  }
 0x85b   :  { %15425 = vmatprep.subr.bf16.mxu1 %v22589_v5  ;;  %v22640_v5 = vld [vmem:[#allocation14 + $0x1b8] sm:$0xff]  }
 0x85e   :  { %15426 = vmatpush2.bf16.msra.mxu1 %v22587_v10  ;;  %v24194_v10 = vld [vmem:[#allocation38_spill] sm:$0xff] }
 0x85f   :  { %19560 = vmatprep.subr.bf16.mxu1 %v22607_v17  ;;  %v22644_v17 = vld [vmem:[#allocation14 + $0x1b0] sm:$0xff]  }
 0x861   :  { %v19523_v18 = vpop.f32.mrf.mxu1  ;;  %15428 = vmatmul.mubr.bf16.vlgmr.msra.gmra.mxu1 %v23987_v32  ;;  %v22619_v32 = vld [vmem:[#allocation14 + $0xe0] sm:$0xff]  }
 0x862   :  { %19561 = vmatpush3.bf16.msra.mxu1 %v22608_v2  ;;  %16119 = vmatprep.mubr.bf16.mxu1 %v24192_v35  ;;  %v22630_v2 = vld [vmem:[#allocation14 + $0x8] sm:$0xff]   ;;  %v22659_v35 = vld [vmem:[#allocation14 + $0x1d0] sm:$0xff]  }
 0x863   :  { %v19524_v25 = vpop.f32.mrf.mxu1  ;;  %19562 = vmatprep.subr.bf16.mxu1 %v22611_v14  ;;  %v22651_v14 = vld [vmem:[#allocation14 + $0x1e0] sm:$0xff]  }
 0x864   :  { %v19525_v54 = vadd.f32 %v19524_v25, %v19523_v18  ;;  %v22655_v18 = vld [vmem:[#allocation14 + $0x1d8] sm:$0xff]   ;;  %v22641_v25 = vld [vmem:[#allocation14 + $0x170] sm:$0xff]  }
 0x865   :  { %v19526_v56 = vpop.f32.mrf.mxu1 }
 0x866   :  { %v14075_v39 = vadd.f32 %v19525_v54, %v14034_v42  ;;  %19563 = vmatpush3.bf16.msra.mxu1 %v22612_v52  ;;  %v22638_v52 = vld [vmem:[#allocation14 + $0x138] sm:$0xff]   ;;  %v22642_v42 = vld [vmem:[#allocation14 + $0x130] sm:$0xff]   ;;  %v22663_v54 = vld [vmem:[#allocation14 + $0x1c8] sm:$0xff]  }
 0x867   :  { %v19527_v8 = vpop.f32.mrf.mxu1  ;;  %19564 = vmatprep.subr.bf16.mxu1 %v22615_v34  ;;  %v24196_v34 = vld [vmem:[#allocation37_spill] sm:$0xff] }
 0x868   :  { %v19528_v51 = vadd.f32 %v19527_v8, %v19526_v56  ;;  %v14116_v53 = vadd.f32 %v14115_v63, %v14075_v39  ;;  %v22631_v63 = vld [vmem:[#allocation14 + $0xc8] sm:$0xff]   ;;  %v22667_v8 = vld [vmem:[#allocation14 + $0x1c0] sm:$0xff]  }
 0x869   :  { %v22645_v56 = vld [vmem:[#allocation14 + $0x168] sm:$0xff]  }
 0x86a   :  { %v14078_v46 = vadd.f32 %v19528_v51, %v14037_v24  ;;  %19565 = vmatpush3.bf16.msra.mxu1 %v22616_v9  ;;  %v14132_v61 = vmax.f32 %v14116_v53, 0.0  ;;  %v22664_v39 = vld [vmem:[#allocation14 + $0x188] sm:$0xff]   ;;  %v22668_v24 = vld [vmem:[#allocation14 + $0x180] sm:$0xff]   ;;  %v24015_v53 = vld [vmem:[#allocation13] sm:$0x3] }
 0x86b   :  { %19566 = vmatprep.subr.bf16.mxu1 %v22619_v32  ;;  %v22646_v9 = vld [vmem:[#allocation14 + $0x128] sm:$0xff]   ;;  %v22649_v32 = vld [vmem:[#allocation14 + $0x160] sm:$0xff]  }
 0x86c   :  { %v14119_v20 = vadd.f32 %v14118_v12, %v14078_v46  ;;  %v22635_v12 = vld [vmem:[#allocation14 + $0xc0] sm:$0xff]   ;;  %v22653_v46 = vld [vmem:[#allocation14 + $0x158] sm:$0xff]  }
 0x86d   :  { %v22650_v51 = vld [vmem:[#allocation14 + $0x120] sm:$0xff]  }
 0x86e   :  { %v14143_v15 = vmax.f32 %v14119_v20, 0.0  ;;  %19567 = vmatpush3.bf16.msra.mxu1 %v22620_v4  ;;  %v24019_v4 = vrot.slane %v24015_v53, %v24153_v31  ;;  %v22657_v20 = vld [vmem:[#allocation14 + $0x150] sm:$0xff]  }
 0x86f   :  { %19568 = vmatprep.subr.bf16.mxu1 %v22623_v50  ;;  %v22654_v50 = vld [vmem:[#allocation14 + $0x118] sm:$0xff]  }
 0x870   :  { %v14154_v26 = vpack.c.bf16 %v14143_v15, %v14132_v61  ;;  %v24198_v15 = vld [vmem:[#allocation42_spill] sm:$0xff] }
 0x872   :  { %15471 = vmatmul.mubr.bf16.vlgmr.msra.gmra.mxu0 %v14154_v26  ;;  %19569 = vmatpush3.bf16.msra.mxu1 %v22624_v41  ;;  %v22661_v26 = vld [vmem:[#allocation14 + $0x148] sm:$0xff]  }
 0x873   :  { %19539 = vmatpush3.bf16.msra.mxu0 %v22606_v59  ;;  %19570 = vmatprep.subr.bf16.mxu1 %v22627_v49  ;;  %v22658_v49 = vld [vmem:[#allocation14 + $0x110] sm:$0xff]  }
 0x874   :  { %19540 = vmatprep.subr.bf16.mxu0 %v22609_v44  ;;  %16078 = vmatprep.mubr.bf16.mxu0 %v24193_v43 }
 0x876   :  { %19571 = vmatpush3.bf16.msra.mxu1 %v22628_v37  ;;  %v22662_v37 = vld [vmem:[#allocation14 + $0x108] sm:$0xff]  }
 0x877   :  { %19541 = vmatpush3.bf16.msra.mxu0 %v22610_v48  ;;  %19572 = vmatprep.subr.bf16.mxu1 %v22631_v63  ;;  %v22665_v48 = vld [vmem:[#allocation14 + $0x140] sm:$0xff]  }
 0x878   :  { %19542 = vmatprep.subr.bf16.mxu0 %v22613_v0  ;;  %v22666_v63 = vld [vmem:[#allocation14 + $0x100] sm:$0xff]  }
 0x879   :  { %v22669_v0 = vld [vmem:[#allocation14 + $0x220] sm:$0x3f]  }
 0x87a   :  { %19573 = vmatpush3.bf16.msra.mxu1 %v22632_v23  ;;  %v16044_v43 = vsel %vm5196_vm0, %v22669_v0, 0  ;;  %v22670_v23 = vld [vmem:[#allocation14 + $0x218] sm:$0xff]  }
 0x87b   :  { %19543 = vmatpush3.bf16.msra.mxu0 %v22614_v28  ;;  %19574 = vmatprep.subr.bf16.mxu1 %v22635_v12  ;;  %v22671_v28 = vld [vmem:[#allocation14 + $0x210] sm:$0xff]   ;;  %v22672_v12 = vld [vmem:[#allocation14 + $0x208] sm:$0xff]  }
 0x87c   :  { %19544 = vmatprep.subr.bf16.mxu0 %v22617_v16  ;;  %v22673_v16 = vld [vmem:[#allocation14 + $0x200] sm:$0xff]  }
 0x87e   :  { %19575 = vmatpush3.bf16.msra.mxu1 %v22636_v57  ;;  %v24200_v57 = vld [vmem:[#allocation43_spill] sm:$0xff] }
 0x87f   :  { %19545 = vmatpush3.bf16.msra.mxu0 %v22618_v62  ;;  %19604 = vmatprep.subr.bf16.mxu1 %v22639_v58 }
 0x880   :  { %19546 = vmatprep.subr.bf16.mxu0 %v22621_v55 }
 0x881   :  { %16120 = vmatmul.mubr.bf16.vlgmr.msra.gmra.mxu1 %v24194_v10 }
 0x882   :  { %19605 = vmatpush3.bf16.msra.mxu1 %v22640_v5  ;;  %16201 = vmatprep.mubr.bf16.mxu1 %v24195_v45 }
 0x883   :  { %19547 = vmatpush3.bf16.msra.mxu0 %v22622_v1  ;;  %19606 = vmatprep.subr.bf16.mxu1 %v22643_v29  ;;  %v22674_v1 = vld [vmem:[#allocation19 + $0xa8] ss:$12 sps:$4 sm:$0xff]   ;;  %v22676_v29 = vld [vmem:[#allocation19 + $0xac] ss:$12 sps:$4 sm:$0xff]  }
 0x884   :  { %19548 = vmatprep.subr.bf16.mxu0 %v22625_v33  ;;  %v22677_v33 = vld [vmem:[#allocation19 + $0xb0] ss:$12 sps:$4 sm:$0xff]  }
 0x886   :  { %19607 = vmatpush3.bf16.msra.mxu1 %v22644_v17 }
 0x887   :  { %19549 = vmatpush3.bf16.msra.mxu0 %v22626_v19  ;;  %19608 = vmatprep.subr.bf16.mxu1 %v22647_v22 }
 0x888   :  { %19550 = vmatprep.subr.bf16.mxu0 %v22629_v3 }
 0x88a   :  { %19609 = vmatpush3.bf16.msra.mxu1 %v22648_v30  ;;  %v22680_v30 = vld [vmem:[#allocation19 + $0x94] ss:$12 sps:$4 sm:$0xff]  }
 0x88b   :  { %19551 = vmatpush3.bf16.msra.mxu0 %v22630_v2  ;;  %19610 = vmatprep.subr.bf16.mxu1 %v22651_v14  ;;  %v22678_v2 = vld [vmem:[#allocation19 + $0x90] ss:$12 sps:$4 sm:$0xff]   ;;  %v22681_v14 = vld [vmem:[#allocation19 + $0x98] ss:$12 sps:$4 sm:$0xff]  }
 0x88c   :  { %19552 = vmatprep.subr.bf16.mxu0 %v22633_v36  ;;  %v22684_v36 = vld [vmem:[#allocation19 + $0x7c] ss:$12 sps:$4 sm:$0xff]  }
 0x88e   :  { %19611 = vmatpush3.bf16.msra.mxu1 %v22652_v27  ;;  %v22682_v27 = vld [vmem:[#allocation19 + $0x78] ss:$12 sps:$4 sm:$0xff]  }
 0x88f   :  { %19553 = vmatpush3.bf16.msra.mxu0 %v22634_v6  ;;  %19612 = vmatprep.subr.bf16.mxu1 %v22655_v18  ;;  %v22685_v6 = vld [vmem:[#allocation19 + $0x80] ss:$12 sps:$4 sm:$0xff]   ;;  %v22688_v18 = vld [vmem:[#allocation19 + $0x64] ss:$12 sps:$4 sm:$0xff]  }
 0x890   :  { %19582 = vmatprep.subr.bf16.mxu0 %v22637_v40  ;;  %v15300_v59 = vpop.f32.mrf.mxu0  ;;  %v22686_v40 = vld [vmem:[#allocation19 + $0x60] ss:$12 sps:$4 sm:$0xff]  }
 0x892   :  { %16079 = vmatmul.mubr.bf16.vlgmr.msra.gmra.mxu0 %v24196_v34  ;;  %19613 = vmatpush3.bf16.msra.mxu1 %v22656_v60  ;;  %v24040_v58 = vpop.f32.mrf.mxu0  ;;  %v22689_v60 = vld [vmem:[#allocation19 + $0x68] ss:$12 sps:$4 sm:$0xff]  }
 0x893   :  { %19583 = vmatpush3.bf16.msra.mxu0 %v22638_v52  ;;  %19614 = vmatprep.subr.bf16.mxu1 %v22659_v35  ;;  %v22692_v52 = vld [vmem:[#allocation19 + $0x4c] ss:$12 sps:$4 sm:$0xff]   ;;  %v22690_v35 = vld [vmem:[#allocation19 + $0x48] ss:$12 sps:$4 sm:$0xff]  }
 0x894   :  { %19584 = vmatprep.subr.bf16.mxu0 %v22641_v25  ;;  %16160 = vmatprep.mubr.bf16.mxu0 %v24197_v47  ;;  %v24044_v5 = vpop.f32.mrf.mxu0  ;;  %v22693_v25 = vld [vmem:[#allocation19 + $0x50] ss:$12 sps:$4 sm:$0xff]   ;;  %v22696_v34 = vld [vmem:[#allocation19 + $0x34] ss:$12 sps:$4 sm:$0xff]  }
 0x895   :  { %v22701_v47 = vld [vmem:[#allocation19 + $0x20] ss:$12 sps:$4 sm:$0xff]  }
 0x896   :  { %19615 = vmatpush3.bf16.msra.mxu1 %v22660_v21  ;;  %v24049_v17 = vpop.f32.mrf.mxu0  ;;  %v22694_v21 = vld [vmem:[#allocation19 + $0x30] ss:$12 sps:$4 sm:$0xff]  }
 0x897   :  { %19585 = vmatpush3.bf16.msra.mxu0 %v22642_v42  ;;  %19616 = vmatprep.subr.bf16.mxu1 %v22663_v54  ;;  %v22697_v42 = vld [vmem:[#allocation19 + $0x38] ss:$12 sps:$4 sm:$0xff]   ;;  %v22700_v54 = vld [vmem:[#allocation19 + $0x1c] ss:$12 sps:$4 sm:$0xff]  }
 0x898   :  { %19586 = vmatprep.subr.bf16.mxu0 %v22645_v56  ;;  %v22698_v56 = vld [vmem:[#allocation19 + $0x18] ss:$12 sps:$4 sm:$0xff]  }
 0x89a   :  { %19617 = vmatpush3.bf16.msra.mxu1 %v22664_v39  ;;  %v22704_v39 = vld [vmem:[#allocation19 + $0x4] ss:$12 sps:$4 sm:$0xff]  }
 0x89b   :  { %19587 = vmatpush3.bf16.msra.mxu0 %v22646_v9  ;;  %19618 = vmatprep.subr.bf16.mxu1 %v22667_v8  ;;  %v22702_v9 = vld [vmem:[#allocation19] ss:$12 sps:$4 sm:$0xff]   ;;  %v22705_v8 = vld [vmem:[#allocation19 + $0x8] ss:$12 sps:$4 sm:$0xff]  }
 0x89c   :  { %19588 = vmatprep.subr.bf16.mxu0 %v22649_v32  ;;  %v22708_v32 = vld [vmem:[#allocation17 + $0xac] ss:$12 sps:$4 sm:$0xff]  }
 0x89e   :  { %19619 = vmatpush3.bf16.msra.mxu1 %v22668_v24  ;;  %v22709_v24 = vld [vmem:[#allocation17 + $0x170] ss:$12 sps:$4 sm:$0xff]  }
 0x89f   :  { %19589 = vmatpush3.bf16.msra.mxu0 %v22650_v51  ;;  %16480 = vmatprep.subr.bf16.mxu1 %v22676_v29 }
 0x8a0   :  { %19590 = vmatprep.subr.bf16.mxu0 %v22653_v46 }
 0x8a1   :  { %v15257_v61 = vpop.f32.mrf.mxu1  ;;  %16202 = vmatmul.mubr.bf16.vlgmr.msra.gmra.mxu1 %v24198_v15 }
 0x8a2   :  { %v15258_v41 = vadd.f32 %v15257_v61, %v24019_v4  ;;  %16512 = vmatprep.mubr.bf16.mxu1 %v24189_v38  ;;  %v24199_v38 = vld [vmem:[#allocation41_spill] sm:$0xff]  ;;  %16481 = vmatpush1.bf16.msra.mxu1 %v22674_v1 }
 0x8a3   :  { %19591 = vmatpush3.bf16.msra.mxu0 %v22654_v50  ;;  %v24038_v62 = vpop.f32.mrf.mxu1  ;;  %16482 = vmatprep.subr.bf16.mxu1 %v22680_v30 }
 0x8a4   :  { %19592 = vmatprep.subr.bf16.mxu0 %v22657_v20  ;;  %v15301_v44 = vadd.f32 %v15300_v59, %v15258_v41 }
 0x8a5   :  { %v24042_v55 = vpop.f32.mrf.mxu1 }
 0x8a6   :  { %16483 = vmatpush1.bf16.msra.mxu1 %v22678_v2  ;;  %v15262_v61 = vadd.f32 %v24042_v55, %v24019_v4 }
 0x8a7   :  { %19593 = vmatpush3.bf16.msra.mxu0 %v22658_v49  ;;  %v24046_v10 = vpop.f32.mrf.mxu1  ;;  %16484 = vmatprep.subr.bf16.mxu1 %v22684_v36 }
 0x8a8   :  { %19594 = vmatprep.subr.bf16.mxu0 %v22661_v26  ;;  %v15305_v59 = vadd.f32 %v24044_v5, %v15262_v61 }
 0x8aa   :  { %16485 = vmatpush1.bf16.msra.mxu1 %v22682_v27  ;;  %v14340_v27 = vrot.slane %v24015_v53, %v23529_v11 }
 0x8ab   :  { %19595 = vmatpush3.bf16.msra.mxu0 %v22662_v37  ;;  %16486 = vmatprep.subr.bf16.mxu1 %v22688_v18  ;;  %v19157_v18 = vld [vmem:[#allocation16] ss:$0 sm:$0xff] }
 0x8ac   :  { %19596 = vmatprep.subr.bf16.mxu0 %v22665_v48 }
 0x8ae   :  { %16487 = vmatpush1.bf16.msra.mxu1 %v22686_v40 }
 0x8af   :  { %19597 = vmatpush3.bf16.msra.mxu0 %v22666_v63  ;;  %16488 = vmatprep.subr.bf16.mxu1 %v22692_v52  ;;  %v15264_v52 = vadd.f32 %v24046_v10, %v14340_v27 }
 0x8b0   :  { %19728 = vmatprep.subr.bf16.mxu0 %v24149_v7 }
 0x8b2   :  { %16161 = vmatmul.mubr.bf16.vlgmr.msra.gmra.mxu0 %v24199_v38  ;;  %16489 = vmatpush1.bf16.msra.mxu1 %v22690_v35 }
 0x8b3   :  { %19729 = vmatpush3.bf16.msra.mxu0 %v16044_v43  ;;  %19738 = vmatprep.mubr.msk.bf16.mxu0 %vm23146_vm2, %v24149_v7 }
 0x8b4   :  { %19730 = vmatprep.subr.bf16.mxu0 %v24149_v7  ;;  %16490 = vmatprep.subr.bf16.mxu1 %v22696_v34 }
 0x8b6   :  { %16491 = vmatpush1.bf16.msra.mxu1 %v22694_v21 }
 0x8b7   :  { %19731 = vmatpush3.bf16.msra.mxu0 %v22670_v23  ;;  %16492 = vmatprep.subr.bf16.mxu1 %v22700_v54 }
 0x8b8   :  { %19732 = vmatprep.subr.bf16.mxu0 %v24149_v7 }
 0x8ba   :  { %16493 = vmatpush1.bf16.msra.mxu1 %v22698_v56  ;;  %v15307_v56 = vadd.f32 %v24049_v17, %v15264_v52  ;;  %v22730_v52 = vld [vmem:[#allocation17 + $0x50] ss:$12 sps:$4 sm:$0xff]  }
 0x8bb   :  { %19733 = vmatpush3.bf16.msra.mxu0 %v22671_v28  ;;  %16494 = vmatprep.subr.bf16.mxu1 %v22704_v39 }
 0x8bc   :  { %19734 = vmatprep.subr.bf16.mxu0 %v24149_v7 }
 0x8be   :  { %16495 = vmatpush1.bf16.msra.mxu1 %v22702_v9 }
 0x8bf   :  { %19735 = vmatpush3.bf16.msra.mxu0 %v22672_v12  ;;  %16820 = vmatprep.subr.bf16.mxu1 %v22708_v32 }
 0x8c0   :  { %19736 = vmatprep.subr.bf16.mxu0 %v24149_v7 }
 0x8c3   :  { %19737 = vmatpush3.bf16.msra.mxu0 %v22673_v16 }
 0x8c4   :  { %19742 = vmatprep.subr.bf16.mxu0 %v24149_v7 }
 0x8c6   :  { %19739 = vmatmul.mubr.msk.bf16.vlgmr.msra.gmra.mxu0 %vm5192_vm1, %v24200_v57 }
 0x8c7   :  { %19758 = vmatprep.mubr.msk.bf16.mxu0 %vm23146_vm2, %v24149_v7  ;;  %19743 = vmatpush3.bf16.msra.mxu0 %v22677_v33 }
 0x8c8   :  { %19744 = vmatprep.subr.bf16.mxu0 %v24149_v7 }
 0x8cb   :  { %19745 = vmatpush3.bf16.msra.mxu0 %v22681_v14 }
 0x8cc   :  { %19746 = vmatprep.subr.bf16.mxu0 %v24149_v7 }
 0x8cf   :  { %19747 = vmatpush3.bf16.msra.mxu0 %v22685_v6 }
 0x8d0   :  { %v15386_v22 = vpop.f32.mrf.mxu0  ;;  %19748 = vmatprep.subr.bf16.mxu0 %v24149_v7 }
 0x8d2   :  { %v24059_v50 = vpop.f32.mrf.mxu0 }
 0x8d3   :  { %19749 = vmatpush3.bf16.msra.mxu0 %v22689_v60 }
 0x8d4   :  { %19750 = vmatprep.subr.bf16.mxu0 %v24149_v7  ;;  %v15390_v41 = vpop.f32.mrf.mxu0 }
 0x8d7   :  { %19751 = vmatpush3.bf16.msra.mxu0 %v22693_v25  ;;  %v15260_v25 = vadd.f32 %v24038_v62, %v14340_v27  ;;  %v22721_v27 = vld [vmem:[#allocation17 + $0x60] ss:$12 sps:$4 sm:$0xff]  }
 0x8d8   :  { %19752 = vmatprep.subr.bf16.mxu0 %v24149_v7 }
 0x8d9   :  { %v15303_v53 = vadd.f32 %v24040_v58, %v15260_v25  ;;  %v22734_v25 = vld [vmem:[#allocation17 + $0xf8] ss:$12 sps:$4 sm:$0xff]  }
 0x8db   :  { %19753 = vmatpush3.bf16.msra.mxu0 %v22697_v42 }
 0x8dc   :  { %19754 = vmatprep.subr.bf16.mxu0 %v24149_v7 }
 0x8df   :  { %19755 = vmatpush3.bf16.msra.mxu0 %v22701_v47 }
 0x8e0   :  { %19756 = vmatprep.subr.bf16.mxu0 %v24149_v7 }
 0x8e1   :  { %v15343_v45 = vpop.f32.mrf.mxu1 }
 0x8e2   :  { %v15344_v19 = vadd.f32 %v15343_v45, %v15301_v44  ;;  %v15392_v44 = vpop.f32.mrf.mxu0 }
 0x8e3   :  { %19757 = vmatpush3.bf16.msra.mxu0 %v22705_v8  ;;  %v15345_v51 = vpop.f32.mrf.mxu1 }
 0x8e4   :  { %v24051_v3 = vadd.f32 %v15386_v22, %v15344_v19  ;;  %19641 = vmatprep.subr.bf16.mxu0 %v22709_v24  ;;  %v15346_v61 = vadd.f32 %v15345_v51, %v15303_v53  ;;  %v22741_v53 = vld [vmem:[#allocation17] ss:$12 sps:$4 sm:$0xff]  }
 0x8e5   :  { %v15347_v46 = vpop.f32.mrf.mxu1 }
 0x8e6   :  { %v15348_v26 = vadd.f32 %v15347_v46, %v15305_v59 }
 0x8e7   :  { %v15349_v20 = vpop.f32.mrf.mxu1 }
 0x8e8   :  { %v15391_v0 = vadd.f32 %v15390_v41, %v15348_v26  ;;  %v15350_v8 = vadd.f32 %v15349_v20, %v15307_v56  ;;  %v22736_v56 = vld [vmem:[#allocation17 + $0x18] ss:$12 sps:$4 sm:$0xff]  }
 0x8ea   :  { %v15393_v62 = vadd.f32 %v15392_v44, %v15350_v8  ;;  %v22706_v44 = vld [vmem:[#allocation17 + $0xa8] ss:$12 sps:$4 sm:$0xff]  }
 0x8eb   :  { %v22745_v8 = vld [vmem:[#allocation17 + $0x8] ss:$12 sps:$4 sm:$0xff]  }
 0x921   :  { %v15429_v15 = vpop.f32.mrf.mxu1 }
 0x922   :  { %v15430_v63 = vadd.f32 %v15429_v15, %v24051_v3 }
 0x923   :  { %v15431_v49 = vpop.f32.mrf.mxu1 }
 0x925   :  { %v15433_v37 = vpop.f32.mrf.mxu1 }
 0x926   :  { %v15434_v38 = vadd.f32 %v15433_v37, %v15391_v0 }
 0x927   :  { %v15435_v5 = vpop.f32.mrf.mxu1 }
 0x928   :  { %v15436_v17 = vadd.f32 %v15435_v5, %v15393_v62  ;;  %v22755_v62 = vld [vmem:[#allocation17 + $0x120] ss:$12 sps:$4 sm:$0xff]  }
 0x932   :  { %v15472_v48 = vpop.f32.mrf.mxu0 }
 0x933   :  { %v15473_v23 = vadd.f32 %v15472_v48, %v15430_v63  ;;  %v15389_v48 = vadd.f32 %v24059_v50, %v15346_v61  ;;  %v22714_v50 = vld [vmem:[#allocation17 + $0x158] ss:$12 sps:$4 sm:$0xff]   ;;  %v22749_v61 = vld [vmem:[#allocation17 + $0x150] ss:$12 sps:$4 sm:$0xff]  }
 0x934   :  { %v15474_v43 = vpop.f32.mrf.mxu0 }
 0x935   :  { %v15481_v16 = vmax.f32 %v15473_v23, 0.0 }
 0x936   :  { %v15476_v28 = vpop.f32.mrf.mxu0 }
 0x937   :  { %v15477_v12 = vadd.f32 %v15476_v28, %v15434_v38  ;;  %v15432_v38 = vadd.f32 %v15431_v49, %v15389_v48  ;;  %v22711_v49 = vld [vmem:[#allocation17 + $0x90] ss:$12 sps:$4 sm:$0xff]  }
 0x938   :  { %v15478_v55 = vpop.f32.mrf.mxu0  ;;  %v22761_v48 = vld [vmem:[#allocation17 + $0xf0] ss:$12 sps:$4 sm:$0xff]  }
 0x939   :  { %v15483_v57 = vmax.f32 %v15477_v12, 0.0  ;;  %v15479_v23 = vadd.f32 %v15478_v55, %v15436_v17  ;;  %v15475_v12 = vadd.f32 %v15474_v43, %v15432_v38  ;;  %v22715_v55 = vld [vmem:[#allocation17 + $0x98] ss:$12 sps:$4 sm:$0xff]   ;;  %v22718_v43 = vld [vmem:[#allocation17 + $0x7c] ss:$12 sps:$4 sm:$0xff]  }
 0x93a   :  { %v22766_v17 = vld [vmem:[#allocation17 + $0xdc] ss:$12 sps:$4 sm:$0xff]   ;;  %v22767_v38 = vld [vmem:[#allocation17 + $0xc0] ss:$12 sps:$4 sm:$0xff]  }
 0x93b   :  { %v24065_v4 = vpack.c.bf16 %v15483_v57, %v15481_v16  ;;  %v15484_v57 = vmax.f32 %v15479_v23, 0.0  ;;  %v22770_v23 = vld [vmem:[#allocation22 + $0xb8] sm:$0xff]  }
 0x941   :  { %v19576_v33 = vpop.f32.mrf.mxu1 }
 0x943   :  { %v19577_v19 = vpop.f32.mrf.mxu1 }
 0x944   :  { %v19578_v21 = vadd.f32 %v19577_v19, %v19576_v33  ;;  %v22710_v33 = vld [vmem:[#allocation17 + $0xb0] ss:$12 sps:$4 sm:$0xff]  }
 0x945   :  { %v19579_v30 = vpop.f32.mrf.mxu1 }
 0x947   :  { %v19580_v2 = vpop.f32.mrf.mxu1 }
 0x948   :  { %v19581_v39 = vadd.f32 %v19580_v2, %v19579_v30  ;;  %v22719_v30 = vld [vmem:[#allocation17 + $0x140] ss:$12 sps:$4 sm:$0xff]  }
 0x949   :  { %v22720_v2 = vld [vmem:[#allocation17 + $0x80] ss:$12 sps:$4 sm:$0xff]  }
 0x952   :  { %v19554_v1 = vpop.f32.mrf.mxu0 }
 0x954   :  { %v19555_v29 = vpop.f32.mrf.mxu0 }
 0x955   :  { %v19556_v6 = vadd.f32 %v19555_v29, %v19554_v1 }
 0x956   :  { %v19557_v45 = vpop.f32.mrf.mxu0 }
 0x957   :  { %v16081_v34 = vadd.f32 %v19556_v6, %v19157_v18  ;;  %v22725_v6 = vld [vmem:[#allocation17 + $0x68] ss:$12 sps:$4 sm:$0xff]  }
 0x958   :  { %v19558_v22 = vpop.f32.mrf.mxu0 }
 0x959   :  { %v19559_v35 = vadd.f32 %v19558_v22, %v19557_v45  ;;  %v16122_v32 = vadd.f32 %v19578_v21, %v16081_v34  ;;  %v15482_v45 = vmax.f32 %v15475_v12, 0.0  ;;  %v22713_v22 = vld [vmem:[#allocation17 + $0x94] ss:$12 sps:$4 sm:$0xff]   ;;  %v22731_v34 = vld [vmem:[#allocation17 + $0x30] ss:$12 sps:$4 sm:$0xff]  }
 0x95a   :  { %v22735_v21 = vld [vmem:[#allocation17 + $0x38] ss:$12 sps:$4 sm:$0xff]  }
 0x95b   :  { %v16084_v47 = vadd.f32 %v19559_v35, %v19157_v18  ;;  %v16254_v5 = vpack.c.bf16 %v15484_v57, %v15482_v45  ;;  %v22728_v18 = vld [vmem:[#allocation17 + $0x4c] ss:$12 sps:$4 sm:$0xff]   ;;  %v22733_v35 = vld [vmem:[#allocation17 + $0x34] ss:$12 sps:$4 sm:$0xff]  }
 0x95c   :  { %v22775_v12 = vld [vmem:[#allocation22 + $0x90] sm:$0xff]   ;;  %v22778_v57 = vld [vmem:[#allocation22 + $0x78] sm:$0xff]   ;;  %v22783_v45 = vld [vmem:[#allocation22 + $0x28] sm:$0xff]  }
 0x95d   :  { %v16125_v10 = vadd.f32 %v19581_v39, %v16084_v47  ;;  %v22740_v47 = vld [vmem:[#allocation17 + $0x20] ss:$12 sps:$4 sm:$0xff]   ;;  %v22743_v39 = vld [vmem:[#allocation17 + $0x4] ss:$12 sps:$4 sm:$0xff]  }
 0x961   :  { %v19620_v36 = vpop.f32.mrf.mxu1 }
 0x963   :  { %v19621_v60 = vpop.f32.mrf.mxu1 }
 0x964   :  { %v19622_v41 = vadd.f32 %v19621_v60, %v19620_v36  ;;  %v22724_v36 = vld [vmem:[#allocation17 + $0x128] ss:$12 sps:$4 sm:$0xff]  }
 0x965   :  { %v19623_v54 = vpop.f32.mrf.mxu1  ;;  %v22726_v60 = vld [vmem:[#allocation17 + $0x48] ss:$12 sps:$4 sm:$0xff]  }
 0x967   :  { %v19624_v46 = vpop.f32.mrf.mxu1 }
 0x968   :  { %v19625_v26 = vadd.f32 %v19624_v46, %v19623_v54  ;;  %v22739_v54 = vld [vmem:[#allocation17 + $0xe0] ss:$12 sps:$4 sm:$0xff]  }
 0x969   :  { %v22751_v46 = vld [vmem:[#allocation17 + $0x154] ss:$12 sps:$4 sm:$0xff]  }
 0x972   :  { %v19598_v3 = vpop.f32.mrf.mxu0 }
 0x974   :  { %v19599_v14 = vpop.f32.mrf.mxu0 }
 0x975   :  { %v19600_v9 = vadd.f32 %v19599_v14, %v19598_v3  ;;  %v22716_v3 = vld [vmem:[#allocation17 + $0x78] ss:$12 sps:$4 sm:$0xff]  }
 0x976   :  { %v19601_v40 = vpop.f32.mrf.mxu0  ;;  %v22723_v14 = vld [vmem:[#allocation17 + $0x64] ss:$12 sps:$4 sm:$0xff]  }
 0x977   :  { %v16163_v15 = vadd.f32 %v19600_v9, %v16122_v32  ;;  %v22744_v9 = vld [vmem:[#allocation17 + $0xc8] ss:$12 sps:$4 sm:$0xff]   ;;  %v22748_v32 = vld [vmem:[#allocation17 + $0x16c] ss:$12 sps:$4 sm:$0xff]  }
 0x978   :  { %v19602_v42 = vpop.f32.mrf.mxu0 }
 0x979   :  { %v19603_v24 = vadd.f32 %v19602_v42, %v19601_v40  ;;  %v16204_v63 = vadd.f32 %v19622_v41, %v16163_v15  ;;  %v22729_v40 = vld [vmem:[#allocation17 + $0x110] ss:$12 sps:$4 sm:$0xff]   ;;  %v22752_v15 = vld [vmem:[#allocation17 + $0x138] ss:$12 sps:$4 sm:$0xff]  }
 0x97a   :  { %v22738_v42 = vld [vmem:[#allocation17 + $0x1c] ss:$12 sps:$4 sm:$0xff]   ;;  %v22757_v41 = vld [vmem:[#allocation17 + $0x124] ss:$12 sps:$4 sm:$0xff]  }
 0x97b   :  { %v16166_v59 = vadd.f32 %v19603_v24, %v16125_v10  ;;  %v22746_v24 = vld [vmem:[#allocation17 + $0x168] ss:$12 sps:$4 sm:$0xff]  }
 0x97c   :  { %v22754_v10 = vld [vmem:[#allocation17 + $0x13c] ss:$12 sps:$4 sm:$0xff]  }
 0x97d   :  { %v16207_v20 = vadd.f32 %v19625_v26, %v16166_v59  ;;  %v22760_v59 = vld [vmem:[#allocation17 + $0x10c] ss:$12 sps:$4 sm:$0xff]   ;;  %v22758_v26 = vld [vmem:[#allocation17 + $0x108] ss:$12 sps:$4 sm:$0xff]  }
 0x986   :  { %v16244_v37 = vpop.f32.mrf.mxu0 }
 0x987   :  { %v16245_v58 = vadd.f32 %v16244_v37, %v16204_v63  ;;  %v22763_v37 = vld [vmem:[#allocation17 + $0xf4] ss:$12 sps:$4 sm:$0xff]   ;;  %v22764_v63 = vld [vmem:[#allocation17 + $0xd8] ss:$12 sps:$4 sm:$0xff]  }
 0x988   :  { %v19740_v0 = vpop.f32.mrf.mxu0 }
 0x989   :  { %v16251_v1 = vmax.f32 %v16245_v58, 0.0  ;;  %v22769_v0 = vld [vmem:[#allocation17 + $0xc4] ss:$12 sps:$4 sm:$0xff]   ;;  %v22771_v58 = vld [vmem:[#allocation22 + $0xb0] sm:$0xff]  }
 0x98a   :  { %v16247_v28 = vpop.f32.mrf.mxu0 }
 0x98b   :  { %v16248_v16 = vadd.f32 %v16247_v28, %v16207_v20  ;;  %v22772_v20 = vld [vmem:[#allocation22 + $0xa8] sm:$0xff]   ;;  %v22773_v28 = vld [vmem:[#allocation22 + $0xa0] sm:$0xff]  }
 0x98c   :  { %v19741_v51 = vpop.f32.mrf.mxu0 }
 0x98d   :  { %v16252_v29 = vmax.f32 %v16248_v16, 0.0  ;;  %v22776_v16 = vld [vmem:[#allocation22 + $0x88] sm:$0xff]   ;;  %v22777_v51 = vld [vmem:[#allocation22 + $0x80] sm:$0xff]  }
 0x98f   :  { %v16319_v19 = vpack.c.bf16 %v16252_v29, %v16251_v1  ;;  %v22779_v1 = vld [vmem:[#allocation22 + $0x38] sm:$0xff]   ;;  %v22780_v29 = vld [vmem:[#allocation22 + $0x70] sm:$0xff]  }
 0x991   :  { %16513 = vmatmul.mubr.bf16.vlgmr.msra.gmra.mxu1 %v16319_v19  ;;  %19759 = vmatmul.mubr.bf16.vlgmr.msra.gmra.mxu0 %v16319_v19  ;;  %v22784_v19 = vld [vmem:[#allocation22 + $0x60] sm:$0xff]  }
 0x992   :  { %16821 = vmatpush1.bf16.msra.mxu1 %v22706_v44  ;;  %19642 = vmatpush3.bf16.msra.mxu0 %v22710_v33  ;;  %v22781_v44 = vld [vmem:[#allocation22 + $0x30] sm:$0xff]   ;;  %v22782_v33 = vld [vmem:[#allocation22 + $0x68] sm:$0xff]  }
 0x993   :  { %16852 = vmatprep.mubr.bf16.mxu1 %v16254_v5  ;;  %16895 = vmatprep.mubr.bf16.mxu0 %v16254_v5  ;;  %v22788_v5 = vld [vmem:[#allocation22 + $0x50] sm:$0xff]  }
 0x994   :  { %16822 = vmatprep.subr.bf16.mxu1 %v22713_v22  ;;  %19643 = vmatprep.subr.bf16.mxu0 %v22714_v50  ;;  %v22785_v22 = vld [vmem:[#allocation22 + $0x20] sm:$0xff]   ;;  %v22786_v50 = vld [vmem:[#allocation22 + $0x58] sm:$0xff]  }
 0x996   :  { %16823 = vmatpush1.bf16.msra.mxu1 %v22711_v49  ;;  %19644 = vmatpush3.bf16.msra.mxu0 %v22715_v55  ;;  %v22789_v49 = vld [vmem:[#allocation22 + $0x10] sm:$0xff]   ;;  %v22790_v55 = vld [vmem:[#allocation22 + $0x48] sm:$0xff]  }
 0x997   :  { %16824 = vmatprep.subr.bf16.mxu1 %v22718_v43  ;;  %19645 = vmatprep.subr.bf16.mxu0 %v22719_v30  ;;  %v22791_v43 = vld [vmem:[#allocation22 + $0x8] sm:$0xff]   ;;  %v22792_v30 = vld [vmem:[#allocation22 + $0x40] sm:$0xff]  }
 0x99a   :  { %16825 = vmatpush1.bf16.msra.mxu1 %v22716_v3  ;;  %19646 = vmatpush3.bf16.msra.mxu0 %v22720_v2  ;;  %v22793_v3 = vld [vmem:[#allocation22] sm:$0xff]  }
 0x99b   :  { %16826 = vmatprep.subr.bf16.mxu1 %v22723_v14  ;;  %19647 = vmatprep.subr.bf16.mxu0 %v22724_v36 }
 0x99e   :  { %16827 = vmatpush1.bf16.msra.mxu1 %v22721_v27  ;;  %19648 = vmatpush3.bf16.msra.mxu0 %v22725_v6 }
 0x99f   :  { %16828 = vmatprep.subr.bf16.mxu1 %v22728_v18  ;;  %19649 = vmatprep.subr.bf16.mxu0 %v22729_v40  ;;  %v16904_v40 = vld [vmem:[#allocation20] sm:$0x7] }
 0x9a2   :  { %16829 = vmatpush1.bf16.msra.mxu1 %v22726_v60  ;;  %19650 = vmatpush3.bf16.msra.mxu0 %v22730_v52 }
 0x9a3   :  { %16830 = vmatprep.subr.bf16.mxu1 %v22733_v35  ;;  %19651 = vmatprep.subr.bf16.mxu0 %v22734_v25  ;;  %v16917_v25 = vrot.slane %v16904_v40, %v24191_v13  ;;  %v16909_v13 = vrot.slane %v16904_v40, %v24153_v31 }
 0x9a6   :  { %16831 = vmatpush1.bf16.msra.mxu1 %v22731_v34  ;;  %19652 = vmatpush3.bf16.msra.mxu0 %v22735_v21 }
 0x9a7   :  { %16832 = vmatprep.subr.bf16.mxu1 %v22738_v42  ;;  %19653 = vmatprep.subr.bf16.mxu0 %v22739_v54 }
 0x9aa   :  { %16833 = vmatpush1.bf16.msra.mxu1 %v22736_v56  ;;  %19654 = vmatpush3.bf16.msra.mxu0 %v22740_v47 }
 0x9ab   :  { %16834 = vmatprep.subr.bf16.mxu1 %v22743_v39  ;;  %19655 = vmatprep.subr.bf16.mxu0 %v22744_v9 }
 0x9ae   :  { %16835 = vmatpush1.bf16.msra.mxu1 %v22741_v53  ;;  %19656 = vmatpush3.bf16.msra.mxu0 %v22745_v8 }
 0x9af   :  { %16836 = vmatprep.subr.bf16.mxu1 %v22748_v32  ;;  %19663 = vmatprep.subr.bf16.mxu0 %v22778_v57  ;;  %v19300_v57 = vld [vmem:[#allocation23] ss:$0 sm:$0xff] }
 0x9b1   :  { %16896 = vmatmul.mubr.bf16.vlgmr.msra.gmra.mxu0 %v24065_v4 }
 0x9b2   :  { %16837 = vmatpush2.bf16.msra.mxu1 %v22746_v24  ;;  %19664 = vmatpush3.bf16.msra.mxu0 %v22779_v1 }
 0x9b3   :  { %16838 = vmatprep.subr.bf16.mxu1 %v22751_v46  ;;  %19665 = vmatprep.subr.bf16.mxu0 %v22780_v29 }
 0x9b6   :  { %16839 = vmatpush2.bf16.msra.mxu1 %v22749_v61  ;;  %19666 = vmatpush3.bf16.msra.mxu0 %v22781_v44 }
 0x9b7   :  { %16840 = vmatprep.subr.bf16.mxu1 %v22754_v10  ;;  %19667 = vmatprep.subr.bf16.mxu0 %v22782_v33 }
 0x9ba   :  { %16841 = vmatpush2.bf16.msra.mxu1 %v22752_v15  ;;  %19668 = vmatpush3.bf16.msra.mxu0 %v22783_v45  ;;  %v16913_v15 = vrot.slane %v16904_v40, %v23529_v11 }
 0x9bb   :  { %16842 = vmatprep.subr.bf16.mxu1 %v22757_v41  ;;  %19669 = vmatprep.subr.bf16.mxu0 %v22784_v19 }
 0x9be   :  { %16843 = vmatpush2.bf16.msra.mxu1 %v22755_v62  ;;  %19670 = vmatpush3.bf16.msra.mxu0 %v22785_v22 }
 0x9bf   :  { %16844 = vmatprep.subr.bf16.mxu1 %v22760_v59  ;;  %19671 = vmatprep.subr.bf16.mxu0 %v22786_v50 }
 0x9c2   :  { %16845 = vmatpush2.bf16.msra.mxu1 %v22758_v26 }
 0x9c3   :  { %16846 = vmatprep.subr.bf16.mxu1 %v22763_v37 }
 0x9c6   :  { %16847 = vmatpush2.bf16.msra.mxu1 %v22761_v48 }
 0x9c7   :  { %16848 = vmatprep.subr.bf16.mxu1 %v22766_v17 }
 0x9ca   :  { %16849 = vmatpush2.bf16.msra.mxu1 %v22764_v63 }
 0x9cb   :  { %16850 = vmatprep.subr.bf16.mxu1 %v22769_v0 }
 0x9ce   :  { %16851 = vmatpush2.bf16.msra.mxu1 %v22767_v38 }
 0x9cf   :  { %19762 = vmatprep.subr.bf16.mxu1 %v24149_v7 }
 0x9d1   :  { %16853 = vmatmul.mubr.bf16.vlgmr.msra.gmra.mxu1 %v24065_v4  ;;  %v22774_v4 = vld [vmem:[#allocation22 + $0x98] sm:$0xff]  }
 0x9d2   :  { %19778 = vmatprep.mubr.msk.bf16.mxu1 %vm23146_vm2, %v24149_v7  ;;  %19763 = vmatpush3.bf16.msra.mxu1 %v22770_v23 }
 0x9d3   :  { %19764 = vmatprep.subr.bf16.mxu1 %v24149_v7 }
 0x9d6   :  { %19765 = vmatpush3.bf16.msra.mxu1 %v22771_v58 }
 0x9d7   :  { %19766 = vmatprep.subr.bf16.mxu1 %v24149_v7 }
 0x9da   :  { %19767 = vmatpush3.bf16.msra.mxu1 %v22772_v20 }
 0x9db   :  { %19768 = vmatprep.subr.bf16.mxu1 %v24149_v7 }
 0x9de   :  { %19769 = vmatpush3.bf16.msra.mxu1 %v22773_v28 }
 0x9df   :  { %19770 = vmatprep.subr.bf16.mxu1 %v24149_v7 }
 0x9e2   :  { %19771 = vmatpush3.bf16.msra.mxu1 %v22774_v4 }
 0x9e3   :  { %19772 = vmatprep.subr.bf16.mxu1 %v24149_v7 }
 0x9e6   :  { %19773 = vmatpush3.bf16.msra.mxu1 %v22775_v12 }
 0x9e7   :  { %19774 = vmatprep.subr.bf16.mxu1 %v24149_v7 }
 0x9ea   :  { %19775 = vmatpush3.bf16.msra.mxu1 %v22776_v16 }
 0x9eb   :  { %19776 = vmatprep.subr.bf16.mxu1 %v24149_v7  ;;  %v22787_v7 = vld [vmem:[#allocation22 + $0x18] sm:$0xff]  }
 0x9ec   :  { %19672 = vmatpush3.bf16.msra.mxu0 %v22787_v7 }
 0x9ed   :  { %19673 = vmatprep.subr.bf16.mxu0 %v22788_v5 }
 0x9ee   :  { %19777 = vmatpush3.bf16.msra.mxu1 %v22777_v51 }
 0x9f0   :  { %19674 = vmatpush3.bf16.msra.mxu0 %v22789_v49 }
 0x9f1   :  { %19675 = vmatprep.subr.bf16.mxu0 %v22790_v55 }
 0x9f4   :  { %19676 = vmatpush3.bf16.msra.mxu0 %v22791_v43 }
 0x9f5   :  { %19677 = vmatprep.subr.bf16.mxu0 %v22792_v30 }
 0x9f8   :  { %19678 = vmatpush3.bf16.msra.mxu0 %v22793_v3 }
 0xa51   :  { %v16557_v2 = vpop.f32.mrf.mxu0  ;;  %v16514_v53 = vpop.f32.mrf.mxu1 }
 0xa53   :  { %v19760_v14 = vpop.f32.mrf.mxu0  ;;  %v16516_v8 = vpop.f32.mrf.mxu1 }
 0xa55   :  { %v16560_v36 = vpop.f32.mrf.mxu0  ;;  %v16518_v32 = vpop.f32.mrf.mxu1 }
 0xa57   :  { %v19761_v27 = vpop.f32.mrf.mxu0  ;;  %v16520_v24 = vpop.f32.mrf.mxu1 }
 0xa71   :  { %v19657_v6 = vpop.f32.mrf.mxu0 }
 0xa73   :  { %v19658_v18 = vpop.f32.mrf.mxu0 }
 0xa74   :  { %v19659_v60 = vadd.f32 %v19658_v18, %v19657_v6 }
 0xa75   :  { %v19660_v52 = vpop.f32.mrf.mxu0 }
 0xa76   :  { %v16898_v35 = vadd.f32 %v19659_v60, %v16557_v2 }
 0xa77   :  { %v19661_v34 = vpop.f32.mrf.mxu0 }
 0xa78   :  { %v19662_v21 = vadd.f32 %v19661_v34, %v19660_v52  ;;  %v16923_v42 = vadd.f32 %v16917_v25, %v16898_v35 }
 0xa7a   :  { %v16901_v54 = vadd.f32 %v19662_v21, %v16560_v36  ;;  %v16929_v47 = vmax.f32 %v16923_v42, 0.0 }
 0xa7c   :  { %v16926_v56 = vadd.f32 %v16917_v25, %v16901_v54 }
 0xa7e   :  { %v16932_v39 = vmax.f32 %v16926_v56, 0.0 }
 0xa80   :  { %v16935_v9 = vpack.c.bf16 %v16932_v39, %v16929_v47 }
 0xa82   :  { %19779 = vmatmul.mubr.bf16.vlgmr.msra.gmra.mxu1 %v16935_v9 }
 0xa91   :  { %v16854_v46 = vpop.f32.mrf.mxu1 }
 0xa92   :  { %v16855_v41 = vadd.f32 %v16854_v46, %v16514_v53 }
 0xa93   :  { %v16856_v61 = vpop.f32.mrf.mxu1 }
 0xa94   :  { %v16857_v10 = vadd.f32 %v16856_v61, %v16516_v8  ;;  %v16921_v63 = vadd.f32 %v16909_v13, %v16855_v41 }
 0xa95   :  { %v16858_v62 = vpop.f32.mrf.mxu1 }
 0xa96   :  { %v16859_v59 = vadd.f32 %v16858_v62, %v16518_v32  ;;  %v16922_v37 = vadd.f32 %v16913_v15, %v16857_v10  ;;  %v16927_v20 = vmax.f32 %v16921_v63, 0.0 }
 0xa97   :  { %v16860_v26 = vpop.f32.mrf.mxu1 }
 0xa98   :  { %v16924_v48 = vadd.f32 %v16909_v13, %v16859_v59  ;;  %v16861_v17 = vadd.f32 %v16860_v26, %v16520_v24  ;;  %v16928_v23 = vmax.f32 %v16922_v37, 0.0 }
 0xa9a   :  { %v16925_v0 = vadd.f32 %v16913_v15, %v16861_v17  ;;  %v16930_v38 = vmax.f32 %v16924_v48, 0.0 }
 0xa9c   :  { %v16931_v58 = vmax.f32 %v16925_v0, 0.0  ;;  %v16933_v4 = vpack.c.bf16 %v16930_v38, %v16927_v20 }
 0xa9e   :  { %v16934_v28 = vpack.c.bf16 %v16931_v58, %v16928_v23 }
 0xaa0   :  { %17167 = vmatprep.mubr.bf16.mxu0 %v16934_v28 }
 0xaa1   :  { %17168 = vmatmul.mubr.bf16.vlgmr.msra.gmra.mxu0 %v16933_v4 }
 0xb42   :  { %v17210_v11 = vpop.f32.mrf.mxu1 }
 0xb44   :  { %v19780_v12 = vpop.f32.mrf.mxu1 }
 0xb46   :  { %v17213_v16 = vpop.f32.mrf.mxu1 }
 0xb48   :  { %v19781_v31 = vpop.f32.mrf.mxu1 }
 0xb61   :  { %v19679_v51 = vpop.f32.mrf.mxu0 }
 0xb63   :  { %v19680_v1 = vpop.f32.mrf.mxu0 }
 0xb64   :  { %v19681_v29 = vadd.f32 %v19680_v1, %v19679_v51 }
 0xb65   :  { %v19682_v44 = vpop.f32.mrf.mxu0 }
 0xb66   :  { %v17170_v33 = vadd.f32 %v19681_v29, %v19300_v57 }
 0xb67   :  { %v19683_v45 = vpop.f32.mrf.mxu0 }
 0xb68   :  { %v17211_v19 = vadd.f32 %v17210_v11, %v17170_v33  ;;  %v19684_v22 = vadd.f32 %v19683_v45, %v19682_v44 }
 0xb6a   :  { %17217 = vst [vmem:[#allocation25] sm:$0xff] %v17211_v19  ;;  %v17173_v50 = vadd.f32 %v19684_v22, %v19300_v57 }
 0xb6c   :  { %v17214_v7 = vadd.f32 %v17213_v16, %v17173_v50 }
 0xb6e   :  { %17218 = vst [vmem:[#allocation25 + $0x8] sm:$0xff] %v17214_v7 }
 0xb6f   :  { %17223 = vsyncadd [#allocation4], 224  ;;  %s23147_s12 = smov [#allocation25]  }
 0xb70   :  { %s17224_s13 = sshll.u32 %s23147_s12, 4  ;;  %s17225_s13 = int_to_ptr.vmem [resolvable:$true] %s17224_s13 }
 0xb71   :  { %s23081_s3 = scalar_lea.vmem %s17225_s13, 32  ;;  %s23085_s16 = scalar_lea.vmem %s17225_s13, 256 }
 0xb72   :  { %p23082_p0 = scmp.ne.s32.totalorder %s17225_s13, %s23081_s3  ;;  %p23086_p1 = scmp.lt.s32.totalorder %s17225_s13, %s17225_s13 }
 0xb73   :  { %p23087_p2 = scmp.lt.s32.totalorder %s23085_s16, %s23081_s3 }
 0xb75   :  { %p23088_p3 = por %p23087_p2, %p23086_p1 }
 0xb77   :  { %p23089_p4 = pnand %p23088_p3, %p23082_p0 }
 0xb79   :  { %23092 = shalt.err (!%p23089_p4)
}
 0xb7a   :  { %s23148_s19 = smov 32   ;;  %s23149_s9 = smov 2  }
 0xb7b   :  { %17230 = dma.vmem_to_hbm [thread:$0]  %s17225_s13, 32, %s24106_s14, [#allocation4], %s23148_s19, %s23148_s19, %s23149_s9  }
 0xb7c   :  { %23117 = dma.done.wait [#allocation4], 256  }
 0xb7d   :  { %23118 = vsyncadd [#allocation4], 4294967040 }
 0xb7e   :  { %17234 = vsyncpa [#allocation3], 1 }
 0xb7f   :  { %17235 = vsyncpa [#allocation6], 1 }
 0xb80   :  { %17236 = vsyncpa [#allocation9], 1 }
 0xb81   :  { %17237 = vsyncpa [#allocation12], 1 }
 0xb82   :  { %17238 = vsyncpa [#allocation15], 1 }
 0xb83   :  { %17239 = vsyncpa [#allocation18], 1 }
 0xb84   :  { %17240 = vsyncpa [#allocation21], 1 }
 0xb85   :  { %17241 = vsyncpa [#allocation24], 1 }
 0xb86   :  { %17242 = vsyncpa [#allocation4], 1 }

</bundles_post_ra>
